<compile_context>
chip_gen: v5e
topology: v5e:2x2
jax: 0.10.0
libtpu: 0.0.40
codegen_flags: <defaults>
</compile_context>

<pallas_src>
import functools
import math

import jax
import jax.numpy as jnp
from jax import lax
from jax.experimental import pallas as pl
from jax.experimental.pallas import tpu as pltpu

MM_DTYPE = jnp.bfloat16  # MXU operand dtype for the projections (accumulation is f32)


# ----------------------------------------------------------------------------
# helpers
# ----------------------------------------------------------------------------
def _pick_tile(m, cap=512):
    """Largest row tile <= cap that divides m and is a multiple of 8 (else full m)."""
    if m % 8 != 0 or m <= 8:
        return m
    tm = min(m, cap)
    tm -= tm % 8
    while m % tm != 0:
        tm -= 8
    return max(tm, 8)


def _pick_lane_tile(n, cap=512):
    """Lane (last-dim) tile: full n when small, else a 128-multiple divisor <= cap."""
    if n <= cap or n % 128 != 0:
        return n
    t = cap - (cap % 128)
    while t >= 128 and n % t != 0:
        t -= 128
    return t if t >= 128 else n


def _pick_head_block(bh, s, dh, budget_bytes=4 << 20):
    """How many (batch*head) attention slices to process per grid step."""
    per = 4 * (s * s + 4 * s * dh)
    blk = max(1, min(bh, budget_bytes // max(per, 1)))
    while bh % blk != 0:
        blk -= 1
    return blk


def _pick_gru_batch(n):
    """Split the batch into two chunks when cleanly possible (v7x: one per TC)."""
    if n % 16 == 0 and n >= 16:
        return n // 2
    return n


# ----------------------------------------------------------------------------
# plain matmul + bias (QKV projection, GRU input projection)
# ----------------------------------------------------------------------------
def _mm_kernel(x_ref, w_ref, b_ref, o_ref):
    x = x_ref[...].astype(MM_DTYPE)
    w = w_ref[...].astype(MM_DTYPE)
    y = jnp.dot(x, w, preferred_element_type=jnp.float32) + b_ref[...]
    o_ref[...] = y.astype(o_ref.dtype)


def matmul_bias(x, w, b):
    m, k = x.shape
    k2, n = w.shape
    assert k == k2 and b.shape == (1, n)
    tm = _pick_tile(m)
    return pl.pallas_call(
        _mm_kernel,
        out_shape=jax.ShapeDtypeStruct((m, n), jnp.float32),
        grid=(m // tm,),
        in_specs=[
            pl.BlockSpec((tm, k), lambda i: (i, 0)),
            pl.BlockSpec((k, n), lambda i: (0, 0)),
            pl.BlockSpec((1, n), lambda i: (0, 0)),
        ],
        out_specs=pl.BlockSpec((tm, n), lambda i: (i, 0)),
        compiler_params=pltpu.CompilerParams(dimension_semantics=("parallel",)),
        cost_estimate=pl.CostEstimate(
            flops=2 * m * k * n, transcendentals=0,
            bytes_accessed=4 * (m * k + k * n + m * n)),
    )(x, w, b)


# ----------------------------------------------------------------------------
# fused: matmul + bias + residual add + LayerNorm   (attention out_proj + norm1)
# ----------------------------------------------------------------------------
def _mm_res_ln_kernel(x_ref, w_ref, b_ref, r_ref, g_ref, be_ref, o_ref, *, eps):
    x = x_ref[...].astype(MM_DTYPE)
    w = w_ref[...].astype(MM_DTYPE)
    y = jnp.dot(x, w, preferred_element_type=jnp.float32) + b_ref[...]
    z = r_ref[...].astype(jnp.float32) + y
    mu = jnp.mean(z, axis=-1, keepdims=True)
    zc = z - mu
    var = jnp.mean(zc * zc, axis=-1, keepdims=True)
    o_ref[...] = (zc * lax.rsqrt(var + eps) * g_ref[...] + be_ref[...]).astype(o_ref.dtype)


def matmul_res_ln(x, w, b, res, gamma, beta, eps=1e-5):
    m, k = x.shape
    _, n = w.shape
    tm = _pick_tile(m)
    kern = functools.partial(_mm_res_ln_kernel, eps=eps)
    return pl.pallas_call(
        kern,
        out_shape=jax.ShapeDtypeStruct((m, n), jnp.float32),
        grid=(m // tm,),
        in_specs=[
            pl.BlockSpec((tm, k), lambda i: (i, 0)),
            pl.BlockSpec((k, n), lambda i: (0, 0)),
            pl.BlockSpec((1, n), lambda i: (0, 0)),
            pl.BlockSpec((tm, n), lambda i: (i, 0)),
            pl.BlockSpec((1, n), lambda i: (0, 0)),
            pl.BlockSpec((1, n), lambda i: (0, 0)),
        ],
        out_specs=pl.BlockSpec((tm, n), lambda i: (i, 0)),
        compiler_params=pltpu.CompilerParams(dimension_semantics=("parallel",)),
        cost_estimate=pl.CostEstimate(
            flops=2 * m * k * n + 8 * m * n, transcendentals=0,
            bytes_accessed=4 * (m * k + k * n + 3 * m * n)),
    )(x, w, b, res, gamma, beta)


# ----------------------------------------------------------------------------
# fused: ReLU + linear2 (split over fwd/bwd GRU halves) + residual + LayerNorm
# ----------------------------------------------------------------------------
def _ffn_res_ln_kernel(hf_ref, hb_ref, wf_ref, wb_ref, b_ref, r_ref, g_ref, be_ref,
                       o_ref, *, eps):
    hf = jnp.maximum(hf_ref[...].astype(jnp.float32), 0.0).astype(MM_DTYPE)
    hb = jnp.maximum(hb_ref[...].astype(jnp.float32), 0.0).astype(MM_DTYPE)
    y = jnp.dot(hf, wf_ref[...].astype(MM_DTYPE), preferred_element_type=jnp.float32)
    y = y + jnp.dot(hb, wb_ref[...].astype(MM_DTYPE), preferred_element_type=jnp.float32)
    y = y + b_ref[...]
    z = r_ref[...].astype(jnp.float32) + y
    mu = jnp.mean(z, axis=-1, keepdims=True)
    zc = z - mu
    var = jnp.mean(zc * zc, axis=-1, keepdims=True)
    o_ref[...] = (zc * lax.rsqrt(var + eps) * g_ref[...] + be_ref[...]).astype(o_ref.dtype)


def ffn_res_ln(hf, hb, wf, wb, b, res, gamma, beta, eps=1e-5):
    m, h = hf.shape
    _, n = wf.shape
    tm = _pick_tile(m)
    kern = functools.partial(_ffn_res_ln_kernel, eps=eps)
    return pl.pallas_call(
        kern,
        out_shape=jax.ShapeDtypeStruct((m, n), jnp.float32),
        grid=(m // tm,),
        in_specs=[
            pl.BlockSpec((tm, h), lambda i: (i, 0)),
            pl.BlockSpec((tm, h), lambda i: (i, 0)),
            pl.BlockSpec((h, n), lambda i: (0, 0)),
            pl.BlockSpec((h, n), lambda i: (0, 0)),
            pl.BlockSpec((1, n), lambda i: (0, 0)),
            pl.BlockSpec((tm, n), lambda i: (i, 0)),
            pl.BlockSpec((1, n), lambda i: (0, 0)),
            pl.BlockSpec((1, n), lambda i: (0, 0)),
        ],
        out_specs=pl.BlockSpec((tm, n), lambda i: (i, 0)),
        compiler_params=pltpu.CompilerParams(dimension_semantics=("parallel",)),
        cost_estimate=pl.CostEstimate(
            flops=4 * m * h * n + 10 * m * n, transcendentals=0,
            bytes_accessed=4 * (2 * m * h + 2 * h * n + 3 * m * n)),
    )(hf, hb, wf, wb, b, res, gamma, beta)


# ----------------------------------------------------------------------------
# attention core: softmax(q k^T * scale) v, many (batch*head) slices per step
# ----------------------------------------------------------------------------
def _attn_kernel(q_ref, k_ref, v_ref, o_ref, *, scale):
    q = q_ref[...].astype(jnp.float32) * scale
    k = k_ref[...].astype(jnp.float32)
    v = v_ref[...].astype(jnp.float32)
    s = jnp.einsum('bqd,bkd->bqk', q, k, preferred_element_type=jnp.float32)
    s = s - jnp.max(s, axis=-1, keepdims=True)
    p = jnp.exp(s)
    denom = jnp.sum(p, axis=-1, keepdims=True)
    p = p * pl.reciprocal(denom, approx=True)
    o = jnp.einsum('bqk,bkd->bqd', p, v, preferred_element_type=jnp.float32)
    o_ref[...] = o.astype(o_ref.dtype)


def mha_core(q, k, v, scale):
    bh, s, dh = q.shape
    hblk = _pick_head_block(bh, s, dh)
    kern = functools.partial(_attn_kernel, scale=scale)
    spec = pl.BlockSpec((hblk, s, dh), lambda i: (i, 0, 0))
    return pl.pallas_call(
        kern,
        out_shape=jax.ShapeDtypeStruct((bh, s, dh), jnp.float32),
        grid=(bh // hblk,),
        in_specs=[spec, spec, spec],
        out_specs=spec,
        compiler_params=pltpu.CompilerParams(dimension_semantics=("parallel",)),
        cost_estimate=pl.CostEstimate(
            flops=4 * bh * s * s * dh,
            transcendentals=bh * s * s,
            bytes_accessed=4 * 4 * bh * s * dh),
    )(q, k, v)


# ----------------------------------------------------------------------------
# GRU recurrence kernel (one direction).  gx = x @ W_ih^T + b_ih is precomputed
# with matmul_bias; the sequential recurrence runs here with a single fused
# h @ Whh[r|z|n] matmul per step.  `reverse` indexes time backwards (PyTorch
# bidirectional semantics) without materializing a reversed copy of gx.
# ----------------------------------------------------------------------------
def _gru_kernel(gx_ref, whh_ref, bhh_ref, o_ref, *, reverse, hidden):
    S, nblk, _ = gx_ref.shape
    H = hidden
    whh = whh_ref[...].astype(jnp.float32)   # (H, 3H)   gates [r | z | n]
    bhh = bhh_ref[...].astype(jnp.float32)   # (1, 3H)

    def body(s, h):
        t = (S - 1 - s) if reverse else s
        gxt = gx_ref[t].astype(jnp.float32)                    # (nblk, 3H)
        hh = jnp.dot(h, whh, preferred_element_type=jnp.float32) + bhh
        r = jax.nn.sigmoid(gxt[:, :H] + hh[:, :H])
        z = jax.nn.sigmoid(gxt[:, H:2 * H] + hh[:, H:2 * H])
        n = jnp.tanh(gxt[:, 2 * H:] + r * hh[:, 2 * H:])
        h_new = (1.0 - z) * n + z * h
        o_ref[t] = h_new.astype(o_ref.dtype)
        return h_new

    h0 = jnp.zeros((nblk, H), jnp.float32)
    # Unroll short recurrences so the LLO scheduler can overlap the per-step
    # matmul with the gate VPU/EUP work of the neighboring steps.
    unroll = True if S <= 16 else 4
    lax.fori_loop(0, S, body, h0, unroll=unroll)


def gru_dir(gx, whh, bhh, reverse):
    S, N, H3 = gx.shape
    H = H3 // 3
    nblk = _pick_gru_batch(N)
    kern = functools.partial(_gru_kernel, reverse=reverse, hidden=H)
    return pl.pallas_call(
        kern,
        out_shape=jax.ShapeDtypeStruct((S, N, H), jnp.float32),
        grid=(N // nblk,),
        in_specs=[
            pl.BlockSpec((S, nblk, H3), lambda i: (0, i, 0)),
            pl.BlockSpec((H, H3), lambda i: (0, 0)),
            pl.BlockSpec((1, H3), lambda i: (0, 0)),
        ],
        out_specs=pl.BlockSpec((S, nblk, H), lambda i: (0, i, 0)),
        compiler_params=pltpu.CompilerParams(dimension_semantics=("parallel",)),
        cost_estimate=pl.CostEstimate(
            flops=2 * S * N * H * H3 + 12 * S * N * H,
            transcendentals=3 * S * N * H,
            bytes_accessed=4 * (S * N * H3 + S * N * H + H * H3)),
    )(gx, whh, bhh)


# ----------------------------------------------------------------------------
# 1x1 conv in NCHW: per-batch W @ x_flat matmul (no layout transposes), fused PReLU
# ----------------------------------------------------------------------------
def _conv1x1_kernel(x_ref, w_ref, b_ref, a_ref, o_ref, *, pre_prelu, post_prelu):
    x = x_ref[0].astype(jnp.float32)                    # (Cin, hw_t)
    alpha = a_ref[0, 0]
    if pre_prelu:
        x = jnp.where(x > 0, x, alpha * x)
    y = jnp.dot(w_ref[...].astype(MM_DTYPE), x.astype(MM_DTYPE),
                preferred_element_type=jnp.float32)
    y = y + b_ref[...]
    if post_prelu:
        y = jnp.where(y > 0, y, alpha * y)
    o_ref[0] = y.astype(o_ref.dtype)


def conv1x1(x3, w, b, alpha, pre_prelu=False, post_prelu=False):
    bb, cin, hw = x3.shape
    cout = w.shape[0]
    hw_t = _pick_lane_tile(hw)
    kern = functools.partial(_conv1x1_kernel, pre_prelu=pre_prelu, post_prelu=post_prelu)
    return pl.pallas_call(
        kern,
        out_shape=jax.ShapeDtypeStruct((bb, cout, hw), jnp.float32),
        grid=(bb, hw // hw_t),
        in_specs=[
            pl.BlockSpec((1, cin, hw_t), lambda i, j: (i, 0, j)),
            pl.BlockSpec((cout, cin), lambda i, j: (0, 0)),
            pl.BlockSpec((cout, 1), lambda i, j: (0, 0)),
            pl.BlockSpec(memory_space=pltpu.MemorySpace.SMEM),
        ],
        out_specs=pl.BlockSpec((1, cout, hw_t), lambda i, j: (i, 0, j)),
        compiler_params=pltpu.CompilerParams(dimension_semantics=("parallel", "parallel")),
        cost_estimate=pl.CostEstimate(
            flops=2 * bb * hw * cin * cout, transcendentals=0,
            bytes_accessed=4 * (bb * cin * hw + cin * cout + bb * cout * hw)),
    )(x3, w, b, alpha)


# ----------------------------------------------------------------------------
# fused GroupNorm(1, C) + residual add:  out = base + GN(x)  (eps = 1e-8)
# The output is aliased onto the `base` input buffer (the running feature map is
# updated in place; no extra HBM allocation / writeback of the residual).
# ----------------------------------------------------------------------------
def _gn_add_kernel(base_ref, x_ref, g_ref, b_ref, o_ref, *, eps):
    x = x_ref[0].astype(jnp.float32)                    # (C, HW)
    mu = jnp.mean(x)
    xc = x - mu
    var = jnp.mean(xc * xc)
    y = xc * lax.rsqrt(var + eps)
    o_ref[0] = (base_ref[0].astype(jnp.float32) + y * g_ref[...] + b_ref[...]
                ).astype(o_ref.dtype)


def group_norm_add(base3, x3, gamma, beta, eps=1e-8):
    b, c, hw = x3.shape
    kern = functools.partial(_gn_add_kernel, eps=eps)
    return pl.pallas_call(
        kern,
        out_shape=jax.ShapeDtypeStruct((b, c, hw), jnp.float32),
        grid=(b,),
        in_specs=[
            pl.BlockSpec((1, c, hw), lambda i: (i, 0, 0)),
            pl.BlockSpec((1, c, hw), lambda i: (i, 0, 0)),
            pl.BlockSpec((c, 1), lambda i: (0, 0)),
            pl.BlockSpec((c, 1), lambda i: (0, 0)),
        ],
        out_specs=pl.BlockSpec((1, c, hw), lambda i: (i, 0, 0)),
        input_output_aliases={0: 0},
        compiler_params=pltpu.CompilerParams(dimension_semantics=("parallel",)),
        cost_estimate=pl.CostEstimate(
            flops=8 * b * c * hw, transcendentals=0,
            bytes_accessed=4 * 3 * b * c * hw),
    )(base3, x3, gamma, beta)


# ----------------------------------------------------------------------------
# composite ops (glue in plain JAX, compute in the Pallas kernels above)
# ----------------------------------------------------------------------------
def transformer_encoder_layer(src, p, nhead):
    """src: (S, N, d) -> (S, N, d).  Dropout probabilities are 0 (identity)."""
    S, N, d = src.shape
    dh = d // nhead
    H = 2 * d  # GRU hidden size

    x2 = src.reshape(S * N, d)

    # --- multi-head self-attention ---
    qkv = matmul_bias(x2, p["qkv_w"], p["qkv_b"])                  # (S*N, 3d)
    qkv = jnp.transpose(qkv.reshape(S, N, 3, nhead, dh), (2, 1, 3, 0, 4))
    q = qkv[0].reshape(N * nhead, S, dh)
    k = qkv[1].reshape(N * nhead, S, dh)
    v = qkv[2].reshape(N * nhead, S, dh)
    attn = mha_core(q, k, v, scale=1.0 / math.sqrt(dh))            # (N*nh, S, dh)
    attn = jnp.transpose(attn.reshape(N, nhead, S, dh), (2, 0, 1, 3)).reshape(S * N, d)

    # fused: out_proj + residual + LayerNorm(norm1)
    src_n = matmul_res_ln(attn, p["out_w"], p["out_b"], x2,
                          p["norm1_g"], p["norm1_b"])              # (S*N, d)

    # --- bidirectional GRU (input projections via MXU, recurrence in-kernel) ---
    gx_f = matmul_bias(src_n, p["gru_f"]["wih"], p["gru_f"]["bih"]).reshape(S, N, 3 * H)
    gx_b = matmul_bias(src_n, p["gru_b"]["wih"], p["gru_b"]["bih"]).reshape(S, N, 3 * H)
    hf = gru_dir(gx_f, p["gru_f"]["whh"], p["gru_f"]["bhh"], reverse=False)  # (S, N, H)
    hb = gru_dir(gx_b, p["gru_b"]["whh"], p["gru_b"]["bhh"], reverse=True)   # (S, N, H)

    # fused: relu + linear2(split fwd/bwd, no concat) + residual + LayerNorm(norm2)
    out = ffn_res_ln(hf.reshape(S * N, H), hb.reshape(S * N, H),
                     p["lin2_wf"], p["lin2_wb"], p["lin2_b"],
                     src_n, p["norm2_g"], p["norm2_b"])            # (S*N, d)
    return out.reshape(S, N, d)


def dual_transformer(x, params, nhead=4):
    b, c, dim2, dim1 = x.shape
    hw = dim2 * dim1
    C = params["in_w"].shape[0]

    out = conv1x1(x.reshape(b, c, hw), params["in_w"], params["in_b"],
                  params["in_alpha"], post_prelu=True)             # (b, C, hw)

    for lp in params["layers"]:
        out4 = out.reshape(b, C, dim2, dim1)

        # row branch: seq = dim1, batch = b * dim2
        row_in = jnp.transpose(out4, (3, 0, 2, 1)).reshape(dim1, b * dim2, C)
        row_out = transformer_encoder_layer(row_in, lp["row"], nhead)
        row_out = jnp.transpose(row_out.reshape(dim1, b, dim2, C),
                                (1, 3, 2, 0)).reshape(b, C, hw)
        out = group_norm_add(out, row_out, lp["row_gn_g"], lp["row_gn_b"])

        out4 = out.reshape(b, C, dim2, dim1)

        # col branch: seq = dim2, batch = b * dim1
        col_in = jnp.transpose(out4, (2, 0, 3, 1)).reshape(dim2, b * dim1, C)
        col_out = transformer_encoder_layer(col_in, lp["col"], nhead)
        col_out = jnp.transpose(col_out.reshape(dim2, b, dim1, C),
                                (1, 3, 0, 2)).reshape(b, C, hw)
        out = group_norm_add(out, col_out, lp["col_gn_g"], lp["col_gn_b"])

    y = conv1x1(out, params["out_w"], params["out_b"], params["out_alpha"],
                pre_prelu=True)                                    # (b, out, hw)
    return y.reshape(b, -1, dim2, dim1)


# ----------------------------------------------------------------------------
# parameters: synthetic PyTorch-layout init + one-time kernel-layout preparation
# ----------------------------------------------------------------------------
def init_params(key, input_size, output_size, num_layers=1):
    """PyTorch-layout synthetic parameters (shapes match the nn.Module)."""
    C = input_size // 2
    H = 2 * C
    ks = iter(jax.random.split(key, 1024))

    def w(shape, scale=0.1):
        return (scale * jax.random.normal(next(ks), shape)).astype(jnp.float32)

    def enc_layer():
        d = C
        return {
            "in_proj_w": w((3 * d, d)),
            "in_proj_b": w((3 * d,)),
            "out_proj_w": w((d, d)),
            "out_proj_b": w((d,)),
            "norm1_g": jnp.ones((d,), jnp.float32),
            "norm1_b": jnp.zeros((d,), jnp.float32),
            "gru_wih_f": w((3 * H, d)),
            "gru_whh_f": w((3 * H, H)),
            "gru_bih_f": w((3 * H,)),
            "gru_bhh_f": w((3 * H,)),
            "gru_wih_b": w((3 * H, d)),
            "gru_whh_b": w((3 * H, H)),
            "gru_bih_b": w((3 * H,)),
            "gru_bhh_b": w((3 * H,)),
            "lin2_w": w((d, 2 * H)),
            "lin2_b": w((d,)),
            "norm2_g": jnp.ones((d,), jnp.float32),
            "norm2_b": jnp.zeros((d,), jnp.float32),
        }

    layers = []
    for _ in range(num_layers):
        layers.append({
            "row": enc_layer(),
            "col": enc_layer(),
            "row_gn_g": jnp.ones((C,), jnp.float32),
            "row_gn_b": jnp.zeros((C,), jnp.float32),
            "col_gn_g": jnp.ones((C,), jnp.float32),
            "col_gn_b": jnp.zeros((C,), jnp.float32),
        })

    return {
        "in_w": w((C, input_size)),                 # Conv2d(in, C, 1) weight (squeezed)
        "in_b": w((C,)),
        "in_alpha": jnp.array(0.25, jnp.float32),   # nn.PReLU() learnable scalar
        "layers": layers,
        "out_w": w((output_size, C)),
        "out_b": w((output_size,)),
        "out_alpha": jnp.array(0.25, jnp.float32),
    }


def prepare_params(raw):
    """One-time conversion to kernel layout: pre-transposed weights, gates
    concatenated as [r|z|n], biases shaped for in-kernel broadcast."""
    def prep_enc(lp):
        d = lp["norm1_g"].shape[0]
        H = 2 * d
        w2t = lp["lin2_w"].T                          # (2H, d)
        out = {
            "qkv_w": lp["in_proj_w"].T,               # (d, 3d) columns [q|k|v]
            "qkv_b": lp["in_proj_b"].reshape(1, -1),
            "out_w": lp["out_proj_w"].T,              # (d, d)
            "out_b": lp["out_proj_b"].reshape(1, -1),
            "norm1_g": lp["norm1_g"].reshape(1, -1),
            "norm1_b": lp["norm1_b"].reshape(1, -1),
            "norm2_g": lp["norm2_g"].reshape(1, -1),
            "norm2_b": lp["norm2_b"].reshape(1, -1),
            "lin2_wf": w2t[:H],                       # multiplies forward GRU output
            "lin2_wb": w2t[H:],                       # multiplies backward GRU output
            "lin2_b": lp["lin2_b"].reshape(1, -1),
        }
        for tag in ("f", "b"):
            out["gru_" + tag] = {
                "wih": lp["gru_wih_" + tag].T,        # (d, 3H) gates [r|z|n]
                "bih": lp["gru_bih_" + tag].reshape(1, -1),
                "whh": lp["gru_whh_" + tag].T,        # (H, 3H) gates [r|z|n]
                "bhh": lp["gru_bhh_" + tag].reshape(1, -1),
            }
        return out

    layers = []
    for lp in raw["layers"]:
        layers.append({
            "row": prep_enc(lp["row"]),
            "col": prep_enc(lp["col"]),
            "row_gn_g": lp["row_gn_g"].reshape(-1, 1),
            "row_gn_b": lp["row_gn_b"].reshape(-1, 1),
            "col_gn_g": lp["col_gn_g"].reshape(-1, 1),
            "col_gn_b": lp["col_gn_b"].reshape(-1, 1),
        })
    return {
        "in_w": raw["in_w"],
        "in_b": raw["in_b"].reshape(-1, 1),
        "in_alpha": jnp.reshape(raw["in_alpha"], (1, 1)).astype(jnp.float32),
        "out_w": raw["out_w"],
        "out_b": raw["out_b"].reshape(-1, 1),
        "out_alpha": jnp.reshape(raw["out_alpha"], (1, 1)).astype(jnp.float32),
        "layers": layers,
    }


# ----------------------------------------------------------------------------
if __name__ == "__main__":
    key = jax.random.PRNGKey(0)
    kx, kp = jax.random.split(key)

    input_size, output_size = 32, 32   # d_model = input_size // 2 = 16, nhead = 4
    b, dim2, dim1 = 2, 8, 8

    x = jax.random.normal(kx, (b, input_size, dim2, dim1), jnp.float32)
    raw_params = init_params(kp, input_size, output_size, num_layers=1)
    params = prepare_params(raw_params)   # one-time, outside the traced forward

    fwd = jax.jit(lambda inp: dual_transformer(inp, params, nhead=4))
    out = fwd(x)
    jax.block_until_ready(out)

    assert out.shape == (b, output_size, dim2, dim1), out.shape
    assert bool(jnp.all(jnp.isfinite(out)))
    print("KERNEL_OK")
</pallas_src>

<mosaic_0001>
module attributes {stable_mosaic.version = 11 : i64} {
  func.func @_conv1x1_kernel(%arg0: i32, %arg1: i32, %arg2: memref<1x32x64xf32, #tpu.memory_space<vmem>>, %arg3: memref<16x32xf32, #tpu.memory_space<vmem>>, %arg4: memref<16x1xf32, #tpu.memory_space<vmem>>, %arg5: memref<1x1xf32, #tpu.memory_space<smem>>, %arg6: memref<1x16x64xf32, #tpu.memory_space<vmem>>) attributes {dimension_semantics = [#tpu.dimension_semantics<parallel>, #tpu.dimension_semantics<parallel>], iteration_bounds = array<i64: 2, 1>, scalar_prefetch = 0 : i64, scratch_operands = 0 : i64, tpu.core_type = #tpu.core_type<tc>, window_params = [{transform_indices = @transform_0, window_bounds = array<i64: 1, 32, 64>}, {pipeline_mode = #tpu.pipeline_mode<synchronous>, transform_indices = @transform_1, window_bounds = array<i64: 16, 32>}, {pipeline_mode = #tpu.pipeline_mode<synchronous>, transform_indices = @transform_2, window_bounds = array<i64: 16, 1>}, {transform_indices = @transform_3, window_bounds = array<i64: 1, 1>}, {transform_indices = @transform_4, window_bounds = array<i64: 1, 16, 64>}]} {
    %c0 = arith.constant 0 : index
    %c0_0 = arith.constant 0 : index
    %c0_1 = arith.constant 0 : index
    %0 = vector.load %arg2[%c0, %c0_0, %c0_1] : memref<1x32x64xf32, #tpu.memory_space<vmem>>, vector<1x32x64xf32>
    %1 = vector.shape_cast %0 : vector<1x32x64xf32> to vector<32x64xf32>
    %c0_2 = arith.constant 0 : index
    %c0_3 = arith.constant 0 : index
    %2 = memref.load %arg5[%c0_2, %c0_3] : memref<1x1xf32, #tpu.memory_space<smem>>
    %c0_4 = arith.constant 0 : index
    %c0_5 = arith.constant 0 : index
    %3 = vector.load %arg3[%c0_4, %c0_5] : memref<16x32xf32, #tpu.memory_space<vmem>>, vector<16x32xf32>
    %4 = arith.truncf %3 : vector<16x32xf32> to vector<16x32xbf16>
    %5 = arith.truncf %1 : vector<32x64xf32> to vector<32x64xbf16>
    %cst = arith.constant dense<0.000000e+00> : vector<16x64xf32>
    %6 = tpu.matmul %4, %5, %cst {dimension_numbers = #tpu.dot_dimension_numbers<[1], [0], [0], [1], [0, 0, 1, 1], [], []>} : vector<16x32xbf16>, vector<32x64xbf16>, vector<16x64xf32> -> vector<16x64xf32>
    %c0_6 = arith.constant 0 : index
    %c0_7 = arith.constant 0 : index
    %7 = vector.load %arg4[%c0_6, %c0_7] : memref<16x1xf32, #tpu.memory_space<vmem>>, vector<16x1xf32>
    %8 = vector.broadcast %7 : vector<16x1xf32> to vector<16x64xf32>
    %9 = arith.addf %6, %8 : vector<16x64xf32>
    %cst_8 = arith.constant 0.000000e+00 : f32
    %10 = vector.broadcast %cst_8 : f32 to vector<16x64xf32>
    %11 = arith.cmpf ogt, %9, %10 : vector<16x64xf32>
    %12 = vector.broadcast %2 : f32 to vector<16x64xf32>
    %13 = arith.mulf %12, %9 : vector<16x64xf32>
    %14 = arith.select %11, %9, %13 : vector<16x64xi1>, vector<16x64xf32>
    %c0_9 = arith.constant 0 : index
    %c0_10 = arith.constant 0 : index
    %c0_11 = arith.constant 0 : index
    %15 = vector.load %arg6[%c0_9, %c0_10, %c0_11] : memref<1x16x64xf32, #tpu.memory_space<vmem>>, vector<1x16x64xf32>
    %16 = vector.shape_cast %15 : vector<1x16x64xf32> to vector<16x64xf32>
    %17 = vector.shape_cast %14 : vector<16x64xf32> to vector<1x16x64xf32>
    tpu.vector_store %arg6[%c0_9, %c0_10, %c0_11], %17 {strides = array<i32>} : memref<1x16x64xf32, #tpu.memory_space<vmem>>, vector<1x16x64xf32>,
    return
  }
  func.func @transform_0(%arg0: i32, %arg1: i32) -> (i32, i32, i32) {
    %c0_i32 = arith.constant 0 : i32
    %c0_i32_0 = arith.constant 0 : i32
    return %arg0, %c0_i32, %arg1 : i32, i32, i32
  }
  func.func @transform_1(%arg0: i32, %arg1: i32) -> (i32, i32) {
    %c0_i32 = arith.constant 0 : i32
    %c0_i32_0 = arith.constant 0 : i32
    %c0_i32_1 = arith.constant 0 : i32
    return %c0_i32, %c0_i32_0 : i32, i32
  }
  func.func @transform_2(%arg0: i32, %arg1: i32) -> (i32, i32) {
    %c0_i32 = arith.constant 0 : i32
    %c0_i32_0 = arith.constant 0 : i32
    %c0_i32_1 = arith.constant 0 : i32
    return %c0_i32, %c0_i32_0 : i32, i32
  }
  func.func @transform_3(%arg0: i32, %arg1: i32) -> (i32, i32) {
    %c0_i32 = arith.constant 0 : i32
    %c0_i32_0 = arith.constant 0 : i32
    %c0_i32_1 = arith.constant 0 : i32
    return %c0_i32, %c0_i32_0 : i32, i32
  }
  func.func @transform_4(%arg0: i32, %arg1: i32) -> (i32, i32, i32) {
    %c0_i32 = arith.constant 0 : i32
    %c0_i32_0 = arith.constant 0 : i32
    return %arg0, %c0_i32, %arg1 : i32, i32, i32
  }
}

module attributes {stable_mosaic.version = 11 : i64} {
  func.func @_mm_kernel(%arg0: i32, %arg1: memref<128x16xf32, #tpu.memory_space<vmem>>, %arg2: memref<16x48xf32, #tpu.memory_space<vmem>>, %arg3: memref<1x48xf32, #tpu.memory_space<vmem>>, %arg4: memref<128x48xf32, #tpu.memory_space<vmem>>) attributes {dimension_semantics = [#tpu.dimension_semantics<parallel>], iteration_bounds = array<i64: 1>, scalar_prefetch = 0 : i64, scratch_operands = 0 : i64, tpu.core_type = #tpu.core_type<tc>, window_params = [{transform_indices = @transform_0, window_bounds = array<i64: 128, 16>}, {pipeline_mode = #tpu.pipeline_mode<synchronous>, transform_indices = @transform_1, window_bounds = array<i64: 16, 48>}, {pipeline_mode = #tpu.pipeline_mode<synchronous>, transform_indices = @transform_2, window_bounds = array<i64: 1, 48>}, {transform_indices = @transform_3, window_bounds = array<i64: 128, 48>}]} {
    %c0 = arith.constant 0 : index
    %c0_0 = arith.constant 0 : index
    %0 = vector.load %arg1[%c0, %c0_0] : memref<128x16xf32, #tpu.memory_space<vmem>>, vector<128x16xf32>
    %1 = arith.truncf %0 : vector<128x16xf32> to vector<128x16xbf16>
    %c0_1 = arith.constant 0 : index
    %c0_2 = arith.constant 0 : index
    %2 = vector.load %arg2[%c0_1, %c0_2] : memref<16x48xf32, #tpu.memory_space<vmem>>, vector<16x48xf32>
    %3 = arith.truncf %2 : vector<16x48xf32> to vector<16x48xbf16>
    %cst = arith.constant dense<0.000000e+00> : vector<128x48xf32>
    %4 = tpu.matmul %1, %3, %cst {dimension_numbers = #tpu.dot_dimension_numbers<[1], [0], [0], [1], [0, 0, 1, 1], [], []>} : vector<128x16xbf16>, vector<16x48xbf16>, vector<128x48xf32> -> vector<128x48xf32>
    %c0_3 = arith.constant 0 : index
    %c0_4 = arith.constant 0 : index
    %5 = vector.load %arg3[%c0_3, %c0_4] : memref<1x48xf32, #tpu.memory_space<vmem>>, vector<1x48xf32>
    %6 = vector.broadcast %5 : vector<1x48xf32> to vector<128x48xf32>
    %7 = arith.addf %4, %6 : vector<128x48xf32>
    %c0_5 = arith.constant 0 : index
    %c0_6 = arith.constant 0 : index
    %8 = vector.load %arg4[%c0_5, %c0_6] : memref<128x48xf32, #tpu.memory_space<vmem>>, vector<128x48xf32>
    tpu.vector_store %arg4[%c0_5, %c0_6], %7 {strides = array<i32>} : memref<128x48xf32, #tpu.memory_space<vmem>>, vector<128x48xf32>,
    return
  }
  func.func @transform_0(%arg0: i32) -> (i32, i32) {
    %c0_i32 = arith.constant 0 : i32
    %c0_i32_0 = arith.constant 0 : i32
    return %arg0, %c0_i32 : i32, i32
  }
  func.func @transform_1(%arg0: i32) -> (i32, i32) {
    %c0_i32 = arith.constant 0 : i32
    %c0_i32_0 = arith.constant 0 : i32
    %c0_i32_1 = arith.constant 0 : i32
    return %c0_i32, %c0_i32_0 : i32, i32
  }
  func.func @transform_2(%arg0: i32) -> (i32, i32) {
    %c0_i32 = arith.constant 0 : i32
    %c0_i32_0 = arith.constant 0 : i32
    %c0_i32_1 = arith.constant 0 : i32
    return %c0_i32, %c0_i32_0 : i32, i32
  }
  func.func @transform_3(%arg0: i32) -> (i32, i32) {
    %c0_i32 = arith.constant 0 : i32
    %c0_i32_0 = arith.constant 0 : i32
    return %arg0, %c0_i32 : i32, i32
  }
}

module attributes {stable_mosaic.version = 11 : i64} {
  func.func @_attn_kernel(%arg0: i32, %arg1: memref<64x8x4xf32, #tpu.memory_space<vmem>>, %arg2: memref<64x8x4xf32, #tpu.memory_space<vmem>>, %arg3: memref<64x8x4xf32, #tpu.memory_space<vmem>>, %arg4: memref<64x8x4xf32, #tpu.memory_space<vmem>>) attributes {dimension_semantics = [#tpu.dimension_semantics<parallel>], iteration_bounds = array<i64: 1>, scalar_prefetch = 0 : i64, scratch_operands = 0 : i64, tpu.core_type = #tpu.core_type<tc>, window_params = [{transform_indices = @transform_0, window_bounds = array<i64: 64, 8, 4>}, {transform_indices = @transform_1, window_bounds = array<i64: 64, 8, 4>}, {transform_indices = @transform_2, window_bounds = array<i64: 64, 8, 4>}, {transform_indices = @transform_3, window_bounds = array<i64: 64, 8, 4>}]} {
    %c0 = arith.constant 0 : index
    %c0_0 = arith.constant 0 : index
    %c0_1 = arith.constant 0 : index
    %0 = vector.load %arg1[%c0, %c0_0, %c0_1] : memref<64x8x4xf32, #tpu.memory_space<vmem>>, vector<64x8x4xf32>
    %cst = arith.constant 5.000000e-01 : f32
    %1 = vector.broadcast %cst : f32 to vector<64x8x4xf32>
    %2 = arith.mulf %0, %1 : vector<64x8x4xf32>
    %c0_2 = arith.constant 0 : index
    %c0_3 = arith.constant 0 : index
    %c0_4 = arith.constant 0 : index
    %3 = vector.load %arg2[%c0_2, %c0_3, %c0_4] : memref<64x8x4xf32, #tpu.memory_space<vmem>>, vector<64x8x4xf32>
    %c0_5 = arith.constant 0 : index
    %c0_6 = arith.constant 0 : index
    %c0_7 = arith.constant 0 : index
    %4 = vector.load %arg3[%c0_5, %c0_6, %c0_7] : memref<64x8x4xf32, #tpu.memory_space<vmem>>, vector<64x8x4xf32>
    "tpu.trace_start"() <{level = 10 : i32, message = "bqd,bkd->bqk"}> : () -> ()
    %cst_8 = arith.constant dense<0.000000e+00> : vector<64x8x8xf32>
    %5 = tpu.matmul %2, %3, %cst_8 {dimension_numbers = #tpu.dot_dimension_numbers<[2], [2], [1], [1], [0, 0, 0, 1, 1, 1], [0], [0]>} : vector<64x8x4xf32>, vector<64x8x4xf32>, vector<64x8x8xf32> -> vector<64x8x8xf32>
    "tpu.trace_stop"() : () -> ()
    %cst_9 = arith.constant dense<0xFF800000> : vector<64x8xf32>
    %6 = vector.multi_reduction <maximumf>, %5, %cst_9 [2] : vector<64x8x8xf32> to vector<64x8xf32>
    %7 = vector.shape_cast %6 : vector<64x8xf32> to vector<64x8x1xf32>
    %8 = vector.broadcast %7 : vector<64x8x1xf32> to vector<64x8x8xf32>
    %9 = arith.subf %5, %8 : vector<64x8x8xf32>
    %10 = math.exp %9 : vector<64x8x8xf32>
    %cst_10 = arith.constant dense<0.000000e+00> : vector<64x8xf32>
    %11 = vector.multi_reduction <add>, %10, %cst_10 [2] : vector<64x8x8xf32> to vector<64x8xf32>
    %12 = vector.shape_cast %11 : vector<64x8xf32> to vector<64x8x1xf32>
    %13 = tpu.reciprocal %12 {approx = true} : vector<64x8x1xf32> -> vector<64x8x1xf32>
    %14 = vector.broadcast %13 : vector<64x8x1xf32> to vector<64x8x8xf32>
    %15 = arith.mulf %10, %14 : vector<64x8x8xf32>
    "tpu.trace_start"() <{level = 10 : i32, message = "bqk,bkd->bqd"}> : () -> ()
    %cst_11 = arith.constant dense<0.000000e+00> : vector<64x8x4xf32>
    %16 = tpu.matmul %15, %4, %cst_11 {dimension_numbers = #tpu.dot_dimension_numbers<[2], [1], [1], [2], [0, 0, 0, 1, 1, 2], [0], [0]>} : vector<64x8x8xf32>, vector<64x8x4xf32>, vector<64x8x4xf32> -> vector<64x8x4xf32>
    "tpu.trace_stop"() : () -> ()
    %c0_12 = arith.constant 0 : index
    %c0_13 = arith.constant 0 : index
    %c0_14 = arith.constant 0 : index
    %17 = vector.load %arg4[%c0_12, %c0_13, %c0_14] : memref<64x8x4xf32, #tpu.memory_space<vmem>>, vector<64x8x4xf32>
    tpu.vector_store %arg4[%c0_12, %c0_13, %c0_14], %16 {strides = array<i32>} : memref<64x8x4xf32, #tpu.memory_space<vmem>>, vector<64x8x4xf32>,
    return
  }
  func.func @transform_0(%arg0: i32) -> (i32, i32, i32) {
    %c0_i32 = arith.constant 0 : i32
    %c0_i32_0 = arith.constant 0 : i32
    %c0_i32_1 = arith.constant 0 : i32
    return %arg0, %c0_i32, %c0_i32_0 : i32, i32, i32
  }
  func.func @transform_1(%arg0: i32) -> (i32, i32, i32) {
    %c0_i32 = arith.constant 0 : i32
    %c0_i32_0 = arith.constant 0 : i32
    %c0_i32_1 = arith.constant 0 : i32
    return %arg0, %c0_i32, %c0_i32_0 : i32, i32, i32
  }
  func.func @transform_2(%arg0: i32) -> (i32, i32, i32) {
    %c0_i32 = arith.constant 0 : i32
    %c0_i32_0 = arith.constant 0 : i32
    %c0_i32_1 = arith.constant 0 : i32
    return %arg0, %c0_i32, %c0_i32_0 : i32, i32, i32
  }
  func.func @transform_3(%arg0: i32) -> (i32, i32, i32) {
    %c0_i32 = arith.constant 0 : i32
    %c0_i32_0 = arith.constant 0 : i32
    %c0_i32_1 = arith.constant 0 : i32
    return %arg0, %c0_i32, %c0_i32_0 : i32, i32, i32
  }
}

module attributes {stable_mosaic.version = 11 : i64} {
  func.func @_mm_res_ln_kernel(%arg0: i32, %arg1: memref<128x16xf32, #tpu.memory_space<vmem>>, %arg2: memref<16x16xf32, #tpu.memory_space<vmem>>, %arg3: memref<1x16xf32, #tpu.memory_space<vmem>>, %arg4: memref<128x16xf32, #tpu.memory_space<vmem>>, %arg5: memref<1x16xf32, #tpu.memory_space<vmem>>, %arg6: memref<1x16xf32, #tpu.memory_space<vmem>>, %arg7: memref<128x16xf32, #tpu.memory_space<vmem>>) attributes {dimension_semantics = [#tpu.dimension_semantics<parallel>], iteration_bounds = array<i64: 1>, scalar_prefetch = 0 : i64, scratch_operands = 0 : i64, tpu.core_type = #tpu.core_type<tc>, window_params = [{transform_indices = @transform_0, window_bounds = array<i64: 128, 16>}, {pipeline_mode = #tpu.pipeline_mode<synchronous>, transform_indices = @transform_1, window_bounds = array<i64: 16, 16>}, {pipeline_mode = #tpu.pipeline_mode<synchronous>, transform_indices = @transform_2, window_bounds = array<i64: 1, 16>}, {transform_indices = @transform_3, window_bounds = array<i64: 128, 16>}, {pipeline_mode = #tpu.pipeline_mode<synchronous>, transform_indices = @transform_4, window_bounds = array<i64: 1, 16>}, {pipeline_mode = #tpu.pipeline_mode<synchronous>, transform_indices = @transform_5, window_bounds = array<i64: 1, 16>}, {transform_indices = @transform_6, window_bounds = array<i64: 128, 16>}]} {
    %c0 = arith.constant 0 : index
    %c0_0 = arith.constant 0 : index
    %0 = vector.load %arg1[%c0, %c0_0] : memref<128x16xf32, #tpu.memory_space<vmem>>, vector<128x16xf32>
    %1 = arith.truncf %0 : vector<128x16xf32> to vector<128x16xbf16>
    %c0_1 = arith.constant 0 : index
    %c0_2 = arith.constant 0 : index
    %2 = vector.load %arg2[%c0_1, %c0_2] : memref<16x16xf32, #tpu.memory_space<vmem>>, vector<16x16xf32>
    %3 = arith.truncf %2 : vector<16x16xf32> to vector<16x16xbf16>
    %cst = arith.constant dense<0.000000e+00> : vector<128x16xf32>
    %4 = tpu.matmul %1, %3, %cst {dimension_numbers = #tpu.dot_dimension_numbers<[1], [0], [0], [1], [0, 0, 1, 1], [], []>} : vector<128x16xbf16>, vector<16x16xbf16>, vector<128x16xf32> -> vector<128x16xf32>
    %c0_3 = arith.constant 0 : index
    %c0_4 = arith.constant 0 : index
    %5 = vector.load %arg3[%c0_3, %c0_4] : memref<1x16xf32, #tpu.memory_space<vmem>>, vector<1x16xf32>
    %6 = vector.broadcast %5 : vector<1x16xf32> to vector<128x16xf32>
    %7 = arith.addf %4, %6 : vector<128x16xf32>
    %c0_5 = arith.constant 0 : index
    %c0_6 = arith.constant 0 : index
    %8 = vector.load %arg4[%c0_5, %c0_6] : memref<128x16xf32, #tpu.memory_space<vmem>>, vector<128x16xf32>
    %9 = arith.addf %8, %7 : vector<128x16xf32>
    %cst_7 = arith.constant dense<0.000000e+00> : vector<128xf32>
    %10 = vector.multi_reduction <add>, %9, %cst_7 [1] : vector<128x16xf32> to vector<128xf32>
    %11 = vector.shape_cast %10 : vector<128xf32> to vector<128x1xf32>
    %cst_8 = arith.constant 1.600000e+01 : f32
    %12 = vector.broadcast %cst_8 : f32 to vector<128x1xf32>
    %13 = arith.divf %11, %12 : vector<128x1xf32>
    %14 = vector.broadcast %13 : vector<128x1xf32> to vector<128x16xf32>
    %15 = arith.subf %9, %14 : vector<128x16xf32>
    %16 = arith.mulf %15, %15 : vector<128x16xf32>
    %cst_9 = arith.constant dense<0.000000e+00> : vector<128xf32>
    %17 = vector.multi_reduction <add>, %16, %cst_9 [1] : vector<128x16xf32> to vector<128xf32>
    %18 = vector.shape_cast %17 : vector<128xf32> to vector<128x1xf32>
    %cst_10 = arith.constant 1.600000e+01 : f32
    %19 = vector.broadcast %cst_10 : f32 to vector<128x1xf32>
    %20 = arith.divf %18, %19 : vector<128x1xf32>
    %cst_11 = arith.constant 9.99999974E-6 : f32
    %21 = vector.broadcast %cst_11 : f32 to vector<128x1xf32>
    %22 = arith.addf %20, %21 : vector<128x1xf32>
    %23 = math.rsqrt %22 : vector<128x1xf32>
    %24 = vector.broadcast %23 : vector<128x1xf32> to vector<128x16xf32>
    %25 = arith.mulf %15, %24 : vector<128x16xf32>
    %c0_12 = arith.constant 0 : index
    %c0_13 = arith.constant 0 : index
    %26 = vector.load %arg5[%c0_12, %c0_13] : memref<1x16xf32, #tpu.memory_space<vmem>>, vector<1x16xf32>
    %27 = vector.broadcast %26 : vector<1x16xf32> to vector<128x16xf32>
    %28 = arith.mulf %25, %27 : vector<128x16xf32>
    %c0_14 = arith.constant 0 : index
    %c0_15 = arith.constant 0 : index
    %29 = vector.load %arg6[%c0_14, %c0_15] : memref<1x16xf32, #tpu.memory_space<vmem>>, vector<1x16xf32>
    %30 = vector.broadcast %29 : vector<1x16xf32> to vector<128x16xf32>
    %31 = arith.addf %28, %30 : vector<128x16xf32>
    %c0_16 = arith.constant 0 : index
    %c0_17 = arith.constant 0 : index
    %32 = vector.load %arg7[%c0_16, %c0_17] : memref<128x16xf32, #tpu.memory_space<vmem>>, vector<128x16xf32>
    tpu.vector_store %arg7[%c0_16, %c0_17], %31 {strides = array<i32>} : memref<128x16xf32, #tpu.memory_space<vmem>>, vector<128x16xf32>,
    return
  }
  func.func @transform_0(%arg0: i32) -> (i32, i32) {
    %c0_i32 = arith.constant 0 : i32
    %c0_i32_0 = arith.constant 0 : i32
    return %arg0, %c0_i32 : i32, i32
  }
  func.func @transform_1(%arg0: i32) -> (i32, i32) {
    %c0_i32 = arith.constant 0 : i32
    %c0_i32_0 = arith.constant 0 : i32
    %c0_i32_1 = arith.constant 0 : i32
    return %c0_i32, %c0_i32_0 : i32, i32
  }
  func.func @transform_2(%arg0: i32) -> (i32, i32) {
    %c0_i32 = arith.constant 0 : i32
    %c0_i32_0 = arith.constant 0 : i32
    %c0_i32_1 = arith.constant 0 : i32
    return %c0_i32, %c0_i32_0 : i32, i32
  }
  func.func @transform_3(%arg0: i32) -> (i32, i32) {
    %c0_i32 = arith.constant 0 : i32
    %c0_i32_0 = arith.constant 0 : i32
    return %arg0, %c0_i32 : i32, i32
  }
  func.func @transform_4(%arg0: i32) -> (i32, i32) {
    %c0_i32 = arith.constant 0 : i32
    %c0_i32_0 = arith.constant 0 : i32
    %c0_i32_1 = arith.constant 0 : i32
    return %c0_i32, %c0_i32_0 : i32, i32
  }
  func.func @transform_5(%arg0: i32) -> (i32, i32) {
    %c0_i32 = arith.constant 0 : i32
    %c0_i32_0 = arith.constant 0 : i32
    %c0_i32_1 = arith.constant 0 : i32
    return %c0_i32, %c0_i32_0 : i32, i32
  }
  func.func @transform_6(%arg0: i32) -> (i32, i32) {
    %c0_i32 = arith.constant 0 : i32
    %c0_i32_0 = arith.constant 0 : i32
    return %arg0, %c0_i32 : i32, i32
  }
}

module attributes {stable_mosaic.version = 11 : i64} {
  func.func @_mm_kernel(%arg0: i32, %arg1: memref<128x16xf32, #tpu.memory_space<vmem>>, %arg2: memref<16x96xf32, #tpu.memory_space<vmem>>, %arg3: memref<1x96xf32, #tpu.memory_space<vmem>>, %arg4: memref<128x96xf32, #tpu.memory_space<vmem>>) attributes {dimension_semantics = [#tpu.dimension_semantics<parallel>], iteration_bounds = array<i64: 1>, scalar_prefetch = 0 : i64, scratch_operands = 0 : i64, tpu.core_type = #tpu.core_type<tc>, window_params = [{transform_indices = @transform_0, window_bounds = array<i64: 128, 16>}, {pipeline_mode = #tpu.pipeline_mode<synchronous>, transform_indices = @transform_1, window_bounds = array<i64: 16, 96>}, {pipeline_mode = #tpu.pipeline_mode<synchronous>, transform_indices = @transform_2, window_bounds = array<i64: 1, 96>}, {transform_indices = @transform_3, window_bounds = array<i64: 128, 96>}]} {
    %c0 = arith.constant 0 : index
    %c0_0 = arith.constant 0 : index
    %0 = vector.load %arg1[%c0, %c0_0] : memref<128x16xf32, #tpu.memory_space<vmem>>, vector<128x16xf32>
    %1 = arith.truncf %0 : vector<128x16xf32> to vector<128x16xbf16>
    %c0_1 = arith.constant 0 : index
    %c0_2 = arith.constant 0 : index
    %2 = vector.load %arg2[%c0_1, %c0_2] : memref<16x96xf32, #tpu.memory_space<vmem>>, vector<16x96xf32>
    %3 = arith.truncf %2 : vector<16x96xf32> to vector<16x96xbf16>
    %cst = arith.constant dense<0.000000e+00> : vector<128x96xf32>
    %4 = tpu.matmul %1, %3, %cst {dimension_numbers = #tpu.dot_dimension_numbers<[1], [0], [0], [1], [0, 0, 1, 1], [], []>} : vector<128x16xbf16>, vector<16x96xbf16>, vector<128x96xf32> -> vector<128x96xf32>
    %c0_3 = arith.constant 0 : index
    %c0_4 = arith.constant 0 : index
    %5 = vector.load %arg3[%c0_3, %c0_4] : memref<1x96xf32, #tpu.memory_space<vmem>>, vector<1x96xf32>
    %6 = vector.broadcast %5 : vector<1x96xf32> to vector<128x96xf32>
    %7 = arith.addf %4, %6 : vector<128x96xf32>
    %c0_5 = arith.constant 0 : index
    %c0_6 = arith.constant 0 : index
    %8 = vector.load %arg4[%c0_5, %c0_6] : memref<128x96xf32, #tpu.memory_space<vmem>>, vector<128x96xf32>
    tpu.vector_store %arg4[%c0_5, %c0_6], %7 {strides = array<i32>} : memref<128x96xf32, #tpu.memory_space<vmem>>, vector<128x96xf32>,
    return
  }
  func.func @transform_0(%arg0: i32) -> (i32, i32) {
    %c0_i32 = arith.constant 0 : i32
    %c0_i32_0 = arith.constant 0 : i32
    return %arg0, %c0_i32 : i32, i32
  }
  func.func @transform_1(%arg0: i32) -> (i32, i32) {
    %c0_i32 = arith.constant 0 : i32
    %c0_i32_0 = arith.constant 0 : i32
    %c0_i32_1 = arith.constant 0 : i32
    return %c0_i32, %c0_i32_0 : i32, i32
  }
  func.func @transform_2(%arg0: i32) -> (i32, i32) {
    %c0_i32 = arith.constant 0 : i32
    %c0_i32_0 = arith.constant 0 : i32
    %c0_i32_1 = arith.constant 0 : i32
    return %c0_i32, %c0_i32_0 : i32, i32
  }
  func.func @transform_3(%arg0: i32) -> (i32, i32) {
    %c0_i32 = arith.constant 0 : i32
    %c0_i32_0 = arith.constant 0 : i32
    return %arg0, %c0_i32 : i32, i32
  }
}

module attributes {stable_mosaic.version = 11 : i64} {
  func.func @_gru_kernel(%arg0: i32, %arg1: memref<8x8x96xf32, #tpu.memory_space<vmem>>, %arg2: memref<32x96xf32, #tpu.memory_space<vmem>>, %arg3: memref<1x96xf32, #tpu.memory_space<vmem>>, %arg4: memref<8x8x32xf32, #tpu.memory_space<vmem>>) attributes {dimension_semantics = [#tpu.dimension_semantics<parallel>], iteration_bounds = array<i64: 2>, scalar_prefetch = 0 : i64, scratch_operands = 0 : i64, tpu.core_type = #tpu.core_type<tc>, window_params = [{transform_indices = @transform_0, window_bounds = array<i64: 8, 8, 96>}, {pipeline_mode = #tpu.pipeline_mode<synchronous>, transform_indices = @transform_1, window_bounds = array<i64: 32, 96>}, {pipeline_mode = #tpu.pipeline_mode<synchronous>, transform_indices = @transform_2, window_bounds = array<i64: 1, 96>}, {transform_indices = @transform_3, window_bounds = array<i64: 8, 8, 32>}]} {
    %c0 = arith.constant 0 : index
    %c0_0 = arith.constant 0 : index
    %0 = vector.load %arg2[%c0, %c0_0] : memref<32x96xf32, #tpu.memory_space<vmem>>, vector<32x96xf32>
    %c0_1 = arith.constant 0 : index
    %c0_2 = arith.constant 0 : index
    %1 = vector.load %arg3[%c0_1, %c0_2] : memref<1x96xf32, #tpu.memory_space<vmem>>, vector<1x96xf32>
    %cst = arith.constant 0.000000e+00 : f32
    %2 = vector.broadcast %cst : f32 to vector<8x32xf32>
    %c0_i32 = arith.constant 0 : i32
    %c7_i32 = arith.constant 7 : i32
    %3 = arith.subi %c7_i32, %c0_i32 : i32
    %4 = arith.index_cast %3 : i32 to index
    %c0_3 = arith.constant 0 : index
    %c0_4 = arith.constant 0 : index
    %5 = vector.load %arg1[%4, %c0_3, %c0_4] : memref<8x8x96xf32, #tpu.memory_space<vmem>>, vector<1x8x96xf32>
    %6 = vector.shape_cast %5 : vector<1x8x96xf32> to vector<8x96xf32>
    %cst_5 = arith.constant dense<0.000000e+00> : vector<8x96xf32>
    %7 = tpu.matmul %2, %0, %cst_5 {dimension_numbers = #tpu.dot_dimension_numbers<[1], [0], [0], [1], [0, 0, 1, 1], [], []>} : vector<8x32xf32>, vector<32x96xf32>, vector<8x96xf32> -> vector<8x96xf32>
    %8 = vector.broadcast %1 : vector<1x96xf32> to vector<8x96xf32>
    %9 = arith.addf %7, %8 : vector<8x96xf32>
    %10 = vector.extract_strided_slice %6 {offsets = [0, 0], sizes = [8, 32], strides = [1, 1]} : vector<8x96xf32> to vector<8x32xf32>
    %11 = vector.extract_strided_slice %9 {offsets = [0, 0], sizes = [8, 32], strides = [1, 1]} : vector<8x96xf32> to vector<8x32xf32>
    %12 = arith.addf %10, %11 : vector<8x32xf32>
    %13 = arith.negf %12 : vector<8x32xf32>
    %14 = math.exp %13 : vector<8x32xf32>
    %cst_6 = arith.constant 1.000000e+00 : f32
    %15 = vector.broadcast %cst_6 : f32 to vector<8x32xf32>
    %16 = arith.addf %15, %14 : vector<8x32xf32>
    %17 = arith.divf %15, %16 : vector<8x32xf32>
    %18 = vector.extract_strided_slice %6 {offsets = [0, 32], sizes = [8, 32], strides = [1, 1]} : vector<8x96xf32> to vector<8x32xf32>
    %19 = vector.extract_strided_slice %9 {offsets = [0, 32], sizes = [8, 32], strides = [1, 1]} : vector<8x96xf32> to vector<8x32xf32>
    %20 = arith.addf %18, %19 : vector<8x32xf32>
    %21 = arith.negf %20 : vector<8x32xf32>
    %22 = math.exp %21 : vector<8x32xf32>
    %cst_7 = arith.constant 1.000000e+00 : f32
    %23 = vector.broadcast %cst_7 : f32 to vector<8x32xf32>
    %24 = arith.addf %23, %22 : vector<8x32xf32>
    %25 = arith.divf %23, %24 : vector<8x32xf32>
    %26 = vector.extract_strided_slice %6 {offsets = [0, 64], sizes = [8, 32], strides = [1, 1]} : vector<8x96xf32> to vector<8x32xf32>
    %27 = vector.extract_strided_slice %9 {offsets = [0, 64], sizes = [8, 32], strides = [1, 1]} : vector<8x96xf32> to vector<8x32xf32>
    %28 = arith.mulf %17, %27 : vector<8x32xf32>
    %29 = arith.addf %26, %28 : vector<8x32xf32>
    %30 = math.tanh %29 : vector<8x32xf32>
    %cst_8 = arith.constant 1.000000e+00 : f32
    %31 = vector.broadcast %cst_8 : f32 to vector<8x32xf32>
    %32 = arith.subf %31, %25 : vector<8x32xf32>
    %33 = arith.mulf %32, %30 : vector<8x32xf32>
    %34 = arith.mulf %25, %2 : vector<8x32xf32>
    %35 = arith.addf %33, %34 : vector<8x32xf32>
    %36 = arith.index_cast %3 : i32 to index
    %c0_9 = arith.constant 0 : index
    %c0_10 = arith.constant 0 : index
    %37 = vector.load %arg4[%36, %c0_9, %c0_10] : memref<8x8x32xf32, #tpu.memory_space<vmem>>, vector<1x8x32xf32>
    %38 = vector.shape_cast %37 : vector<1x8x32xf32> to vector<8x32xf32>
    %39 = vector.shape_cast %35 : vector<8x32xf32> to vector<1x8x32xf32>
    tpu.vector_store %arg4[%36, %c0_9, %c0_10], %39 {strides = array<i32>} : memref<8x8x32xf32, #tpu.memory_space<vmem>>, vector<1x8x32xf32>,
    %c1_i32 = arith.constant 1 : i32
    %c7_i32_11 = arith.constant 7 : i32
    %40 = arith.subi %c7_i32_11, %c1_i32 : i32
    %41 = arith.index_cast %40 : i32 to index
    %c0_12 = arith.constant 0 : index
    %c0_13 = arith.constant 0 : index
    %42 = vector.load %arg1[%41, %c0_12, %c0_13] : memref<8x8x96xf32, #tpu.memory_space<vmem>>, vector<1x8x96xf32>
    %43 = vector.shape_cast %42 : vector<1x8x96xf32> to vector<8x96xf32>
    %cst_14 = arith.constant dense<0.000000e+00> : vector<8x96xf32>
    %44 = tpu.matmul %35, %0, %cst_14 {dimension_numbers = #tpu.dot_dimension_numbers<[1], [0], [0], [1], [0, 0, 1, 1], [], []>} : vector<8x32xf32>, vector<32x96xf32>, vector<8x96xf32> -> vector<8x96xf32>
    %45 = vector.broadcast %1 : vector<1x96xf32> to vector<8x96xf32>
    %46 = arith.addf %44, %45 : vector<8x96xf32>
    %47 = vector.extract_strided_slice %43 {offsets = [0, 0], sizes = [8, 32], strides = [1, 1]} : vector<8x96xf32> to vector<8x32xf32>
    %48 = vector.extract_strided_slice %46 {offsets = [0, 0], sizes = [8, 32], strides = [1, 1]} : vector<8x96xf32> to vector<8x32xf32>
    %49 = arith.addf %47, %48 : vector<8x32xf32>
    %50 = arith.negf %49 : vector<8x32xf32>
    %51 = math.exp %50 : vector<8x32xf32>
    %cst_15 = arith.constant 1.000000e+00 : f32
    %52 = vector.broadcast %cst_15 : f32 to vector<8x32xf32>
    %53 = arith.addf %52, %51 : vector<8x32xf32>
    %54 = arith.divf %52, %53 : vector<8x32xf32>
    %55 = vector.extract_strided_slice %43 {offsets = [0, 32], sizes = [8, 32], strides = [1, 1]} : vector<8x96xf32> to vector<8x32xf32>
    %56 = vector.extract_strided_slice %46 {offsets = [0, 32], sizes = [8, 32], strides = [1, 1]} : vector<8x96xf32> to vector<8x32xf32>
    %57 = arith.addf %55, %56 : vector<8x32xf32>
    %58 = arith.negf %57 : vector<8x32xf32>
    %59 = math.exp %58 : vector<8x32xf32>
    %cst_16 = arith.constant 1.000000e+00 : f32
    %60 = vector.broadcast %cst_16 : f32 to vector<8x32xf32>
    %61 = arith.addf %60, %59 : vector<8x32xf32>
    %62 = arith.divf %60, %61 : vector<8x32xf32>
    %63 = vector.extract_strided_slice %43 {offsets = [0, 64], sizes = [8, 32], strides = [1, 1]} : vector<8x96xf32> to vector<8x32xf32>
    %64 = vector.extract_strided_slice %46 {offsets = [0, 64], sizes = [8, 32], strides = [1, 1]} : vector<8x96xf32> to vector<8x32xf32>
    %65 = arith.mulf %54, %64 : vector<8x32xf32>
    %66 = arith.addf %63, %65 : vector<8x32xf32>
    %67 = math.tanh %66 : vector<8x32xf32>
    %cst_17 = arith.constant 1.000000e+00 : f32
    %68 = vector.broadcast %cst_17 : f32 to vector<8x32xf32>
    %69 = arith.subf %68, %62 : vector<8x32xf32>
    %70 = arith.mulf %69, %67 : vector<8x32xf32>
    %71 = arith.mulf %62, %35 : vector<8x32xf32>
    %72 = arith.addf %70, %71 : vector<8x32xf32>
    %73 = arith.index_cast %40 : i32 to index
    %c0_18 = arith.constant 0 : index
    %c0_19 = arith.constant 0 : index
    %74 = vector.load %arg4[%73, %c0_18, %c0_19] : memref<8x8x32xf32, #tpu.memory_space<vmem>>, vector<1x8x32xf32>
    %75 = vector.shape_cast %74 : vector<1x8x32xf32> to vector<8x32xf32>
    %76 = vector.shape_cast %72 : vector<8x32xf32> to vector<1x8x32xf32>
    tpu.vector_store %arg4[%73, %c0_18, %c0_19], %76 {strides = array<i32>} : memref<8x8x32xf32, #tpu.memory_space<vmem>>, vector<1x8x32xf32>,
    %c2_i32 = arith.constant 2 : i32
    %c7_i32_20 = arith.constant 7 : i32
    %77 = arith.subi %c7_i32_20, %c2_i32 : i32
    %78 = arith.index_cast %77 : i32 to index
    %c0_21 = arith.constant 0 : index
    %c0_22 = arith.constant 0 : index
    %79 = vector.load %arg1[%78, %c0_21, %c0_22] : memref<8x8x96xf32, #tpu.memory_space<vmem>>, vector<1x8x96xf32>
    %80 = vector.shape_cast %79 : vector<1x8x96xf32> to vector<8x96xf32>
    %cst_23 = arith.constant dense<0.000000e+00> : vector<8x96xf32>
    %81 = tpu.matmul %72, %0, %cst_23 {dimension_numbers = #tpu.dot_dimension_numbers<[1], [0], [0], [1], [0, 0, 1, 1], [], []>} : vector<8x32xf32>, vector<32x96xf32>, vector<8x96xf32> -> vector<8x96xf32>
    %82 = vector.broadcast %1 : vector<1x96xf32> to vector<8x96xf32>
    %83 = arith.addf %81, %82 : vector<8x96xf32>
    %84 = vector.extract_strided_slice %80 {offsets = [0, 0], sizes = [8, 32], strides = [1, 1]} : vector<8x96xf32> to vector<8x32xf32>
    %85 = vector.extract_strided_slice %83 {offsets = [0, 0], sizes = [8, 32], strides = [1, 1]} : vector<8x96xf32> to vector<8x32xf32>
    %86 = arith.addf %84, %85 : vector<8x32xf32>
    %87 = arith.negf %86 : vector<8x32xf32>
    %88 = math.exp %87 : vector<8x32xf32>
    %cst_24 = arith.constant 1.000000e+00 : f32
    %89 = vector.broadcast %cst_24 : f32 to vector<8x32xf32>
    %90 = arith.addf %89, %88 : vector<8x32xf32>
    %91 = arith.divf %89, %90 : vector<8x32xf32>
    %92 = vector.extract_strided_slice %80 {offsets = [0, 32], sizes = [8, 32], strides = [1, 1]} : vector<8x96xf32> to vector<8x32xf32>
    %93 = vector.extract_strided_slice %83 {offsets = [0, 32], sizes = [8, 32], strides = [1, 1]} : vector<8x96xf32> to vector<8x32xf32>
    %94 = arith.addf %92, %93 : vector<8x32xf32>
    %95 = arith.negf %94 : vector<8x32xf32>
    %96 = math.exp %95 : vector<8x32xf32>
    %cst_25 = arith.constant 1.000000e+00 : f32
    %97 = vector.broadcast %cst_25 : f32 to vector<8x32xf32>
    %98 = arith.addf %97, %96 : vector<8x32xf32>
    %99 = arith.divf %97, %98 : vector<8x32xf32>
    %100 = vector.extract_strided_slice %80 {offsets = [0, 64], sizes = [8, 32], strides = [1, 1]} : vector<8x96xf32> to vector<8x32xf32>
    %101 = vector.extract_strided_slice %83 {offsets = [0, 64], sizes = [8, 32], strides = [1, 1]} : vector<8x96xf32> to vector<8x32xf32>
    %102 = arith.mulf %91, %101 : vector<8x32xf32>
    %103 = arith.addf %100, %102 : vector<8x32xf32>
    %104 = math.tanh %103 : vector<8x32xf32>
    %cst_26 = arith.constant 1.000000e+00 : f32
    %105 = vector.broadcast %cst_26 : f32 to vector<8x32xf32>
    %106 = arith.subf %105, %99 : vector<8x32xf32>
    %107 = arith.mulf %106, %104 : vector<8x32xf32>
    %108 = arith.mulf %99, %72 : vector<8x32xf32>
    %109 = arith.addf %107, %108 : vector<8x32xf32>
    %110 = arith.index_cast %77 : i32 to index
    %c0_27 = arith.constant 0 : index
    %c0_28 = arith.constant 0 : index
    %111 = vector.load %arg4[%110, %c0_27, %c0_28] : memref<8x8x32xf32, #tpu.memory_space<vmem>>, vector<1x8x32xf32>
    %112 = vector.shape_cast %111 : vector<1x8x32xf32> to vector<8x32xf32>
    %113 = vector.shape_cast %109 : vector<8x32xf32> to vector<1x8x32xf32>
    tpu.vector_store %arg4[%110, %c0_27, %c0_28], %113 {strides = array<i32>} : memref<8x8x32xf32, #tpu.memory_space<vmem>>, vector<1x8x32xf32>,
    %c3_i32 = arith.constant 3 : i32
    %c7_i32_29 = arith.constant 7 : i32
    %114 = arith.subi %c7_i32_29, %c3_i32 : i32
    %115 = arith.index_cast %114 : i32 to index
    %c0_30 = arith.constant 0 : index
    %c0_31 = arith.constant 0 : index
    %116 = vector.load %arg1[%115, %c0_30, %c0_31] : memref<8x8x96xf32, #tpu.memory_space<vmem>>, vector<1x8x96xf32>
    %117 = vector.shape_cast %116 : vector<1x8x96xf32> to vector<8x96xf32>
    %cst_32 = arith.constant dense<0.000000e+00> : vector<8x96xf32>
    %118 = tpu.matmul %109, %0, %cst_32 {dimension_numbers = #tpu.dot_dimension_numbers<[1], [0], [0], [1], [0, 0, 1, 1], [], []>} : vector<8x32xf32>, vector<32x96xf32>, vector<8x96xf32> -> vector<8x96xf32>
    %119 = vector.broadcast %1 : vector<1x96xf32> to vector<8x96xf32>
    %120 = arith.addf %118, %119 : vector<8x96xf32>
    %121 = vector.extract_strided_slice %117 {offsets = [0, 0], sizes = [8, 32], strides = [1, 1]} : vector<8x96xf32> to vector<8x32xf32>
    %122 = vector.extract_strided_slice %120 {offsets = [0, 0], sizes = [8, 32], strides = [1, 1]} : vector<8x96xf32> to vector<8x32xf32>
    %123 = arith.addf %121, %122 : vector<8x32xf32>
    %124 = arith.negf %123 : vector<8x32xf32>
    %125 = math.exp %124 : vector<8x32xf32>
    %cst_33 = arith.constant 1.000000e+00 : f32
    %126 = vector.broadcast %cst_33 : f32 to vector<8x32xf32>
    %127 = arith.addf %126, %125 : vector<8x32xf32>
    %128 = arith.divf %126, %127 : vector<8x32xf32>
    %129 = vector.extract_strided_slice %117 {offsets = [0, 32], sizes = [8, 32], strides = [1, 1]} : vector<8x96xf32> to vector<8x32xf32>
    %130 = vector.extract_strided_slice %120 {offsets = [0, 32], sizes = [8, 32], strides = [1, 1]} : vector<8x96xf32> to vector<8x32xf32>
    %131 = arith.addf %129, %130 : vector<8x32xf32>
    %132 = arith.negf %131 : vector<8x32xf32>
    %133 = math.exp %132 : vector<8x32xf32>
    %cst_34 = arith.constant 1.000000e+00 : f32
    %134 = vector.broadcast %cst_34 : f32 to vector<8x32xf32>
    %135 = arith.addf %134, %133 : vector<8x32xf32>
    %136 = arith.divf %134, %135 : vector<8x32xf32>
    %137 = vector.extract_strided_slice %117 {offsets = [0, 64], sizes = [8, 32], strides = [1, 1]} : vector<8x96xf32> to vector<8x32xf32>
    %138 = vector.extract_strided_slice %120 {offsets = [0, 64], sizes = [8, 32], strides = [1, 1]} : vector<8x96xf32> to vector<8x32xf32>
    %139 = arith.mulf %128, %138 : vector<8x32xf32>
    %140 = arith.addf %137, %139 : vector<8x32xf32>
    %141 = math.tanh %140 : vector<8x32xf32>
    %cst_35 = arith.constant 1.000000e+00 : f32
    %142 = vector.broadcast %cst_35 : f32 to vector<8x32xf32>
    %143 = arith.subf %142, %136 : vector<8x32xf32>
    %144 = arith.mulf %143, %141 : vector<8x32xf32>
    %145 = arith.mulf %136, %109 : vector<8x32xf32>
    %146 = arith.addf %144, %145 : vector<8x32xf32>
    %147 = arith.index_cast %114 : i32 to index
    %c0_36 = arith.constant 0 : index
    %c0_37 = arith.constant 0 : index
    %148 = vector.load %arg4[%147, %c0_36, %c0_37] : memref<8x8x32xf32, #tpu.memory_space<vmem>>, vector<1x8x32xf32>
    %149 = vector.shape_cast %148 : vector<1x8x32xf32> to vector<8x32xf32>
    %150 = vector.shape_cast %146 : vector<8x32xf32> to vector<1x8x32xf32>
    tpu.vector_store %arg4[%147, %c0_36, %c0_37], %150 {strides = array<i32>} : memref<8x8x32xf32, #tpu.memory_space<vmem>>, vector<1x8x32xf32>,
    %c4_i32 = arith.constant 4 : i32
    %c7_i32_38 = arith.constant 7 : i32
    %151 = arith.subi %c7_i32_38, %c4_i32 : i32
    %152 = arith.index_cast %151 : i32 to index
    %c0_39 = arith.constant 0 : index
    %c0_40 = arith.constant 0 : index
    %153 = vector.load %arg1[%152, %c0_39, %c0_40] : memref<8x8x96xf32, #tpu.memory_space<vmem>>, vector<1x8x96xf32>
    %154 = vector.shape_cast %153 : vector<1x8x96xf32> to vector<8x96xf32>
    %cst_41 = arith.constant dense<0.000000e+00> : vector<8x96xf32>
    %155 = tpu.matmul %146, %0, %cst_41 {dimension_numbers = #tpu.dot_dimension_numbers<[1], [0], [0], [1], [0, 0, 1, 1], [], []>} : vector<8x32xf32>, vector<32x96xf32>, vector<8x96xf32> -> vector<8x96xf32>
    %156 = vector.broadcast %1 : vector<1x96xf32> to vector<8x96xf32>
    %157 = arith.addf %155, %156 : vector<8x96xf32>
    %158 = vector.extract_strided_slice %154 {offsets = [0, 0], sizes = [8, 32], strides = [1, 1]} : vector<8x96xf32> to vector<8x32xf32>
    %159 = vector.extract_strided_slice %157 {offsets = [0, 0], sizes = [8, 32], strides = [1, 1]} : vector<8x96xf32> to vector<8x32xf32>
    %160 = arith.addf %158, %159 : vector<8x32xf32>
    %161 = arith.negf %160 : vector<8x32xf32>
    %162 = math.exp %161 : vector<8x32xf32>
    %cst_42 = arith.constant 1.000000e+00 : f32
    %163 = vector.broadcast %cst_42 : f32 to vector<8x32xf32>
    %164 = arith.addf %163, %162 : vector<8x32xf32>
    %165 = arith.divf %163, %164 : vector<8x32xf32>
    %166 = vector.extract_strided_slice %154 {offsets = [0, 32], sizes = [8, 32], strides = [1, 1]} : vector<8x96xf32> to vector<8x32xf32>
    %167 = vector.extract_strided_slice %157 {offsets = [0, 32], sizes = [8, 32], strides = [1, 1]} : vector<8x96xf32> to vector<8x32xf32>
    %168 = arith.addf %166, %167 : vector<8x32xf32>
    %169 = arith.negf %168 : vector<8x32xf32>
    %170 = math.exp %169 : vector<8x32xf32>
    %cst_43 = arith.constant 1.000000e+00 : f32
    %171 = vector.broadcast %cst_43 : f32 to vector<8x32xf32>
    %172 = arith.addf %171, %170 : vector<8x32xf32>
    %173 = arith.divf %171, %172 : vector<8x32xf32>
    %174 = vector.extract_strided_slice %154 {offsets = [0, 64], sizes = [8, 32], strides = [1, 1]} : vector<8x96xf32> to vector<8x32xf32>
    %175 = vector.extract_strided_slice %157 {offsets = [0, 64], sizes = [8, 32], strides = [1, 1]} : vector<8x96xf32> to vector<8x32xf32>
    %176 = arith.mulf %165, %175 : vector<8x32xf32>
    %177 = arith.addf %174, %176 : vector<8x32xf32>
    %178 = math.tanh %177 : vector<8x32xf32>
    %cst_44 = arith.constant 1.000000e+00 : f32
    %179 = vector.broadcast %cst_44 : f32 to vector<8x32xf32>
    %180 = arith.subf %179, %173 : vector<8x32xf32>
    %181 = arith.mulf %180, %178 : vector<8x32xf32>
    %182 = arith.mulf %173, %146 : vector<8x32xf32>
    %183 = arith.addf %181, %182 : vector<8x32xf32>
    %184 = arith.index_cast %151 : i32 to index
    %c0_45 = arith.constant 0 : index
    %c0_46 = arith.constant 0 : index
    %185 = vector.load %arg4[%184, %c0_45, %c0_46] : memref<8x8x32xf32, #tpu.memory_space<vmem>>, vector<1x8x32xf32>
    %186 = vector.shape_cast %185 : vector<1x8x32xf32> to vector<8x32xf32>
    %187 = vector.shape_cast %183 : vector<8x32xf32> to vector<1x8x32xf32>
    tpu.vector_store %arg4[%184, %c0_45, %c0_46], %187 {strides = array<i32>} : memref<8x8x32xf32, #tpu.memory_space<vmem>>, vector<1x8x32xf32>,
    %c5_i32 = arith.constant 5 : i32
    %c7_i32_47 = arith.constant 7 : i32
    %188 = arith.subi %c7_i32_47, %c5_i32 : i32
    %189 = arith.index_cast %188 : i32 to index
    %c0_48 = arith.constant 0 : index
    %c0_49 = arith.constant 0 : index
    %190 = vector.load %arg1[%189, %c0_48, %c0_49] : memref<8x8x96xf32, #tpu.memory_space<vmem>>, vector<1x8x96xf32>
    %191 = vector.shape_cast %190 : vector<1x8x96xf32> to vector<8x96xf32>
    %cst_50 = arith.constant dense<0.000000e+00> : vector<8x96xf32>
    %192 = tpu.matmul %183, %0, %cst_50 {dimension_numbers = #tpu.dot_dimension_numbers<[1], [0], [0], [1], [0, 0, 1, 1], [], []>} : vector<8x32xf32>, vector<32x96xf32>, vector<8x96xf32> -> vector<8x96xf32>
    %193 = vector.broadcast %1 : vector<1x96xf32> to vector<8x96xf32>
    %194 = arith.addf %192, %193 : vector<8x96xf32>
    %195 = vector.extract_strided_slice %191 {offsets = [0, 0], sizes = [8, 32], strides = [1, 1]} : vector<8x96xf32> to vector<8x32xf32>
    %196 = vector.extract_strided_slice %194 {offsets = [0, 0], sizes = [8, 32], strides = [1, 1]} : vector<8x96xf32> to vector<8x32xf32>
    %197 = arith.addf %195, %196 : vector<8x32xf32>
    %198 = arith.negf %197 : vector<8x32xf32>
    %199 = math.exp %198 : vector<8x32xf32>
    %cst_51 = arith.constant 1.000000e+00 : f32
    %200 = vector.broadcast %cst_51 : f32 to vector<8x32xf32>
    %201 = arith.addf %200, %199 : vector<8x32xf32>
    %202 = arith.divf %200, %201 : vector<8x32xf32>
    %203 = vector.extract_strided_slice %191 {offsets = [0, 32], sizes = [8, 32], strides = [1, 1]} : vector<8x96xf32> to vector<8x32xf32>
    %204 = vector.extract_strided_slice %194 {offsets = [0, 32], sizes = [8, 32], strides = [1, 1]} : vector<8x96xf32> to vector<8x32xf32>
    %205 = arith.addf %203, %204 : vector<8x32xf32>
    %206 = arith.negf %205 : vector<8x32xf32>
    %207 = math.exp %206 : vector<8x32xf32>
    %cst_52 = arith.constant 1.000000e+00 : f32
    %208 = vector.broadcast %cst_52 : f32 to vector<8x32xf32>
    %209 = arith.addf %208, %207 : vector<8x32xf32>
    %210 = arith.divf %208, %209 : vector<8x32xf32>
    %211 = vector.extract_strided_slice %191 {offsets = [0, 64], sizes = [8, 32], strides = [1, 1]} : vector<8x96xf32> to vector<8x32xf32>
    %212 = vector.extract_strided_slice %194 {offsets = [0, 64], sizes = [8, 32], strides = [1, 1]} : vector<8x96xf32> to vector<8x32xf32>
    %213 = arith.mulf %202, %212 : vector<8x32xf32>
    %214 = arith.addf %211, %213 : vector<8x32xf32>
    %215 = math.tanh %214 : vector<8x32xf32>
    %cst_53 = arith.constant 1.000000e+00 : f32
    %216 = vector.broadcast %cst_53 : f32 to vector<8x32xf32>
    %217 = arith.subf %216, %210 : vector<8x32xf32>
    %218 = arith.mulf %217, %215 : vector<8x32xf32>
    %219 = arith.mulf %210, %183 : vector<8x32xf32>
    %220 = arith.addf %218, %219 : vector<8x32xf32>
    %221 = arith.index_cast %188 : i32 to index
    %c0_54 = arith.constant 0 : index
    %c0_55 = arith.constant 0 : index
    %222 = vector.load %arg4[%221, %c0_54, %c0_55] : memref<8x8x32xf32, #tpu.memory_space<vmem>>, vector<1x8x32xf32>
    %223 = vector.shape_cast %222 : vector<1x8x32xf32> to vector<8x32xf32>
    %224 = vector.shape_cast %220 : vector<8x32xf32> to vector<1x8x32xf32>
    tpu.vector_store %arg4[%221, %c0_54, %c0_55], %224 {strides = array<i32>} : memref<8x8x32xf32, #tpu.memory_space<vmem>>, vector<1x8x32xf32>,
    %c6_i32 = arith.constant 6 : i32
    %c7_i32_56 = arith.constant 7 : i32
    %225 = arith.subi %c7_i32_56, %c6_i32 : i32
    %226 = arith.index_cast %225 : i32 to index
    %c0_57 = arith.constant 0 : index
    %c0_58 = arith.constant 0 : index
    %227 = vector.load %arg1[%226, %c0_57, %c0_58] : memref<8x8x96xf32, #tpu.memory_space<vmem>>, vector<1x8x96xf32>
    %228 = vector.shape_cast %227 : vector<1x8x96xf32> to vector<8x96xf32>
    %cst_59 = arith.constant dense<0.000000e+00> : vector<8x96xf32>
    %229 = tpu.matmul %220, %0, %cst_59 {dimension_numbers = #tpu.dot_dimension_numbers<[1], [0], [0], [1], [0, 0, 1, 1], [], []>} : vector<8x32xf32>, vector<32x96xf32>, vector<8x96xf32> -> vector<8x96xf32>
    %230 = vector.broadcast %1 : vector<1x96xf32> to vector<8x96xf32>
    %231 = arith.addf %229, %230 : vector<8x96xf32>
    %232 = vector.extract_strided_slice %228 {offsets = [0, 0], sizes = [8, 32], strides = [1, 1]} : vector<8x96xf32> to vector<8x32xf32>
    %233 = vector.extract_strided_slice %231 {offsets = [0, 0], sizes = [8, 32], strides = [1, 1]} : vector<8x96xf32> to vector<8x32xf32>
    %234 = arith.addf %232, %233 : vector<8x32xf32>
    %235 = arith.negf %234 : vector<8x32xf32>
    %236 = math.exp %235 : vector<8x32xf32>
    %cst_60 = arith.constant 1.000000e+00 : f32
    %237 = vector.broadcast %cst_60 : f32 to vector<8x32xf32>
    %238 = arith.addf %237, %236 : vector<8x32xf32>
    %239 = arith.divf %237, %238 : vector<8x32xf32>
    %240 = vector.extract_strided_slice %228 {offsets = [0, 32], sizes = [8, 32], strides = [1, 1]} : vector<8x96xf32> to vector<8x32xf32>
    %241 = vector.extract_strided_slice %231 {offsets = [0, 32], sizes = [8, 32], strides = [1, 1]} : vector<8x96xf32> to vector<8x32xf32>
    %242 = arith.addf %240, %241 : vector<8x32xf32>
    %243 = arith.negf %242 : vector<8x32xf32>
    %244 = math.exp %243 : vector<8x32xf32>
    %cst_61 = arith.constant 1.000000e+00 : f32
    %245 = vector.broadcast %cst_61 : f32 to vector<8x32xf32>
    %246 = arith.addf %245, %244 : vector<8x32xf32>
    %247 = arith.divf %245, %246 : vector<8x32xf32>
    %248 = vector.extract_strided_slice %228 {offsets = [0, 64], sizes = [8, 32], strides = [1, 1]} : vector<8x96xf32> to vector<8x32xf32>
    %249 = vector.extract_strided_slice %231 {offsets = [0, 64], sizes = [8, 32], strides = [1, 1]} : vector<8x96xf32> to vector<8x32xf32>
    %250 = arith.mulf %239, %249 : vector<8x32xf32>
    %251 = arith.addf %248, %250 : vector<8x32xf32>
    %252 = math.tanh %251 : vector<8x32xf32>
    %cst_62 = arith.constant 1.000000e+00 : f32
    %253 = vector.broadcast %cst_62 : f32 to vector<8x32xf32>
    %254 = arith.subf %253, %247 : vector<8x32xf32>
    %255 = arith.mulf %254, %252 : vector<8x32xf32>
    %256 = arith.mulf %247, %220 : vector<8x32xf32>
    %257 = arith.addf %255, %256 : vector<8x32xf32>
    %258 = arith.index_cast %225 : i32 to index
    %c0_63 = arith.constant 0 : index
    %c0_64 = arith.constant 0 : index
    %259 = vector.load %arg4[%258, %c0_63, %c0_64] : memref<8x8x32xf32, #tpu.memory_space<vmem>>, vector<1x8x32xf32>
    %260 = vector.shape_cast %259 : vector<1x8x32xf32> to vector<8x32xf32>
    %261 = vector.shape_cast %257 : vector<8x32xf32> to vector<1x8x32xf32>
    tpu.vector_store %arg4[%258, %c0_63, %c0_64], %261 {strides = array<i32>} : memref<8x8x32xf32, #tpu.memory_space<vmem>>, vector<1x8x32xf32>,
    %c7_i32_65 = arith.constant 7 : i32
    %c7_i32_66 = arith.constant 7 : i32
    %262 = arith.subi %c7_i32_66, %c7_i32_65 : i32
    %263 = arith.index_cast %262 : i32 to index
    %c0_67 = arith.constant 0 : index
    %c0_68 = arith.constant 0 : index
    %264 = vector.load %arg1[%263, %c0_67, %c0_68] : memref<8x8x96xf32, #tpu.memory_space<vmem>>, vector<1x8x96xf32>
    %265 = vector.shape_cast %264 : vector<1x8x96xf32> to vector<8x96xf32>
    %cst_69 = arith.constant dense<0.000000e+00> : vector<8x96xf32>
    %266 = tpu.matmul %257, %0, %cst_69 {dimension_numbers = #tpu.dot_dimension_numbers<[1], [0], [0], [1], [0, 0, 1, 1], [], []>} : vector<8x32xf32>, vector<32x96xf32>, vector<8x96xf32> -> vector<8x96xf32>
    %267 = vector.broadcast %1 : vector<1x96xf32> to vector<8x96xf32>
    %268 = arith.addf %266, %267 : vector<8x96xf32>
    %269 = vector.extract_strided_slice %265 {offsets = [0, 0], sizes = [8, 32], strides = [1, 1]} : vector<8x96xf32> to vector<8x32xf32>
    %270 = vector.extract_strided_slice %268 {offsets = [0, 0], sizes = [8, 32], strides = [1, 1]} : vector<8x96xf32> to vector<8x32xf32>
    %271 = arith.addf %269, %270 : vector<8x32xf32>
    %272 = arith.negf %271 : vector<8x32xf32>
    %273 = math.exp %272 : vector<8x32xf32>
    %cst_70 = arith.constant 1.000000e+00 : f32
    %274 = vector.broadcast %cst_70 : f32 to vector<8x32xf32>
    %275 = arith.addf %274, %273 : vector<8x32xf32>
    %276 = arith.divf %274, %275 : vector<8x32xf32>
    %277 = vector.extract_strided_slice %265 {offsets = [0, 32], sizes = [8, 32], strides = [1, 1]} : vector<8x96xf32> to vector<8x32xf32>
    %278 = vector.extract_strided_slice %268 {offsets = [0, 32], sizes = [8, 32], strides = [1, 1]} : vector<8x96xf32> to vector<8x32xf32>
    %279 = arith.addf %277, %278 : vector<8x32xf32>
    %280 = arith.negf %279 : vector<8x32xf32>
    %281 = math.exp %280 : vector<8x32xf32>
    %cst_71 = arith.constant 1.000000e+00 : f32
    %282 = vector.broadcast %cst_71 : f32 to vector<8x32xf32>
    %283 = arith.addf %282, %281 : vector<8x32xf32>
    %284 = arith.divf %282, %283 : vector<8x32xf32>
    %285 = vector.extract_strided_slice %265 {offsets = [0, 64], sizes = [8, 32], strides = [1, 1]} : vector<8x96xf32> to vector<8x32xf32>
    %286 = vector.extract_strided_slice %268 {offsets = [0, 64], sizes = [8, 32], strides = [1, 1]} : vector<8x96xf32> to vector<8x32xf32>
    %287 = arith.mulf %276, %286 : vector<8x32xf32>
    %288 = arith.addf %285, %287 : vector<8x32xf32>
    %289 = math.tanh %288 : vector<8x32xf32>
    %cst_72 = arith.constant 1.000000e+00 : f32
    %290 = vector.broadcast %cst_72 : f32 to vector<8x32xf32>
    %291 = arith.subf %290, %284 : vector<8x32xf32>
    %292 = arith.mulf %291, %289 : vector<8x32xf32>
    %293 = arith.mulf %284, %257 : vector<8x32xf32>
    %294 = arith.addf %292, %293 : vector<8x32xf32>
    %295 = arith.index_cast %262 : i32 to index
    %c0_73 = arith.constant 0 : index
    %c0_74 = arith.constant 0 : index
    %296 = vector.load %arg4[%295, %c0_73, %c0_74] : memref<8x8x32xf32, #tpu.memory_space<vmem>>, vector<1x8x32xf32>
    %297 = vector.shape_cast %296 : vector<1x8x32xf32> to vector<8x32xf32>
    %298 = vector.shape_cast %294 : vector<8x32xf32> to vector<1x8x32xf32>
    tpu.vector_store %arg4[%295, %c0_73, %c0_74], %298 {strides = array<i32>} : memref<8x8x32xf32, #tpu.memory_space<vmem>>, vector<1x8x32xf32>,
    %c8_i32 = arith.constant 8 : i32
    return
  }
  func.func @transform_0(%arg0: i32) -> (i32, i32, i32) {
    %c0_i32 = arith.constant 0 : i32
    %c0_i32_0 = arith.constant 0 : i32
    %c0_i32_1 = arith.constant 0 : i32
    return %c0_i32, %arg0, %c0_i32_0 : i32, i32, i32
  }
  func.func @transform_1(%arg0: i32) -> (i32, i32) {
    %c0_i32 = arith.constant 0 : i32
    %c0_i32_0 = arith.constant 0 : i32
    %c0_i32_1 = arith.constant 0 : i32
    return %c0_i32, %c0_i32_0 : i32, i32
  }
  func.func @transform_2(%arg0: i32) -> (i32, i32) {
    %c0_i32 = arith.constant 0 : i32
    %c0_i32_0 = arith.constant 0 : i32
    %c0_i32_1 = arith.constant 0 : i32
    return %c0_i32, %c0_i32_0 : i32, i32
  }
  func.func @transform_3(%arg0: i32) -> (i32, i32, i32) {
    %c0_i32 = arith.constant 0 : i32
    %c0_i32_0 = arith.constant 0 : i32
    %c0_i32_1 = arith.constant 0 : i32
    return %c0_i32, %arg0, %c0_i32_0 : i32, i32, i32
  }
}

module attributes {stable_mosaic.version = 11 : i64} {
  func.func @_gru_kernel(%arg0: i32, %arg1: memref<8x8x96xf32, #tpu.memory_space<vmem>>, %arg2: memref<32x96xf32, #tpu.memory_space<vmem>>, %arg3: memref<1x96xf32, #tpu.memory_space<vmem>>, %arg4: memref<8x8x32xf32, #tpu.memory_space<vmem>>) attributes {dimension_semantics = [#tpu.dimension_semantics<parallel>], iteration_bounds = array<i64: 2>, scalar_prefetch = 0 : i64, scratch_operands = 0 : i64, tpu.core_type = #tpu.core_type<tc>, window_params = [{transform_indices = @transform_0, window_bounds = array<i64: 8, 8, 96>}, {pipeline_mode = #tpu.pipeline_mode<synchronous>, transform_indices = @transform_1, window_bounds = array<i64: 32, 96>}, {pipeline_mode = #tpu.pipeline_mode<synchronous>, transform_indices = @transform_2, window_bounds = array<i64: 1, 96>}, {transform_indices = @transform_3, window_bounds = array<i64: 8, 8, 32>}]} {
    %c0 = arith.constant 0 : index
    %c0_0 = arith.constant 0 : index
    %0 = vector.load %arg2[%c0, %c0_0] : memref<32x96xf32, #tpu.memory_space<vmem>>, vector<32x96xf32>
    %c0_1 = arith.constant 0 : index
    %c0_2 = arith.constant 0 : index
    %1 = vector.load %arg3[%c0_1, %c0_2] : memref<1x96xf32, #tpu.memory_space<vmem>>, vector<1x96xf32>
    %cst = arith.constant 0.000000e+00 : f32
    %2 = vector.broadcast %cst : f32 to vector<8x32xf32>
    %c0_i32 = arith.constant 0 : i32
    %3 = arith.index_cast %c0_i32 : i32 to index
    %c0_3 = arith.constant 0 : index
    %c0_4 = arith.constant 0 : index
    %4 = vector.load %arg1[%3, %c0_3, %c0_4] : memref<8x8x96xf32, #tpu.memory_space<vmem>>, vector<1x8x96xf32>
    %5 = vector.shape_cast %4 : vector<1x8x96xf32> to vector<8x96xf32>
    %cst_5 = arith.constant dense<0.000000e+00> : vector<8x96xf32>
    %6 = tpu.matmul %2, %0, %cst_5 {dimension_numbers = #tpu.dot_dimension_numbers<[1], [0], [0], [1], [0, 0, 1, 1], [], []>} : vector<8x32xf32>, vector<32x96xf32>, vector<8x96xf32> -> vector<8x96xf32>
    %7 = vector.broadcast %1 : vector<1x96xf32> to vector<8x96xf32>
    %8 = arith.addf %6, %7 : vector<8x96xf32>
    %9 = vector.extract_strided_slice %5 {offsets = [0, 0], sizes = [8, 32], strides = [1, 1]} : vector<8x96xf32> to vector<8x32xf32>
    %10 = vector.extract_strided_slice %8 {offsets = [0, 0], sizes = [8, 32], strides = [1, 1]} : vector<8x96xf32> to vector<8x32xf32>
    %11 = arith.addf %9, %10 : vector<8x32xf32>
    %12 = arith.negf %11 : vector<8x32xf32>
    %13 = math.exp %12 : vector<8x32xf32>
    %cst_6 = arith.constant 1.000000e+00 : f32
    %14 = vector.broadcast %cst_6 : f32 to vector<8x32xf32>
    %15 = arith.addf %14, %13 : vector<8x32xf32>
    %16 = arith.divf %14, %15 : vector<8x32xf32>
    %17 = vector.extract_strided_slice %5 {offsets = [0, 32], sizes = [8, 32], strides = [1, 1]} : vector<8x96xf32> to vector<8x32xf32>
    %18 = vector.extract_strided_slice %8 {offsets = [0, 32], sizes = [8, 32], strides = [1, 1]} : vector<8x96xf32> to vector<8x32xf32>
    %19 = arith.addf %17, %18 : vector<8x32xf32>
    %20 = arith.negf %19 : vector<8x32xf32>
    %21 = math.exp %20 : vector<8x32xf32>
    %cst_7 = arith.constant 1.000000e+00 : f32
    %22 = vector.broadcast %cst_7 : f32 to vector<8x32xf32>
    %23 = arith.addf %22, %21 : vector<8x32xf32>
    %24 = arith.divf %22, %23 : vector<8x32xf32>
    %25 = vector.extract_strided_slice %5 {offsets = [0, 64], sizes = [8, 32], strides = [1, 1]} : vector<8x96xf32> to vector<8x32xf32>
    %26 = vector.extract_strided_slice %8 {offsets = [0, 64], sizes = [8, 32], strides = [1, 1]} : vector<8x96xf32> to vector<8x32xf32>
    %27 = arith.mulf %16, %26 : vector<8x32xf32>
    %28 = arith.addf %25, %27 : vector<8x32xf32>
    %29 = math.tanh %28 : vector<8x32xf32>
    %cst_8 = arith.constant 1.000000e+00 : f32
    %30 = vector.broadcast %cst_8 : f32 to vector<8x32xf32>
    %31 = arith.subf %30, %24 : vector<8x32xf32>
    %32 = arith.mulf %31, %29 : vector<8x32xf32>
    %33 = arith.mulf %24, %2 : vector<8x32xf32>
    %34 = arith.addf %32, %33 : vector<8x32xf32>
    %35 = arith.index_cast %c0_i32 : i32 to index
    %c0_9 = arith.constant 0 : index
    %c0_10 = arith.constant 0 : index
    %36 = vector.load %arg4[%35, %c0_9, %c0_10] : memref<8x8x32xf32, #tpu.memory_space<vmem>>, vector<1x8x32xf32>
    %37 = vector.shape_cast %36 : vector<1x8x32xf32> to vector<8x32xf32>
    %38 = vector.shape_cast %34 : vector<8x32xf32> to vector<1x8x32xf32>
    tpu.vector_store %arg4[%35, %c0_9, %c0_10], %38 {strides = array<i32>} : memref<8x8x32xf32, #tpu.memory_space<vmem>>, vector<1x8x32xf32>,
    %c1_i32 = arith.constant 1 : i32
    %39 = arith.index_cast %c1_i32 : i32 to index
    %c0_11 = arith.constant 0 : index
    %c0_12 = arith.constant 0 : index
    %40 = vector.load %arg1[%39, %c0_11, %c0_12] : memref<8x8x96xf32, #tpu.memory_space<vmem>>, vector<1x8x96xf32>
    %41 = vector.shape_cast %40 : vector<1x8x96xf32> to vector<8x96xf32>
    %cst_13 = arith.constant dense<0.000000e+00> : vector<8x96xf32>
    %42 = tpu.matmul %34, %0, %cst_13 {dimension_numbers = #tpu.dot_dimension_numbers<[1], [0], [0], [1], [0, 0, 1, 1], [], []>} : vector<8x32xf32>, vector<32x96xf32>, vector<8x96xf32> -> vector<8x96xf32>
    %43 = vector.broadcast %1 : vector<1x96xf32> to vector<8x96xf32>
    %44 = arith.addf %42, %43 : vector<8x96xf32>
    %45 = vector.extract_strided_slice %41 {offsets = [0, 0], sizes = [8, 32], strides = [1, 1]} : vector<8x96xf32> to vector<8x32xf32>
    %46 = vector.extract_strided_slice %44 {offsets = [0, 0], sizes = [8, 32], strides = [1, 1]} : vector<8x96xf32> to vector<8x32xf32>
    %47 = arith.addf %45, %46 : vector<8x32xf32>
    %48 = arith.negf %47 : vector<8x32xf32>
    %49 = math.exp %48 : vector<8x32xf32>
    %cst_14 = arith.constant 1.000000e+00 : f32
    %50 = vector.broadcast %cst_14 : f32 to vector<8x32xf32>
    %51 = arith.addf %50, %49 : vector<8x32xf32>
    %52 = arith.divf %50, %51 : vector<8x32xf32>
    %53 = vector.extract_strided_slice %41 {offsets = [0, 32], sizes = [8, 32], strides = [1, 1]} : vector<8x96xf32> to vector<8x32xf32>
    %54 = vector.extract_strided_slice %44 {offsets = [0, 32], sizes = [8, 32], strides = [1, 1]} : vector<8x96xf32> to vector<8x32xf32>
    %55 = arith.addf %53, %54 : vector<8x32xf32>
    %56 = arith.negf %55 : vector<8x32xf32>
    %57 = math.exp %56 : vector<8x32xf32>
    %cst_15 = arith.constant 1.000000e+00 : f32
    %58 = vector.broadcast %cst_15 : f32 to vector<8x32xf32>
    %59 = arith.addf %58, %57 : vector<8x32xf32>
    %60 = arith.divf %58, %59 : vector<8x32xf32>
    %61 = vector.extract_strided_slice %41 {offsets = [0, 64], sizes = [8, 32], strides = [1, 1]} : vector<8x96xf32> to vector<8x32xf32>
    %62 = vector.extract_strided_slice %44 {offsets = [0, 64], sizes = [8, 32], strides = [1, 1]} : vector<8x96xf32> to vector<8x32xf32>
    %63 = arith.mulf %52, %62 : vector<8x32xf32>
    %64 = arith.addf %61, %63 : vector<8x32xf32>
    %65 = math.tanh %64 : vector<8x32xf32>
    %cst_16 = arith.constant 1.000000e+00 : f32
    %66 = vector.broadcast %cst_16 : f32 to vector<8x32xf32>
    %67 = arith.subf %66, %60 : vector<8x32xf32>
    %68 = arith.mulf %67, %65 : vector<8x32xf32>
    %69 = arith.mulf %60, %34 : vector<8x32xf32>
    %70 = arith.addf %68, %69 : vector<8x32xf32>
    %71 = arith.index_cast %c1_i32 : i32 to index
    %c0_17 = arith.constant 0 : index
    %c0_18 = arith.constant 0 : index
    %72 = vector.load %arg4[%71, %c0_17, %c0_18] : memref<8x8x32xf32, #tpu.memory_space<vmem>>, vector<1x8x32xf32>
    %73 = vector.shape_cast %72 : vector<1x8x32xf32> to vector<8x32xf32>
    %74 = vector.shape_cast %70 : vector<8x32xf32> to vector<1x8x32xf32>
    tpu.vector_store %arg4[%71, %c0_17, %c0_18], %74 {strides = array<i32>} : memref<8x8x32xf32, #tpu.memory_space<vmem>>, vector<1x8x32xf32>,
    %c2_i32 = arith.constant 2 : i32
    %75 = arith.index_cast %c2_i32 : i32 to index
    %c0_19 = arith.constant 0 : index
    %c0_20 = arith.constant 0 : index
    %76 = vector.load %arg1[%75, %c0_19, %c0_20] : memref<8x8x96xf32, #tpu.memory_space<vmem>>, vector<1x8x96xf32>
    %77 = vector.shape_cast %76 : vector<1x8x96xf32> to vector<8x96xf32>
    %cst_21 = arith.constant dense<0.000000e+00> : vector<8x96xf32>
    %78 = tpu.matmul %70, %0, %cst_21 {dimension_numbers = #tpu.dot_dimension_numbers<[1], [0], [0], [1], [0, 0, 1, 1], [], []>} : vector<8x32xf32>, vector<32x96xf32>, vector<8x96xf32> -> vector<8x96xf32>
    %79 = vector.broadcast %1 : vector<1x96xf32> to vector<8x96xf32>
    %80 = arith.addf %78, %79 : vector<8x96xf32>
    %81 = vector.extract_strided_slice %77 {offsets = [0, 0], sizes = [8, 32], strides = [1, 1]} : vector<8x96xf32> to vector<8x32xf32>
    %82 = vector.extract_strided_slice %80 {offsets = [0, 0], sizes = [8, 32], strides = [1, 1]} : vector<8x96xf32> to vector<8x32xf32>
    %83 = arith.addf %81, %82 : vector<8x32xf32>
    %84 = arith.negf %83 : vector<8x32xf32>
    %85 = math.exp %84 : vector<8x32xf32>
    %cst_22 = arith.constant 1.000000e+00 : f32
    %86 = vector.broadcast %cst_22 : f32 to vector<8x32xf32>
    %87 = arith.addf %86, %85 : vector<8x32xf32>
    %88 = arith.divf %86, %87 : vector<8x32xf32>
    %89 = vector.extract_strided_slice %77 {offsets = [0, 32], sizes = [8, 32], strides = [1, 1]} : vector<8x96xf32> to vector<8x32xf32>
    %90 = vector.extract_strided_slice %80 {offsets = [0, 32], sizes = [8, 32], strides = [1, 1]} : vector<8x96xf32> to vector<8x32xf32>
    %91 = arith.addf %89, %90 : vector<8x32xf32>
    %92 = arith.negf %91 : vector<8x32xf32>
    %93 = math.exp %92 : vector<8x32xf32>
    %cst_23 = arith.constant 1.000000e+00 : f32
    %94 = vector.broadcast %cst_23 : f32 to vector<8x32xf32>
    %95 = arith.addf %94, %93 : vector<8x32xf32>
    %96 = arith.divf %94, %95 : vector<8x32xf32>
    %97 = vector.extract_strided_slice %77 {offsets = [0, 64], sizes = [8, 32], strides = [1, 1]} : vector<8x96xf32> to vector<8x32xf32>
    %98 = vector.extract_strided_slice %80 {offsets = [0, 64], sizes = [8, 32], strides = [1, 1]} : vector<8x96xf32> to vector<8x32xf32>
    %99 = arith.mulf %88, %98 : vector<8x32xf32>
    %100 = arith.addf %97, %99 : vector<8x32xf32>
    %101 = math.tanh %100 : vector<8x32xf32>
    %cst_24 = arith.constant 1.000000e+00 : f32
    %102 = vector.broadcast %cst_24 : f32 to vector<8x32xf32>
    %103 = arith.subf %102, %96 : vector<8x32xf32>
    %104 = arith.mulf %103, %101 : vector<8x32xf32>
    %105 = arith.mulf %96, %70 : vector<8x32xf32>
    %106 = arith.addf %104, %105 : vector<8x32xf32>
    %107 = arith.index_cast %c2_i32 : i32 to index
    %c0_25 = arith.constant 0 : index
    %c0_26 = arith.constant 0 : index
    %108 = vector.load %arg4[%107, %c0_25, %c0_26] : memref<8x8x32xf32, #tpu.memory_space<vmem>>, vector<1x8x32xf32>
    %109 = vector.shape_cast %108 : vector<1x8x32xf32> to vector<8x32xf32>
    %110 = vector.shape_cast %106 : vector<8x32xf32> to vector<1x8x32xf32>
    tpu.vector_store %arg4[%107, %c0_25, %c0_26], %110 {strides = array<i32>} : memref<8x8x32xf32, #tpu.memory_space<vmem>>, vector<1x8x32xf32>,
    %c3_i32 = arith.constant 3 : i32
    %111 = arith.index_cast %c3_i32 : i32 to index
    %c0_27 = arith.constant 0 : index
    %c0_28 = arith.constant 0 : index
    %112 = vector.load %arg1[%111, %c0_27, %c0_28] : memref<8x8x96xf32, #tpu.memory_space<vmem>>, vector<1x8x96xf32>
    %113 = vector.shape_cast %112 : vector<1x8x96xf32> to vector<8x96xf32>
    %cst_29 = arith.constant dense<0.000000e+00> : vector<8x96xf32>
    %114 = tpu.matmul %106, %0, %cst_29 {dimension_numbers = #tpu.dot_dimension_numbers<[1], [0], [0], [1], [0, 0, 1, 1], [], []>} : vector<8x32xf32>, vector<32x96xf32>, vector<8x96xf32> -> vector<8x96xf32>
    %115 = vector.broadcast %1 : vector<1x96xf32> to vector<8x96xf32>
    %116 = arith.addf %114, %115 : vector<8x96xf32>
    %117 = vector.extract_strided_slice %113 {offsets = [0, 0], sizes = [8, 32], strides = [1, 1]} : vector<8x96xf32> to vector<8x32xf32>
    %118 = vector.extract_strided_slice %116 {offsets = [0, 0], sizes = [8, 32], strides = [1, 1]} : vector<8x96xf32> to vector<8x32xf32>
    %119 = arith.addf %117, %118 : vector<8x32xf32>
    %120 = arith.negf %119 : vector<8x32xf32>
    %121 = math.exp %120 : vector<8x32xf32>
    %cst_30 = arith.constant 1.000000e+00 : f32
    %122 = vector.broadcast %cst_30 : f32 to vector<8x32xf32>
    %123 = arith.addf %122, %121 : vector<8x32xf32>
    %124 = arith.divf %122, %123 : vector<8x32xf32>
    %125 = vector.extract_strided_slice %113 {offsets = [0, 32], sizes = [8, 32], strides = [1, 1]} : vector<8x96xf32> to vector<8x32xf32>
    %126 = vector.extract_strided_slice %116 {offsets = [0, 32], sizes = [8, 32], strides = [1, 1]} : vector<8x96xf32> to vector<8x32xf32>
    %127 = arith.addf %125, %126 : vector<8x32xf32>
    %128 = arith.negf %127 : vector<8x32xf32>
    %129 = math.exp %128 : vector<8x32xf32>
    %cst_31 = arith.constant 1.000000e+00 : f32
    %130 = vector.broadcast %cst_31 : f32 to vector<8x32xf32>
    %131 = arith.addf %130, %129 : vector<8x32xf32>
    %132 = arith.divf %130, %131 : vector<8x32xf32>
    %133 = vector.extract_strided_slice %113 {offsets = [0, 64], sizes = [8, 32], strides = [1, 1]} : vector<8x96xf32> to vector<8x32xf32>
    %134 = vector.extract_strided_slice %116 {offsets = [0, 64], sizes = [8, 32], strides = [1, 1]} : vector<8x96xf32> to vector<8x32xf32>
    %135 = arith.mulf %124, %134 : vector<8x32xf32>
    %136 = arith.addf %133, %135 : vector<8x32xf32>
    %137 = math.tanh %136 : vector<8x32xf32>
    %cst_32 = arith.constant 1.000000e+00 : f32
    %138 = vector.broadcast %cst_32 : f32 to vector<8x32xf32>
    %139 = arith.subf %138, %132 : vector<8x32xf32>
    %140 = arith.mulf %139, %137 : vector<8x32xf32>
    %141 = arith.mulf %132, %106 : vector<8x32xf32>
    %142 = arith.addf %140, %141 : vector<8x32xf32>
    %143 = arith.index_cast %c3_i32 : i32 to index
    %c0_33 = arith.constant 0 : index
    %c0_34 = arith.constant 0 : index
    %144 = vector.load %arg4[%143, %c0_33, %c0_34] : memref<8x8x32xf32, #tpu.memory_space<vmem>>, vector<1x8x32xf32>
    %145 = vector.shape_cast %144 : vector<1x8x32xf32> to vector<8x32xf32>
    %146 = vector.shape_cast %142 : vector<8x32xf32> to vector<1x8x32xf32>
    tpu.vector_store %arg4[%143, %c0_33, %c0_34], %146 {strides = array<i32>} : memref<8x8x32xf32, #tpu.memory_space<vmem>>, vector<1x8x32xf32>,
    %c4_i32 = arith.constant 4 : i32
    %147 = arith.index_cast %c4_i32 : i32 to index
    %c0_35 = arith.constant 0 : index
    %c0_36 = arith.constant 0 : index
    %148 = vector.load %arg1[%147, %c0_35, %c0_36] : memref<8x8x96xf32, #tpu.memory_space<vmem>>, vector<1x8x96xf32>
    %149 = vector.shape_cast %148 : vector<1x8x96xf32> to vector<8x96xf32>
    %cst_37 = arith.constant dense<0.000000e+00> : vector<8x96xf32>
    %150 = tpu.matmul %142, %0, %cst_37 {dimension_numbers = #tpu.dot_dimension_numbers<[1], [0], [0], [1], [0, 0, 1, 1], [], []>} : vector<8x32xf32>, vector<32x96xf32>, vector<8x96xf32> -> vector<8x96xf32>
    %151 = vector.broadcast %1 : vector<1x96xf32> to vector<8x96xf32>
    %152 = arith.addf %150, %151 : vector<8x96xf32>
    %153 = vector.extract_strided_slice %149 {offsets = [0, 0], sizes = [8, 32], strides = [1, 1]} : vector<8x96xf32> to vector<8x32xf32>
    %154 = vector.extract_strided_slice %152 {offsets = [0, 0], sizes = [8, 32], strides = [1, 1]} : vector<8x96xf32> to vector<8x32xf32>
    %155 = arith.addf %153, %154 : vector<8x32xf32>
    %156 = arith.negf %155 : vector<8x32xf32>
    %157 = math.exp %156 : vector<8x32xf32>
    %cst_38 = arith.constant 1.000000e+00 : f32
    %158 = vector.broadcast %cst_38 : f32 to vector<8x32xf32>
    %159 = arith.addf %158, %157 : vector<8x32xf32>
    %160 = arith.divf %158, %159 : vector<8x32xf32>
    %161 = vector.extract_strided_slice %149 {offsets = [0, 32], sizes = [8, 32], strides = [1, 1]} : vector<8x96xf32> to vector<8x32xf32>
    %162 = vector.extract_strided_slice %152 {offsets = [0, 32], sizes = [8, 32], strides = [1, 1]} : vector<8x96xf32> to vector<8x32xf32>
    %163 = arith.addf %161, %162 : vector<8x32xf32>
    %164 = arith.negf %163 : vector<8x32xf32>
    %165 = math.exp %164 : vector<8x32xf32>
    %cst_39 = arith.constant 1.000000e+00 : f32
    %166 = vector.broadcast %cst_39 : f32 to vector<8x32xf32>
    %167 = arith.addf %166, %165 : vector<8x32xf32>
    %168 = arith.divf %166, %167 : vector<8x32xf32>
    %169 = vector.extract_strided_slice %149 {offsets = [0, 64], sizes = [8, 32], strides = [1, 1]} : vector<8x96xf32> to vector<8x32xf32>
    %170 = vector.extract_strided_slice %152 {offsets = [0, 64], sizes = [8, 32], strides = [1, 1]} : vector<8x96xf32> to vector<8x32xf32>
    %171 = arith.mulf %160, %170 : vector<8x32xf32>
    %172 = arith.addf %169, %171 : vector<8x32xf32>
    %173 = math.tanh %172 : vector<8x32xf32>
    %cst_40 = arith.constant 1.000000e+00 : f32
    %174 = vector.broadcast %cst_40 : f32 to vector<8x32xf32>
    %175 = arith.subf %174, %168 : vector<8x32xf32>
    %176 = arith.mulf %175, %173 : vector<8x32xf32>
    %177 = arith.mulf %168, %142 : vector<8x32xf32>
    %178 = arith.addf %176, %177 : vector<8x32xf32>
    %179 = arith.index_cast %c4_i32 : i32 to index
    %c0_41 = arith.constant 0 : index
    %c0_42 = arith.constant 0 : index
    %180 = vector.load %arg4[%179, %c0_41, %c0_42] : memref<8x8x32xf32, #tpu.memory_space<vmem>>, vector<1x8x32xf32>
    %181 = vector.shape_cast %180 : vector<1x8x32xf32> to vector<8x32xf32>
    %182 = vector.shape_cast %178 : vector<8x32xf32> to vector<1x8x32xf32>
    tpu.vector_store %arg4[%179, %c0_41, %c0_42], %182 {strides = array<i32>} : memref<8x8x32xf32, #tpu.memory_space<vmem>>, vector<1x8x32xf32>,
    %c5_i32 = arith.constant 5 : i32
    %183 = arith.index_cast %c5_i32 : i32 to index
    %c0_43 = arith.constant 0 : index
    %c0_44 = arith.constant 0 : index
    %184 = vector.load %arg1[%183, %c0_43, %c0_44] : memref<8x8x96xf32, #tpu.memory_space<vmem>>, vector<1x8x96xf32>
    %185 = vector.shape_cast %184 : vector<1x8x96xf32> to vector<8x96xf32>
    %cst_45 = arith.constant dense<0.000000e+00> : vector<8x96xf32>
    %186 = tpu.matmul %178, %0, %cst_45 {dimension_numbers = #tpu.dot_dimension_numbers<[1], [0], [0], [1], [0, 0, 1, 1], [], []>} : vector<8x32xf32>, vector<32x96xf32>, vector<8x96xf32> -> vector<8x96xf32>
    %187 = vector.broadcast %1 : vector<1x96xf32> to vector<8x96xf32>
    %188 = arith.addf %186, %187 : vector<8x96xf32>
    %189 = vector.extract_strided_slice %185 {offsets = [0, 0], sizes = [8, 32], strides = [1, 1]} : vector<8x96xf32> to vector<8x32xf32>
    %190 = vector.extract_strided_slice %188 {offsets = [0, 0], sizes = [8, 32], strides = [1, 1]} : vector<8x96xf32> to vector<8x32xf32>
    %191 = arith.addf %189, %190 : vector<8x32xf32>
    %192 = arith.negf %191 : vector<8x32xf32>
    %193 = math.exp %192 : vector<8x32xf32>
    %cst_46 = arith.constant 1.000000e+00 : f32
    %194 = vector.broadcast %cst_46 : f32 to vector<8x32xf32>
    %195 = arith.addf %194, %193 : vector<8x32xf32>
    %196 = arith.divf %194, %195 : vector<8x32xf32>
    %197 = vector.extract_strided_slice %185 {offsets = [0, 32], sizes = [8, 32], strides = [1, 1]} : vector<8x96xf32> to vector<8x32xf32>
    %198 = vector.extract_strided_slice %188 {offsets = [0, 32], sizes = [8, 32], strides = [1, 1]} : vector<8x96xf32> to vector<8x32xf32>
    %199 = arith.addf %197, %198 : vector<8x32xf32>
    %200 = arith.negf %199 : vector<8x32xf32>
    %201 = math.exp %200 : vector<8x32xf32>
    %cst_47 = arith.constant 1.000000e+00 : f32
    %202 = vector.broadcast %cst_47 : f32 to vector<8x32xf32>
    %203 = arith.addf %202, %201 : vector<8x32xf32>
    %204 = arith.divf %202, %203 : vector<8x32xf32>
    %205 = vector.extract_strided_slice %185 {offsets = [0, 64], sizes = [8, 32], strides = [1, 1]} : vector<8x96xf32> to vector<8x32xf32>
    %206 = vector.extract_strided_slice %188 {offsets = [0, 64], sizes = [8, 32], strides = [1, 1]} : vector<8x96xf32> to vector<8x32xf32>
    %207 = arith.mulf %196, %206 : vector<8x32xf32>
    %208 = arith.addf %205, %207 : vector<8x32xf32>
    %209 = math.tanh %208 : vector<8x32xf32>
    %cst_48 = arith.constant 1.000000e+00 : f32
    %210 = vector.broadcast %cst_48 : f32 to vector<8x32xf32>
    %211 = arith.subf %210, %204 : vector<8x32xf32>
    %212 = arith.mulf %211, %209 : vector<8x32xf32>
    %213 = arith.mulf %204, %178 : vector<8x32xf32>
    %214 = arith.addf %212, %213 : vector<8x32xf32>
    %215 = arith.index_cast %c5_i32 : i32 to index
    %c0_49 = arith.constant 0 : index
    %c0_50 = arith.constant 0 : index
    %216 = vector.load %arg4[%215, %c0_49, %c0_50] : memref<8x8x32xf32, #tpu.memory_space<vmem>>, vector<1x8x32xf32>
    %217 = vector.shape_cast %216 : vector<1x8x32xf32> to vector<8x32xf32>
    %218 = vector.shape_cast %214 : vector<8x32xf32> to vector<1x8x32xf32>
    tpu.vector_store %arg4[%215, %c0_49, %c0_50], %218 {strides = array<i32>} : memref<8x8x32xf32, #tpu.memory_space<vmem>>, vector<1x8x32xf32>,
    %c6_i32 = arith.constant 6 : i32
    %219 = arith.index_cast %c6_i32 : i32 to index
    %c0_51 = arith.constant 0 : index
    %c0_52 = arith.constant 0 : index
    %220 = vector.load %arg1[%219, %c0_51, %c0_52] : memref<8x8x96xf32, #tpu.memory_space<vmem>>, vector<1x8x96xf32>
    %221 = vector.shape_cast %220 : vector<1x8x96xf32> to vector<8x96xf32>
    %cst_53 = arith.constant dense<0.000000e+00> : vector<8x96xf32>
    %222 = tpu.matmul %214, %0, %cst_53 {dimension_numbers = #tpu.dot_dimension_numbers<[1], [0], [0], [1], [0, 0, 1, 1], [], []>} : vector<8x32xf32>, vector<32x96xf32>, vector<8x96xf32> -> vector<8x96xf32>
    %223 = vector.broadcast %1 : vector<1x96xf32> to vector<8x96xf32>
    %224 = arith.addf %222, %223 : vector<8x96xf32>
    %225 = vector.extract_strided_slice %221 {offsets = [0, 0], sizes = [8, 32], strides = [1, 1]} : vector<8x96xf32> to vector<8x32xf32>
    %226 = vector.extract_strided_slice %224 {offsets = [0, 0], sizes = [8, 32], strides = [1, 1]} : vector<8x96xf32> to vector<8x32xf32>
    %227 = arith.addf %225, %226 : vector<8x32xf32>
    %228 = arith.negf %227 : vector<8x32xf32>
    %229 = math.exp %228 : vector<8x32xf32>
    %cst_54 = arith.constant 1.000000e+00 : f32
    %230 = vector.broadcast %cst_54 : f32 to vector<8x32xf32>
    %231 = arith.addf %230, %229 : vector<8x32xf32>
    %232 = arith.divf %230, %231 : vector<8x32xf32>
    %233 = vector.extract_strided_slice %221 {offsets = [0, 32], sizes = [8, 32], strides = [1, 1]} : vector<8x96xf32> to vector<8x32xf32>
    %234 = vector.extract_strided_slice %224 {offsets = [0, 32], sizes = [8, 32], strides = [1, 1]} : vector<8x96xf32> to vector<8x32xf32>
    %235 = arith.addf %233, %234 : vector<8x32xf32>
    %236 = arith.negf %235 : vector<8x32xf32>
    %237 = math.exp %236 : vector<8x32xf32>
    %cst_55 = arith.constant 1.000000e+00 : f32
    %238 = vector.broadcast %cst_55 : f32 to vector<8x32xf32>
    %239 = arith.addf %238, %237 : vector<8x32xf32>
    %240 = arith.divf %238, %239 : vector<8x32xf32>
    %241 = vector.extract_strided_slice %221 {offsets = [0, 64], sizes = [8, 32], strides = [1, 1]} : vector<8x96xf32> to vector<8x32xf32>
    %242 = vector.extract_strided_slice %224 {offsets = [0, 64], sizes = [8, 32], strides = [1, 1]} : vector<8x96xf32> to vector<8x32xf32>
    %243 = arith.mulf %232, %242 : vector<8x32xf32>
    %244 = arith.addf %241, %243 : vector<8x32xf32>
    %245 = math.tanh %244 : vector<8x32xf32>
    %cst_56 = arith.constant 1.000000e+00 : f32
    %246 = vector.broadcast %cst_56 : f32 to vector<8x32xf32>
    %247 = arith.subf %246, %240 : vector<8x32xf32>
    %248 = arith.mulf %247, %245 : vector<8x32xf32>
    %249 = arith.mulf %240, %214 : vector<8x32xf32>
    %250 = arith.addf %248, %249 : vector<8x32xf32>
    %251 = arith.index_cast %c6_i32 : i32 to index
    %c0_57 = arith.constant 0 : index
    %c0_58 = arith.constant 0 : index
    %252 = vector.load %arg4[%251, %c0_57, %c0_58] : memref<8x8x32xf32, #tpu.memory_space<vmem>>, vector<1x8x32xf32>
    %253 = vector.shape_cast %252 : vector<1x8x32xf32> to vector<8x32xf32>
    %254 = vector.shape_cast %250 : vector<8x32xf32> to vector<1x8x32xf32>
    tpu.vector_store %arg4[%251, %c0_57, %c0_58], %254 {strides = array<i32>} : memref<8x8x32xf32, #tpu.memory_space<vmem>>, vector<1x8x32xf32>,
    %c7_i32 = arith.constant 7 : i32
    %255 = arith.index_cast %c7_i32 : i32 to index
    %c0_59 = arith.constant 0 : index
    %c0_60 = arith.constant 0 : index
    %256 = vector.load %arg1[%255, %c0_59, %c0_60] : memref<8x8x96xf32, #tpu.memory_space<vmem>>, vector<1x8x96xf32>
    %257 = vector.shape_cast %256 : vector<1x8x96xf32> to vector<8x96xf32>
    %cst_61 = arith.constant dense<0.000000e+00> : vector<8x96xf32>
    %258 = tpu.matmul %250, %0, %cst_61 {dimension_numbers = #tpu.dot_dimension_numbers<[1], [0], [0], [1], [0, 0, 1, 1], [], []>} : vector<8x32xf32>, vector<32x96xf32>, vector<8x96xf32> -> vector<8x96xf32>
    %259 = vector.broadcast %1 : vector<1x96xf32> to vector<8x96xf32>
    %260 = arith.addf %258, %259 : vector<8x96xf32>
    %261 = vector.extract_strided_slice %257 {offsets = [0, 0], sizes = [8, 32], strides = [1, 1]} : vector<8x96xf32> to vector<8x32xf32>
    %262 = vector.extract_strided_slice %260 {offsets = [0, 0], sizes = [8, 32], strides = [1, 1]} : vector<8x96xf32> to vector<8x32xf32>
    %263 = arith.addf %261, %262 : vector<8x32xf32>
    %264 = arith.negf %263 : vector<8x32xf32>
    %265 = math.exp %264 : vector<8x32xf32>
    %cst_62 = arith.constant 1.000000e+00 : f32
    %266 = vector.broadcast %cst_62 : f32 to vector<8x32xf32>
    %267 = arith.addf %266, %265 : vector<8x32xf32>
    %268 = arith.divf %266, %267 : vector<8x32xf32>
    %269 = vector.extract_strided_slice %257 {offsets = [0, 32], sizes = [8, 32], strides = [1, 1]} : vector<8x96xf32> to vector<8x32xf32>
    %270 = vector.extract_strided_slice %260 {offsets = [0, 32], sizes = [8, 32], strides = [1, 1]} : vector<8x96xf32> to vector<8x32xf32>
    %271 = arith.addf %269, %270 : vector<8x32xf32>
    %272 = arith.negf %271 : vector<8x32xf32>
    %273 = math.exp %272 : vector<8x32xf32>
    %cst_63 = arith.constant 1.000000e+00 : f32
    %274 = vector.broadcast %cst_63 : f32 to vector<8x32xf32>
    %275 = arith.addf %274, %273 : vector<8x32xf32>
    %276 = arith.divf %274, %275 : vector<8x32xf32>
    %277 = vector.extract_strided_slice %257 {offsets = [0, 64], sizes = [8, 32], strides = [1, 1]} : vector<8x96xf32> to vector<8x32xf32>
    %278 = vector.extract_strided_slice %260 {offsets = [0, 64], sizes = [8, 32], strides = [1, 1]} : vector<8x96xf32> to vector<8x32xf32>
    %279 = arith.mulf %268, %278 : vector<8x32xf32>
    %280 = arith.addf %277, %279 : vector<8x32xf32>
    %281 = math.tanh %280 : vector<8x32xf32>
    %cst_64 = arith.constant 1.000000e+00 : f32
    %282 = vector.broadcast %cst_64 : f32 to vector<8x32xf32>
    %283 = arith.subf %282, %276 : vector<8x32xf32>
    %284 = arith.mulf %283, %281 : vector<8x32xf32>
    %285 = arith.mulf %276, %250 : vector<8x32xf32>
    %286 = arith.addf %284, %285 : vector<8x32xf32>
    %287 = arith.index_cast %c7_i32 : i32 to index
    %c0_65 = arith.constant 0 : index
    %c0_66 = arith.constant 0 : index
    %288 = vector.load %arg4[%287, %c0_65, %c0_66] : memref<8x8x32xf32, #tpu.memory_space<vmem>>, vector<1x8x32xf32>
    %289 = vector.shape_cast %288 : vector<1x8x32xf32> to vector<8x32xf32>
    %290 = vector.shape_cast %286 : vector<8x32xf32> to vector<1x8x32xf32>
    tpu.vector_store %arg4[%287, %c0_65, %c0_66], %290 {strides = array<i32>} : memref<8x8x32xf32, #tpu.memory_space<vmem>>, vector<1x8x32xf32>,
    %c8_i32 = arith.constant 8 : i32
    return
  }
  func.func @transform_0(%arg0: i32) -> (i32, i32, i32) {
    %c0_i32 = arith.constant 0 : i32
    %c0_i32_0 = arith.constant 0 : i32
    %c0_i32_1 = arith.constant 0 : i32
    return %c0_i32, %arg0, %c0_i32_0 : i32, i32, i32
  }
  func.func @transform_1(%arg0: i32) -> (i32, i32) {
    %c0_i32 = arith.constant 0 : i32
    %c0_i32_0 = arith.constant 0 : i32
    %c0_i32_1 = arith.constant 0 : i32
    return %c0_i32, %c0_i32_0 : i32, i32
  }
  func.func @transform_2(%arg0: i32) -> (i32, i32) {
    %c0_i32 = arith.constant 0 : i32
    %c0_i32_0 = arith.constant 0 : i32
    %c0_i32_1 = arith.constant 0 : i32
    return %c0_i32, %c0_i32_0 : i32, i32
  }
  func.func @transform_3(%arg0: i32) -> (i32, i32, i32) {
    %c0_i32 = arith.constant 0 : i32
    %c0_i32_0 = arith.constant 0 : i32
    %c0_i32_1 = arith.constant 0 : i32
    return %c0_i32, %arg0, %c0_i32_0 : i32, i32, i32
  }
}

module attributes {stable_mosaic.version = 11 : i64} {
  func.func @_ffn_res_ln_kernel(%arg0: i32, %arg1: memref<128x32xf32, #tpu.memory_space<vmem>>, %arg2: memref<128x32xf32, #tpu.memory_space<vmem>>, %arg3: memref<32x16xf32, #tpu.memory_space<vmem>>, %arg4: memref<32x16xf32, #tpu.memory_space<vmem>>, %arg5: memref<1x16xf32, #tpu.memory_space<vmem>>, %arg6: memref<128x16xf32, #tpu.memory_space<vmem>>, %arg7: memref<1x16xf32, #tpu.memory_space<vmem>>, %arg8: memref<1x16xf32, #tpu.memory_space<vmem>>, %arg9: memref<128x16xf32, #tpu.memory_space<vmem>>) attributes {dimension_semantics = [#tpu.dimension_semantics<parallel>], iteration_bounds = array<i64: 1>, scalar_prefetch = 0 : i64, scratch_operands = 0 : i64, tpu.core_type = #tpu.core_type<tc>, window_params = [{transform_indices = @transform_0, window_bounds = array<i64: 128, 32>}, {transform_indices = @transform_1, window_bounds = array<i64: 128, 32>}, {pipeline_mode = #tpu.pipeline_mode<synchronous>, transform_indices = @transform_2, window_bounds = array<i64: 32, 16>}, {pipeline_mode = #tpu.pipeline_mode<synchronous>, transform_indices = @transform_3, window_bounds = array<i64: 32, 16>}, {pipeline_mode = #tpu.pipeline_mode<synchronous>, transform_indices = @transform_4, window_bounds = array<i64: 1, 16>}, {transform_indices = @transform_5, window_bounds = array<i64: 128, 16>}, {pipeline_mode = #tpu.pipeline_mode<synchronous>, transform_indices = @transform_6, window_bounds = array<i64: 1, 16>}, {pipeline_mode = #tpu.pipeline_mode<synchronous>, transform_indices = @transform_7, window_bounds = array<i64: 1, 16>}, {transform_indices = @transform_8, window_bounds = array<i64: 128, 16>}]} {
    %c0 = arith.constant 0 : index
    %c0_0 = arith.constant 0 : index
    %0 = vector.load %arg1[%c0, %c0_0] : memref<128x32xf32, #tpu.memory_space<vmem>>, vector<128x32xf32>
    %cst = arith.constant 0.000000e+00 : f32
    %1 = vector.broadcast %cst : f32 to vector<128x32xf32>
    %2 = arith.maximumf %0, %1 : vector<128x32xf32>
    %3 = arith.truncf %2 : vector<128x32xf32> to vector<128x32xbf16>
    %c0_1 = arith.constant 0 : index
    %c0_2 = arith.constant 0 : index
    %4 = vector.load %arg2[%c0_1, %c0_2] : memref<128x32xf32, #tpu.memory_space<vmem>>, vector<128x32xf32>
    %cst_3 = arith.constant 0.000000e+00 : f32
    %5 = vector.broadcast %cst_3 : f32 to vector<128x32xf32>
    %6 = arith.maximumf %4, %5 : vector<128x32xf32>
    %7 = arith.truncf %6 : vector<128x32xf32> to vector<128x32xbf16>
    %c0_4 = arith.constant 0 : index
    %c0_5 = arith.constant 0 : index
    %8 = vector.load %arg3[%c0_4, %c0_5] : memref<32x16xf32, #tpu.memory_space<vmem>>, vector<32x16xf32>
    %9 = arith.truncf %8 : vector<32x16xf32> to vector<32x16xbf16>
    %cst_6 = arith.constant dense<0.000000e+00> : vector<128x16xf32>
    %10 = tpu.matmul %3, %9, %cst_6 {dimension_numbers = #tpu.dot_dimension_numbers<[1], [0], [0], [1], [0, 0, 1, 1], [], []>} : vector<128x32xbf16>, vector<32x16xbf16>, vector<128x16xf32> -> vector<128x16xf32>
    %c0_7 = arith.constant 0 : index
    %c0_8 = arith.constant 0 : index
    %11 = vector.load %arg4[%c0_7, %c0_8] : memref<32x16xf32, #tpu.memory_space<vmem>>, vector<32x16xf32>
    %12 = arith.truncf %11 : vector<32x16xf32> to vector<32x16xbf16>
    %cst_9 = arith.constant dense<0.000000e+00> : vector<128x16xf32>
    %13 = tpu.matmul %7, %12, %cst_9 {dimension_numbers = #tpu.dot_dimension_numbers<[1], [0], [0], [1], [0, 0, 1, 1], [], []>} : vector<128x32xbf16>, vector<32x16xbf16>, vector<128x16xf32> -> vector<128x16xf32>
    %14 = arith.addf %10, %13 : vector<128x16xf32>
    %c0_10 = arith.constant 0 : index
    %c0_11 = arith.constant 0 : index
    %15 = vector.load %arg5[%c0_10, %c0_11] : memref<1x16xf32, #tpu.memory_space<vmem>>, vector<1x16xf32>
    %16 = vector.broadcast %15 : vector<1x16xf32> to vector<128x16xf32>
    %17 = arith.addf %14, %16 : vector<128x16xf32>
    %c0_12 = arith.constant 0 : index
    %c0_13 = arith.constant 0 : index
    %18 = vector.load %arg6[%c0_12, %c0_13] : memref<128x16xf32, #tpu.memory_space<vmem>>, vector<128x16xf32>
    %19 = arith.addf %18, %17 : vector<128x16xf32>
    %cst_14 = arith.constant dense<0.000000e+00> : vector<128xf32>
    %20 = vector.multi_reduction <add>, %19, %cst_14 [1] : vector<128x16xf32> to vector<128xf32>
    %21 = vector.shape_cast %20 : vector<128xf32> to vector<128x1xf32>
    %cst_15 = arith.constant 1.600000e+01 : f32
    %22 = vector.broadcast %cst_15 : f32 to vector<128x1xf32>
    %23 = arith.divf %21, %22 : vector<128x1xf32>
    %24 = vector.broadcast %23 : vector<128x1xf32> to vector<128x16xf32>
    %25 = arith.subf %19, %24 : vector<128x16xf32>
    %26 = arith.mulf %25, %25 : vector<128x16xf32>
    %cst_16 = arith.constant dense<0.000000e+00> : vector<128xf32>
    %27 = vector.multi_reduction <add>, %26, %cst_16 [1] : vector<128x16xf32> to vector<128xf32>
    %28 = vector.shape_cast %27 : vector<128xf32> to vector<128x1xf32>
    %cst_17 = arith.constant 1.600000e+01 : f32
    %29 = vector.broadcast %cst_17 : f32 to vector<128x1xf32>
    %30 = arith.divf %28, %29 : vector<128x1xf32>
    %cst_18 = arith.constant 9.99999974E-6 : f32
    %31 = vector.broadcast %cst_18 : f32 to vector<128x1xf32>
    %32 = arith.addf %30, %31 : vector<128x1xf32>
    %33 = math.rsqrt %32 : vector<128x1xf32>
    %34 = vector.broadcast %33 : vector<128x1xf32> to vector<128x16xf32>
    %35 = arith.mulf %25, %34 : vector<128x16xf32>
    %c0_19 = arith.constant 0 : index
    %c0_20 = arith.constant 0 : index
    %36 = vector.load %arg7[%c0_19, %c0_20] : memref<1x16xf32, #tpu.memory_space<vmem>>, vector<1x16xf32>
    %37 = vector.broadcast %36 : vector<1x16xf32> to vector<128x16xf32>
    %38 = arith.mulf %35, %37 : vector<128x16xf32>
    %c0_21 = arith.constant 0 : index
    %c0_22 = arith.constant 0 : index
    %39 = vector.load %arg8[%c0_21, %c0_22] : memref<1x16xf32, #tpu.memory_space<vmem>>, vector<1x16xf32>
    %40 = vector.broadcast %39 : vector<1x16xf32> to vector<128x16xf32>
    %41 = arith.addf %38, %40 : vector<128x16xf32>
    %c0_23 = arith.constant 0 : index
    %c0_24 = arith.constant 0 : index
    %42 = vector.load %arg9[%c0_23, %c0_24] : memref<128x16xf32, #tpu.memory_space<vmem>>, vector<128x16xf32>
    tpu.vector_store %arg9[%c0_23, %c0_24], %41 {strides = array<i32>} : memref<128x16xf32, #tpu.memory_space<vmem>>, vector<128x16xf32>,
    return
  }
  func.func @transform_0(%arg0: i32) -> (i32, i32) {
    %c0_i32 = arith.constant 0 : i32
    %c0_i32_0 = arith.constant 0 : i32
    return %arg0, %c0_i32 : i32, i32
  }
  func.func @transform_1(%arg0: i32) -> (i32, i32) {
    %c0_i32 = arith.constant 0 : i32
    %c0_i32_0 = arith.constant 0 : i32
    return %arg0, %c0_i32 : i32, i32
  }
  func.func @transform_2(%arg0: i32) -> (i32, i32) {
    %c0_i32 = arith.constant 0 : i32
    %c0_i32_0 = arith.constant 0 : i32
    %c0_i32_1 = arith.constant 0 : i32
    return %c0_i32, %c0_i32_0 : i32, i32
  }
  func.func @transform_3(%arg0: i32) -> (i32, i32) {
    %c0_i32 = arith.constant 0 : i32
    %c0_i32_0 = arith.constant 0 : i32
    %c0_i32_1 = arith.constant 0 : i32
    return %c0_i32, %c0_i32_0 : i32, i32
  }
  func.func @transform_4(%arg0: i32) -> (i32, i32) {
    %c0_i32 = arith.constant 0 : i32
    %c0_i32_0 = arith.constant 0 : i32
    %c0_i32_1 = arith.constant 0 : i32
    return %c0_i32, %c0_i32_0 : i32, i32
  }
  func.func @transform_5(%arg0: i32) -> (i32, i32) {
    %c0_i32 = arith.constant 0 : i32
    %c0_i32_0 = arith.constant 0 : i32
    return %arg0, %c0_i32 : i32, i32
  }
  func.func @transform_6(%arg0: i32) -> (i32, i32) {
    %c0_i32 = arith.constant 0 : i32
    %c0_i32_0 = arith.constant 0 : i32
    %c0_i32_1 = arith.constant 0 : i32
    return %c0_i32, %c0_i32_0 : i32, i32
  }
  func.func @transform_7(%arg0: i32) -> (i32, i32) {
    %c0_i32 = arith.constant 0 : i32
    %c0_i32_0 = arith.constant 0 : i32
    %c0_i32_1 = arith.constant 0 : i32
    return %c0_i32, %c0_i32_0 : i32, i32
  }
  func.func @transform_8(%arg0: i32) -> (i32, i32) {
    %c0_i32 = arith.constant 0 : i32
    %c0_i32_0 = arith.constant 0 : i32
    return %arg0, %c0_i32 : i32, i32
  }
}

module attributes {stable_mosaic.version = 11 : i64} {
  func.func @_gn_add_kernel(%arg0: i32, %arg1: memref<1x16x64xf32, #tpu.memory_space<vmem>>, %arg2: memref<1x16x64xf32, #tpu.memory_space<vmem>>, %arg3: memref<16x1xf32, #tpu.memory_space<vmem>>, %arg4: memref<16x1xf32, #tpu.memory_space<vmem>>, %arg5: memref<1x16x64xf32, #tpu.memory_space<vmem>>) attributes {dimension_semantics = [#tpu.dimension_semantics<parallel>], iteration_bounds = array<i64: 2>, scalar_prefetch = 0 : i64, scratch_operands = 0 : i64, tpu.core_type = #tpu.core_type<tc>, window_params = [{transform_indices = @transform_0, window_bounds = array<i64: 1, 16, 64>}, {transform_indices = @transform_1, window_bounds = array<i64: 1, 16, 64>}, {pipeline_mode = #tpu.pipeline_mode<synchronous>, transform_indices = @transform_2, window_bounds = array<i64: 16, 1>}, {pipeline_mode = #tpu.pipeline_mode<synchronous>, transform_indices = @transform_3, window_bounds = array<i64: 16, 1>}, {transform_indices = @transform_4, window_bounds = array<i64: 1, 16, 64>}]} {
    %c0 = arith.constant 0 : index
    %c0_0 = arith.constant 0 : index
    %c0_1 = arith.constant 0 : index
    %0 = vector.load %arg2[%c0, %c0_0, %c0_1] : memref<1x16x64xf32, #tpu.memory_space<vmem>>, vector<1x16x64xf32>
    %1 = vector.shape_cast %0 : vector<1x16x64xf32> to vector<16x64xf32>
    %2 = vector.shape_cast %1 : vector<16x64xf32> to vector<1x16x64xf32>
    %cst = arith.constant dense<0.000000e+00> : vector<1xf32>
    %3 = vector.multi_reduction <add>, %2, %cst [1, 2] : vector<1x16x64xf32> to vector<1xf32>
    %4 = vector.shape_cast %3 : vector<1xf32> to vector<1x1x1xf32>
    %5 = vector.extract %4[0, 0, 0] : f32 from vector<1x1x1xf32>
    %cst_2 = arith.constant 1.024000e+03 : f32
    %6 = arith.divf %5, %cst_2 : f32
    %7 = vector.broadcast %6 : f32 to vector<16x64xf32>
    %8 = arith.subf %1, %7 : vector<16x64xf32>
    %9 = arith.mulf %8, %8 : vector<16x64xf32>
    %10 = vector.shape_cast %9 : vector<16x64xf32> to vector<1x16x64xf32>
    %cst_3 = arith.constant dense<0.000000e+00> : vector<1xf32>
    %11 = vector.multi_reduction <add>, %10, %cst_3 [1, 2] : vector<1x16x64xf32> to vector<1xf32>
    %12 = vector.shape_cast %11 : vector<1xf32> to vector<1x1x1xf32>
    %13 = vector.extract %12[0, 0, 0] : f32 from vector<1x1x1xf32>
    %cst_4 = arith.constant 1.024000e+03 : f32
    %14 = arith.divf %13, %cst_4 : f32
    %cst_5 = arith.constant 9.99999993E-9 : f32
    %15 = arith.addf %14, %cst_5 : f32
    %16 = math.rsqrt %15 : f32
    %17 = vector.broadcast %16 : f32 to vector<16x64xf32>
    %18 = arith.mulf %8, %17 : vector<16x64xf32>
    %c0_6 = arith.constant 0 : index
    %c0_7 = arith.constant 0 : index
    %c0_8 = arith.constant 0 : index
    %19 = vector.load %arg1[%c0_6, %c0_7, %c0_8] : memref<1x16x64xf32, #tpu.memory_space<vmem>>, vector<1x16x64xf32>
    %20 = vector.shape_cast %19 : vector<1x16x64xf32> to vector<16x64xf32>
    %c0_9 = arith.constant 0 : index
    %c0_10 = arith.constant 0 : index
    %21 = vector.load %arg3[%c0_9, %c0_10] : memref<16x1xf32, #tpu.memory_space<vmem>>, vector<16x1xf32>
    %22 = vector.broadcast %21 : vector<16x1xf32> to vector<16x64xf32>
    %23 = arith.mulf %18, %22 : vector<16x64xf32>
    %24 = arith.addf %20, %23 : vector<16x64xf32>
    %c0_11 = arith.constant 0 : index
    %c0_12 = arith.constant 0 : index
    %25 = vector.load %arg4[%c0_11, %c0_12] : memref<16x1xf32, #tpu.memory_space<vmem>>, vector<16x1xf32>
    %26 = vector.broadcast %25 : vector<16x1xf32> to vector<16x64xf32>
    %27 = arith.addf %24, %26 : vector<16x64xf32>
    %c0_13 = arith.constant 0 : index
    %c0_14 = arith.constant 0 : index
    %c0_15 = arith.constant 0 : index
    %28 = vector.load %arg5[%c0_13, %c0_14, %c0_15] : memref<1x16x64xf32, #tpu.memory_space<vmem>>, vector<1x16x64xf32>
    %29 = vector.shape_cast %28 : vector<1x16x64xf32> to vector<16x64xf32>
    %30 = vector.shape_cast %27 : vector<16x64xf32> to vector<1x16x64xf32>
    tpu.vector_store %arg5[%c0_13, %c0_14, %c0_15], %30 {strides = array<i32>} : memref<1x16x64xf32, #tpu.memory_space<vmem>>, vector<1x16x64xf32>,
    return
  }
  func.func @transform_0(%arg0: i32) -> (i32, i32, i32) {
    %c0_i32 = arith.constant 0 : i32
    %c0_i32_0 = arith.constant 0 : i32
    %c0_i32_1 = arith.constant 0 : i32
    return %arg0, %c0_i32, %c0_i32_0 : i32, i32, i32
  }
  func.func @transform_1(%arg0: i32) -> (i32, i32, i32) {
    %c0_i32 = arith.constant 0 : i32
    %c0_i32_0 = arith.constant 0 : i32
    %c0_i32_1 = arith.constant 0 : i32
    return %arg0, %c0_i32, %c0_i32_0 : i32, i32, i32
  }
  func.func @transform_2(%arg0: i32) -> (i32, i32) {
    %c0_i32 = arith.constant 0 : i32
    %c0_i32_0 = arith.constant 0 : i32
    %c0_i32_1 = arith.constant 0 : i32
    return %c0_i32, %c0_i32_0 : i32, i32
  }
  func.func @transform_3(%arg0: i32) -> (i32, i32) {
    %c0_i32 = arith.constant 0 : i32
    %c0_i32_0 = arith.constant 0 : i32
    %c0_i32_1 = arith.constant 0 : i32
    return %c0_i32, %c0_i32_0 : i32, i32
  }
  func.func @transform_4(%arg0: i32) -> (i32, i32, i32) {
    %c0_i32 = arith.constant 0 : i32
    %c0_i32_0 = arith.constant 0 : i32
    %c0_i32_1 = arith.constant 0 : i32
    return %arg0, %c0_i32, %c0_i32_0 : i32, i32, i32
  }
}

module attributes {stable_mosaic.version = 11 : i64} {
  func.func @_conv1x1_kernel(%arg0: i32, %arg1: i32, %arg2: memref<1x16x64xf32, #tpu.memory_space<vmem>>, %arg3: memref<32x16xf32, #tpu.memory_space<vmem>>, %arg4: memref<32x1xf32, #tpu.memory_space<vmem>>, %arg5: memref<1x1xf32, #tpu.memory_space<smem>>, %arg6: memref<1x32x64xf32, #tpu.memory_space<vmem>>) attributes {dimension_semantics = [#tpu.dimension_semantics<parallel>, #tpu.dimension_semantics<parallel>], iteration_bounds = array<i64: 2, 1>, scalar_prefetch = 0 : i64, scratch_operands = 0 : i64, tpu.core_type = #tpu.core_type<tc>, window_params = [{transform_indices = @transform_0, window_bounds = array<i64: 1, 16, 64>}, {pipeline_mode = #tpu.pipeline_mode<synchronous>, transform_indices = @transform_1, window_bounds = array<i64: 32, 16>}, {pipeline_mode = #tpu.pipeline_mode<synchronous>, transform_indices = @transform_2, window_bounds = array<i64: 32, 1>}, {transform_indices = @transform_3, window_bounds = array<i64: 1, 1>}, {transform_indices = @transform_4, window_bounds = array<i64: 1, 32, 64>}]} {
    %c0 = arith.constant 0 : index
    %c0_0 = arith.constant 0 : index
    %c0_1 = arith.constant 0 : index
    %0 = vector.load %arg2[%c0, %c0_0, %c0_1] : memref<1x16x64xf32, #tpu.memory_space<vmem>>, vector<1x16x64xf32>
    %1 = vector.shape_cast %0 : vector<1x16x64xf32> to vector<16x64xf32>
    %c0_2 = arith.constant 0 : index
    %c0_3 = arith.constant 0 : index
    %2 = memref.load %arg5[%c0_2, %c0_3] : memref<1x1xf32, #tpu.memory_space<smem>>
    %cst = arith.constant 0.000000e+00 : f32
    %3 = vector.broadcast %cst : f32 to vector<16x64xf32>
    %4 = arith.cmpf ogt, %1, %3 : vector<16x64xf32>
    %5 = vector.broadcast %2 : f32 to vector<16x64xf32>
    %6 = arith.mulf %5, %1 : vector<16x64xf32>
    %7 = arith.select %4, %1, %6 : vector<16x64xi1>, vector<16x64xf32>
    %c0_4 = arith.constant 0 : index
    %c0_5 = arith.constant 0 : index
    %8 = vector.load %arg3[%c0_4, %c0_5] : memref<32x16xf32, #tpu.memory_space<vmem>>, vector<32x16xf32>
    %9 = arith.truncf %8 : vector<32x16xf32> to vector<32x16xbf16>
    %10 = arith.truncf %7 : vector<16x64xf32> to vector<16x64xbf16>
    %cst_6 = arith.constant dense<0.000000e+00> : vector<32x64xf32>
    %11 = tpu.matmul %9, %10, %cst_6 {dimension_numbers = #tpu.dot_dimension_numbers<[1], [0], [0], [1], [0, 0, 1, 1], [], []>} : vector<32x16xbf16>, vector<16x64xbf16>, vector<32x64xf32> -> vector<32x64xf32>
    %c0_7 = arith.constant 0 : index
    %c0_8 = arith.constant 0 : index
    %12 = vector.load %arg4[%c0_7, %c0_8] : memref<32x1xf32, #tpu.memory_space<vmem>>, vector<32x1xf32>
    %13 = vector.broadcast %12 : vector<32x1xf32> to vector<32x64xf32>
    %14 = arith.addf %11, %13 : vector<32x64xf32>
    %c0_9 = arith.constant 0 : index
    %c0_10 = arith.constant 0 : index
    %c0_11 = arith.constant 0 : index
    %15 = vector.load %arg6[%c0_9, %c0_10, %c0_11] : memref<1x32x64xf32, #tpu.memory_space<vmem>>, vector<1x32x64xf32>
    %16 = vector.shape_cast %15 : vector<1x32x64xf32> to vector<32x64xf32>
    %17 = vector.shape_cast %14 : vector<32x64xf32> to vector<1x32x64xf32>
    tpu.vector_store %arg6[%c0_9, %c0_10, %c0_11], %17 {strides = array<i32>} : memref<1x32x64xf32, #tpu.memory_space<vmem>>, vector<1x32x64xf32>,
    return
  }
  func.func @transform_0(%arg0: i32, %arg1: i32) -> (i32, i32, i32) {
    %c0_i32 = arith.constant 0 : i32
    %c0_i32_0 = arith.constant 0 : i32
    return %arg0, %c0_i32, %arg1 : i32, i32, i32
  }
  func.func @transform_1(%arg0: i32, %arg1: i32) -> (i32, i32) {
    %c0_i32 = arith.constant 0 : i32
    %c0_i32_0 = arith.constant 0 : i32
    %c0_i32_1 = arith.constant 0 : i32
    return %c0_i32, %c0_i32_0 : i32, i32
  }
  func.func @transform_2(%arg0: i32, %arg1: i32) -> (i32, i32) {
    %c0_i32 = arith.constant 0 : i32
    %c0_i32_0 = arith.constant 0 : i32
    %c0_i32_1 = arith.constant 0 : i32
    return %c0_i32, %c0_i32_0 : i32, i32
  }
  func.func @transform_3(%arg0: i32, %arg1: i32) -> (i32, i32) {
    %c0_i32 = arith.constant 0 : i32
    %c0_i32_0 = arith.constant 0 : i32
    %c0_i32_1 = arith.constant 0 : i32
    return %c0_i32, %c0_i32_0 : i32, i32
  }
  func.func @transform_4(%arg0: i32, %arg1: i32) -> (i32, i32, i32) {
    %c0_i32 = arith.constant 0 : i32
    %c0_i32_0 = arith.constant 0 : i32
    return %arg0, %c0_i32, %arg1 : i32, i32, i32
  }
}

</mosaic_0001>

<bundles_post_ra>
// kernel: _lambda_.21
= control target key start
LH: loop header
LB: loop body
LE: loop exit
PB: predicated region body
PF: predicated region fallthrough
CT: control target
= control target key end

     0   :  { %vm46_vm0 = vcmask 130048   ;;  %vm120_vm1 = vcmask 392192   ;;  %s302_s1 = inlined_call_operand.vmem [shape: f32[16,48], index: 1, kind: input, shape index: {}]   ;;  %s303_s0 = inlined_call_operand.vmem [shape: f32[128,16], index: 0, kind: input, shape index: {}]   ;;  %s304_s2 = inlined_call_operand.vmem [shape: f32[1,48], index: 2, kind: input, shape index: {}]   ;;  %s305_s3 = inlined_call_operand.vmem [shape: f32[128,48], index: 3, kind: output, shape index: {}]  }
   0x1   :  { %v39_v0 = vld [vmem:[%s302_s1] sm:$0xff]  ;;  %v40_v1 = vld [vmem:[%s302_s1 + $0x8] sm:$0xff]  ;;  %v17_v15 = vld [vmem:[%s303_s0 + $0x10] sm:$0xff] }
   0x2   :  { %v15_v2 = vld [vmem:[%s303_s0] sm:$0xff]  ;;  %v41_v3 = vpack.c.bf16 %v40_v1, %v39_v0  ;;  %v16_v4 = vld [vmem:[%s303_s0 + $0x8] sm:$0xff]  ;;  %v18_v16 = vld [vmem:[%s303_s0 + $0x18] sm:$0xff] }
   0x3   :  { %v19_v5 = vld [vmem:[%s303_s0 + $0x20] sm:$0xff]  ;;  %v20_v6 = vld [vmem:[%s303_s0 + $0x28] sm:$0xff]  ;;  %v31_v7 = vpack.c.bf16 %v16_v4, %v15_v2  ;;  %v21_v17 = vld [vmem:[%s303_s0 + $0x30] sm:$0xff]  ;;  %v32_v23 = vpack.c.bf16 %v18_v16, %v17_v15 }
   0x4   :  { %v33_v8 = vpack.c.bf16 %v20_v6, %v19_v5  ;;  %v23_v9 = vld [vmem:[%s303_s0 + $0x40] sm:$0xff]  ;;  %v24_v10 = vld [vmem:[%s303_s0 + $0x48] sm:$0xff]  ;;  %78 = vmatpush.bf16.msra.mxu0 %v41_v3  ;;  %149 = vmatpush.bf16.msra.mxu1 %v41_v3  ;;  %v22_v18 = vld [vmem:[%s303_s0 + $0x38] sm:$0xff] }
   0x5   :  { %v27_v11 = vld [vmem:[%s303_s0 + $0x60] sm:$0xff]  ;;  %v35_v12 = vpack.c.bf16 %v24_v10, %v23_v9  ;;  %v28_v13 = vld [vmem:[%s303_s0 + $0x68] sm:$0xff]  ;;  %150 = vmatpush.bf16.msra.mxu2 %v41_v3  ;;  %151 = vmatpush.bf16.msra.mxu3 %v41_v3  ;;  %v25_v19 = vld [vmem:[%s303_s0 + $0x50] sm:$0xff]  ;;  %v34_v24 = vpack.c.bf16 %v22_v18, %v21_v17 }
   0x6   :  { %v37_v14 = vpack.c.bf16 %v28_v13, %v27_v11  ;;  %v26_v20 = vld [vmem:[%s303_s0 + $0x58] sm:$0xff]  ;;  %v29_v21 = vld [vmem:[%s303_s0 + $0x70] sm:$0xff]  ;;  %v152_v27 = vld [vmem:[%s304_s2] ss:$0 sm:$0xff] }
   0x7   :  { %141 = vmatmul.msk.bf16.vlgmr.msra.gmra.mxu0 %vm46_vm0, %v31_v7  ;;  %143 = vmatmul.msk.bf16.vlgmr.msra.gmra.mxu1 %vm46_vm0, %v33_v8  ;;  %v30_v22 = vld [vmem:[%s303_s0 + $0x78] sm:$0xff]  ;;  %v36_v25 = vpack.c.bf16 %v26_v20, %v25_v19 }
   0x8   :  { %145 = vmatmul.msk.bf16.vlgmr.msra.gmra.mxu2 %vm46_vm0, %v35_v12  ;;  %147 = vmatmul.msk.bf16.vlgmr.msra.gmra.mxu3 %vm46_vm0, %v37_v14  ;;  %v38_v26 = vpack.c.bf16 %v30_v22, %v29_v21 }
  0x17   :  { %142 = vmatmul.msk.bf16.gmra.mxu0 %vm46_vm0, %v32_v23  ;;  %144 = vmatmul.msk.bf16.gmra.mxu1 %vm46_vm0, %v34_v24 }
  0x18   :  { %146 = vmatmul.msk.bf16.gmra.mxu2 %vm46_vm0, %v36_v25  ;;  %148 = vmatmul.msk.bf16.gmra.mxu3 %vm46_vm0, %v38_v26 }
  0x84   :  { %v80_v28 = vpop.f32.mrf.mxu0  ;;  %v90_v29 = vpop.f32.mrf.mxu1 }
  0x85   :  { %v81_v30 = vadd.f32 %v152_v27, %v80_v28  ;;  %v91_v31 = vadd.f32 %v152_v27, %v90_v29 }
  0x87   :  { %121 = vst.msk [vmem:[%s305_s3] sm:$0xff] %vm120_vm1, %v81_v30 }
  0x88   :  { %125 = vst.msk [vmem:[%s305_s3 + $0x20] sm:$0xff] %vm120_vm1, %v91_v31 }
  0x8b   :  { %v100_v32 = vpop.f32.mrf.mxu2  ;;  %v110_v33 = vpop.f32.mrf.mxu3 }
  0x8c   :  { %v101_v34 = vadd.f32 %v152_v27, %v100_v32  ;;  %v111_v35 = vadd.f32 %v152_v27, %v110_v33  ;;  %v82_v36 = vpop.f32.mrf.mxu0  ;;  %v92_v37 = vpop.f32.mrf.mxu1 }
  0x8d   :  { %v83_v38 = vadd.f32 %v152_v27, %v82_v36  ;;  %v93_v39 = vadd.f32 %v152_v27, %v92_v37 }
  0x8e   :  { %129 = vst.msk [vmem:[%s305_s3 + $0x40] sm:$0xff] %vm120_vm1, %v101_v34 }
  0x8f   :  { %133 = vst.msk [vmem:[%s305_s3 + $0x60] sm:$0xff] %vm120_vm1, %v111_v35 }
  0x90   :  { %122 = vst.msk [vmem:[%s305_s3 + $0x8] sm:$0xff] %vm120_vm1, %v83_v38 }
  0x91   :  { %126 = vst.msk [vmem:[%s305_s3 + $0x28] sm:$0xff] %vm120_vm1, %v93_v39 }
  0x93   :  { %v102_v40 = vpop.f32.mrf.mxu2  ;;  %v112_v41 = vpop.f32.mrf.mxu3 }
  0x94   :  { %v103_v42 = vadd.f32 %v152_v27, %v102_v40  ;;  %v113_v43 = vadd.f32 %v152_v27, %v112_v41  ;;  %v85_v44 = vpop.f32.mrf.mxu0  ;;  %v95_v45 = vpop.f32.mrf.mxu1 }
  0x95   :  { %v86_v46 = vadd.f32 %v152_v27, %v85_v44  ;;  %v96_v47 = vadd.f32 %v152_v27, %v95_v45 }
  0x96   :  { %130 = vst.msk [vmem:[%s305_s3 + $0x48] sm:$0xff] %vm120_vm1, %v103_v42 }
  0x97   :  { %134 = vst.msk [vmem:[%s305_s3 + $0x68] sm:$0xff] %vm120_vm1, %v113_v43 }
  0x98   :  { %123 = vst.msk [vmem:[%s305_s3 + $0x10] sm:$0xff] %vm120_vm1, %v86_v46 }
  0x99   :  { %127 = vst.msk [vmem:[%s305_s3 + $0x30] sm:$0xff] %vm120_vm1, %v96_v47 }
  0x9b   :  { %v105_v48 = vpop.f32.mrf.mxu2  ;;  %v115_v49 = vpop.f32.mrf.mxu3 }
  0x9c   :  { %v106_v50 = vadd.f32 %v152_v27, %v105_v48  ;;  %v116_v51 = vadd.f32 %v152_v27, %v115_v49  ;;  %v87_v52 = vpop.f32.mrf.mxu0  ;;  %v97_v53 = vpop.f32.mrf.mxu1 }
  0x9d   :  { %v88_v54 = vadd.f32 %v152_v27, %v87_v52  ;;  %v98_v55 = vadd.f32 %v152_v27, %v97_v53 }
  0x9e   :  { %131 = vst.msk [vmem:[%s305_s3 + $0x50] sm:$0xff] %vm120_vm1, %v106_v50 }
  0x9f   :  { %135 = vst.msk [vmem:[%s305_s3 + $0x70] sm:$0xff] %vm120_vm1, %v116_v51 }
  0xa0   :  { %124 = vst.msk [vmem:[%s305_s3 + $0x18] sm:$0xff] %vm120_vm1, %v88_v54 }
  0xa1   :  { %128 = vst.msk [vmem:[%s305_s3 + $0x38] sm:$0xff] %vm120_vm1, %v98_v55 }
  0xa3   :  { %v107_v56 = vpop.f32.mrf.mxu2  ;;  %v117_v57 = vpop.f32.mrf.mxu3 }
  0xa4   :  { %v108_v58 = vadd.f32 %v152_v27, %v107_v56  ;;  %v118_v59 = vadd.f32 %v152_v27, %v117_v57 }
  0xa6   :  { %132 = vst.msk [vmem:[%s305_s3 + $0x58] sm:$0xff] %vm120_vm1, %v108_v58 }
  0xa7   :  { %136 = vst.msk [vmem:[%s305_s3 + $0x78] sm:$0xff] %vm120_vm1, %v118_v59 }

// kernel: _lambda_.20
= control target key start
LH: loop header
LB: loop body
LE: loop exit
PB: predicated region body
PF: predicated region fallthrough
CT: control target
= control target key end

     0   :  { %s457_s17 = smov 0   ;;  %s459_s18 = smov 0   ;;  %s502_s0 = inlined_call_operand.vmem [shape: f32[2,32,64], index: 0, kind: input, shape index: {}]   ;;  %s503_s1 = inlined_call_operand.vmem [shape: f32[16,32], index: 1, kind: input, shape index: {}]   ;;  %s504_s2 = inlined_call_operand.vmem [shape: f32[16,1], index: 2, kind: input, shape index: {}]   ;;  %s505_s3 = inlined_call_operand.<no memory space> [shape: f32[1,1], index: 3, kind: input, shape index: {}]   ;;  %s506_s4 = inlined_call_operand.vmem [shape: f32[2,16,64], index: 4, kind: output, shape index: {}]  }
   0x1   :  { %9 = sst [smem:[#allocation2]] %s505_s3  ;;  %s461_s19 = smov 0  }
   0x2 LB: > { %s27_s3 = sadd.s32 1, %s422_s18  ;;  %p368_p0 = scmp.ge.s32.totalorder %s426_s19, 1  ;;  %s426_s19 = sphi %s461_s19, %s15_s19   ;;  %s422_s18 = sphi %s459_s18, %s508_s18   ;;  %s418_s17 = sphi %s457_s17, %s507_s17  }
   0x3   : > { %p29_p1 = scmp.ge.s32.totalorder %s27_s3, 2  ;;  %p182_p2 = scmp.lt.s32.totalorder %s426_s19, 3 }
   0x5   : > { %s510_s3 = smov (%p29_p1, %s27_s3), 0  ;;  %p183_p3 = pnand %p368_p0, %p182_p2 }
   0x6   : > { %p214_p4 = scmp.lt.s32.totalorder (!%p183_p3), %s418_s17, 1  ;;  %s235_s6 = sld [smem:[#allocation2]] (!%p183_p3) }
   0x7   : > { %186 = sbr.rel (%p183_p3) target bundleno = 165 (0xa5), region = 36 }
   0xc   : > { %v241_v0 = vld [vmem:[%s504_s2] sm:$0xff]  ;;  %v428_v1 = vmov 0   ;;  %s512_s17 = smov (!%p214_p4, %s418_s17), 1  ;;  %v242_v7 = vld [vmem:[%s504_s2 + $0x8] sm:$0xff]  ;;  %vm253_vm0 = vcmask 261120   ;;  %v273_v14 = vstv %s235_s6  ;;  %vm278_vm2 = vcmask 523264  }
   0xd   : > { %403 = vset.pattern.permute.xlu0 %v428_v1  ;;  %s376_s22 = sshll.u32 %s512_s17, 5  ;;  %v236_v9 = vld [vmem:[%s503_s1] sm:$0xff]  ;;  %v237_v10 = vld [vmem:[%s503_s1 + $0x8] sm:$0xff]  ;;  %s377_s7 = sshll.u32 %s512_s17, 4 }
   0xe   : > { %245 = vperm.xlu0 %403, %v241_v0   ;;  %s221_s25 = scalar_lea.vmem %s502_s0, %s376_s22  ;;  %v238_v11 = vpack.c.bf16 %v237_v10, %v236_v9  ;;  %s229_s10 = scalar_lea.vmem %s506_s4, %s377_s7 }
   0xf   : > { %v233_v2 = vld [vmem:[%s221_s25 + $0x10] sm:$0xff]  ;;  %v234_v3 = vld [vmem:[%s221_s25 + $0x18] sm:$0xff]  ;;  %v231_v4 = vld [vmem:[%s221_s25] sm:$0xff] }
  0x10   : > { %v240_v5 = vpack.c.bf16 %v234_v3, %v233_v2  ;;  %v232_v6 = vld [vmem:[%s221_s25 + $0x8] sm:$0xff] }
  0x11   : > { %v239_v8 = vpack.c.bf16 %v232_v6, %v231_v4 }
  0x12   : > { %263 = vmatpush.bf16.msra.mxu0 %v240_v5 }
  0x16   : > { %250 = vperm.xlu0 %403, %v242_v7   ;;  %264 = vmatpush.bf16.msra.mxu0 %v239_v8 }
  0x19   : > { %373 = vmatmul.msk.bf16.vlgmr.msra.gmra.mxu0 %vm253_vm0, %v238_v11 }
  0x80   : > { %v246_v12 = vpop.permute.xlu0 %245 }
  0x88   : > { %v251_v18 = vpop.permute.xlu0 %250 }
  0x96   : > { %v266_v13 = vpop.f32.mrf.mxu0 }
  0x97   : > { %v267_v15 = vadd.f32 %v266_v13, %v246_v12 }
  0x99   : > { %vm271_vm1 = vcmp.gt.f32.partialorder %v267_v15, 0.0  ;;  %v274_v16 = vmul.f32 %v273_v14, %v267_v15 }
  0x9b   : > { %v276_v17 = vsel %vm271_vm1, %v267_v15, %v274_v16 }
  0x9c   : > { %279 = vst.msk [vmem:[%s229_s10] sm:$0xff] %vm278_vm2, %v276_v17 }
  0x9e   : > { %v268_v19 = vpop.f32.mrf.mxu0 }
  0x9f   : > { %v269_v20 = vadd.f32 %v268_v19, %v251_v18 }
  0xa1   : > { %vm272_vm3 = vcmp.gt.f32.partialorder %v269_v20, 0.0  ;;  %v275_v21 = vmul.f32 %v273_v14, %v269_v20 }
  0xa3   : > { %v277_v22 = vsel %vm272_vm3, %v269_v20, %v275_v21 }
  0xa4   : > { %280 = vst.msk [vmem:[%s229_s10 + $0x8] sm:$0xff] %vm278_vm2, %v277_v22 }
  0xa5 PF: > { %s15_s19 = sadd.s32 1, %s426_s19   ;;  %s507_s17 = smov %s422_s18 }
  0xa6   : > { %p12_p5 = scmp.ge.s32.totalorder %s15_s19, 4   ;;  %s508_s18 = smov %s510_s3 }
  0xa8   :  { %14 = sbr.rel (!%p12_p5) target bundleno = 2 (0x2), region = 66 }

// kernel: _lambda_.23
= control target key start
LH: loop header
LB: loop body
LE: loop exit
PB: predicated region body
PF: predicated region fallthrough
CT: control target
= control target key end

     0   :  { %vm55_vm0 = vcmask 130048   ;;  %s1202_s1 = inlined_call_operand.vmem [shape: f32[16,16], index: 1, kind: input, shape index: {}]   ;;  %s1203_s0 = inlined_call_operand.vmem [shape: f32[128,16], index: 0, kind: input, shape index: {}]   ;;  %s1204_s2 = inlined_call_operand.vmem [shape: f32[1,16], index: 2, kind: input, shape index: {}]   ;;  %s1205_s3 = inlined_call_operand.vmem [shape: f32[128,16], index: 3, kind: input, shape index: {}]   ;;  %s1206_s4 = inlined_call_operand.vmem [shape: f32[1,16], index: 4, kind: input, shape index: {}]   ;;  %s1207_s5 = inlined_call_operand.vmem [shape: f32[1,16], index: 5, kind: input, shape index: {}]   ;;  %s1208_s6 = inlined_call_operand.vmem [shape: f32[128,16], index: 6, kind: output, shape index: {}]  }
   0x1   :  { %v48_v0 = vld [vmem:[%s1202_s1] sm:$0xff]  ;;  %v49_v1 = vld [vmem:[%s1202_s1 + $0x8] sm:$0xff]  ;;  %v26_v15 = vld [vmem:[%s1203_s0 + $0x10] sm:$0xff] }
   0x2   :  { %v24_v2 = vld [vmem:[%s1203_s0] sm:$0xff]  ;;  %v50_v3 = vpack.c.bf16 %v49_v1, %v48_v0  ;;  %v25_v4 = vld [vmem:[%s1203_s0 + $0x8] sm:$0xff]  ;;  %v27_v16 = vld [vmem:[%s1203_s0 + $0x18] sm:$0xff] }
   0x3   :  { %v28_v5 = vld [vmem:[%s1203_s0 + $0x20] sm:$0xff]  ;;  %v29_v6 = vld [vmem:[%s1203_s0 + $0x28] sm:$0xff]  ;;  %v40_v7 = vpack.c.bf16 %v25_v4, %v24_v2  ;;  %v34_v17 = vld [vmem:[%s1203_s0 + $0x50] sm:$0xff]  ;;  %v41_v23 = vpack.c.bf16 %v27_v16, %v26_v15 }
   0x4   :  { %v42_v8 = vpack.c.bf16 %v29_v6, %v28_v5  ;;  %v32_v9 = vld [vmem:[%s1203_s0 + $0x40] sm:$0xff]  ;;  %v33_v10 = vld [vmem:[%s1203_s0 + $0x48] sm:$0xff]  ;;  %87 = vmatpush.bf16.msra.mxu0 %v50_v3  ;;  %588 = vmatpush.bf16.msra.mxu1 %v50_v3  ;;  %v30_v18 = vld [vmem:[%s1203_s0 + $0x30] sm:$0xff] }
   0x5   :  { %v36_v11 = vld [vmem:[%s1203_s0 + $0x60] sm:$0xff]  ;;  %v44_v12 = vpack.c.bf16 %v33_v10, %v32_v9  ;;  %v37_v13 = vld [vmem:[%s1203_s0 + $0x68] sm:$0xff]  ;;  %589 = vmatpush.bf16.msra.mxu2 %v50_v3  ;;  %590 = vmatpush.bf16.msra.mxu3 %v50_v3  ;;  %v31_v19 = vld [vmem:[%s1203_s0 + $0x38] sm:$0xff] }
   0x6   :  { %v46_v14 = vpack.c.bf16 %v37_v13, %v36_v11  ;;  %v35_v20 = vld [vmem:[%s1203_s0 + $0x58] sm:$0xff]  ;;  %v38_v21 = vld [vmem:[%s1203_s0 + $0x70] sm:$0xff]  ;;  %v43_v24 = vpack.c.bf16 %v31_v19, %v30_v18  ;;  %v730_v27 = vld [vmem:[%s1204_s2] ss:$0 sm:$0xff] }
   0x7   :  { %580 = vmatmul.msk.bf16.vlgmr.msra.gmra.mxu0 %vm55_vm0, %v40_v7  ;;  %582 = vmatmul.msk.bf16.vlgmr.msra.gmra.mxu1 %vm55_vm0, %v42_v8  ;;  %v39_v22 = vld [vmem:[%s1203_s0 + $0x78] sm:$0xff]  ;;  %v45_v25 = vpack.c.bf16 %v35_v20, %v34_v17  ;;  %v133_v30 = vld [vmem:[%s1205_s3 + $0x20] sm:$0xff]  ;;  %v134_v52 = vld [vmem:[%s1205_s3 + $0x28] sm:$0xff] }
   0x8   :  { %584 = vmatmul.msk.bf16.vlgmr.msra.gmra.mxu2 %vm55_vm0, %v44_v12  ;;  %586 = vmatmul.msk.bf16.vlgmr.msra.gmra.mxu3 %vm55_vm0, %v46_v14  ;;  %v47_v26 = vpack.c.bf16 %v39_v22, %v38_v21  ;;  %v129_v31 = vld [vmem:[%s1205_s3] sm:$0xff]  ;;  %v130_v53 = vld [vmem:[%s1205_s3 + $0x8] sm:$0xff]  ;;  %v131_v63 = vld [vmem:[%s1205_s3 + $0x10] sm:$0xff] }
   0x9   :  { %v137_v40 = vld [vmem:[%s1205_s3 + $0x40] sm:$0xff]  ;;  %v142_v56 = vld [vmem:[%s1205_s3 + $0x68] sm:$0xff]  ;;  %v139_v13 = vld [vmem:[%s1205_s3 + $0x50] sm:$0xff] }
   0xa   :  { %v141_v41 = vld [vmem:[%s1205_s3 + $0x60] sm:$0xff]  ;;  %v138_v5 = vld [vmem:[%s1205_s3 + $0x48] sm:$0xff]  ;;  %v135_v14 = vld [vmem:[%s1205_s3 + $0x30] sm:$0xff] }
   0xb   :  { %v140_v18 = vld [vmem:[%s1205_s3 + $0x58] sm:$0xff] }
  0x17   :  { %581 = vmatmul.msk.bf16.gmra.mxu0 %vm55_vm0, %v41_v23  ;;  %583 = vmatmul.msk.bf16.gmra.mxu1 %vm55_vm0, %v43_v24 }
  0x18   :  { %585 = vmatmul.msk.bf16.gmra.mxu2 %vm55_vm0, %v45_v25  ;;  %587 = vmatmul.msk.bf16.gmra.mxu3 %vm55_vm0, %v47_v26 }
  0x84   :  { %v89_v28 = vpop.f32.mrf.mxu0  ;;  %v99_v29 = vpop.f32.mrf.mxu1 }
  0x85   :  { %v90_v32 = vadd.f32 %v730_v27, %v89_v28  ;;  %v100_v33 = vadd.f32 %v730_v27, %v99_v29  ;;  %v143_v29 = vld [vmem:[%s1205_s3 + $0x70] sm:$0xff] }
  0x87   :  { %v740_v34 = vadd.f32 %v133_v30, %v100_v33  ;;  %v742_v35 = vadd.f32 %v129_v31, %v90_v32  ;;  %v144_v32 = vld [vmem:[%s1205_s3 + $0x78] sm:$0xff] }
  0x88   :  { %v132_v33 = vld [vmem:[%s1205_s3 + $0x18] sm:$0xff] }
  0x89   :  { %v173_v36 = vsel %vm55_vm0, %v740_v34, 0.0  ;;  %v161_v37 = vsel %vm55_vm0, %v742_v35, 0.0 }
  0x8a   :  { %174 = vadd.xlane.f32.xlu2 %v173_v36  ;;  %162 = vadd.xlane.f32.xlu0 %v161_v37 }
  0x8b   :  { %v109_v38 = vpop.f32.mrf.mxu2  ;;  %v119_v39 = vpop.f32.mrf.mxu3 }
  0x8c   :  { %v110_v42 = vadd.f32 %v730_v27, %v109_v38  ;;  %v120_v43 = vadd.f32 %v730_v27, %v119_v39  ;;  %v91_v44 = vpop.f32.mrf.mxu0  ;;  %v101_v45 = vpop.f32.mrf.mxu1 }
  0x8d   :  { %v92_v49 = vadd.f32 %v730_v27, %v91_v44  ;;  %v102_v50 = vadd.f32 %v730_v27, %v101_v45  ;;  %v136_v44 = vld [vmem:[%s1205_s3 + $0x38] sm:$0xff] }
  0x8e   :  { %v756_v46 = vadd.f32 %v137_v40, %v110_v42  ;;  %v758_v47 = vadd.f32 %v141_v41, %v120_v43 }
  0x8f   :  { %v776_v59 = vadd.f32 %v134_v52, %v102_v50  ;;  %v778_v60 = vadd.f32 %v130_v53, %v92_v49  ;;  %v629_v49 = vmov 16.0  }
  0x90   :  { %v185_v48 = vsel %vm55_vm0, %v756_v46, 0.0  ;;  %v197_v51 = vsel %vm55_vm0, %v758_v47, 0.0  ;;  %595 = vrcp.f32 %v629_v49 }
  0x91   :  { %v176_v2 = vsel %vm55_vm0, %v776_v59, 0.0  ;;  %v164_v3 = vsel %vm55_vm0, %v778_v60, 0.0 }
  0x92   :  { %186 = vadd.xlane.f32.xlu2 %v185_v48  ;;  %198 = vadd.xlane.f32.xlu0 %v197_v51 }
  0x93   :  { %v111_v54 = vpop.f32.mrf.mxu2  ;;  %v121_v55 = vpop.f32.mrf.mxu3 }
  0x94   :  { %v122_v57 = vadd.f32 %v730_v27, %v121_v55  ;;  %v94_v58 = vpop.f32.mrf.mxu0  ;;  %v112_v1 = vadd.f32 %v730_v27, %v111_v54  ;;  %v104_v11 = vpop.f32.mrf.mxu1 }
  0x95   :  { %v95_v61 = vadd.f32 %v730_v27, %v94_v58  ;;  %v105_v12 = vadd.f32 %v730_v27, %v104_v11 }
  0x96   :  { %v781_v62 = vadd.f32 %v142_v56, %v122_v57  ;;  %v798_v8 = vadd.f32 %v138_v5, %v112_v1  ;;  %v596_v50 = vpop.eup %595 }
  0x97   :  { %v793_v4 = vadd.f32 %v131_v63, %v95_v61  ;;  %v817_v19 = vadd.f32 %v135_v14, %v105_v12  ;;  %vm214_vm1 = vweird.f32 %v596_v50 }
  0x98   :  { %v200_v0 = vsel %vm55_vm0, %v781_v62, 0.0  ;;  %v188_v15 = vsel %vm55_vm0, %v798_v8, 0.0 }
  0x99   :  { %201 = vadd.xlane.f32.xlu1 %v200_v0  ;;  %v167_v10 = vsel %vm55_vm0, %v793_v4, 0.0  ;;  %v179_v26 = vsel %vm55_vm0, %v817_v19, 0.0 }
  0x9a   :  { %177 = vadd.xlane.f32.xlu2 %v176_v2  ;;  %165 = vadd.xlane.f32.xlu0 %v164_v3 }
  0x9b   :  { %v114_v6 = vpop.f32.mrf.mxu2  ;;  %v124_v7 = vpop.f32.mrf.mxu3 }
  0x9c   :  { %v115_v9 = vadd.f32 %v730_v27, %v114_v6  ;;  %v96_v22 = vpop.f32.mrf.mxu0  ;;  %v125_v23 = vadd.f32 %v730_v27, %v124_v7  ;;  %v106_v39 = vpop.f32.mrf.mxu1 }
  0x9d   :  { %v97_v30 = vadd.f32 %v730_v27, %v96_v22  ;;  %v107_v42 = vadd.f32 %v730_v27, %v106_v39 }
  0x9e   :  { %v812_v16 = vadd.f32 %v139_v13, %v115_v9  ;;  %v840_v36 = vadd.f32 %v143_v29, %v125_v23 }
  0x9f   :  { %v844_v38 = vadd.f32 %v132_v33, %v97_v30  ;;  %v856_v45 = vadd.f32 %v136_v44, %v107_v42 }
  0xa0   :  { %v191_v25 = vsel %vm55_vm0, %v812_v16, 0.0  ;;  %v203_v40 = vsel %vm55_vm0, %v840_v36, 0.0 }
  0xa1   :  { %168 = vadd.xlane.f32.xlu1 %v167_v10  ;;  %v170_v43 = vsel %vm55_vm0, %v844_v38, 0.0  ;;  %v182_v48 = vsel %vm55_vm0, %v856_v45, 0.0 }
  0xa2   :  { %189 = vadd.xlane.f32.xlu0 %v188_v15 }
  0xa3   :  { %v116_v17 = vpop.f32.mrf.mxu2  ;;  %v126_v21 = vpop.f32.mrf.mxu3 }
  0xa4   :  { %v117_v20 = vadd.f32 %v730_v27, %v116_v17  ;;  %v127_v28 = vadd.f32 %v730_v27, %v126_v21  ;;  %v210_v27 = vmul.f32 16.0, %v596_v50 }
  0xa6   :  { %v821_v24 = vadd.f32 %v140_v18, %v117_v20  ;;  %v842_v37 = vadd.f32 %v144_v32, %v127_v28  ;;  %v211_v51 = vsub.f32 1.0, %v210_v27 }
  0xa8   :  { %v194_v31 = vsel %vm55_vm0, %v821_v24, 0.0  ;;  %v206_v41 = vsel %vm55_vm0, %v842_v37, 0.0  ;;  %v212_v52 = vmul.f32 %v596_v50, %v211_v51 }
  0xa9   :  { %195 = vadd.xlane.f32.xlu2 %v194_v31  ;;  %192 = vadd.xlane.f32.xlu1 %v191_v25 }
  0xaa   :  { %180 = vadd.xlane.f32.xlu0 %v179_v26  ;;  %v213_v53 = vadd.f32 %v596_v50, %v212_v52 }
  0xac   :  { %v860_v54 = vsel %vm214_vm1, %v596_v50, %v213_v53 }
  0xb1   :  { %204 = vadd.xlane.f32.xlu2 %v203_v40  ;;  %171 = vadd.xlane.f32.xlu1 %v170_v43 }
  0xb2   :  { %207 = vadd.xlane.f32.xlu0 %v206_v41 }
  0xb9   :  { %183 = vadd.xlane.f32.xlu1 %v182_v48 }
  0xfd   :  { %v175_v55 = vpop.xlane.xlu2 %174  ;;  %v163_v56 = vpop.xlane.xlu0 %162 }
  0xfe   :  { %v220_v57 = vmul.f32 %v860_v54, %v175_v55  ;;  %v216_v58 = vmul.f32 %v860_v54, %v163_v56 }
 0x100   :  { %v865_v61 = vsub.f32 %v740_v34, %v220_v57  ;;  %v868_v63 = vsub.f32 %v742_v35, %v216_v58 }
 0x102   :  { %v252_v0 = vmul.f32 %v865_v61, %v865_v61  ;;  %v248_v1 = vmul.f32 %v868_v63, %v868_v63 }
 0x104   :  { %v276_v2 = vsel %vm55_vm0, %v252_v0, 0.0  ;;  %v264_v3 = vsel %vm55_vm0, %v248_v1, 0.0 }
 0x105   :  { %277 = vadd.xlane.f32.xlu2 %v276_v2  ;;  %v187_v5 = vpop.xlane.xlu2 %186  ;;  %265 = vadd.xlane.f32.xlu1 %v264_v3  ;;  %v199_v6 = vpop.xlane.xlu0 %198 }
 0x106   :  { %v224_v34 = vmul.f32 %v860_v54, %v187_v5  ;;  %v228_v7 = vmul.f32 %v860_v54, %v199_v6 }
 0x108   :  { %v879_v35 = vsub.f32 %v756_v46, %v224_v34  ;;  %v882_v9 = vsub.f32 %v758_v47, %v228_v7 }
 0x10a   :  { %v256_v10 = vmul.f32 %v879_v35, %v879_v35  ;;  %v260_v11 = vmul.f32 %v882_v9, %v882_v9 }
 0x10c   :  { %v888_v12 = vpop.xlane.xlu1 %201  ;;  %v288_v13 = vsel %vm55_vm0, %v256_v10, 0.0  ;;  %v300_v14 = vsel %vm55_vm0, %v260_v11, 0.0 }
 0x10d   :  { %v178_v15 = vpop.xlane.xlu2 %177  ;;  %289 = vadd.xlane.f32.xlu0 %v288_v13  ;;  %301 = vadd.xlane.f32.xlu1 %v300_v14  ;;  %v166_v46 = vpop.xlane.xlu0 %165 }
 0x10e   :  { %v221_v17 = vmul.f32 %v860_v54, %v178_v15  ;;  %v217_v47 = vmul.f32 %v860_v54, %v166_v46 }
 0x110   :  { %v895_v18 = vsub.f32 %v776_v59, %v221_v17  ;;  %v898_v20 = vsub.f32 %v778_v60, %v217_v47 }
 0x112   :  { %v253_v21 = vmul.f32 %v895_v18, %v895_v18  ;;  %v249_v22 = vmul.f32 %v898_v20, %v898_v20 }
 0x114   :  { %v169_v23 = vpop.xlane.xlu1 %168  ;;  %v279_v25 = vsel %vm55_vm0, %v253_v21, 0.0  ;;  %v267_v26 = vsel %vm55_vm0, %v249_v22, 0.0 }
 0x115   :  { %v218_v28 = vmul.f32 %v860_v54, %v169_v23  ;;  %280 = vadd.xlane.f32.xlu0 %v279_v25  ;;  %268 = vadd.xlane.f32.xlu2 %v267_v26  ;;  %v190_v59 = vpop.xlane.xlu0 %189 }
 0x116   :  { %v225_v29 = vmul.f32 %v860_v54, %v190_v59 }
 0x117   :  { %v909_v60 = vsub.f32 %v793_v4, %v218_v28 }
 0x118   :  { %v912_v30 = vsub.f32 %v798_v8, %v225_v29 }
 0x119   :  { %v250_v31 = vmul.f32 %v909_v60, %v909_v60 }
 0x11a   :  { %v257_v32 = vmul.f32 %v912_v30, %v912_v30 }
 0x11b   :  { %v270_v40 = vsel %vm55_vm0, %v250_v31, 0.0 }
 0x11c   :  { %v196_v33 = vpop.xlane.xlu2 %195  ;;  %v193_v39 = vpop.xlane.xlu1 %192  ;;  %v291_v41 = vsel %vm55_vm0, %v257_v32, 0.0 }
 0x11d   :  { %v227_v42 = vmul.f32 %v860_v54, %v196_v33  ;;  %v226_v4 = vmul.f32 %v860_v54, %v193_v39  ;;  %271 = vadd.xlane.f32.xlu0 %v270_v40  ;;  %292 = vadd.xlane.f32.xlu1 %v291_v41  ;;  %v181_v8 = vpop.xlane.xlu0 %180 }
 0x11e   :  { %v222_v43 = vmul.f32 %v860_v54, %v181_v8 }
 0x11f   :  { %v924_v44 = vsub.f32 %v821_v24, %v227_v42  ;;  %v927_v48 = vsub.f32 %v812_v16, %v226_v4 }
 0x120   :  { %v930_v49 = vsub.f32 %v817_v19, %v222_v43 }
 0x121   :  { %v258_v50 = vmul.f32 %v927_v48, %v927_v48  ;;  %v259_v27 = vmul.f32 %v924_v44, %v924_v44 }
 0x122   :  { %v254_v51 = vmul.f32 %v930_v49, %v930_v49 }
 0x123   :  { %v294_v52 = vsel %vm55_vm0, %v258_v50, 0.0  ;;  %v297_v16 = vsel %vm55_vm0, %v259_v27, 0.0 }
 0x124   :  { %v205_v53 = vpop.xlane.xlu2 %204  ;;  %v172_v24 = vpop.xlane.xlu1 %171  ;;  %295 = vadd.xlane.f32.xlu2 %v294_v52  ;;  %v282_v55 = vsel %vm55_vm0, %v254_v51, 0.0 }
 0x125   :  { %v230_v19 = vmul.f32 %v860_v54, %v205_v53  ;;  %v219_v56 = vmul.f32 %v860_v54, %v172_v24  ;;  %298 = vadd.xlane.f32.xlu0 %v297_v16  ;;  %283 = vadd.xlane.f32.xlu1 %v282_v55  ;;  %v208_v57 = vpop.xlane.xlu0 %207 }
 0x126   :  { %v231_v1 = vmul.f32 %v860_v54, %v208_v57  ;;  %v997_v57 = vld [vmem:[%s1206_s4] ss:$0 sm:$0xff] }
 0x127   :  { %v944_v58 = vsub.f32 %v840_v36, %v230_v19  ;;  %v947_v0 = vsub.f32 %v844_v38, %v219_v56  ;;  %v229_v38 = vmul.f32 %v860_v54, %v888_v12 }
 0x128   :  { %v955_v5 = vsub.f32 %v842_v37, %v231_v1 }
 0x129   :  { %v262_v2 = vmul.f32 %v944_v58, %v944_v58  ;;  %v251_v3 = vmul.f32 %v947_v0, %v947_v0  ;;  %v970_v13 = vsub.f32 %v781_v62, %v229_v38 }
 0x12a   :  { %v263_v11 = vmul.f32 %v955_v5, %v955_v5 }
 0x12b   :  { %v306_v34 = vsel %vm55_vm0, %v262_v2, 0.0  ;;  %v273_v36 = vsel %vm55_vm0, %v251_v3, 0.0  ;;  %v261_v12 = vmul.f32 %v970_v13, %v970_v13 }
 0x12c   :  { %v184_v6 = vpop.xlane.xlu1 %183  ;;  %v309_v15 = vsel %vm55_vm0, %v263_v11, 0.0 }
 0x12d   :  { %v223_v7 = vmul.f32 %v860_v54, %v184_v6  ;;  %307 = vadd.xlane.f32.xlu0 %v306_v34  ;;  %274 = vadd.xlane.f32.xlu1 %v273_v36  ;;  %v1005_v34 = vld [vmem:[%s1207_s5] ss:$0 sm:$0xff] }
 0x12f   :  { %v963_v10 = vsub.f32 %v856_v45, %v223_v7  ;;  %v303_v45 = vsel %vm55_vm0, %v261_v12, 0.0 }
 0x131   :  { %v255_v37 = vmul.f32 %v963_v10, %v963_v10 }
 0x133   :  { %v285_v14 = vsel %vm55_vm0, %v255_v37, 0.0 }
 0x134   :  { %286 = vadd.xlane.f32.xlu2 %v285_v14 }
 0x135   :  { %310 = vadd.xlane.f32.xlu1 %v309_v15 }
 0x13c   :  { %304 = vadd.xlane.f32.xlu2 %v303_v45 }
 0x178   :  { %v278_v46 = vpop.xlane.xlu2 %277  ;;  %v266_v17 = vpop.xlane.xlu1 %265 }
 0x179   :  { %v316_v47 = vmul.f32 %v278_v46, %v860_v54  ;;  %v312_v21 = vmul.f32 %v266_v17, %v860_v54 }
 0x17b   :  { %v332_v62 = vadd.f32 1e-05, %v316_v47  ;;  %v328_v22 = vadd.f32 1e-05, %v312_v21 }
 0x17d   :  { %597 = vrsqrt.f32 %v332_v62  ;;  %vm390_vm4 = vweird.f32 %v332_v62  ;;  %vm350_vm6 = vweird.f32 %v328_v22 }
 0x17e   :  { %599 = vrsqrt.f32 %v328_v22 }
 0x180   :  { %v302_v23 = vpop.xlane.xlu1 %301  ;;  %v290_v25 = vpop.xlane.xlu0 %289 }
 0x181   :  { %v324_v26 = vmul.f32 %v302_v23, %v860_v54  ;;  %v320_v28 = vmul.f32 %v290_v25, %v860_v54 }
 0x183   :  { %v598_v59 = vpop.eup %597  ;;  %v981_v29 = vadd.f32 1e-05, %v324_v26  ;;  %v983_v31 = vadd.f32 1e-05, %v320_v28 }
 0x184   :  { %v600_v32 = vpop.eup %599  ;;  %v385_v33 = vmul.f32 %v598_v59, %v332_v62  ;;  %vm391_vm2 = vweird.f32 %v598_v59 }
 0x185   :  { %v345_v39 = vmul.f32 %v600_v32, %v328_v22  ;;  %601 = vrsqrt.f32 %v981_v29  ;;  %vm351_vm3 = vweird.f32 %v600_v32  ;;  %vm392_vm5 = vmor %vm390_vm4, %vm391_vm2  ;;  %vm470_vm10 = vweird.f32 %v981_v29 }
 0x186   :  { %v386_v40 = vmul.f32 %v598_v59, %v385_v33  ;;  %603 = vrsqrt.f32 %v983_v31  ;;  %vm352_vm7 = vmor %vm350_vm6, %vm351_vm3  ;;  %vm430_vm12 = vweird.f32 %v983_v31 }
 0x187   :  { %v346_v41 = vmul.f32 %v600_v32, %v345_v39 }
 0x188   :  { %v387_v42 = vmul.f32 0.5, %v386_v40  ;;  %v269_v4 = vpop.xlane.xlu2 %268  ;;  %v281_v8 = vpop.xlane.xlu0 %280 }
 0x189   :  { %v347_v43 = vmul.f32 0.5, %v346_v41  ;;  %v313_v50 = vmul.f32 %v269_v4, %v860_v54  ;;  %v317_v27 = vmul.f32 %v281_v8, %v860_v54 }
 0x18a   :  { %v388_v51 = vsub.f32 1.5, %v387_v42 }
 0x18b   :  { %v602_v52 = vpop.eup %601  ;;  %v348_v53 = vsub.f32 1.5, %v347_v43  ;;  %v989_v24 = vadd.f32 1e-05, %v313_v50  ;;  %v991_v16 = vadd.f32 1e-05, %v317_v27 }
 0x18c   :  { %v604_v55 = vpop.eup %603  ;;  %v389_v19 = vmul.f32 %v598_v59, %v388_v51  ;;  %v465_v56 = vmul.f32 %v602_v52, %v981_v29  ;;  %vm471_vm8 = vweird.f32 %v602_v52 }
 0x18d   :  { %v349_v1 = vmul.f32 %v600_v32, %v348_v53  ;;  %v425_v2 = vmul.f32 %v604_v55, %v983_v31  ;;  %605 = vrsqrt.f32 %v989_v24  ;;  %vm431_vm9 = vweird.f32 %v604_v55  ;;  %vm472_vm11 = vmor %vm470_vm10, %vm471_vm8 }
 0x18e   :  { %v393_v3 = vsel %vm392_vm5, %v598_v59, %v389_v19  ;;  %v466_v6 = vmul.f32 %v602_v52, %v465_v56  ;;  %607 = vrsqrt.f32 %v991_v16  ;;  %vm432_vm13 = vmor %vm430_vm12, %vm431_vm9  ;;  %vm360_vm14 = vweird.f32 %v989_v24 }
 0x18f   :  { %v508_v36 = vmul.f32 %v393_v3, %v865_v61  ;;  %v353_v7 = vsel %vm352_vm7, %v600_v32, %v349_v1  ;;  %v426_v38 = vmul.f32 %v604_v55, %v425_v2  ;;  %vm400_vm3 = vweird.f32 %v991_v16 }
 0x190   :  { %v504_v11 = vmul.f32 %v353_v7, %v868_v63  ;;  %v467_v37 = vmul.f32 0.5, %v466_v6  ;;  %v293_v14 = vpop.xlane.xlu1 %292  ;;  %v272_v15 = vpop.xlane.xlu0 %271 }
 0x191   :  { %v528_v12 = vmul.f32 %v997_v57, %v508_v36  ;;  %v427_v45 = vmul.f32 0.5, %v426_v38  ;;  %v321_v46 = vmul.f32 %v293_v14, %v860_v54  ;;  %v314_v17 = vmul.f32 %v272_v15, %v860_v54 }
 0x192   :  { %v524_v47 = vmul.f32 %v997_v57, %v504_v11  ;;  %v468_v21 = vsub.f32 1.5, %v467_v37 }
 0x193   :  { %v606_v61 = vpop.eup %605  ;;  %v548_v62 = vadd.f32 %v1005_v34, %v528_v12  ;;  %v428_v22 = vsub.f32 1.5, %v427_v45  ;;  %v1014_v63 = vadd.f32 1e-05, %v321_v46  ;;  %v1016_v23 = vadd.f32 1e-05, %v314_v17 }
 0x194   :  { %v608_v25 = vpop.eup %607  ;;  %v544_v26 = vadd.f32 %v1005_v34, %v524_v47  ;;  %v469_v28 = vmul.f32 %v602_v52, %v468_v21  ;;  %v355_v59 = vmul.f32 %v606_v61, %v989_v24  ;;  %vm361_vm15 = vweird.f32 %v606_v61 }
 0x195   :  { %564 = vst.msk [vmem:[%s1208_s6 + $0x20] sm:$0xff] %vm55_vm0, %v548_v62  ;;  %v429_v32 = vmul.f32 %v604_v55, %v428_v22  ;;  %v395_v33 = vmul.f32 %v608_v25, %v991_v16  ;;  %609 = vrsqrt.f32 %v1014_v63  ;;  %vm401_vm1 = vweird.f32 %v608_v25  ;;  %vm362_vm2 = vmor %vm360_vm14, %vm361_vm15 }
 0x196   :  { %560 = vst.msk [vmem:[%s1208_s6] sm:$0xff] %vm55_vm0, %v544_v26  ;;  %v473_v29 = vsel %vm472_vm11, %v602_v52, %v469_v28  ;;  %v356_v39 = vmul.f32 %v606_v61, %v355_v59  ;;  %611 = vrsqrt.f32 %v1016_v23  ;;  %vm402_vm4 = vmor %vm400_vm3, %vm401_vm1  ;;  %vm440_vm7 = vweird.f32 %v1014_v63 }
 0x197   :  { %v516_v40 = vmul.f32 %v473_v29, %v882_v9  ;;  %v433_v41 = vsel %vm432_vm13, %v604_v55, %v429_v32  ;;  %v396_v42 = vmul.f32 %v608_v25, %v395_v33  ;;  %v296_v31 = vpop.xlane.xlu2 %295  ;;  %vm370_vm9 = vweird.f32 %v1016_v23 }
 0x198   :  { %v512_v4 = vmul.f32 %v433_v41, %v879_v35  ;;  %v357_v8 = vmul.f32 0.5, %v356_v39  ;;  %v322_v43 = vmul.f32 %v296_v31, %v860_v54  ;;  %v284_v50 = vpop.xlane.xlu1 %283  ;;  %v299_v27 = vpop.xlane.xlu0 %298 }
 0x199   :  { %v536_v51 = vmul.f32 %v997_v57, %v516_v40  ;;  %v397_v52 = vmul.f32 0.5, %v396_v42  ;;  %v318_v53 = vmul.f32 %v284_v50, %v860_v54  ;;  %v323_v19 = vmul.f32 %v299_v27, %v860_v54 }
 0x19a   :  { %v532_v9 = vmul.f32 %v997_v57, %v512_v4  ;;  %v358_v55 = vsub.f32 1.5, %v357_v8  ;;  %v1042_v56 = vadd.f32 1e-05, %v322_v43 }
 0x19b   :  { %v610_v35 = vpop.eup %609  ;;  %v556_v1 = vadd.f32 %v1005_v34, %v536_v51  ;;  %v398_v2 = vsub.f32 1.5, %v397_v52  ;;  %v1045_v3 = vadd.f32 1e-05, %v318_v53  ;;  %v1049_v11 = vadd.f32 1e-05, %v323_v19 }
 0x19c   :  { %v612_v6 = vpop.eup %611  ;;  %v552_v36 = vadd.f32 %v1005_v34, %v532_v9  ;;  %v359_v7 = vmul.f32 %v606_v61, %v358_v55  ;;  %v435_v38 = vmul.f32 %v610_v35, %v1014_v63  ;;  %613 = vrsqrt.f32 %v1042_v56 }
 0x19d   :  { %572 = vst.msk [vmem:[%s1208_s6 + $0x60] sm:$0xff] %vm55_vm0, %v556_v1  ;;  %v399_v37 = vmul.f32 %v608_v25, %v398_v2  ;;  %v365_v14 = vmul.f32 %v612_v6, %v1016_v23  ;;  %615 = vrsqrt.f32 %v1045_v3  ;;  %vm441_vm5 = vweird.f32 %v610_v35 }
 0x19e   :  { %568 = vst.msk [vmem:[%s1208_s6 + $0x40] sm:$0xff] %vm55_vm0, %v552_v36  ;;  %v363_v15 = vsel %vm362_vm2, %v606_v61, %v359_v7  ;;  %v436_v12 = vmul.f32 %v610_v35, %v435_v38  ;;  %617 = vrsqrt.f32 %v1049_v11  ;;  %vm371_vm6 = vweird.f32 %v612_v6  ;;  %vm442_vm8 = vmor %vm440_vm7, %vm441_vm5 }
 0x19f   :  { %v505_v24 = vmul.f32 %v363_v15, %v898_v20  ;;  %v403_v45 = vsel %vm402_vm4, %v608_v25, %v399_v37  ;;  %v366_v46 = vmul.f32 %v612_v6, %v365_v14  ;;  %vm372_vm10 = vmor %vm370_vm9, %vm371_vm6  ;;  %vm450_vm11 = vweird.f32 %v1042_v56 }
 0x1a0   :  { %v509_v16 = vmul.f32 %v403_v45, %v895_v18  ;;  %v437_v17 = vmul.f32 0.5, %v436_v12  ;;  %v275_v47 = vpop.xlane.xlu1 %274  ;;  %v308_v21 = vpop.xlane.xlu0 %307  ;;  %vm410_vm12 = vweird.f32 %v1045_v3  ;;  %vm460_vm3 = vweird.f32 %v1049_v11 }
 0x1a1   :  { %v525_v62 = vmul.f32 %v997_v57, %v505_v24  ;;  %v367_v22 = vmul.f32 0.5, %v366_v46  ;;  %v315_v61 = vmul.f32 %v275_v47, %v860_v54  ;;  %v326_v26 = vmul.f32 %v308_v21, %v860_v54 }
 0x1a2   :  { %v529_v28 = vmul.f32 %v997_v57, %v509_v16  ;;  %v438_v59 = vsub.f32 1.5, %v437_v17  ;;  %v1073_v20 = vpop.eup %613 }
 0x1a3   :  { %v545_v18 = vadd.f32 %v1005_v34, %v525_v62  ;;  %v368_v25 = vsub.f32 1.5, %v367_v22  ;;  %v1076_v32 = vadd.f32 1e-05, %v315_v61  ;;  %v1078_v33 = vadd.f32 1e-05, %v326_v26  ;;  %v1080_v29 = vpop.eup %615 }
 0x1a4   :  { %v549_v39 = vadd.f32 %v1005_v34, %v529_v28  ;;  %v439_v40 = vmul.f32 %v610_v35, %v438_v59  ;;  %v445_v41 = vmul.f32 %v1073_v20, %v1042_v56  ;;  %v405_v31 = vmul.f32 %v1080_v29, %v1045_v3  ;;  %v618_v4 = vpop.eup %617 }
 0x1a5   :  { %561 = vst.msk [vmem:[%s1208_s6 + $0x8] sm:$0xff] %vm55_vm0, %v545_v18  ;;  %v369_v42 = vmul.f32 %v612_v6, %v368_v25  ;;  %619 = vrsqrt.f32 %v1076_v32  ;;  %v455_v27 = vmul.f32 %v618_v4, %v1049_v11  ;;  %vm451_vm13 = vweird.f32 %v1073_v20 }
 0x1a6   :  { %565 = vst.msk [vmem:[%s1208_s6 + $0x28] sm:$0xff] %vm55_vm0, %v549_v39  ;;  %v443_v63 = vsel %vm442_vm8, %v610_v35, %v439_v40  ;;  %v446_v8 = vmul.f32 %v1073_v20, %v445_v41  ;;  %621 = vrsqrt.f32 %v1078_v33  ;;  %v406_v50 = vmul.f32 %v1080_v29, %v405_v31  ;;  %vm452_vm15 = vmor %vm450_vm11, %vm451_vm13 }
 0x1a7   :  { %v513_v23 = vmul.f32 %v443_v63, %v912_v30  ;;  %v373_v43 = vsel %vm372_vm10, %v612_v6, %v369_v42  ;;  %v287_v51 = vpop.xlane.xlu2 %286  ;;  %v456_v55 = vmul.f32 %v618_v4, %v455_v27  ;;  %vm411_vm14 = vweird.f32 %v1080_v29 }
 0x1a8   :  { %v506_v52 = vmul.f32 %v373_v43, %v909_v60  ;;  %v447_v53 = vmul.f32 0.5, %v446_v8  ;;  %v407_v9 = vmul.f32 0.5, %v406_v50  ;;  %v319_v35 = vmul.f32 %v287_v51, %v860_v54  ;;  %v311_v30 = vpop.xlane.xlu1 %310  ;;  %vm412_vm2 = vmor %vm410_vm12, %vm411_vm14 }
 0x1a9   :  { %v533_v19 = vmul.f32 %v997_v57, %v513_v23  ;;  %v457_v7 = vmul.f32 0.5, %v456_v55  ;;  %v327_v24 = vmul.f32 %v311_v30, %v860_v54  ;;  %vm461_vm1 = vweird.f32 %v618_v4 }
 0x1aa   :  { %v526_v1 = vmul.f32 %v997_v57, %v506_v52  ;;  %v448_v2 = vsub.f32 1.5, %v447_v53  ;;  %v408_v36 = vsub.f32 1.5, %v407_v9  ;;  %v1113_v38 = vadd.f32 1e-05, %v319_v35  ;;  %vm462_vm4 = vmor %vm460_vm3, %vm461_vm1 }
 0x1ab   :  { %v620_v60 = vpop.eup %619  ;;  %v553_v6 = vadd.f32 %v1005_v34, %v533_v19  ;;  %v458_v46 = vsub.f32 1.5, %v457_v7  ;;  %v343_v59 = vadd.f32 1e-05, %v327_v24  ;;  %vm380_vm7 = vweird.f32 %v1076_v32 }
 0x1ac   :  { %v622_v37 = vpop.eup %621  ;;  %v546_v14 = vadd.f32 %v1005_v34, %v526_v1  ;;  %v449_v15 = vmul.f32 %v1073_v20, %v448_v2  ;;  %v375_v12 = vmul.f32 %v620_v60, %v1076_v32  ;;  %v409_v45 = vmul.f32 %v1080_v29, %v408_v36 }
 0x1ad   :  { %569 = vst.msk [vmem:[%s1208_s6 + $0x48] sm:$0xff] %vm55_vm0, %v553_v6  ;;  %v485_v16 = vmul.f32 %v622_v37, %v1078_v33  ;;  %623 = vrsqrt.f32 %v1113_v38  ;;  %v459_v62 = vmul.f32 %v618_v4, %v458_v46  ;;  %vm381_vm5 = vweird.f32 %v620_v60 }
 0x1ae   :  { %562 = vst.msk [vmem:[%s1208_s6 + $0x10] sm:$0xff] %vm55_vm0, %v546_v14  ;;  %v453_v17 = vsel %vm452_vm15, %v1073_v20, %v449_v15  ;;  %v376_v56 = vmul.f32 %v620_v60, %v375_v12  ;;  %v413_v21 = vsel %vm412_vm2, %v1080_v29, %v409_v45  ;;  %625 = vrsqrt.f32 %v343_v59  ;;  %vm382_vm8 = vmor %vm380_vm7, %vm381_vm5 }
 0x1af   :  { %v514_v47 = vmul.f32 %v453_v17, %v927_v48  ;;  %v486_v22 = vmul.f32 %v622_v37, %v485_v16  ;;  %v305_v61 = vpop.xlane.xlu2 %304  ;;  %v510_v26 = vmul.f32 %v413_v21, %v930_v49  ;;  %v463_v11 = vsel %vm462_vm4, %v618_v4, %v459_v62 }
 0x1b0   :  { %v377_v28 = vmul.f32 0.5, %v376_v56  ;;  %v325_v3 = vmul.f32 %v305_v61, %v860_v54  ;;  %v515_v48 = vmul.f32 %v463_v11, %v924_v44  ;;  %vm491_vm6 = vweird.f32 %v622_v37 }
 0x1b1   :  { %v534_v20 = vmul.f32 %v997_v57, %v514_v47  ;;  %v487_v18 = vmul.f32 0.5, %v486_v22  ;;  %v530_v25 = vmul.f32 %v997_v57, %v510_v26  ;;  %vm490_vm9 = vweird.f32 %v1078_v33 }
 0x1b2   :  { %v378_v29 = vsub.f32 1.5, %v377_v28  ;;  %v341_v49 = vadd.f32 1e-05, %v325_v3  ;;  %v535_v54 = vmul.f32 %v997_v57, %v515_v48  ;;  %vm492_vm10 = vmor %vm490_vm9, %vm491_vm6  ;;  %vm420_vm12 = vweird.f32 %v1113_v38 }
 0x1b3   :  { %v554_v39 = vadd.f32 %v1005_v34, %v534_v20  ;;  %v488_v40 = vsub.f32 1.5, %v487_v18  ;;  %v624_v41 = vpop.eup %623  ;;  %v550_v42 = vadd.f32 %v1005_v34, %v530_v25  ;;  %vm500_vm15 = vweird.f32 %v343_v59 }
 0x1b4   :  { %v379_v31 = vmul.f32 %v620_v60, %v378_v29  ;;  %v415_v4 = vmul.f32 %v624_v41, %v1113_v38  ;;  %627 = vrsqrt.f32 %v341_v49  ;;  %v555_v32 = vadd.f32 %v1005_v34, %v535_v54  ;;  %v626_v50 = vpop.eup %625 }
 0x1b5   :  { %570 = vst.msk [vmem:[%s1208_s6 + $0x50] sm:$0xff] %vm55_vm0, %v554_v39  ;;  %v489_v44 = vmul.f32 %v622_v37, %v488_v40  ;;  %v495_v52 = vmul.f32 %v626_v50, %v343_v59  ;;  %vm421_vm11 = vweird.f32 %v624_v41  ;;  %vm501_vm14 = vweird.f32 %v626_v50 }
 0x1b6   :  { %566 = vst.msk [vmem:[%s1208_s6 + $0x30] sm:$0xff] %vm55_vm0, %v550_v42  ;;  %v383_v63 = vsel %vm382_vm8, %v620_v60, %v379_v31  ;;  %v416_v43 = vmul.f32 %v624_v41, %v415_v4  ;;  %vm422_vm13 = vmor %vm420_vm12, %vm421_vm11  ;;  %vm480_vm3 = vweird.f32 %v341_v49 }
 0x1b7   :  { %v507_v8 = vmul.f32 %v383_v63, %v947_v0  ;;  %v493_v23 = vsel %vm492_vm10, %v622_v37, %v489_v44  ;;  %571 = vst.msk [vmem:[%s1208_s6 + $0x58] sm:$0xff] %vm55_vm0, %v555_v32  ;;  %v496_v55 = vmul.f32 %v626_v50, %v495_v52  ;;  %vm502_vm1 = vmor %vm500_vm15, %vm501_vm14 }
 0x1b8   :  { %v518_v33 = vmul.f32 %v493_v23, %v944_v58  ;;  %v417_v51 = vmul.f32 0.5, %v416_v43 }
 0x1b9   :  { %v527_v27 = vmul.f32 %v997_v57, %v507_v8  ;;  %v497_v1 = vmul.f32 0.5, %v496_v55 }
 0x1ba   :  { %v538_v53 = vmul.f32 %v997_v57, %v518_v33  ;;  %v628_v19 = vpop.eup %627  ;;  %v418_v0 = vsub.f32 1.5, %v417_v51 }
 0x1bb   :  { %v547_v9 = vadd.f32 %v1005_v34, %v527_v27  ;;  %v475_v30 = vmul.f32 %v628_v19, %v341_v49  ;;  %v498_v6 = vsub.f32 1.5, %v497_v1  ;;  %vm481_vm2 = vweird.f32 %v628_v19 }
 0x1bc   :  { %v558_v35 = vadd.f32 %v1005_v34, %v538_v53  ;;  %v419_v58 = vmul.f32 %v624_v41, %v418_v0  ;;  %vm482_vm4 = vmor %vm480_vm3, %vm481_vm2 }
 0x1bd   :  { %563 = vst.msk [vmem:[%s1208_s6 + $0x18] sm:$0xff] %vm55_vm0, %v547_v9  ;;  %v476_v2 = vmul.f32 %v628_v19, %v475_v30  ;;  %v499_v37 = vmul.f32 %v626_v50, %v498_v6 }
 0x1be   :  { %574 = vst.msk [vmem:[%s1208_s6 + $0x70] sm:$0xff] %vm55_vm0, %v558_v35  ;;  %v423_v60 = vsel %vm422_vm13, %v624_v41, %v419_v58 }
 0x1bf   :  { %v511_v36 = vmul.f32 %v423_v60, %v963_v10  ;;  %v477_v7 = vmul.f32 0.5, %v476_v2  ;;  %v503_v15 = vsel %vm502_vm1, %v626_v50, %v499_v37 }
 0x1c0   :  { %v519_v24 = vmul.f32 %v503_v15, %v955_v5 }
 0x1c1   :  { %v531_v14 = vmul.f32 %v997_v57, %v511_v36  ;;  %v478_v38 = vsub.f32 1.5, %v477_v7 }
 0x1c2   :  { %v539_v10 = vmul.f32 %v997_v57, %v519_v24 }
 0x1c3   :  { %v551_v12 = vadd.f32 %v1005_v34, %v531_v14  ;;  %v479_v45 = vmul.f32 %v628_v19, %v478_v38 }
 0x1c4   :  { %v559_v17 = vadd.f32 %v1005_v34, %v539_v10 }
 0x1c5   :  { %567 = vst.msk [vmem:[%s1208_s6 + $0x38] sm:$0xff] %vm55_vm0, %v551_v12  ;;  %v483_v46 = vsel %vm482_vm4, %v628_v19, %v479_v45 }
 0x1c6   :  { %v517_v16 = vmul.f32 %v483_v46, %v970_v13  ;;  %575 = vst.msk [vmem:[%s1208_s6 + $0x78] sm:$0xff] %vm55_vm0, %v559_v17 }
 0x1c8   :  { %v537_v56 = vmul.f32 %v997_v57, %v517_v16 }
 0x1ca   :  { %v557_v5 = vadd.f32 %v1005_v34, %v537_v56 }
 0x1cc   :  { %573 = vst.msk [vmem:[%s1208_s6 + $0x68] sm:$0xff] %vm55_vm0, %v557_v5 }

// kernel: _lambda_.25
= control target key start
LH: loop header
LB: loop body
LE: loop exit
PB: predicated region body
PF: predicated region fallthrough
CT: control target
= control target key end

     0   :  { %vm46_vm0 = vcmask 130048   ;;  %vm120_vm1 = vcmask 785408   ;;  %s302_s1 = inlined_call_operand.vmem [shape: f32[16,96], index: 1, kind: input, shape index: {}]   ;;  %s303_s0 = inlined_call_operand.vmem [shape: f32[128,16], index: 0, kind: input, shape index: {}]   ;;  %s304_s2 = inlined_call_operand.vmem [shape: f32[1,96], index: 2, kind: input, shape index: {}]   ;;  %s305_s3 = inlined_call_operand.vmem [shape: f32[128,96], index: 3, kind: output, shape index: {}]  }
   0x1   :  { %v39_v0 = vld [vmem:[%s302_s1] sm:$0xff]  ;;  %v40_v1 = vld [vmem:[%s302_s1 + $0x8] sm:$0xff]  ;;  %v17_v15 = vld [vmem:[%s303_s0 + $0x10] sm:$0xff] }
   0x2   :  { %v15_v2 = vld [vmem:[%s303_s0] sm:$0xff]  ;;  %v41_v3 = vpack.c.bf16 %v40_v1, %v39_v0  ;;  %v16_v4 = vld [vmem:[%s303_s0 + $0x8] sm:$0xff]  ;;  %v18_v16 = vld [vmem:[%s303_s0 + $0x18] sm:$0xff] }
   0x3   :  { %v19_v5 = vld [vmem:[%s303_s0 + $0x20] sm:$0xff]  ;;  %v20_v6 = vld [vmem:[%s303_s0 + $0x28] sm:$0xff]  ;;  %v31_v7 = vpack.c.bf16 %v16_v4, %v15_v2  ;;  %v21_v17 = vld [vmem:[%s303_s0 + $0x30] sm:$0xff]  ;;  %v32_v23 = vpack.c.bf16 %v18_v16, %v17_v15 }
   0x4   :  { %v33_v8 = vpack.c.bf16 %v20_v6, %v19_v5  ;;  %v23_v9 = vld [vmem:[%s303_s0 + $0x40] sm:$0xff]  ;;  %v24_v10 = vld [vmem:[%s303_s0 + $0x48] sm:$0xff]  ;;  %78 = vmatpush.bf16.msra.mxu0 %v41_v3  ;;  %149 = vmatpush.bf16.msra.mxu1 %v41_v3  ;;  %v22_v18 = vld [vmem:[%s303_s0 + $0x38] sm:$0xff] }
   0x5   :  { %v27_v11 = vld [vmem:[%s303_s0 + $0x60] sm:$0xff]  ;;  %v35_v12 = vpack.c.bf16 %v24_v10, %v23_v9  ;;  %v28_v13 = vld [vmem:[%s303_s0 + $0x68] sm:$0xff]  ;;  %150 = vmatpush.bf16.msra.mxu2 %v41_v3  ;;  %151 = vmatpush.bf16.msra.mxu3 %v41_v3  ;;  %v25_v19 = vld [vmem:[%s303_s0 + $0x50] sm:$0xff]  ;;  %v34_v24 = vpack.c.bf16 %v22_v18, %v21_v17 }
   0x6   :  { %v37_v14 = vpack.c.bf16 %v28_v13, %v27_v11  ;;  %v26_v20 = vld [vmem:[%s303_s0 + $0x58] sm:$0xff]  ;;  %v29_v21 = vld [vmem:[%s303_s0 + $0x70] sm:$0xff]  ;;  %v152_v27 = vld [vmem:[%s304_s2] ss:$0 sm:$0xff] }
   0x7   :  { %141 = vmatmul.msk.bf16.vlgmr.msra.gmra.mxu0 %vm46_vm0, %v31_v7  ;;  %143 = vmatmul.msk.bf16.vlgmr.msra.gmra.mxu1 %vm46_vm0, %v33_v8  ;;  %v30_v22 = vld [vmem:[%s303_s0 + $0x78] sm:$0xff]  ;;  %v36_v25 = vpack.c.bf16 %v26_v20, %v25_v19 }
   0x8   :  { %145 = vmatmul.msk.bf16.vlgmr.msra.gmra.mxu2 %vm46_vm0, %v35_v12  ;;  %147 = vmatmul.msk.bf16.vlgmr.msra.gmra.mxu3 %vm46_vm0, %v37_v14  ;;  %v38_v26 = vpack.c.bf16 %v30_v22, %v29_v21 }
  0x17   :  { %142 = vmatmul.msk.bf16.gmra.mxu0 %vm46_vm0, %v32_v23  ;;  %144 = vmatmul.msk.bf16.gmra.mxu1 %vm46_vm0, %v34_v24 }
  0x18   :  { %146 = vmatmul.msk.bf16.gmra.mxu2 %vm46_vm0, %v36_v25  ;;  %148 = vmatmul.msk.bf16.gmra.mxu3 %vm46_vm0, %v38_v26 }
  0x84   :  { %v80_v28 = vpop.f32.mrf.mxu0  ;;  %v90_v29 = vpop.f32.mrf.mxu1 }
  0x85   :  { %v81_v30 = vadd.f32 %v152_v27, %v80_v28  ;;  %v91_v31 = vadd.f32 %v152_v27, %v90_v29 }
  0x87   :  { %121 = vst.msk [vmem:[%s305_s3] sm:$0xff] %vm120_vm1, %v81_v30 }
  0x88   :  { %125 = vst.msk [vmem:[%s305_s3 + $0x20] sm:$0xff] %vm120_vm1, %v91_v31 }
  0x8b   :  { %v100_v32 = vpop.f32.mrf.mxu2  ;;  %v110_v33 = vpop.f32.mrf.mxu3 }
  0x8c   :  { %v101_v34 = vadd.f32 %v152_v27, %v100_v32  ;;  %v111_v35 = vadd.f32 %v152_v27, %v110_v33  ;;  %v82_v36 = vpop.f32.mrf.mxu0  ;;  %v92_v37 = vpop.f32.mrf.mxu1 }
  0x8d   :  { %v83_v38 = vadd.f32 %v152_v27, %v82_v36  ;;  %v93_v39 = vadd.f32 %v152_v27, %v92_v37 }
  0x8e   :  { %129 = vst.msk [vmem:[%s305_s3 + $0x40] sm:$0xff] %vm120_vm1, %v101_v34 }
  0x8f   :  { %133 = vst.msk [vmem:[%s305_s3 + $0x60] sm:$0xff] %vm120_vm1, %v111_v35 }
  0x90   :  { %122 = vst.msk [vmem:[%s305_s3 + $0x8] sm:$0xff] %vm120_vm1, %v83_v38 }
  0x91   :  { %126 = vst.msk [vmem:[%s305_s3 + $0x28] sm:$0xff] %vm120_vm1, %v93_v39 }
  0x93   :  { %v102_v40 = vpop.f32.mrf.mxu2  ;;  %v112_v41 = vpop.f32.mrf.mxu3 }
  0x94   :  { %v103_v42 = vadd.f32 %v152_v27, %v102_v40  ;;  %v113_v43 = vadd.f32 %v152_v27, %v112_v41  ;;  %v85_v44 = vpop.f32.mrf.mxu0  ;;  %v95_v45 = vpop.f32.mrf.mxu1 }
  0x95   :  { %v86_v46 = vadd.f32 %v152_v27, %v85_v44  ;;  %v96_v47 = vadd.f32 %v152_v27, %v95_v45 }
  0x96   :  { %130 = vst.msk [vmem:[%s305_s3 + $0x48] sm:$0xff] %vm120_vm1, %v103_v42 }
  0x97   :  { %134 = vst.msk [vmem:[%s305_s3 + $0x68] sm:$0xff] %vm120_vm1, %v113_v43 }
  0x98   :  { %123 = vst.msk [vmem:[%s305_s3 + $0x10] sm:$0xff] %vm120_vm1, %v86_v46 }
  0x99   :  { %127 = vst.msk [vmem:[%s305_s3 + $0x30] sm:$0xff] %vm120_vm1, %v96_v47 }
  0x9b   :  { %v105_v48 = vpop.f32.mrf.mxu2  ;;  %v115_v49 = vpop.f32.mrf.mxu3 }
  0x9c   :  { %v106_v50 = vadd.f32 %v152_v27, %v105_v48  ;;  %v116_v51 = vadd.f32 %v152_v27, %v115_v49  ;;  %v87_v52 = vpop.f32.mrf.mxu0  ;;  %v97_v53 = vpop.f32.mrf.mxu1 }
  0x9d   :  { %v88_v54 = vadd.f32 %v152_v27, %v87_v52  ;;  %v98_v55 = vadd.f32 %v152_v27, %v97_v53 }
  0x9e   :  { %131 = vst.msk [vmem:[%s305_s3 + $0x50] sm:$0xff] %vm120_vm1, %v106_v50 }
  0x9f   :  { %135 = vst.msk [vmem:[%s305_s3 + $0x70] sm:$0xff] %vm120_vm1, %v116_v51 }
  0xa0   :  { %124 = vst.msk [vmem:[%s305_s3 + $0x18] sm:$0xff] %vm120_vm1, %v88_v54 }
  0xa1   :  { %128 = vst.msk [vmem:[%s305_s3 + $0x38] sm:$0xff] %vm120_vm1, %v98_v55 }
  0xa3   :  { %v107_v56 = vpop.f32.mrf.mxu2  ;;  %v117_v57 = vpop.f32.mrf.mxu3 }
  0xa4   :  { %v108_v58 = vadd.f32 %v152_v27, %v107_v56  ;;  %v118_v59 = vadd.f32 %v152_v27, %v117_v57 }
  0xa6   :  { %132 = vst.msk [vmem:[%s305_s3 + $0x58] sm:$0xff] %vm120_vm1, %v108_v58 }
  0xa7   :  { %136 = vst.msk [vmem:[%s305_s3 + $0x78] sm:$0xff] %vm120_vm1, %v118_v59 }

// kernel: _lambda_.27
= control target key start
LH: loop header
LB: loop body
LE: loop exit
PB: predicated region body
PF: predicated region fallthrough
CT: control target
= control target key end

     0   :  { %s1079_s12 = smov 0   ;;  %s1081_s13 = smov 0   ;;  %s1243_s0 = inlined_call_operand.vmem [shape: f32[8,16,96], index: 0, kind: input, shape index: {}]   ;;  %s1244_s1 = inlined_call_operand.vmem [shape: f32[32,96], index: 1, kind: input, shape index: {}]   ;;  %s1245_s2 = inlined_call_operand.vmem [shape: f32[1,96], index: 2, kind: input, shape index: {}]   ;;  %s1246_s3 = inlined_call_operand.vmem [shape: f32[8,16,32], index: 3, kind: output, shape index: {}]  }
   0x1   :  { %s1083_s14 = smov 0  }
   0x2 LB: > { %s914_s15 = sadd.s32 4294967295, %s1054_s14   ;;  %s1096_s16 = sadd.s32 1, %s1054_s14   ;;  %s1054_s14 = sphi %s1083_s14, %s1250_s14   ;;  %s1050_s13 = sphi %s1081_s13, %s1249_s13   ;;  %s1046_s12 = sphi %s1079_s12, %s1248_s12  }
   0x3   : > { %s17_s17 = ssub.s32 %s1054_s14, %s1096_s16  ;;  %s20_s18 = sadd.s32 1, %s1050_s13 }
   0x4   : > { %p18_p0 = scmp.eq.s32.totalorder %s17_s17, 0  ;;  %p27_p1 = scmp.ne.s32.totalorder %s1050_s13, %s1046_s12 }
   0x5   : > { %p28_p2 = scmp.eq.s32.totalorder %s1054_s14, 0  ;;  %p99_p3 = scmp.eq.s32.totalorder %s914_s15, 1 }
   0x6   : > { %s1107_s19 = scalar_select %p18_p0, %s1050_s13, %s20_s18  }
   0x7   : > { %p29_p4 = por %p28_p2, %p27_p1  ;;  %p1109_p5 = por %p99_p3, %p27_p1 }
   0x8   : > { %p917_p6 = scmp.ge.s32.totalorder %s1054_s14, 2 }
   0xa   : > { %127 = sbr.rel (%p917_p6) target bundleno = 27 (0x1b), region = 24 }
   0xf   : > { %130 = sbr.rel (!%p29_p4) target bundleno = 27 (0x1b), region = 28  ;;  %s132_s21 = sand.u32 (%p29_p4), 1, %s1050_s13  }
  0x10   : > { %s919_s22 = sshll.u32 (%p29_p4), %s1054_s14, 3  ;;  %s918_s23 = sshll.u32 (%p29_p4), %s132_s21, 6 }
  0x11   : > { %s136_s26 = scalar_lea.vmem (%p29_p4), %s1243_s0, %s919_s22  ;;  %s134_s27 = scalar_lea.vmem (%p29_p4), [#allocation2], %s918_s23 }
  0x12   : > { %v179_v0 = vld [vmem:[%s136_s26] sm:$0xff] (%p29_p4)  ;;  %v181_v1 = vld [vmem:[%s136_s26 + $0x10] sm:$0xff] (%p29_p4) }
  0x13   : > { %v183_v2 = vld [vmem:[%s136_s26 + $0x20] sm:$0xff] (%p29_p4)  ;;  %180 = vst [vmem:[%s134_s27] sm:$0xff] (%p29_p4), %v179_v0  ;;  %v185_v3 = vld [vmem:[%s136_s26 + $0x30] sm:$0xff] (%p29_p4) }
  0x14   : > { %182 = vst [vmem:[%s134_s27 + $0x8] sm:$0xff] %v181_v1  ;;  %v187_v4 = vld [vmem:[%s136_s26 + $0x40] sm:$0xff]  ;;  %v189_v5 = vld [vmem:[%s136_s26 + $0x50] sm:$0xff] }
  0x15   : > { %184 = vst [vmem:[%s134_s27 + $0x10] sm:$0xff] %v183_v2  ;;  %v191_v6 = vld [vmem:[%s136_s26 + $0x60] sm:$0xff]  ;;  %v193_v7 = vld [vmem:[%s136_s26 + $0x70] sm:$0xff] }
  0x16   : > { %186 = vst [vmem:[%s134_s27 + $0x18] sm:$0xff] %v185_v3 }
  0x17   : > { %188 = vst [vmem:[%s134_s27 + $0x20] sm:$0xff] %v187_v4 }
  0x18   : > { %190 = vst [vmem:[%s134_s27 + $0x28] sm:$0xff] %v189_v5 }
  0x19   : > { %192 = vst [vmem:[%s134_s27 + $0x30] sm:$0xff] %v191_v6 }
  0x1a   : > { %194 = vst [vmem:[%s134_s27 + $0x38] sm:$0xff] %v193_v7 }
  0x1b PF: > { %p920_p7 = scmp.ge.s32.totalorder %s1054_s14, 1  ;;  %p199_p8 = scmp.lt.s32.totalorder %s1054_s14, 3 }
  0x1d   : > { %p200_p9 = pnand %p920_p7, %p199_p8 }
  0x1e   : > { %s1057_s11 = smov (!%p200_p9), 64   ;;  %s206_s17 = sand.u32 (!%p200_p9), 1, %s1046_s12  }
  0x1f   : > { %203 = sbr.rel (%p200_p9) target bundleno = 4661 (0x1235), region = 66  ;;  %s1141_s18 = sshll.u32 (!%p200_p9), %s206_s17, 6 }
  0x20   : > { %s1144_s21 = scalar_lea.vmem (!%p200_p9), [#allocation2], %s1141_s18  ;;  %s1058_s12 = smov (!%p200_p9), 96  }
  0x21   : > { %s1151_s22 = scalar_lea.vmem (!%p200_p9), [#allocation3], %s1141_s18 }
  0x24   : > { %v231_v8 = vld [vmem:[%s1244_s1 + $0x18] sm:$0xff]  ;;  %v230_v9 = vld [vmem:[%s1244_s1 + $0x10] sm:$0xff]  ;;  %v229_v10 = vld [vmem:[%s1244_s1 + $0x8] sm:$0xff]  ;;  %v1056_v12 = vmov 0.0   ;;  %vm238_vm4 = vcmask 261120   ;;  %s953_s23 = sshll.u32 (%p1109_p5), %s914_s15, 3 }
  0x25   : > { %254 = vmatpush.msra.mxu0 %v231_v8  ;;  %323 = vmatpush.msra.mxu1 %v231_v8  ;;  %v228_v11 = vld [vmem:[%s1244_s1] sm:$0xff]  ;;  %v923_v16 = vld [vmem:[%s1144_s21 + $0x38] sm:$0xff]  ;;  %v926_v44 = vld [vmem:[%s1144_s21 + $0x30] sm:$0xff]  ;;  %s796_s26 = scalar_lea.vmem (%p1109_p5), %s1246_s3, %s953_s23 }
  0x26   : > { %392 = vmatpush.msra.mxu2 %v231_v8  ;;  %461 = vmatpush.msra.mxu3 %v231_v8  ;;  %v1136_v13 = vld [vmem:[%s1245_s2] ss:$0 sm:$0xff] }
  0x27   : > { %255 = vmatpush.msra.mxu0 %v230_v9  ;;  %324 = vmatpush.msra.mxu1 %v230_v9 }
  0x28   : > { %393 = vmatpush.msra.mxu2 %v230_v9  ;;  %462 = vmatpush.msra.mxu3 %v230_v9 }
  0x29   : > { %256 = vmatpush.msra.mxu0 %v229_v10  ;;  %325 = vmatpush.msra.mxu1 %v229_v10 }
  0x2a   : > { %394 = vmatpush.msra.mxu2 %v229_v10  ;;  %463 = vmatpush.msra.mxu3 %v229_v10 }
  0x2b   : > { %257 = vmatpush.msra.mxu0 %v228_v11  ;;  %326 = vmatpush.msra.mxu1 %v228_v11 }
  0x2c   : > { %258 = vmatmul.f32.vlgmr.msra.gmra.mxu0 %v1056_v12  ;;  %395 = vmatpush.msra.mxu2 %v228_v11 }
  0x2d   : > { %464 = vmatpush.msra.mxu3 %v228_v11  ;;  %530 = vmatpush.msrb.mxu0 %v231_v8 }
  0x2e   : > { %599 = vmatpush.msrb.mxu1 %v231_v8  ;;  %668 = vmatpush.msrb.mxu2 %v231_v8 }
  0x2f   : > { %531 = vmatpush.msrb.mxu0 %v230_v9  ;;  %736 = vmatpush.msrb.mxu3 %v231_v8  ;;  %v930_v8 = vld [vmem:[%s1144_s21 + $0x28] sm:$0xff] }
  0x30   : > { %600 = vmatpush.msrb.mxu1 %v230_v9  ;;  %669 = vmatpush.msrb.mxu2 %v230_v9 }
  0x31   : > { %532 = vmatpush.msrb.mxu0 %v229_v10  ;;  %737 = vmatpush.msrb.mxu3 %v230_v9 }
  0x32   : > { %601 = vmatpush.msrb.mxu1 %v229_v10  ;;  %670 = vmatpush.msrb.mxu2 %v229_v10 }
  0x33   : > { %533 = vmatpush.msrb.mxu0 %v228_v11  ;;  %738 = vmatpush.msrb.mxu3 %v229_v10 }
  0x34   : > { %602 = vmatpush.msrb.mxu1 %v228_v11  ;;  %671 = vmatpush.msrb.mxu2 %v228_v11 }
  0x35   : > { %739 = vmatpush.msrb.mxu3 %v228_v11 }
  0xa9   : > { %v259_v14 = vpop.f32.mrf.mxu0 }
  0xaa   : > { %v260_v15 = vadd.f32 %v1136_v13, %v259_v14 }
  0xac   : > { %283 = vrot.lane.b32.xlu0 %v260_v15, %s1057_s11  ;;  %v262_v17 = vadd.f32 %v923_v16, %v260_v15 }
  0xae   : > { %v924_v18 = vmul.f32 -1.442695, %v262_v17 }
  0xb0   : > { %984 = vpow2.f32 %v924_v18 }
  0xb6   : > { %v985_v19 = vpop.eup %984 }
  0xb7   : > { %v266_v20 = vadd.f32 1.0, %v985_v19 }
  0xb9   : > { %986 = vrcp.f32 %v266_v20  ;;  %v278_v26 = vand.u32 2147483648, %v266_v20  ;;  %vm272_vm1 = vweird.f32 %v266_v20  ;;  %v276_v27 = vand.u32 2147483647, %v266_v20 }
  0xbb   : > { %v279_v29 = vor.u32 1.1754944e-38, %v278_v26  ;;  %vm277_vm3 = vcmp.eq.f32.partialorder %v276_v27, 8.507059e+37 }
  0xbf   : > { %v987_v21 = vpop.eup %986 }
  0xc0   : > { %v268_v22 = vmul.f32 %v987_v21, %v266_v20  ;;  %vm273_vm0 = vweird.f32 %v987_v21 }
  0xc1   : > { %vm274_vm2 = vmor %vm272_vm1, %vm273_vm0 }
  0xc2   : > { %v269_v23 = vsub.f32 1.0, %v268_v22 }
  0xc4   : > { %v270_v24 = vmul.f32 %v987_v21, %v269_v23 }
  0xc6   : > { %v271_v25 = vadd.f32 %v987_v21, %v270_v24 }
  0xc8   : > { %v275_v28 = vsel %vm274_vm2, %v987_v21, %v271_v25 }
  0xc9   : > { %v280_v31 = vsel %vm277_vm3, %v279_v29, %v275_v28 }
  0xca   : > { %v293_v36 = vsub.f32 1.0, %v280_v31  ;;  %v299_v38 = vmul.f32 0.0, %v280_v31 }
 0x11e   : > { %v284_v30 = vpop.permute.xlu0 %283 }
 0x11f   : > { %v286_v32 = vmul.f32 %v284_v30, %v280_v31 }
 0x121   : > { %288 = vrot.lane.b32.xlu0 %v286_v32, %s1057_s11 }
 0x193   : > { %v289_v33 = vpop.permute.xlu0 %288 }
 0x194   : > { %v291_v34 = vadd.f32 %v923_v16, %v289_v33 }
 0x196   : > { %988 = vtanh.f32 %v291_v34 }
 0x19c   : > { %v989_v35 = vpop.eup %988 }
 0x19d   : > { %295 = vrot.lane.b32.xlu1 %v989_v35, %s1058_s12 }
 0x20f   : > { %v296_v37 = vpop.permute.xlu1 %295 }
 0x210   : > { %v298_v39 = vmul.f32 %v296_v37, %v293_v36  ;;  %v934_v37 = vld [vmem:[%s1144_s21 + $0x20] sm:$0xff] }
 0x212   : > { %v300_v40 = vadd.f32 %v299_v38, %v298_v39 }
 0x214   : > { %302 = vrot.lane.b32.xlu1 %v300_v40, %s1058_s12 }
 0x286   : > { %v303_v41 = vpop.permute.xlu1 %302 }
 0x287   : > { %925 = vst.msk [vmem:[%s1151_s22 + $0x38] sm:$0xff] %vm238_vm4, %v303_v41  ;;  %927 = vmatmul.msk.f32.vlgmr.msra.gmra.mxu1 %vm238_vm4, %v303_v41 }
 0x304   : > { %v328_v42 = vpop.f32.mrf.mxu1 }
 0x305   : > { %v329_v43 = vadd.f32 %v1136_v13, %v328_v42 }
 0x307   : > { %352 = vrot.lane.b32.xlu2 %v329_v43, %s1057_s11  ;;  %v331_v45 = vadd.f32 %v926_v44, %v329_v43 }
 0x309   : > { %v928_v46 = vmul.f32 -1.442695, %v331_v45 }
 0x30b   : > { %990 = vpow2.f32 %v928_v46 }
 0x311   : > { %v991_v47 = vpop.eup %990 }
 0x312   : > { %v335_v48 = vadd.f32 1.0, %v991_v47 }
 0x314   : > { %992 = vrcp.f32 %v335_v48  ;;  %v347_v54 = vand.u32 2147483648, %v335_v48  ;;  %vm341_vm6 = vweird.f32 %v335_v48  ;;  %v345_v55 = vand.u32 2147483647, %v335_v48 }
 0x316   : > { %v348_v57 = vor.u32 1.1754944e-38, %v347_v54  ;;  %vm346_vm8 = vcmp.eq.f32.partialorder %v345_v55, 8.507059e+37 }
 0x31a   : > { %v993_v49 = vpop.eup %992 }
 0x31b   : > { %v337_v50 = vmul.f32 %v993_v49, %v335_v48  ;;  %vm342_vm5 = vweird.f32 %v993_v49 }
 0x31c   : > { %vm343_vm7 = vmor %vm341_vm6, %vm342_vm5 }
 0x31d   : > { %v338_v51 = vsub.f32 1.0, %v337_v50 }
 0x31f   : > { %v339_v52 = vmul.f32 %v993_v49, %v338_v51 }
 0x321   : > { %v340_v53 = vadd.f32 %v993_v49, %v339_v52 }
 0x323   : > { %v344_v56 = vsel %vm343_vm7, %v993_v49, %v340_v53 }
 0x324   : > { %v349_v59 = vsel %vm346_vm8, %v348_v57, %v344_v56 }
 0x325   : > { %v362_v0 = vsub.f32 1.0, %v349_v59  ;;  %v368_v2 = vmul.f32 %v349_v59, %v300_v40 }
 0x361   : > { %v353_v58 = vpop.permute.xlu2 %352 }
 0x362   : > { %v355_v60 = vmul.f32 %v353_v58, %v349_v59 }
 0x364   : > { %357 = vrot.lane.b32.xlu2 %v355_v60, %s1057_s11 }
 0x3be   : > { %v358_v61 = vpop.permute.xlu2 %357 }
 0x3bf   : > { %v360_v62 = vadd.f32 %v926_v44, %v358_v61 }
 0x3c1   : > { %994 = vtanh.f32 %v360_v62 }
 0x3c7   : > { %v995_v63 = vpop.eup %994 }
 0x3c8   : > { %364 = vrot.lane.b32.xlu0 %v995_v63, %s1058_s12 }
 0x43a   : > { %v365_v1 = vpop.permute.xlu0 %364 }
 0x43b   : > { %v367_v3 = vmul.f32 %v365_v1, %v362_v0  ;;  %v938_v1 = vld [vmem:[%s1144_s21 + $0x18] sm:$0xff] }
 0x43d   : > { %v369_v4 = vadd.f32 %v368_v2, %v367_v3 }
 0x43f   : > { %371 = vrot.lane.b32.xlu1 %v369_v4, %s1058_s12 }
 0x4b1   : > { %v372_v5 = vpop.permute.xlu1 %371 }
 0x4b2   : > { %929 = vst.msk [vmem:[%s1151_s22 + $0x30] sm:$0xff] %vm238_vm4, %v372_v5  ;;  %931 = vmatmul.msk.f32.vlgmr.msra.gmra.mxu2 %vm238_vm4, %v372_v5 }
 0x535   : > { %v397_v6 = vpop.f32.mrf.mxu2 }
 0x536   : > { %v398_v7 = vadd.f32 %v1136_v13, %v397_v6 }
 0x538   : > { %421 = vrot.lane.b32.xlu2 %v398_v7, %s1057_s11  ;;  %v400_v9 = vadd.f32 %v930_v8, %v398_v7 }
 0x53a   : > { %v932_v10 = vmul.f32 -1.442695, %v400_v9 }
 0x53c   : > { %996 = vpow2.f32 %v932_v10 }
 0x542   : > { %v997_v11 = vpop.eup %996 }
 0x543   : > { %v404_v12 = vadd.f32 1.0, %v997_v11 }
 0x545   : > { %998 = vrcp.f32 %v404_v12  ;;  %v416_v19 = vand.u32 2147483648, %v404_v12  ;;  %vm410_vm10 = vweird.f32 %v404_v12  ;;  %v414_v20 = vand.u32 2147483647, %v404_v12 }
 0x547   : > { %v417_v22 = vor.u32 1.1754944e-38, %v416_v19  ;;  %vm415_vm12 = vcmp.eq.f32.partialorder %v414_v20, 8.507059e+37 }
 0x54b   : > { %v999_v14 = vpop.eup %998 }
 0x54c   : > { %v406_v15 = vmul.f32 %v999_v14, %v404_v12  ;;  %vm411_vm9 = vweird.f32 %v999_v14 }
 0x54d   : > { %vm412_vm11 = vmor %vm410_vm10, %vm411_vm9 }
 0x54e   : > { %v407_v16 = vsub.f32 1.0, %v406_v15 }
 0x550   : > { %v408_v17 = vmul.f32 %v999_v14, %v407_v16 }
 0x552   : > { %v409_v18 = vadd.f32 %v999_v14, %v408_v17 }
 0x554   : > { %v413_v21 = vsel %vm412_vm11, %v999_v14, %v409_v18 }
 0x555   : > { %v418_v24 = vsel %vm415_vm12, %v417_v22, %v413_v21 }
 0x556   : > { %v431_v29 = vsub.f32 1.0, %v418_v24  ;;  %v437_v31 = vmul.f32 %v418_v24, %v369_v4 }
 0x592   : > { %v422_v23 = vpop.permute.xlu2 %421 }
 0x593   : > { %v424_v25 = vmul.f32 %v422_v23, %v418_v24 }
 0x595   : > { %426 = vrot.lane.b32.xlu0 %v424_v25, %s1057_s11 }
 0x607   : > { %v427_v26 = vpop.permute.xlu0 %426 }
 0x608   : > { %v429_v27 = vadd.f32 %v930_v8, %v427_v26 }
 0x60a   : > { %1000 = vtanh.f32 %v429_v27 }
 0x610   : > { %v1001_v28 = vpop.eup %1000 }
 0x611   : > { %433 = vrot.lane.b32.xlu1 %v1001_v28, %s1058_s12 }
 0x683   : > { %v434_v30 = vpop.permute.xlu1 %433 }
 0x684   : > { %v436_v32 = vmul.f32 %v434_v30, %v431_v29  ;;  %v942_v30 = vld [vmem:[%s1144_s21 + $0x10] sm:$0xff] }
 0x686   : > { %v438_v33 = vadd.f32 %v437_v31, %v436_v32 }
 0x688   : > { %440 = vrot.lane.b32.xlu2 %v438_v33, %s1058_s12 }
 0x6e2   : > { %v441_v34 = vpop.permute.xlu2 %440 }
 0x6e3   : > { %933 = vst.msk [vmem:[%s1151_s22 + $0x28] sm:$0xff] %vm238_vm4, %v441_v34  ;;  %935 = vmatmul.msk.f32.vlgmr.msra.gmra.mxu3 %vm238_vm4, %v441_v34 }
 0x766   : > { %v466_v35 = vpop.f32.mrf.mxu3 }
 0x767   : > { %v467_v36 = vadd.f32 %v1136_v13, %v466_v35 }
 0x769   : > { %490 = vrot.lane.b32.xlu0 %v467_v36, %s1057_s11  ;;  %v469_v38 = vadd.f32 %v934_v37, %v467_v36 }
 0x76b   : > { %v936_v39 = vmul.f32 -1.442695, %v469_v38 }
 0x76d   : > { %1002 = vpow2.f32 %v936_v39 }
 0x773   : > { %v1003_v40 = vpop.eup %1002 }
 0x774   : > { %v473_v41 = vadd.f32 1.0, %v1003_v40 }
 0x776   : > { %1004 = vrcp.f32 %v473_v41  ;;  %v485_v47 = vand.u32 2147483648, %v473_v41  ;;  %vm479_vm14 = vweird.f32 %v473_v41  ;;  %v483_v48 = vand.u32 2147483647, %v473_v41 }
 0x778   : > { %v486_v50 = vor.u32 1.1754944e-38, %v485_v47  ;;  %vm484_vm0 = vcmp.eq.f32.partialorder %v483_v48, 8.507059e+37 }
 0x77c   : > { %v1005_v42 = vpop.eup %1004 }
 0x77d   : > { %v475_v43 = vmul.f32 %v1005_v42, %v473_v41  ;;  %vm480_vm13 = vweird.f32 %v1005_v42 }
 0x77e   : > { %vm481_vm15 = vmor %vm479_vm14, %vm480_vm13 }
 0x77f   : > { %v476_v44 = vsub.f32 1.0, %v475_v43 }
 0x781   : > { %v477_v45 = vmul.f32 %v1005_v42, %v476_v44 }
 0x783   : > { %v478_v46 = vadd.f32 %v1005_v42, %v477_v45 }
 0x785   : > { %v482_v49 = vsel %vm481_vm15, %v1005_v42, %v478_v46 }
 0x786   : > { %v487_v52 = vsel %vm484_vm0, %v486_v50, %v482_v49 }
 0x787   : > { %v500_v57 = vsub.f32 1.0, %v487_v52  ;;  %v506_v59 = vmul.f32 %v487_v52, %v438_v33 }
 0x7db   : > { %v491_v51 = vpop.permute.xlu0 %490 }
 0x7dc   : > { %v493_v53 = vmul.f32 %v491_v51, %v487_v52 }
 0x7de   : > { %495 = vrot.lane.b32.xlu1 %v493_v53, %s1057_s11 }
 0x850   : > { %v496_v54 = vpop.permute.xlu1 %495 }
 0x851   : > { %v498_v55 = vadd.f32 %v934_v37, %v496_v54 }
 0x853   : > { %1006 = vtanh.f32 %v498_v55 }
 0x859   : > { %v1007_v56 = vpop.eup %1006 }
 0x85a   : > { %502 = vrot.lane.b32.xlu2 %v1007_v56, %s1058_s12 }
 0x8b4   : > { %v503_v58 = vpop.permute.xlu2 %502 }
 0x8b5   : > { %v505_v60 = vmul.f32 %v503_v58, %v500_v57  ;;  %v946_v58 = vld [vmem:[%s1144_s21 + $0x8] sm:$0xff] }
 0x8b7   : > { %v507_v61 = vadd.f32 %v506_v59, %v505_v60 }
 0x8b9   : > { %509 = vrot.lane.b32.xlu0 %v507_v61, %s1058_s12 }
 0x92b   : > { %v510_v62 = vpop.permute.xlu0 %509 }
 0x92c   : > { %937 = vst.msk [vmem:[%s1151_s22 + $0x20] sm:$0xff] %vm238_vm4, %v510_v62  ;;  %939 = vmatmul.msk.f32.vlgmr.msrb.gmra.mxu0 %vm238_vm4, %v510_v62 }
 0x9a9   : > { %v535_v63 = vpop.f32.mrf.mxu0 }
 0x9aa   : > { %v536_v0 = vadd.f32 %v1136_v13, %v535_v63 }
 0x9ac   : > { %559 = vrot.lane.b32.xlu1 %v536_v0, %s1057_s11  ;;  %v538_v2 = vadd.f32 %v938_v1, %v536_v0 }
 0x9ae   : > { %v940_v3 = vmul.f32 -1.442695, %v538_v2 }
 0x9b0   : > { %1008 = vpow2.f32 %v940_v3 }
 0x9b6   : > { %v1009_v4 = vpop.eup %1008 }
 0x9b7   : > { %v542_v5 = vadd.f32 1.0, %v1009_v4 }
 0x9b9   : > { %1010 = vrcp.f32 %v542_v5  ;;  %v554_v11 = vand.u32 2147483648, %v542_v5  ;;  %vm548_vm2 = vweird.f32 %v542_v5  ;;  %v552_v12 = vand.u32 2147483647, %v542_v5 }
 0x9bb   : > { %v555_v15 = vor.u32 1.1754944e-38, %v554_v11  ;;  %vm553_vm5 = vcmp.eq.f32.partialorder %v552_v12, 8.507059e+37 }
 0x9bf   : > { %v1011_v6 = vpop.eup %1010 }
 0x9c0   : > { %v544_v7 = vmul.f32 %v1011_v6, %v542_v5  ;;  %vm549_vm1 = vweird.f32 %v1011_v6 }
 0x9c1   : > { %vm550_vm3 = vmor %vm548_vm2, %vm549_vm1 }
 0x9c2   : > { %v545_v8 = vsub.f32 1.0, %v544_v7 }
 0x9c4   : > { %v546_v9 = vmul.f32 %v1011_v6, %v545_v8 }
 0x9c6   : > { %v547_v10 = vadd.f32 %v1011_v6, %v546_v9 }
 0x9c8   : > { %v551_v14 = vsel %vm550_vm3, %v1011_v6, %v547_v10 }
 0x9c9   : > { %v556_v17 = vsel %vm553_vm5, %v555_v15, %v551_v14 }
 0x9ca   : > { %v569_v22 = vsub.f32 1.0, %v556_v17  ;;  %v575_v24 = vmul.f32 %v556_v17, %v507_v61 }
 0xa1e   : > { %v560_v16 = vpop.permute.xlu1 %559 }
 0xa1f   : > { %v562_v18 = vmul.f32 %v560_v16, %v556_v17 }
 0xa21   : > { %564 = vrot.lane.b32.xlu2 %v562_v18, %s1057_s11 }
 0xa7b   : > { %v565_v19 = vpop.permute.xlu2 %564 }
 0xa7c   : > { %v567_v20 = vadd.f32 %v938_v1, %v565_v19 }
 0xa7e   : > { %1012 = vtanh.f32 %v567_v20 }
 0xa84   : > { %v1013_v21 = vpop.eup %1012 }
 0xa85   : > { %571 = vrot.lane.b32.xlu0 %v1013_v21, %s1058_s12 }
 0xaf7   : > { %v572_v23 = vpop.permute.xlu0 %571 }
 0xaf8   : > { %v574_v25 = vmul.f32 %v572_v23, %v569_v22  ;;  %v721_v23 = vld [vmem:[%s1144_s21] sm:$0xff] }
 0xafa   : > { %v576_v26 = vadd.f32 %v575_v24, %v574_v25 }
 0xafc   : > { %578 = vrot.lane.b32.xlu1 %v576_v26, %s1058_s12 }
 0xb6e   : > { %v579_v27 = vpop.permute.xlu1 %578 }
 0xb6f   : > { %941 = vst.msk [vmem:[%s1151_s22 + $0x18] sm:$0xff] %vm238_vm4, %v579_v27  ;;  %943 = vmatmul.msk.f32.vlgmr.msrb.gmra.mxu1 %vm238_vm4, %v579_v27 }
 0xbec   : > { %v604_v28 = vpop.f32.mrf.mxu1 }
 0xbed   : > { %v605_v29 = vadd.f32 %v1136_v13, %v604_v28 }
 0xbef   : > { %628 = vrot.lane.b32.xlu2 %v605_v29, %s1057_s11  ;;  %v607_v31 = vadd.f32 %v942_v30, %v605_v29 }
 0xbf1   : > { %v944_v32 = vmul.f32 -1.442695, %v607_v31 }
 0xbf3   : > { %1014 = vpow2.f32 %v944_v32 }
 0xbf9   : > { %v1015_v33 = vpop.eup %1014 }
 0xbfa   : > { %v611_v34 = vadd.f32 1.0, %v1015_v33 }
 0xbfc   : > { %1016 = vrcp.f32 %v611_v34  ;;  %v623_v40 = vand.u32 2147483648, %v611_v34  ;;  %vm617_vm7 = vweird.f32 %v611_v34  ;;  %v621_v41 = vand.u32 2147483647, %v611_v34 }
 0xbfe   : > { %v624_v43 = vor.u32 1.1754944e-38, %v623_v40  ;;  %vm622_vm9 = vcmp.eq.f32.partialorder %v621_v41, 8.507059e+37 }
 0xc02   : > { %v1017_v35 = vpop.eup %1016 }
 0xc03   : > { %v613_v36 = vmul.f32 %v1017_v35, %v611_v34  ;;  %vm618_vm6 = vweird.f32 %v1017_v35 }
 0xc04   : > { %vm619_vm8 = vmor %vm617_vm7, %vm618_vm6 }
 0xc05   : > { %v614_v37 = vsub.f32 1.0, %v613_v36 }
 0xc07   : > { %v615_v38 = vmul.f32 %v1017_v35, %v614_v37 }
 0xc09   : > { %v616_v39 = vadd.f32 %v1017_v35, %v615_v38 }
 0xc0b   : > { %v620_v42 = vsel %vm619_vm8, %v1017_v35, %v616_v39 }
 0xc0c   : > { %v625_v45 = vsel %vm622_vm9, %v624_v43, %v620_v42 }
 0xc0d   : > { %v638_v50 = vsub.f32 1.0, %v625_v45  ;;  %v644_v52 = vmul.f32 %v625_v45, %v576_v26 }
 0xc49   : > { %v629_v44 = vpop.permute.xlu2 %628 }
 0xc4a   : > { %v631_v46 = vmul.f32 %v629_v44, %v625_v45 }
 0xc4c   : > { %633 = vrot.lane.b32.xlu0 %v631_v46, %s1057_s11 }
 0xcbe   : > { %v634_v47 = vpop.permute.xlu0 %633 }
 0xcbf   : > { %v636_v48 = vadd.f32 %v942_v30, %v634_v47 }
 0xcc1   : > { %1018 = vtanh.f32 %v636_v48 }
 0xcc7   : > { %v1019_v49 = vpop.eup %1018 }
 0xcc8   : > { %640 = vrot.lane.b32.xlu1 %v1019_v49, %s1058_s12 }
 0xd3a   : > { %v641_v51 = vpop.permute.xlu1 %640 }
 0xd3b   : > { %v643_v53 = vmul.f32 %v641_v51, %v638_v50  ;;  %v845_v51 = vld [vmem:[%s1151_s22 + $0x18] sm:$0xff] (%p1109_p5) }
 0xd3c   : > { %846 = vst [vmem:[%s796_s26 + $0x30] sm:$0xff] (%p1109_p5), %v845_v51 }
 0xd3d   : > { %v645_v54 = vadd.f32 %v644_v52, %v643_v53  ;;  %v847_v52 = vld [vmem:[%s1151_s22 + $0x20] sm:$0xff] (%p1109_p5)  ;;  %v849_v53 = vld [vmem:[%s1151_s22 + $0x28] sm:$0xff] (%p1109_p5) }
 0xd3e   : > { %848 = vst [vmem:[%s796_s26 + $0x40] sm:$0xff] (%p1109_p5), %v847_v52 }
 0xd3f   : > { %647 = vrot.lane.b32.xlu2 %v645_v54, %s1058_s12  ;;  %850 = vst [vmem:[%s796_s26 + $0x50] sm:$0xff] (%p1109_p5), %v849_v53 }
 0xd99   : > { %v648_v55 = vpop.permute.xlu2 %647 }
 0xd9a   : > { %945 = vst.msk [vmem:[%s1151_s22 + $0x10] sm:$0xff] %vm238_vm4, %v648_v55  ;;  %947 = vmatmul.msk.f32.vlgmr.msrb.gmra.mxu2 %vm238_vm4, %v648_v55  ;;  %v853_v55 = vld [vmem:[%s1151_s22 + $0x38] sm:$0xff] (%p1109_p5) }
 0xd9b   : > { %854 = vst [vmem:[%s796_s26 + $0x70] sm:$0xff] (%p1109_p5), %v853_v55 }
 0xda1   : > { %v843_v50 = vld [vmem:[%s1151_s22 + $0x10] sm:$0xff] (%p1109_p5) }
 0xda2   : > { %844 = vst [vmem:[%s796_s26 + $0x20] sm:$0xff] (%p1109_p5), %v843_v50 }
 0xe1d   : > { %v673_v56 = vpop.f32.mrf.mxu2 }
 0xe1e   : > { %v674_v57 = vadd.f32 %v1136_v13, %v673_v56 }
 0xe20   : > { %697 = vrot.lane.b32.xlu0 %v674_v57, %s1057_s11  ;;  %v676_v59 = vadd.f32 %v946_v58, %v674_v57 }
 0xe22   : > { %v948_v60 = vmul.f32 -1.442695, %v676_v59 }
 0xe24   : > { %1020 = vpow2.f32 %v948_v60 }
 0xe2a   : > { %v1021_v61 = vpop.eup %1020 }
 0xe2b   : > { %v680_v62 = vadd.f32 1.0, %v1021_v61 }
 0xe2d   : > { %1022 = vrcp.f32 %v680_v62  ;;  %v692_v4 = vand.u32 2147483648, %v680_v62  ;;  %vm686_vm11 = vweird.f32 %v680_v62  ;;  %v690_v5 = vand.u32 2147483647, %v680_v62 }
 0xe2f   : > { %v693_v7 = vor.u32 1.1754944e-38, %v692_v4  ;;  %vm691_vm13 = vcmp.eq.f32.partialorder %v690_v5, 8.507059e+37 }
 0xe33   : > { %v1023_v63 = vpop.eup %1022 }
 0xe34   : > { %v682_v0 = vmul.f32 %v1023_v63, %v680_v62  ;;  %vm687_vm10 = vweird.f32 %v1023_v63 }
 0xe35   : > { %vm688_vm12 = vmor %vm686_vm11, %vm687_vm10 }
 0xe36   : > { %v683_v1 = vsub.f32 1.0, %v682_v0 }
 0xe38   : > { %v684_v2 = vmul.f32 %v1023_v63, %v683_v1 }
 0xe3a   : > { %v685_v3 = vadd.f32 %v1023_v63, %v684_v2 }
 0xe3c   : > { %v689_v6 = vsel %vm688_vm12, %v1023_v63, %v685_v3 }
 0xe3d   : > { %v694_v9 = vsel %vm691_vm13, %v693_v7, %v689_v6 }
 0xe3e   : > { %v707_v15 = vsub.f32 1.0, %v694_v9  ;;  %v713_v17 = vmul.f32 %v694_v9, %v645_v54  ;;  %v851_v54 = vld [vmem:[%s1151_s22 + $0x30] sm:$0xff] (%p1109_p5) }
 0xe3f   : > { %852 = vst [vmem:[%s796_s26 + $0x60] sm:$0xff] (%p1109_p5), %v851_v54 }
 0xe92   : > { %v698_v8 = vpop.permute.xlu0 %697 }
 0xe93   : > { %v700_v10 = vmul.f32 %v698_v8, %v694_v9 }
 0xe95   : > { %702 = vrot.lane.b32.xlu1 %v700_v10, %s1057_s11 }
 0xf07   : > { %v703_v11 = vpop.permute.xlu1 %702 }
 0xf08   : > { %v705_v12 = vadd.f32 %v946_v58, %v703_v11 }
 0xf0a   : > { %1024 = vtanh.f32 %v705_v12 }
 0xf10   : > { %v1025_v14 = vpop.eup %1024 }
 0xf11   : > { %709 = vrot.lane.b32.xlu2 %v1025_v14, %s1058_s12 }
 0xf6b   : > { %v710_v16 = vpop.permute.xlu2 %709 }
 0xf6c   : > { %v712_v18 = vmul.f32 %v710_v16, %v707_v15 }
 0xf6e   : > { %v714_v19 = vadd.f32 %v713_v17, %v712_v18 }
 0xf70   : > { %716 = vrot.lane.b32.xlu0 %v714_v19, %s1058_s12 }
 0xfe2   : > { %v717_v20 = vpop.permute.xlu0 %716 }
 0xfe3   : > { %949 = vst.msk [vmem:[%s1151_s22 + $0x8] sm:$0xff] %vm238_vm4, %v717_v20  ;;  %950 = vmatmul.msk.f32.vlgmr.msrb.gmra.mxu3 %vm238_vm4, %v717_v20 }
 0xfea   : > { %v841_v49 = vld [vmem:[%s1151_s22 + $0x8] sm:$0xff] (%p1109_p5) }
 0xfeb   : > { %842 = vst [vmem:[%s796_s26 + $0x10] sm:$0xff] (%p1109_p5), %v841_v49 }
0x1066   : > { %v741_v21 = vpop.f32.mrf.mxu3 }
0x1067   : > { %v742_v22 = vadd.f32 %v1136_v13, %v741_v21 }
0x1069   : > { %765 = vrot.lane.b32.xlu1 %v742_v22, %s1057_s11  ;;  %v744_v24 = vadd.f32 %v742_v22, %v721_v23 }
0x106b   : > { %v951_v25 = vmul.f32 -1.442695, %v744_v24 }
0x106d   : > { %1026 = vpow2.f32 %v951_v25 }
0x1073   : > { %v1027_v26 = vpop.eup %1026 }
0x1074   : > { %v748_v27 = vadd.f32 1.0, %v1027_v26 }
0x1076   : > { %1028 = vrcp.f32 %v748_v27  ;;  %v760_v33 = vand.u32 2147483648, %v748_v27  ;;  %vm754_vm15 = vweird.f32 %v748_v27  ;;  %v758_v34 = vand.u32 2147483647, %v748_v27 }
0x1078   : > { %v761_v35 = vor.u32 1.1754944e-38, %v760_v33  ;;  %vm759_vm1 = vcmp.eq.f32.partialorder %v758_v34, 8.507059e+37 }
0x107c   : > { %v1029_v28 = vpop.eup %1028 }
0x107d   : > { %v750_v29 = vmul.f32 %v1029_v28, %v748_v27  ;;  %vm755_vm14 = vweird.f32 %v1029_v28 }
0x107e   : > { %vm756_vm0 = vmor %vm754_vm15, %vm755_vm14 }
0x107f   : > { %v751_v30 = vsub.f32 1.0, %v750_v29 }
0x1081   : > { %v752_v31 = vmul.f32 %v1029_v28, %v751_v30 }
0x1083   : > { %v753_v32 = vadd.f32 %v1029_v28, %v752_v31 }
0x1085   : > { %v757_v13 = vsel %vm756_vm0, %v1029_v28, %v753_v32 }
0x1086   : > { %v762_v37 = vsel %vm759_vm1, %v761_v35, %v757_v13 }
0x1087   : > { %v775_v42 = vsub.f32 1.0, %v762_v37  ;;  %v781_v44 = vmul.f32 %v762_v37, %v714_v19 }
0x10db   : > { %v766_v36 = vpop.permute.xlu1 %765 }
0x10dc   : > { %v768_v38 = vmul.f32 %v766_v36, %v762_v37 }
0x10de   : > { %770 = vrot.lane.b32.xlu2 %v768_v38, %s1057_s11 }
0x1138   : > { %v771_v39 = vpop.permute.xlu2 %770 }
0x1139   : > { %v773_v40 = vadd.f32 %v771_v39, %v721_v23 }
0x113b   : > { %1030 = vtanh.f32 %v773_v40 }
0x1141   : > { %v1031_v41 = vpop.eup %1030 }
0x1142   : > { %777 = vrot.lane.b32.xlu0 %v1031_v41, %s1058_s12 }
0x11b4   : > { %v778_v43 = vpop.permute.xlu0 %777 }
0x11b5   : > { %v780_v45 = vmul.f32 %v778_v43, %v775_v42 }
0x11b7   : > { %v782_v46 = vadd.f32 %v781_v44, %v780_v45 }
0x11b9   : > { %784 = vrot.lane.b32.xlu1 %v782_v46, %s1058_s12 }
0x1228   : > { %794 = sbr.rel (!%p1109_p5) target bundleno = 4661 (0x1235), region = 74 }
0x122b   : > { %v785_v47 = vpop.permute.xlu1 %784 }
0x122c   : > { %787 = vst.msk [vmem:[%s1151_s22] sm:$0xff] %vm238_vm4, %v785_v47 }
0x1233   : > { %v839_v48 = vld [vmem:[%s1151_s22] sm:$0xff] }
0x1234   : > { %840 = vst [vmem:[%s796_s26] sm:$0xff] %v839_v48 }
0x1235 PF: > { %p10_p10 = scmp.ge.s32.totalorder %s1096_s16, 4   ;;  %s1248_s12 = smov %s1050_s13 }
0x1236   : > { %s1249_s13 = smov %s1107_s19  ;;  %s1250_s14 = smov %s1096_s16 }
0x1237   :  { %12 = sbr.rel (!%p10_p10) target bundleno = 2 (0x2), region = 157 }

// kernel: _lambda_.22
= control target key start
LH: loop header
LB: loop body
LE: loop exit
PB: predicated region body
PF: predicated region fallthrough
CT: control target
= control target key end

     0   :  { %vm270_vm0 = vcmask 31744   ;;  %vm1935_vm1 = vcmask 64512   ;;  %s6498_s1 = inlined_call_operand.vmem [shape: f32[64,8,4], index: 1, kind: input, shape index: {}]   ;;  %s6499_s0 = inlined_call_operand.vmem [shape: f32[64,8,4], index: 0, kind: input, shape index: {}]   ;;  %s6500_s2 = inlined_call_operand.vmem [shape: f32[64,8,4], index: 2, kind: input, shape index: {}]   ;;  %s6501_s3 = inlined_call_operand.vmem [shape: f32[64,8,4], index: 3, kind: output, shape index: {}]  }
   0x1   :  { %v142_v0 = vld [vmem:[%s6498_s1] sm:$0xff]  ;;  %v144_v1 = vld [vmem:[%s6498_s1 + $0x10] sm:$0xff]  ;;  %v143_v6 = vld [vmem:[%s6498_s1 + $0x8] sm:$0xff] }
   0x2   :  { %v14_v2 = vld [vmem:[%s6499_s0] sm:$0xff]  ;;  %4180 = vmatpush.xpose.msk.msra.mxu0 %vm270_vm0, %v142_v0  ;;  %4184 = vmatpush.xpose.msk.msra.mxu2 %vm270_vm0, %v144_v1  ;;  %v16_v4 = vld [vmem:[%s6499_s0 + $0x10] sm:$0xff]  ;;  %v145_v8 = vld [vmem:[%s6498_s1 + $0x18] sm:$0xff] }
   0x3   :  { %v78_v3 = vmul.f32 0.5, %v14_v2  ;;  %v146_v5 = vld [vmem:[%s6498_s1 + $0x20] sm:$0xff]  ;;  %v80_v7 = vmul.f32 0.5, %v16_v4  ;;  %4182 = vmatpush.xpose.msk.msra.mxu1 %vm270_vm0, %v143_v6  ;;  %v148_v9 = vld [vmem:[%s6498_s1 + $0x30] sm:$0xff]  ;;  %v15_v10 = vld [vmem:[%s6499_s0 + $0x8] sm:$0xff]  ;;  %4186 = vmatpush.xpose.msk.msra.mxu3 %vm270_vm0, %v145_v8 }
   0x4   :  { %v79_v11 = vmul.f32 0.5, %v15_v10  ;;  %v17_v12 = vld [vmem:[%s6499_s0 + $0x18] sm:$0xff]  ;;  %v147_v13 = vld [vmem:[%s6498_s1 + $0x28] sm:$0xff]  ;;  %v18_v15 = vld [vmem:[%s6499_s0 + $0x20] sm:$0xff] }
   0x5   :  { %4181 = vmatmul.msk.f32.vlgmr.msra.gmra.mxu0 %vm270_vm0, %v78_v3  ;;  %4185 = vmatmul.msk.f32.vlgmr.msra.gmra.mxu2 %vm270_vm0, %v80_v7  ;;  %v81_v14 = vmul.f32 0.5, %v17_v12  ;;  %v149_v16 = vld [vmem:[%s6498_s1 + $0x38] sm:$0xff]  ;;  %v20_v17 = vld [vmem:[%s6499_s0 + $0x30] sm:$0xff]  ;;  %v150_v18 = vld [vmem:[%s6498_s1 + $0x40] sm:$0xff]  ;;  %v82_v24 = vmul.f32 0.5, %v18_v15 }
   0x6   :  { %4188 = vmatpush.xpose.msk.msrb.mxu0 %vm270_vm0, %v146_v5  ;;  %4192 = vmatpush.xpose.msk.msrb.mxu2 %vm270_vm0, %v148_v9  ;;  %v152_v19 = vld [vmem:[%s6498_s1 + $0x50] sm:$0xff]  ;;  %v19_v20 = vld [vmem:[%s6499_s0 + $0x28] sm:$0xff]  ;;  %v153_v21 = vld [vmem:[%s6498_s1 + $0x58] sm:$0xff]  ;;  %v84_v25 = vmul.f32 0.5, %v20_v17 }
   0x7   :  { %4183 = vmatmul.msk.f32.vlgmr.msra.gmra.mxu1 %vm270_vm0, %v79_v11  ;;  %4194 = vmatpush.xpose.msk.msrb.mxu3 %vm270_vm0, %v149_v16  ;;  %v151_v22 = vld [vmem:[%s6498_s1 + $0x48] sm:$0xff]  ;;  %v21_v23 = vld [vmem:[%s6499_s0 + $0x38] sm:$0xff]  ;;  %v83_v26 = vmul.f32 0.5, %v19_v20  ;;  %v156_v28 = vld [vmem:[%s6498_s1 + $0x70] sm:$0xff] }
   0x8   :  { %4187 = vmatmul.msk.f32.vlgmr.msra.gmra.mxu3 %vm270_vm0, %v81_v14  ;;  %4190 = vmatpush.xpose.msk.msrb.mxu1 %vm270_vm0, %v147_v13  ;;  %v85_v27 = vmul.f32 0.5, %v21_v23  ;;  %v154_v29 = vld [vmem:[%s6498_s1 + $0x60] sm:$0xff]  ;;  %v155_v30 = vld [vmem:[%s6498_s1 + $0x68] sm:$0xff]  ;;  %v157_v31 = vld [vmem:[%s6498_s1 + $0x78] sm:$0xff] }
   0x9   :  { %v22_v32 = vld [vmem:[%s6499_s0 + $0x40] sm:$0xff]  ;;  %v24_v33 = vld [vmem:[%s6499_s0 + $0x50] sm:$0xff]  ;;  %v23_v34 = vld [vmem:[%s6499_s0 + $0x48] sm:$0xff] }
   0xa   :  { %4196 = vmatpush.xpose.msk.msra.mxu0 %vm270_vm0, %v150_v18  ;;  %4200 = vmatpush.xpose.msk.msra.mxu2 %vm270_vm0, %v152_v19  ;;  %v25_v35 = vld [vmem:[%s6499_s0 + $0x58] sm:$0xff]  ;;  %v86_v36 = vmul.f32 0.5, %v22_v32  ;;  %v88_v37 = vmul.f32 0.5, %v24_v33  ;;  %v87_v38 = vmul.f32 0.5, %v23_v34  ;;  %v158_v40 = vld [vmem:[%s6498_s1 + $0x80] sm:$0xff]  ;;  %v160_v41 = vld [vmem:[%s6498_s1 + $0x90] sm:$0xff] }
   0xb   :  { %4202 = vmatpush.xpose.msk.msra.mxu3 %vm270_vm0, %v153_v21  ;;  %v89_v39 = vmul.f32 0.5, %v25_v35  ;;  %v159_v42 = vld [vmem:[%s6498_s1 + $0x88] sm:$0xff]  ;;  %v161_v43 = vld [vmem:[%s6498_s1 + $0x98] sm:$0xff]  ;;  %v26_v44 = vld [vmem:[%s6499_s0 + $0x60] sm:$0xff] }
   0xc   :  { %4198 = vmatpush.xpose.msk.msra.mxu1 %vm270_vm0, %v151_v22  ;;  %v28_v45 = vld [vmem:[%s6499_s0 + $0x70] sm:$0xff]  ;;  %v27_v46 = vld [vmem:[%s6499_s0 + $0x68] sm:$0xff]  ;;  %v29_v47 = vld [vmem:[%s6499_s0 + $0x78] sm:$0xff]  ;;  %v90_v48 = vmul.f32 0.5, %v26_v44 }
   0xd   :  { %4189 = vmatmul.msk.f32.vlgmr.msrb.gmra.mxu0 %vm270_vm0, %v82_v24  ;;  %4193 = vmatmul.msk.f32.vlgmr.msrb.gmra.mxu2 %vm270_vm0, %v84_v25  ;;  %v92_v49 = vmul.f32 0.5, %v28_v45  ;;  %v91_v50 = vmul.f32 0.5, %v27_v46  ;;  %v93_v51 = vmul.f32 0.5, %v29_v47  ;;  %v162_v52 = vld [vmem:[%s6498_s1 + $0xa0] sm:$0xff]  ;;  %v164_v53 = vld [vmem:[%s6498_s1 + $0xb0] sm:$0xff]  ;;  %v165_v54 = vld [vmem:[%s6498_s1 + $0xb8] sm:$0xff] }
   0xe   :  { %4208 = vmatpush.xpose.msk.msrb.mxu2 %vm270_vm0, %v156_v28  ;;  %4204 = vmatpush.xpose.msk.msrb.mxu0 %vm270_vm0, %v154_v29  ;;  %v163_v55 = vld [vmem:[%s6498_s1 + $0xa8] sm:$0xff]  ;;  %v32_v56 = vld [vmem:[%s6499_s0 + $0x90] sm:$0xff]  ;;  %v30_v57 = vld [vmem:[%s6499_s0 + $0x80] sm:$0xff] }
   0xf   :  { %4191 = vmatmul.msk.f32.vlgmr.msrb.gmra.mxu1 %vm270_vm0, %v83_v26  ;;  %v31_v58 = vld [vmem:[%s6499_s0 + $0x88] sm:$0xff]  ;;  %v33_v59 = vld [vmem:[%s6499_s0 + $0x98] sm:$0xff]  ;;  %v96_v60 = vmul.f32 0.5, %v32_v56  ;;  %v94_v61 = vmul.f32 0.5, %v30_v57  ;;  %v166_v0 = vld [vmem:[%s6498_s1 + $0xc0] sm:$0xff] }
  0x10   :  { %4195 = vmatmul.msk.f32.vlgmr.msrb.gmra.mxu3 %vm270_vm0, %v85_v27  ;;  %4206 = vmatpush.xpose.msk.msrb.mxu1 %vm270_vm0, %v155_v30  ;;  %v95_v62 = vmul.f32 0.5, %v31_v58  ;;  %v97_v63 = vmul.f32 0.5, %v33_v59  ;;  %v168_v1 = vld [vmem:[%s6498_s1 + $0xd0] sm:$0xff]  ;;  %v167_v2 = vld [vmem:[%s6498_s1 + $0xc8] sm:$0xff]  ;;  %v169_v3 = vld [vmem:[%s6498_s1 + $0xd8] sm:$0xff] }
  0x11   :  { %4210 = vmatpush.xpose.msk.msrb.mxu3 %vm270_vm0, %v157_v31  ;;  %v34_v4 = vld [vmem:[%s6499_s0 + $0xa0] sm:$0xff]  ;;  %v36_v5 = vld [vmem:[%s6499_s0 + $0xb0] sm:$0xff]  ;;  %v35_v6 = vld [vmem:[%s6499_s0 + $0xa8] sm:$0xff] }
  0x12   :  { %v37_v7 = vld [vmem:[%s6499_s0 + $0xb8] sm:$0xff]  ;;  %v98_v8 = vmul.f32 0.5, %v34_v4  ;;  %v100_v9 = vmul.f32 0.5, %v36_v5  ;;  %v99_v10 = vmul.f32 0.5, %v35_v6  ;;  %v170_v12 = vld [vmem:[%s6498_s1 + $0xe0] sm:$0xff]  ;;  %v172_v13 = vld [vmem:[%s6498_s1 + $0xf0] sm:$0xff] }
  0x13   :  { %v101_v11 = vmul.f32 0.5, %v37_v7  ;;  %v171_v14 = vld [vmem:[%s6498_s1 + $0xe8] sm:$0xff]  ;;  %v173_v15 = vld [vmem:[%s6498_s1 + $0xf8] sm:$0xff]  ;;  %v38_v16 = vld [vmem:[%s6499_s0 + $0xc0] sm:$0xff] }
  0x14   :  { %v40_v17 = vld [vmem:[%s6499_s0 + $0xd0] sm:$0xff]  ;;  %v39_v18 = vld [vmem:[%s6499_s0 + $0xc8] sm:$0xff]  ;;  %v41_v19 = vld [vmem:[%s6499_s0 + $0xd8] sm:$0xff]  ;;  %v102_v20 = vmul.f32 0.5, %v38_v16 }
  0x15   :  { %4197 = vmatmul.msk.f32.vlgmr.msra.gmra.mxu0 %vm270_vm0, %v86_v36  ;;  %4201 = vmatmul.msk.f32.vlgmr.msra.gmra.mxu2 %vm270_vm0, %v88_v37  ;;  %v104_v21 = vmul.f32 0.5, %v40_v17  ;;  %v103_v22 = vmul.f32 0.5, %v39_v18  ;;  %v105_v23 = vmul.f32 0.5, %v41_v19  ;;  %v174_v24 = vld [vmem:[%s6498_s1 + $0x100] sm:$0xff]  ;;  %v176_v25 = vld [vmem:[%s6498_s1 + $0x110] sm:$0xff]  ;;  %v175_v26 = vld [vmem:[%s6498_s1 + $0x108] sm:$0xff] }
  0x16   :  { %4212 = vmatpush.xpose.msk.msra.mxu0 %vm270_vm0, %v158_v40  ;;  %4216 = vmatpush.xpose.msk.msra.mxu2 %vm270_vm0, %v160_v41  ;;  %v177_v27 = vld [vmem:[%s6498_s1 + $0x118] sm:$0xff]  ;;  %v42_v28 = vld [vmem:[%s6499_s0 + $0xe0] sm:$0xff]  ;;  %v44_v29 = vld [vmem:[%s6499_s0 + $0xf0] sm:$0xff] }
  0x17   :  { %4199 = vmatmul.msk.f32.vlgmr.msra.gmra.mxu1 %vm270_vm0, %v87_v38  ;;  %v43_v30 = vld [vmem:[%s6499_s0 + $0xe8] sm:$0xff]  ;;  %v45_v31 = vld [vmem:[%s6499_s0 + $0xf8] sm:$0xff]  ;;  %v106_v32 = vmul.f32 0.5, %v42_v28  ;;  %v108_v33 = vmul.f32 0.5, %v44_v29  ;;  %v178_v36 = vld [vmem:[%s6498_s1 + $0x120] sm:$0xff] }
  0x18   :  { %4203 = vmatmul.msk.f32.vlgmr.msra.gmra.mxu3 %vm270_vm0, %v89_v39  ;;  %4214 = vmatpush.xpose.msk.msra.mxu1 %vm270_vm0, %v159_v42  ;;  %v107_v34 = vmul.f32 0.5, %v43_v30  ;;  %v109_v35 = vmul.f32 0.5, %v45_v31  ;;  %v179_v37 = vld [vmem:[%s6498_s1 + $0x128] sm:$0xff]  ;;  %v180_v38 = vld [vmem:[%s6498_s1 + $0x130] sm:$0xff]  ;;  %v181_v39 = vld [vmem:[%s6498_s1 + $0x138] sm:$0xff] }
  0x19   :  { %4218 = vmatpush.xpose.msk.msra.mxu3 %vm270_vm0, %v161_v43  ;;  %v46_v40 = vld [vmem:[%s6499_s0 + $0x100] sm:$0xff]  ;;  %v48_v41 = vld [vmem:[%s6499_s0 + $0x110] sm:$0xff]  ;;  %v47_v42 = vld [vmem:[%s6499_s0 + $0x108] sm:$0xff] }
  0x1a   :  { %v49_v43 = vld [vmem:[%s6499_s0 + $0x118] sm:$0xff]  ;;  %v110_v44 = vmul.f32 0.5, %v46_v40  ;;  %v112_v45 = vmul.f32 0.5, %v48_v41  ;;  %v111_v46 = vmul.f32 0.5, %v47_v42  ;;  %v196_v28 = vld [vmem:[%s6498_s1 + $0x1b0] sm:$0xff]  ;;  %v195_v30 = vld [vmem:[%s6498_s1 + $0x1a8] sm:$0xff] }
  0x1b   :  { %v113_v47 = vmul.f32 0.5, %v49_v43  ;;  %v66_v31 = vld [vmem:[%s6499_s0 + $0x1a0] sm:$0xff]  ;;  %v69_v40 = vld [vmem:[%s6499_s0 + $0x1b8] sm:$0xff] }
  0x1c   :  { %v70_v41 = vld [vmem:[%s6499_s0 + $0x1c0] sm:$0xff]  ;;  %v133_v42 = vmul.f32 0.5, %v69_v40 }
  0x1d   :  { %4205 = vmatmul.msk.f32.vlgmr.msrb.gmra.mxu0 %vm270_vm0, %v90_v48  ;;  %4209 = vmatmul.msk.f32.vlgmr.msrb.gmra.mxu2 %vm270_vm0, %v92_v49  ;;  %v182_v48 = vld [vmem:[%s6498_s1 + $0x140] sm:$0xff]  ;;  %v184_v49 = vld [vmem:[%s6498_s1 + $0x150] sm:$0xff]  ;;  %v134_v43 = vmul.f32 0.5, %v70_v41 }
  0x1e   :  { %4220 = vmatpush.xpose.msk.msrb.mxu0 %vm270_vm0, %v162_v52  ;;  %4224 = vmatpush.xpose.msk.msrb.mxu2 %vm270_vm0, %v164_v53  ;;  %v50_v52 = vld [vmem:[%s6499_s0 + $0x120] sm:$0xff]  ;;  %v52_v53 = vld [vmem:[%s6499_s0 + $0x130] sm:$0xff] }
  0x1f   :  { %4207 = vmatmul.msk.f32.vlgmr.msrb.gmra.mxu1 %vm270_vm0, %v91_v50  ;;  %v183_v50 = vld [vmem:[%s6498_s1 + $0x148] sm:$0xff]  ;;  %v114_v56 = vmul.f32 0.5, %v50_v52  ;;  %v116_v57 = vmul.f32 0.5, %v52_v53  ;;  %v204_v52 = vld [vmem:[%s6498_s1 + $0x1f0] sm:$0xff]  ;;  %v73_v53 = vld [vmem:[%s6499_s0 + $0x1d8] sm:$0xff] }
  0x20   :  { %4211 = vmatmul.msk.f32.vlgmr.msrb.gmra.mxu3 %vm270_vm0, %v93_v51  ;;  %4222 = vmatpush.xpose.msk.msrb.mxu1 %vm270_vm0, %v163_v55  ;;  %v185_v51 = vld [vmem:[%s6498_s1 + $0x158] sm:$0xff] }
  0x21   :  { %4226 = vmatpush.xpose.msk.msrb.mxu3 %vm270_vm0, %v165_v54  ;;  %v51_v54 = vld [vmem:[%s6499_s0 + $0x128] sm:$0xff]  ;;  %v53_v55 = vld [vmem:[%s6499_s0 + $0x138] sm:$0xff] }
  0x22   :  { %v115_v58 = vmul.f32 0.5, %v51_v54  ;;  %v117_v59 = vmul.f32 0.5, %v53_v55  ;;  %v137_v54 = vmul.f32 0.5, %v73_v53  ;;  %v205_v55 = vld [vmem:[%s6498_s1 + $0x1f8] sm:$0xff] }
  0x25   :  { %4217 = vmatmul.msk.f32.vlgmr.msra.gmra.mxu2 %vm270_vm0, %v96_v60  ;;  %4213 = vmatmul.msk.f32.vlgmr.msra.gmra.mxu0 %vm270_vm0, %v94_v61  ;;  %v186_v60 = vld [vmem:[%s6498_s1 + $0x160] sm:$0xff]  ;;  %v188_v61 = vld [vmem:[%s6498_s1 + $0x170] sm:$0xff] }
  0x26   :  { %4228 = vmatpush.xpose.msk.msra.mxu0 %vm270_vm0, %v166_v0  ;;  %4232 = vmatpush.xpose.msk.msra.mxu2 %vm270_vm0, %v168_v1  ;;  %v54_v0 = vld [vmem:[%s6499_s0 + $0x140] sm:$0xff]  ;;  %v56_v1 = vld [vmem:[%s6499_s0 + $0x150] sm:$0xff] }
  0x27   :  { %4215 = vmatmul.msk.f32.vlgmr.msra.gmra.mxu1 %vm270_vm0, %v95_v62  ;;  %v187_v62 = vld [vmem:[%s6498_s1 + $0x168] sm:$0xff]  ;;  %v118_v4 = vmul.f32 0.5, %v54_v0  ;;  %v120_v5 = vmul.f32 0.5, %v56_v1  ;;  %v77_v1 = vld [vmem:[%s6499_s0 + $0x1f8] sm:$0xff] }
  0x28   :  { %4219 = vmatmul.msk.f32.vlgmr.msra.gmra.mxu3 %vm270_vm0, %v97_v63  ;;  %4230 = vmatpush.xpose.msk.msra.mxu1 %vm270_vm0, %v167_v2  ;;  %v189_v63 = vld [vmem:[%s6498_s1 + $0x178] sm:$0xff]  ;;  %v55_v2 = vld [vmem:[%s6499_s0 + $0x148] sm:$0xff] }
  0x29   :  { %4234 = vmatpush.xpose.msk.msra.mxu3 %vm270_vm0, %v169_v3  ;;  %v57_v3 = vld [vmem:[%s6499_s0 + $0x158] sm:$0xff]  ;;  %v119_v6 = vmul.f32 0.5, %v55_v2  ;;  %v141_v2 = vmul.f32 0.5, %v77_v1 }
  0x2a   :  { %v121_v7 = vmul.f32 0.5, %v57_v3 }
  0x2d   :  { %4221 = vmatmul.msk.f32.vlgmr.msrb.gmra.mxu0 %vm270_vm0, %v98_v8  ;;  %4225 = vmatmul.msk.f32.vlgmr.msrb.gmra.mxu2 %vm270_vm0, %v100_v9  ;;  %v190_v8 = vld [vmem:[%s6498_s1 + $0x180] sm:$0xff]  ;;  %v191_v9 = vld [vmem:[%s6498_s1 + $0x188] sm:$0xff] }
  0x2e   :  { %4236 = vmatpush.xpose.msk.msrb.mxu0 %vm270_vm0, %v170_v12  ;;  %4240 = vmatpush.xpose.msk.msrb.mxu2 %vm270_vm0, %v172_v13  ;;  %v58_v12 = vld [vmem:[%s6499_s0 + $0x160] sm:$0xff]  ;;  %v60_v13 = vld [vmem:[%s6499_s0 + $0x170] sm:$0xff] }
  0x2f   :  { %4223 = vmatmul.msk.f32.vlgmr.msrb.gmra.mxu1 %vm270_vm0, %v99_v10  ;;  %v192_v10 = vld [vmem:[%s6498_s1 + $0x190] sm:$0xff]  ;;  %v122_v16 = vmul.f32 0.5, %v58_v12  ;;  %v124_v17 = vmul.f32 0.5, %v60_v13 }
  0x30   :  { %4227 = vmatmul.msk.f32.vlgmr.msrb.gmra.mxu3 %vm270_vm0, %v101_v11  ;;  %4238 = vmatpush.xpose.msk.msrb.mxu1 %vm270_vm0, %v171_v14  ;;  %v193_v11 = vld [vmem:[%s6498_s1 + $0x198] sm:$0xff]  ;;  %v59_v14 = vld [vmem:[%s6499_s0 + $0x168] sm:$0xff] }
  0x31   :  { %4242 = vmatpush.xpose.msk.msrb.mxu3 %vm270_vm0, %v173_v15  ;;  %v61_v15 = vld [vmem:[%s6499_s0 + $0x178] sm:$0xff]  ;;  %v123_v18 = vmul.f32 0.5, %v59_v14 }
  0x32   :  { %v125_v19 = vmul.f32 0.5, %v61_v15 }
  0x35   :  { %4229 = vmatmul.msk.f32.vlgmr.msra.gmra.mxu0 %vm270_vm0, %v102_v20  ;;  %4233 = vmatmul.msk.f32.vlgmr.msra.gmra.mxu2 %vm270_vm0, %v104_v21  ;;  %v62_v20 = vld [vmem:[%s6499_s0 + $0x180] sm:$0xff] }
  0x36   :  { %4244 = vmatpush.xpose.msk.msra.mxu0 %vm270_vm0, %v174_v24  ;;  %4248 = vmatpush.xpose.msk.msra.mxu2 %vm270_vm0, %v176_v25  ;;  %v126_v21 = vmul.f32 0.5, %v62_v20 }
  0x37   :  { %4231 = vmatmul.msk.f32.vlgmr.msra.gmra.mxu1 %vm270_vm0, %v103_v22  ;;  %v63_v22 = vld [vmem:[%s6499_s0 + $0x188] sm:$0xff] }
  0x38   :  { %4235 = vmatmul.msk.f32.vlgmr.msra.gmra.mxu3 %vm270_vm0, %v105_v23  ;;  %4246 = vmatpush.xpose.msk.msra.mxu1 %vm270_vm0, %v175_v26  ;;  %v64_v23 = vld [vmem:[%s6499_s0 + $0x190] sm:$0xff]  ;;  %v127_v24 = vmul.f32 0.5, %v63_v22  ;;  %v194_v26 = vld [vmem:[%s6498_s1 + $0x1a0] sm:$0xff] }
  0x39   :  { %4250 = vmatpush.xpose.msk.msra.mxu3 %vm270_vm0, %v177_v27  ;;  %v128_v25 = vmul.f32 0.5, %v64_v23  ;;  %v65_v27 = vld [vmem:[%s6499_s0 + $0x198] sm:$0xff] }
  0x3a   :  { %v129_v29 = vmul.f32 0.5, %v65_v27 }
  0x3d   :  { %4237 = vmatmul.msk.f32.vlgmr.msrb.gmra.mxu0 %vm270_vm0, %v106_v32  ;;  %4241 = vmatmul.msk.f32.vlgmr.msrb.gmra.mxu2 %vm270_vm0, %v108_v33  ;;  %v130_v32 = vmul.f32 0.5, %v66_v31  ;;  %v197_v33 = vld [vmem:[%s6498_s1 + $0x1b8] sm:$0xff] }
  0x3e   :  { %4252 = vmatpush.xpose.msk.msrb.mxu0 %vm270_vm0, %v178_v36  ;;  %4256 = vmatpush.xpose.msk.msrb.mxu2 %vm270_vm0, %v180_v38  ;;  %v67_v38 = vld [vmem:[%s6499_s0 + $0x1a8] sm:$0xff] }
  0x3f   :  { %4239 = vmatmul.msk.f32.vlgmr.msrb.gmra.mxu1 %vm270_vm0, %v107_v34  ;;  %v198_v34 = vld [vmem:[%s6498_s1 + $0x1c0] sm:$0xff] }
  0x40   :  { %4243 = vmatmul.msk.f32.vlgmr.msrb.gmra.mxu3 %vm270_vm0, %v109_v35  ;;  %4254 = vmatpush.xpose.msk.msrb.mxu1 %vm270_vm0, %v179_v37  ;;  %v68_v35 = vld [vmem:[%s6499_s0 + $0x1b0] sm:$0xff] }
  0x41   :  { %4258 = vmatpush.xpose.msk.msrb.mxu3 %vm270_vm0, %v181_v39  ;;  %v132_v36 = vmul.f32 0.5, %v68_v35  ;;  %v200_v37 = vld [vmem:[%s6498_s1 + $0x1d0] sm:$0xff]  ;;  %v131_v39 = vmul.f32 0.5, %v67_v38 }
  0x45   :  { %4245 = vmatmul.msk.f32.vlgmr.msra.gmra.mxu0 %vm270_vm0, %v110_v44  ;;  %4249 = vmatmul.msk.f32.vlgmr.msra.gmra.mxu2 %vm270_vm0, %v112_v45  ;;  %v199_v44 = vld [vmem:[%s6498_s1 + $0x1c8] sm:$0xff]  ;;  %v72_v45 = vld [vmem:[%s6499_s0 + $0x1d0] sm:$0xff] }
  0x46   :  { %4260 = vmatpush.xpose.msk.msra.mxu0 %vm270_vm0, %v182_v48  ;;  %4264 = vmatpush.xpose.msk.msra.mxu2 %vm270_vm0, %v184_v49  ;;  %v202_v48 = vld [vmem:[%s6498_s1 + $0x1e0] sm:$0xff]  ;;  %v71_v49 = vld [vmem:[%s6499_s0 + $0x1c8] sm:$0xff] }
  0x47   :  { %4247 = vmatmul.msk.f32.vlgmr.msra.gmra.mxu1 %vm270_vm0, %v111_v46  ;;  %v201_v46 = vld [vmem:[%s6498_s1 + $0x1d8] sm:$0xff] }
  0x48   :  { %4251 = vmatmul.msk.f32.vlgmr.msra.gmra.mxu3 %vm270_vm0, %v113_v47  ;;  %4262 = vmatpush.xpose.msk.msra.mxu1 %vm270_vm0, %v183_v50  ;;  %v136_v47 = vmul.f32 0.5, %v72_v45  ;;  %v135_v50 = vmul.f32 0.5, %v71_v49 }
  0x49   :  { %4266 = vmatpush.xpose.msk.msra.mxu3 %vm270_vm0, %v185_v51  ;;  %v203_v51 = vld [vmem:[%s6498_s1 + $0x1e8] sm:$0xff] }
  0x4d   :  { %4253 = vmatmul.msk.f32.vlgmr.msrb.gmra.mxu0 %vm270_vm0, %v114_v56  ;;  %4257 = vmatmul.msk.f32.vlgmr.msrb.gmra.mxu2 %vm270_vm0, %v116_v57  ;;  %v74_v56 = vld [vmem:[%s6499_s0 + $0x1e0] sm:$0xff] }
  0x4e   :  { %4268 = vmatpush.xpose.msk.msrb.mxu0 %vm270_vm0, %v186_v60  ;;  %4272 = vmatpush.xpose.msk.msrb.mxu2 %vm270_vm0, %v188_v61  ;;  %v138_v57 = vmul.f32 0.5, %v74_v56  ;;  %v76_v60 = vld [vmem:[%s6499_s0 + $0x1f0] sm:$0xff] }
  0x4f   :  { %4255 = vmatmul.msk.f32.vlgmr.msrb.gmra.mxu1 %vm270_vm0, %v115_v58  ;;  %v140_v0 = vmul.f32 0.5, %v76_v60 }
  0x50   :  { %4259 = vmatmul.msk.f32.vlgmr.msrb.gmra.mxu3 %vm270_vm0, %v117_v59  ;;  %4270 = vmatpush.xpose.msk.msrb.mxu1 %vm270_vm0, %v187_v62  ;;  %v75_v59 = vld [vmem:[%s6499_s0 + $0x1e8] sm:$0xff] }
  0x51   :  { %4274 = vmatpush.xpose.msk.msrb.mxu3 %vm270_vm0, %v189_v63  ;;  %v139_v63 = vmul.f32 0.5, %v75_v59 }
  0x55   :  { %4261 = vmatmul.msk.f32.vlgmr.msra.gmra.mxu0 %vm270_vm0, %v118_v4  ;;  %4265 = vmatmul.msk.f32.vlgmr.msra.gmra.mxu2 %vm270_vm0, %v120_v5 }
  0x56   :  { %4276 = vmatpush.xpose.msk.msra.mxu0 %vm270_vm0, %v190_v8  ;;  %4280 = vmatpush.xpose.msk.msra.mxu2 %vm270_vm0, %v192_v10 }
  0x57   :  { %4263 = vmatmul.msk.f32.vlgmr.msra.gmra.mxu1 %vm270_vm0, %v119_v6 }
  0x58   :  { %4267 = vmatmul.msk.f32.vlgmr.msra.gmra.mxu3 %vm270_vm0, %v121_v7  ;;  %4278 = vmatpush.xpose.msk.msra.mxu1 %vm270_vm0, %v191_v9 }
  0x59   :  { %4282 = vmatpush.xpose.msk.msra.mxu3 %vm270_vm0, %v193_v11 }
  0x5d   :  { %4269 = vmatmul.msk.f32.vlgmr.msrb.gmra.mxu0 %vm270_vm0, %v122_v16  ;;  %4273 = vmatmul.msk.f32.vlgmr.msrb.gmra.mxu2 %vm270_vm0, %v124_v17 }
  0x5e   :  { %4284 = vmatpush.xpose.msk.msrb.mxu0 %vm270_vm0, %v194_v26  ;;  %4288 = vmatpush.xpose.msk.msrb.mxu2 %vm270_vm0, %v196_v28 }
  0x5f   :  { %4271 = vmatmul.msk.f32.vlgmr.msrb.gmra.mxu1 %vm270_vm0, %v123_v18 }
  0x60   :  { %4275 = vmatmul.msk.f32.vlgmr.msrb.gmra.mxu3 %vm270_vm0, %v125_v19  ;;  %4286 = vmatpush.xpose.msk.msrb.mxu1 %vm270_vm0, %v195_v30 }
  0x61   :  { %4290 = vmatpush.xpose.msk.msrb.mxu3 %vm270_vm0, %v197_v33 }
  0x65   :  { %4277 = vmatmul.msk.f32.vlgmr.msra.gmra.mxu0 %vm270_vm0, %v126_v21  ;;  %4281 = vmatmul.msk.f32.vlgmr.msra.gmra.mxu2 %vm270_vm0, %v128_v25 }
  0x66   :  { %4292 = vmatpush.xpose.msk.msra.mxu0 %vm270_vm0, %v198_v34  ;;  %4296 = vmatpush.xpose.msk.msra.mxu2 %vm270_vm0, %v200_v37 }
  0x67   :  { %4279 = vmatmul.msk.f32.vlgmr.msra.gmra.mxu1 %vm270_vm0, %v127_v24 }
  0x68   :  { %4283 = vmatmul.msk.f32.vlgmr.msra.gmra.mxu3 %vm270_vm0, %v129_v29  ;;  %4294 = vmatpush.xpose.msk.msra.mxu1 %vm270_vm0, %v199_v44 }
  0x69   :  { %4298 = vmatpush.xpose.msk.msra.mxu3 %vm270_vm0, %v201_v46 }
  0x6d   :  { %4285 = vmatmul.msk.f32.vlgmr.msrb.gmra.mxu0 %vm270_vm0, %v130_v32  ;;  %4289 = vmatmul.msk.f32.vlgmr.msrb.gmra.mxu2 %vm270_vm0, %v132_v36 }
  0x6e   :  { %4300 = vmatpush.xpose.msk.msrb.mxu0 %vm270_vm0, %v202_v48  ;;  %4304 = vmatpush.xpose.msk.msrb.mxu2 %vm270_vm0, %v204_v52 }
  0x6f   :  { %4287 = vmatmul.msk.f32.vlgmr.msrb.gmra.mxu1 %vm270_vm0, %v131_v39 }
  0x70   :  { %4291 = vmatmul.msk.f32.vlgmr.msrb.gmra.mxu3 %vm270_vm0, %v133_v42  ;;  %4302 = vmatpush.xpose.msk.msrb.mxu1 %vm270_vm0, %v203_v51 }
  0x71   :  { %4306 = vmatpush.xpose.msk.msrb.mxu3 %vm270_vm0, %v205_v55 }
  0x75   :  { %4293 = vmatmul.msk.f32.vlgmr.msra.gmra.mxu0 %vm270_vm0, %v134_v43  ;;  %4297 = vmatmul.msk.f32.vlgmr.msra.gmra.mxu2 %vm270_vm0, %v136_v47 }
  0x77   :  { %4295 = vmatmul.msk.f32.vlgmr.msra.gmra.mxu1 %vm270_vm0, %v135_v50 }
  0x78   :  { %4299 = vmatmul.msk.f32.vlgmr.msra.gmra.mxu3 %vm270_vm0, %v137_v54 }
  0x7d   :  { %4301 = vmatmul.msk.f32.vlgmr.msrb.gmra.mxu0 %vm270_vm0, %v138_v57  ;;  %4305 = vmatmul.msk.f32.vlgmr.msrb.gmra.mxu2 %vm270_vm0, %v140_v0 }
  0x7f   :  { %4303 = vmatmul.msk.f32.vlgmr.msrb.gmra.mxu1 %vm270_vm0, %v139_v63 }
  0x80   :  { %4307 = vmatmul.msk.f32.vlgmr.msrb.gmra.mxu3 %vm270_vm0, %v141_v2 }
  0x82   :  { %v5147_v58 = vpop.f32.mrf.mxu0 }
  0x83   :  { %v1936_v61 = vsel %vm1935_vm1, %v5147_v58, -inf }
  0x84   :  { %v5157_v62 = vpop.f32.mrf.mxu1  ;;  %1937 = vmax.xlane.f32.xlu0 %v1936_v61 }
  0x85   :  { %v1939_v5 = vsel %vm1935_vm1, %v5157_v62, -inf }
  0x88   :  { %v5166_v3 = vpop.f32.mrf.mxu2 }
  0x89   :  { %v1942_v4 = vsel %vm1935_vm1, %v5166_v3, -inf }
  0x8a   :  { %1943 = vmax.xlane.f32.xlu1 %v1942_v4  ;;  %v5172_v6 = vpop.f32.mrf.mxu0 }
  0x8b   :  { %v5174_v7 = vpop.f32.mrf.mxu3  ;;  %v1948_v8 = vsel %vm1935_vm1, %v5172_v6, -inf }
  0x8c   :  { %1940 = vmax.xlane.f32.xlu0 %v1939_v5  ;;  %1949 = vmax.xlane.f32.xlu2 %v1948_v8  ;;  %v5178_v9 = vpop.f32.mrf.mxu1  ;;  %v1945_v10 = vsel %vm1935_vm1, %v5174_v7, -inf }
  0x8d   :  { %v1951_v13 = vsel %vm1935_vm1, %v5178_v9, -inf }
  0x90   :  { %v5182_v11 = vpop.f32.mrf.mxu2 }
  0x91   :  { %v1954_v12 = vsel %vm1935_vm1, %v5182_v11, -inf }
  0x92   :  { %1946 = vmax.xlane.f32.xlu1 %v1945_v10  ;;  %v5190_v15 = vpop.f32.mrf.mxu0 }
  0x93   :  { %v5188_v14 = vpop.f32.mrf.mxu3  ;;  %v1960_v19 = vsel %vm1935_vm1, %v5190_v15, -inf }
  0x94   :  { %1955 = vmax.xlane.f32.xlu0 %v1954_v12  ;;  %1952 = vmax.xlane.f32.xlu2 %v1951_v13  ;;  %v5192_v16 = vpop.f32.mrf.mxu1  ;;  %v1957_v17 = vsel %vm1935_vm1, %v5188_v14, -inf }
  0x95   :  { %v1963_v18 = vsel %vm1935_vm1, %v5192_v16, -inf }
  0x98   :  { %v5200_v20 = vpop.f32.mrf.mxu2 }
  0x99   :  { %v1966_v23 = vsel %vm1935_vm1, %v5200_v20, -inf }
  0x9a   :  { %1958 = vmax.xlane.f32.xlu1 %v1957_v17  ;;  %v5204_v22 = vpop.f32.mrf.mxu0 }
  0x9b   :  { %v5202_v21 = vpop.f32.mrf.mxu3  ;;  %v1972_v25 = vsel %vm1935_vm1, %v5204_v22, -inf }
  0x9c   :  { %1964 = vmax.xlane.f32.xlu0 %v1963_v18  ;;  %1961 = vmax.xlane.f32.xlu2 %v1960_v19  ;;  %v1969_v24 = vsel %vm1935_vm1, %v5202_v21, -inf  ;;  %v5212_v26 = vpop.f32.mrf.mxu1 }
  0x9d   :  { %v1975_v29 = vsel %vm1935_vm1, %v5212_v26, -inf }
  0xa0   :  { %v5214_v27 = vpop.f32.mrf.mxu2 }
  0xa1   :  { %v1978_v31 = vsel %vm1935_vm1, %v5214_v27, -inf }
  0xa2   :  { %1967 = vmax.xlane.f32.xlu1 %v1966_v23  ;;  %v5220_v30 = vpop.f32.mrf.mxu0 }
  0xa3   :  { %v5216_v28 = vpop.f32.mrf.mxu3  ;;  %v1984_v35 = vsel %vm1935_vm1, %v5220_v30, -inf }
  0xa4   :  { %1970 = vmax.xlane.f32.xlu2 %v1969_v24  ;;  %1973 = vmax.xlane.f32.xlu0 %v1972_v25  ;;  %v1981_v32 = vsel %vm1935_vm1, %v5216_v28, -inf  ;;  %v5226_v33 = vpop.f32.mrf.mxu1 }
  0xa5   :  { %v1987_v37 = vsel %vm1935_vm1, %v5226_v33, -inf }
  0xa8   :  { %v5228_v34 = vpop.f32.mrf.mxu2 }
  0xa9   :  { %v1990_v38 = vsel %vm1935_vm1, %v5228_v34, -inf }
  0xaa   :  { %1976 = vmax.xlane.f32.xlu1 %v1975_v29  ;;  %v5232_v36 = vpop.f32.mrf.mxu0 }
  0xab   :  { %v5238_v39 = vpop.f32.mrf.mxu3  ;;  %v1996_v43 = vsel %vm1935_vm1, %v5232_v36, -inf }
  0xac   :  { %1979 = vmax.xlane.f32.xlu2 %v1978_v31  ;;  %1982 = vmax.xlane.f32.xlu0 %v1981_v32  ;;  %v5240_v40 = vpop.f32.mrf.mxu1  ;;  %v1993_v41 = vsel %vm1935_vm1, %v5238_v39, -inf }
  0xad   :  { %v1999_v42 = vsel %vm1935_vm1, %v5240_v40, -inf }
  0xb0   :  { %v5248_v44 = vpop.f32.mrf.mxu2 }
  0xb1   :  { %v2002_v47 = vsel %vm1935_vm1, %v5248_v44, -inf }
  0xb2   :  { %1985 = vmax.xlane.f32.xlu1 %v1984_v35  ;;  %v5250_v45 = vpop.f32.mrf.mxu0 }
  0xb3   :  { %v5252_v46 = vpop.f32.mrf.mxu3  ;;  %v2008_v49 = vsel %vm1935_vm1, %v5250_v45, -inf }
  0xb4   :  { %1988 = vmax.xlane.f32.xlu2 %v1987_v37  ;;  %1991 = vmax.xlane.f32.xlu0 %v1990_v38  ;;  %v2005_v48 = vsel %vm1935_vm1, %v5252_v46, -inf  ;;  %v5260_v50 = vpop.f32.mrf.mxu1 }
  0xb5   :  { %v2011_v54 = vsel %vm1935_vm1, %v5260_v50, -inf }
  0xb8   :  { %v5262_v51 = vpop.f32.mrf.mxu2 }
  0xb9   :  { %v2014_v55 = vsel %vm1935_vm1, %v5262_v51, -inf }
  0xba   :  { %1994 = vmax.xlane.f32.xlu1 %v1993_v41  ;;  %v5264_v52 = vpop.f32.mrf.mxu0 }
  0xbb   :  { %v5266_v53 = vpop.f32.mrf.mxu3  ;;  %v2020_v0 = vsel %vm1935_vm1, %v5264_v52, -inf }
  0xbc   :  { %2000 = vmax.xlane.f32.xlu0 %v1999_v42  ;;  %1997 = vmax.xlane.f32.xlu2 %v1996_v43  ;;  %v2017_v56 = vsel %vm1935_vm1, %v5266_v53, -inf  ;;  %v5274_v57 = vpop.f32.mrf.mxu1 }
  0xbd   :  { %v2023_v61 = vsel %vm1935_vm1, %v5274_v57, -inf }
  0xc0   :  { %v5276_v59 = vpop.f32.mrf.mxu2 }
  0xc1   :  { %v2026_v10 = vsel %vm1935_vm1, %v5276_v59, -inf }
  0xc2   :  { %2003 = vmax.xlane.f32.xlu1 %v2002_v47  ;;  %v5278_v60 = vpop.f32.mrf.mxu0 }
  0xc3   :  { %v2032_v63 = vsel %vm1935_vm1, %v5278_v60, -inf  ;;  %v5286_v1 = vpop.f32.mrf.mxu3 }
  0xc4   :  { %2006 = vmax.xlane.f32.xlu2 %v2005_v48  ;;  %2009 = vmax.xlane.f32.xlu0 %v2008_v49  ;;  %v5288_v2 = vpop.f32.mrf.mxu1  ;;  %v2029_v5 = vsel %vm1935_vm1, %v5286_v1, -inf }
  0xc5   :  { %v2035_v23 = vsel %vm1935_vm1, %v5288_v2, -inf }
  0xc8   :  { %v5290_v4 = vpop.f32.mrf.mxu2 }
  0xc9   :  { %v2038_v8 = vsel %vm1935_vm1, %v5290_v4, -inf }
  0xca   :  { %2012 = vmax.xlane.f32.xlu1 %v2011_v54  ;;  %v5298_v12 = vpop.f32.mrf.mxu0 }
  0xcb   :  { %v5300_v13 = vpop.f32.mrf.mxu3  ;;  %v2044_v18 = vsel %vm1935_vm1, %v5298_v12, -inf }
  0xcc   :  { %2015 = vmax.xlane.f32.xlu2 %v2014_v55  ;;  %2018 = vmax.xlane.f32.xlu0 %v2017_v56  ;;  %6542 = vst [vmem:[#allocation2_spill] sm:$0xff] %v5300_v13  ;;  %v5302_v17 = vpop.f32.mrf.mxu1  ;;  %v2041_v35 = vsel %vm1935_vm1, %v5300_v13, -inf }
  0xcd   :  { %6543 = vst [vmem:[#allocation3_spill] sm:$0xff] %v5302_v17  ;;  %v2047_v19 = vsel %vm1935_vm1, %v5302_v17, -inf }
  0xd0   :  { %v5310_v24 = vpop.f32.mrf.mxu2 }
  0xd1   :  { %6544 = vst [vmem:[#allocation4_spill] sm:$0xff] %v5310_v24  ;;  %v2050_v31 = vsel %vm1935_vm1, %v5310_v24, -inf }
  0xd2   :  { %2024 = vmax.xlane.f32.xlu1 %v2023_v61  ;;  %v5312_v25 = vpop.f32.mrf.mxu0 }
  0xd3   :  { %6545 = vst [vmem:[#allocation5_spill] sm:$0xff] %v5312_v25  ;;  %v5314_v29 = vpop.f32.mrf.mxu3  ;;  %v2056_v47 = vsel %vm1935_vm1, %v5312_v25, -inf }
  0xd4   :  { %2021 = vmax.xlane.f32.xlu0 %v2020_v0  ;;  %2033 = vmax.xlane.f32.xlu2 %v2032_v63  ;;  %6546 = vst [vmem:[#allocation6_spill] sm:$0xff] %v5314_v29  ;;  %v2053_v32 = vsel %vm1935_vm1, %v5314_v29, -inf  ;;  %v5322_v37 = vpop.f32.mrf.mxu1 }
  0xd5   :  { %6547 = vst [vmem:[#allocation7_spill] sm:$0xff] %v5322_v37  ;;  %v2059_v42 = vsel %vm1935_vm1, %v5322_v37, -inf }
  0xd8   :  { %v5324_v38 = vpop.f32.mrf.mxu2 }
  0xd9   :  { %6548 = vst [vmem:[#allocation8_spill] sm:$0xff] %v5324_v38  ;;  %v2062_v63 = vsel %vm1935_vm1, %v5324_v38, -inf }
  0xda   :  { %2030 = vmax.xlane.f32.xlu1 %v2029_v5  ;;  %v5326_v41 = vpop.f32.mrf.mxu0 }
  0xdb   :  { %6549 = vst [vmem:[#allocation9_spill] sm:$0xff] %v5326_v41  ;;  %v2068_v43 = vsel %vm1935_vm1, %v5326_v41, -inf  ;;  %v5334_v48 = vpop.f32.mrf.mxu3 }
  0xdc   :  { %2027 = vmax.xlane.f32.xlu0 %v2026_v10  ;;  %2039 = vmax.xlane.f32.xlu2 %v2038_v8  ;;  %6550 = vst [vmem:[#allocation10_spill] sm:$0xff] %v5334_v48  ;;  %v5336_v49 = vpop.f32.mrf.mxu1  ;;  %v2065_v56 = vsel %vm1935_vm1, %v5334_v48, -inf }
  0xdd   :  { %6551 = vst [vmem:[#allocation11_spill] sm:$0xff] %v5336_v49 }
  0xe0   :  { %v5338_v54 = vpop.f32.mrf.mxu2 }
  0xe1   :  { %6552 = vst [vmem:[#allocation12_spill] sm:$0xff] %v5338_v54  ;;  %v2074_v61 = vsel %vm1935_vm1, %v5338_v54, -inf }
  0xe2   :  { %2045 = vmax.xlane.f32.xlu1 %v2044_v18  ;;  %v5348_v0 = vpop.f32.mrf.mxu0 }
  0xe3   :  { %6553 = vst [vmem:[#allocation13_spill] sm:$0xff] %v5348_v0  ;;  %v5350_v5 = vpop.f32.mrf.mxu3 }
  0xe4   :  { %2036 = vmax.xlane.f32.xlu0 %v2035_v23  ;;  %2048 = vmax.xlane.f32.xlu2 %v2047_v19  ;;  %6554 = vst [vmem:[#allocation14_spill] sm:$0xff] %v5350_v5  ;;  %v5352_v10 = vpop.f32.mrf.mxu1  ;;  %v2080_v23 = vsel %vm1935_vm1, %v5348_v0, -inf }
  0xe5   :  { %6555 = vst [vmem:[#allocation15_spill] sm:$0xff] %v5352_v10 }
  0xea   :  { %2051 = vmax.xlane.f32.xlu1 %v2050_v31  ;;  %v2083_v31 = vsel %vm1935_vm1, %v5352_v10, -inf }
  0xec   :  { %2042 = vmax.xlane.f32.xlu0 %v2041_v35  ;;  %2054 = vmax.xlane.f32.xlu2 %v2053_v32  ;;  %v2071_v32 = vsel %vm1935_vm1, %v5336_v49, -inf  ;;  %v5364_v35 = vpop.f32.mrf.mxu2 }
  0xed   :  { %6556 = vst [vmem:[#allocation16_spill] sm:$0xff] %v5364_v35 }
  0xf2   :  { %2060 = vmax.xlane.f32.xlu1 %v2059_v42  ;;  %v5366_v42 = vpop.f32.mrf.mxu0 }
  0xf3   :  { %6557 = vst [vmem:[#allocation17_spill] sm:$0xff] %v5366_v42 }
  0xf4   :  { %2057 = vmax.xlane.f32.xlu0 %v2056_v47  ;;  %2069 = vmax.xlane.f32.xlu2 %v2068_v43  ;;  %v5370_v47 = vpop.f32.mrf.mxu3  ;;  %v5384_v10 = vpop.f32.mrf.mxu2 }
  0xf5   :  { %6558 = vst [vmem:[#allocation18_spill] sm:$0xff] %v5370_v47 }
  0xf6   :  { %6560 = vst [vmem:[#allocation20_spill] sm:$0xff] %v5384_v10 }
  0xf7   :  { %v5340_v55 = vpop.xlane.xlu0 %1937 }
  0xfa   :  { %2066 = vmax.xlane.f32.xlu1 %v2065_v56  ;;  %v5388_v54 = vpop.f32.mrf.mxu0 }
  0xfb   :  { %6561 = vst [vmem:[#allocation21_spill] sm:$0xff] %v5388_v54 }
  0xfc   :  { %2063 = vmax.xlane.f32.xlu0 %v2062_v63  ;;  %2075 = vmax.xlane.f32.xlu2 %v2074_v61  ;;  %v2086_v63 = vsel %vm1935_vm1, %v5364_v35, -inf  ;;  %v5404_v38 = vpop.f32.mrf.mxu2 }
  0xfd   :  { %v1944_v8 = vpop.xlane.xlu1 %1943  ;;  %6563 = vst [vmem:[#allocation23_spill] sm:$0xff] %v5404_v38 }
  0xff   :  { %v5354_v18 = vpop.xlane.xlu0 %1940  ;;  %v5356_v19 = vpop.xlane.xlu2 %1949 }
 0x102   :  { %2081 = vmax.xlane.f32.xlu1 %v2080_v23  ;;  %v2089_v23 = vsel %vm1935_vm1, %v5370_v47, -inf }
 0x104   :  { %2072 = vmax.xlane.f32.xlu0 %v2071_v32  ;;  %2084 = vmax.xlane.f32.xlu2 %v2083_v31  ;;  %v2077_v31 = vsel %vm1935_vm1, %v5350_v5, -inf  ;;  %v5382_v32 = vpop.f32.mrf.mxu1  ;;  %v5439_v13 = vpop.f32.mrf.mxu2 }
 0x105   :  { %v5368_v43 = vpop.xlane.xlu1 %1946  ;;  %6559 = vst [vmem:[#allocation19_spill] sm:$0xff] %v5382_v32  ;;  %v2095_v47 = vsel %vm1935_vm1, %v5382_v32, -inf }
 0x107   :  { %v5372_v56 = vpop.xlane.xlu0 %1955  ;;  %v5374_v61 = vpop.xlane.xlu2 %1952 }
 0x10a   :  { %2087 = vmax.xlane.f32.xlu1 %v2086_v63  ;;  %v2104_v63 = vsel %vm1935_vm1, %v5388_v54, -inf  ;;  %v2110_v54 = vsel %vm1935_vm1, %v5404_v38, -inf  ;;  %v2130_v38 = vsub.f32 %v5166_v3, %v1944_v8 }
 0x10c   :  { %2078 = vmax.xlane.f32.xlu0 %v2077_v31  ;;  %2090 = vmax.xlane.f32.xlu2 %v2089_v23  ;;  %v2092_v23 = vsel %vm1935_vm1, %v5366_v42, -inf  ;;  %v5398_v31 = vpop.f32.mrf.mxu3  ;;  %v5400_v5 = vpop.f32.mrf.mxu1  ;;  %v2196_v24 = vmul.f32 1.442695, %v2130_v38  ;;  %v2131_v38 = vsub.f32 %v5174_v7, %v5368_v43 }
 0x10d   :  { %v5386_v0 = vpop.xlane.xlu1 %1958  ;;  %6562 = vst [vmem:[#allocation22_spill] sm:$0xff] %v5398_v31  ;;  %v2107_v29 = vsel %vm1935_vm1, %v5400_v5, -inf }
 0x10e   :  { %4372 = vpow2.f32 %v2196_v24  ;;  %v2198_v24 = vmul.f32 1.442695, %v2131_v38 }
 0x10f   :  { %v5390_v41 = vpop.xlane.xlu0 %1964  ;;  %v1962_v35 = vpop.xlane.xlu2 %1961 }
 0x112   :  { %2096 = vmax.xlane.f32.xlu1 %v2095_v47  ;;  %v2101_v47 = vsel %vm1935_vm1, %v5398_v31, -inf }
 0x114   :  { %2093 = vmax.xlane.f32.xlu0 %v2092_v23  ;;  %2105 = vmax.xlane.f32.xlu2 %v2104_v63  ;;  %v2098_v63 = vsel %vm1935_vm1, %v5384_v10, -inf  ;;  %v5416_v23 = vpop.f32.mrf.mxu0  ;;  %v5418_v42 = vpop.f32.mrf.mxu3  ;;  %v2129_v10 = vsub.f32 %v5157_v62, %v5354_v18  ;;  %v2122_v62 = vsel %vm1935_vm1, %v5439_v13, -inf  ;;  %v2136_v18 = vsub.f32 %v5190_v15, %v1962_v35 }
 0x115   :  { %v5402_v49 = vpop.xlane.xlu1 %1967  ;;  %6564 = vst [vmem:[#allocation24_spill] sm:$0xff] %v5416_v23  ;;  %v5422_v37 = vpop.f32.mrf.mxu1  ;;  %v2134_v35 = vsub.f32 %v5182_v11, %v5372_v56 }
 0x116   :  { %6565 = vst [vmem:[#allocation25_spill] sm:$0xff] %v5422_v37  ;;  %v2194_v8 = vmul.f32 1.442695, %v2129_v10 }
 0x117   :  { %v5406_v25 = vpop.xlane.xlu2 %1970  ;;  %v5408_v32 = vpop.xlane.xlu0 %1973 }
 0x11a   :  { %2102 = vmax.xlane.f32.xlu1 %v2101_v47  ;;  %v2116_v47 = vsel %vm1935_vm1, %v5416_v23, -inf }
 0x11c   :  { %2099 = vmax.xlane.f32.xlu0 %v2098_v63  ;;  %2111 = vmax.xlane.f32.xlu2 %v2110_v54  ;;  %v2128_v54 = vsub.f32 %v5147_v58, %v5340_v55  ;;  %v2119_v63 = vsel %vm1935_vm1, %v5422_v37, -inf  ;;  %v5443_v58 = vpop.f32.mrf.mxu3 }
 0x11d   :  { %v5420_v48 = vpop.xlane.xlu1 %1976  ;;  %v2125_v10 = vsel %vm1935_vm1, %v5443_v58, -inf }
 0x11e   :  { %v2192_v23 = vmul.f32 1.442695, %v2128_v54 }
 0x11f   :  { %v5424_v17 = vpop.xlane.xlu2 %1979  ;;  %v5426_v31 = vpop.xlane.xlu0 %1982 }
 0x120   :  { %4374 = vpow2.f32 %v2192_v23 }
 0x121   :  { %4376 = vpow2.f32 %v2194_v8  ;;  %v2133_v8 = vsub.f32 %v5178_v9, %v5374_v61 }
 0x122   :  { %2117 = vmax.xlane.f32.xlu1 %v2116_v47  ;;  %v2113_v47 = vsel %vm1935_vm1, %v5418_v42, -inf }
 0x123   :  { %v2202_v11 = vmul.f32 1.442695, %v2133_v8  ;;  %v2141_v8 = vsub.f32 %v5212_v26, %v5420_v48 }
 0x124   :  { %2108 = vmax.xlane.f32.xlu0 %v2107_v29  ;;  %2120 = vmax.xlane.f32.xlu2 %v2119_v63  ;;  %v2132_v29 = vsub.f32 %v5172_v6, %v5356_v19  ;;  %v5462_v6 = vpop.eup %4372  ;;  %v2208_v19 = vmul.f32 1.442695, %v2136_v18  ;;  %v2204_v18 = vmul.f32 1.442695, %v2134_v35 }
 0x125   :  { %v5441_v3 = vpop.xlane.xlu1 %1985 }
 0x126   :  { %v2200_v54 = vmul.f32 1.442695, %v2132_v29  ;;  %v5464_v7 = vpop.eup %4374  ;;  %v2138_v29 = vsub.f32 %v5200_v20, %v5402_v49 }
 0x127   :  { %v5445_v55 = vpop.xlane.xlu2 %1988  ;;  %v5447_v37 = vpop.xlane.xlu0 %1991 }
 0x128   :  { %v5470_v15 = vpop.eup %4376  ;;  %4378 = vpow2.f32 %v2200_v54  ;;  %v2212_v61 = vmul.f32 1.442695, %v2138_v29 }
 0x129   :  { %4380 = vpow2.f32 %v2198_v24  ;;  %v2323_v38 = vsel %vm1935_vm1, %v5470_v15, 0.0  ;;  %v2137_v24 = vsub.f32 %v5192_v16, %v5390_v41 }
 0x12a   :  { %2123 = vmax.xlane.f32.xlu1 %v2122_v62  ;;  %v2326_v62 = vsel %vm1935_vm1, %v5462_v6, 0.0  ;;  %4382 = vpow2.f32 %v2208_v19  ;;  %v2135_v19 = vsub.f32 %v5188_v14, %v5386_v0  ;;  %v2218_v0 = vmul.f32 1.442695, %v2141_v8 }
 0x12b   :  { %4384 = vpow2.f32 %v2204_v18 }
 0x12c   :  { %2114 = vmax.xlane.f32.xlu0 %v2113_v47  ;;  %2126 = vmax.xlane.f32.xlu2 %v2125_v10  ;;  %v2320_v10 = vsel %vm1935_vm1, %v5464_v7, 0.0  ;;  %4386 = vpow2.f32 %v2202_v11  ;;  %v2206_v16 = vmul.f32 1.442695, %v2135_v19  ;;  %v2139_v11 = vsub.f32 %v5202_v21, %v5406_v25 }
 0x12d   :  { %v5460_v63 = vpop.xlane.xlu1 %1994  ;;  %4388 = vpow2.f32 %v2212_v61  ;;  %v2140_v61 = vsub.f32 %v5204_v22, %v5408_v32  ;;  %v2143_v19 = vsub.f32 %v5216_v28, %v5426_v31 }
 0x12e   :  { %v5486_v9 = vpop.eup %4378 }
 0x12f   :  { %v5466_v43 = vpop.xlane.xlu0 %2000  ;;  %v5468_v23 = vpop.xlane.xlu2 %1997  ;;  %v2332_v35 = vsel %vm1935_vm1, %v5486_v9, 0.0  ;;  %v2216_v21 = vmul.f32 1.442695, %v2140_v61  ;;  %v2222_v32 = vmul.f32 1.442695, %v2143_v19 }
 0x130   :  { %v5488_v47 = vpop.eup %4380  ;;  %v2148_v61 = vsub.f32 %v5232_v36, %v5468_v23 }
 0x131   :  { %v5494_v49 = vpop.eup %4382  ;;  %v2329_v29 = vsel %vm1935_vm1, %v5488_v47, 0.0 }
 0x132   :  { %2327 = vadd.xlane.f32.xlu1 %v2326_v62  ;;  %v2344_v62 = vsel %vm1935_vm1, %v5494_v49, 0.0  ;;  %v5510_v14 = vpop.eup %4384 }
 0x134   :  { %2324 = vadd.xlane.f32.xlu0 %v2323_v38  ;;  %2321 = vadd.xlane.f32.xlu2 %v2320_v10  ;;  %v2210_v38 = vmul.f32 1.442695, %v2137_v24  ;;  %v5512_v10 = vpop.eup %4386  ;;  %v2338_v24 = vsel %vm1935_vm1, %v5510_v14, 0.0 }
 0x135   :  { %v5484_v56 = vpop.xlane.xlu1 %2003  ;;  %v5518_v48 = vpop.eup %4388  ;;  %v2335_v8 = vsel %vm1935_vm1, %v5512_v10, 0.0 }
 0x136   :  { %4390 = vpow2.f32 %v2210_v38 }
 0x137   :  { %v5490_v54 = vpop.xlane.xlu2 %2006  ;;  %v5492_v20 = vpop.xlane.xlu0 %2009  ;;  %4392 = vpow2.f32 %v2206_v16  ;;  %v2144_v16 = vsub.f32 %v5220_v30, %v5441_v3 }
 0x138   :  { %4394 = vpow2.f32 %v2218_v0  ;;  %v2142_v0 = vsub.f32 %v5214_v27, %v5424_v17  ;;  %v2232_v17 = vmul.f32 1.442695, %v2148_v61 }
 0x13a   :  { %2333 = vadd.xlane.f32.xlu1 %v2332_v35  ;;  %v2350_v35 = vsel %vm1935_vm1, %v5518_v48, 0.0  ;;  %v2220_v30 = vmul.f32 1.442695, %v2142_v0  ;;  %v2150_v0 = vsub.f32 %v5248_v44, %v5484_v56 }
 0x13c   :  { %2345 = vadd.xlane.f32.xlu0 %v2344_v62  ;;  %2330 = vadd.xlane.f32.xlu2 %v2329_v29  ;;  %v2214_v62 = vmul.f32 1.442695, %v2139_v11  ;;  %v5534_v22 = vpop.eup %4390 }
 0x13d   :  { %v5508_v41 = vpop.xlane.xlu1 %2012  ;;  %v5536_v29 = vpop.eup %4392  ;;  %v2347_v11 = vsel %vm1935_vm1, %v5534_v22, 0.0 }
 0x13e   :  { %v5542_v31 = vpop.eup %4394  ;;  %4396 = vpow2.f32 %v2214_v62  ;;  %v2341_v19 = vsel %vm1935_vm1, %v5536_v29, 0.0 }
 0x13f   :  { %v5514_v18 = vpop.xlane.xlu2 %2015  ;;  %v5516_v26 = vpop.xlane.xlu0 %2018  ;;  %4398 = vpow2.f32 %v2216_v21  ;;  %v2146_v21 = vsub.f32 %v5228_v34, %v5447_v37 }
 0x140   :  { %4400 = vpow2.f32 %v2222_v32  ;;  %v2145_v32 = vsub.f32 %v5226_v33, %v5445_v55  ;;  %v2236_v55 = vmul.f32 1.442695, %v2150_v0 }
 0x142   :  { %2339 = vadd.xlane.f32.xlu1 %v2338_v24  ;;  %v2359_v24 = vsel %vm1935_vm1, %v5542_v31, 0.0  ;;  %v2226_v34 = vmul.f32 1.442695, %v2145_v32  ;;  %v2153_v32 = vsub.f32 %v5260_v50, %v5508_v41 }
 0x144   :  { %2351 = vadd.xlane.f32.xlu0 %v2350_v35  ;;  %2336 = vadd.xlane.f32.xlu2 %v2335_v8  ;;  %v2224_v35 = vmul.f32 1.442695, %v2144_v16  ;;  %v5558_v27 = vpop.eup %4396 }
 0x145   :  { %v5532_v25 = vpop.xlane.xlu1 %2024  ;;  %v5560_v8 = vpop.eup %4398  ;;  %v2353_v16 = vsel %vm1935_vm1, %v5558_v27, 0.0 }
 0x146   :  { %v5566_v23 = vpop.eup %4400  ;;  %4402 = vpow2.f32 %v2224_v35  ;;  %v2356_v61 = vsel %vm1935_vm1, %v5560_v8, 0.0 }
 0x147   :  { %v5538_v38 = vpop.xlane.xlu0 %2021  ;;  %v5540_v28 = vpop.xlane.xlu2 %2033  ;;  %4404 = vpow2.f32 %v2220_v30  ;;  %v2149_v30 = vsub.f32 %v5240_v40, %v5466_v43 }
 0x148   :  { %4406 = vpow2.f32 %v2232_v17  ;;  %v2147_v17 = vsub.f32 %v5238_v39, %v5460_v63  ;;  %v2242_v63 = vmul.f32 1.442695, %v2153_v32 }
 0x14a   :  { %2348 = vadd.xlane.f32.xlu1 %v2347_v11  ;;  %v2365_v11 = vsel %vm1935_vm1, %v5566_v23, 0.0  ;;  %v2230_v40 = vmul.f32 1.442695, %v2147_v17  ;;  %v2155_v17 = vsub.f32 %v5266_v53, %v5516_v26 }
 0x14c   :  { %2360 = vadd.xlane.f32.xlu0 %v2359_v24  ;;  %2342 = vadd.xlane.f32.xlu2 %v2341_v19  ;;  %v2228_v24 = vmul.f32 1.442695, %v2146_v21  ;;  %v5582_v33 = vpop.eup %4402 }
 0x14d   :  { %v5556_v3 = vpop.xlane.xlu1 %2030  ;;  %v5584_v19 = vpop.eup %4404  ;;  %v2368_v21 = vsel %vm1935_vm1, %v5582_v33, 0.0 }
 0x14e   :  { %v5590_v56 = vpop.eup %4406  ;;  %4408 = vpow2.f32 %v2228_v24  ;;  %v2362_v0 = vsel %vm1935_vm1, %v5584_v19, 0.0 }
 0x14f   :  { %v5562_v62 = vpop.xlane.xlu0 %2027  ;;  %v5564_v36 = vpop.xlane.xlu2 %2039  ;;  %4410 = vpow2.f32 %v2226_v34  ;;  %v2151_v34 = vsub.f32 %v5252_v46, %v5490_v54 }
 0x150   :  { %4412 = vpow2.f32 %v2236_v55  ;;  %v2152_v55 = vsub.f32 %v5250_v45, %v5492_v20  ;;  %v2246_v20 = vmul.f32 1.442695, %v2155_v17 }
 0x152   :  { %2354 = vadd.xlane.f32.xlu1 %v2353_v16  ;;  %v2380_v16 = vsel %vm1935_vm1, %v5590_v56, 0.0  ;;  %v2240_v46 = vmul.f32 1.442695, %v2152_v55  ;;  %v2160_v55 = vsub.f32 %v5278_v60, %v5540_v28 }
 0x154   :  { %2366 = vadd.xlane.f32.xlu0 %v2365_v11  ;;  %2357 = vadd.xlane.f32.xlu2 %v2356_v61  ;;  %v2234_v11 = vmul.f32 1.442695, %v2149_v30  ;;  %v5606_v39 = vpop.eup %4408 }
 0x155   :  { %v5580_v37 = vpop.xlane.xlu1 %2045  ;;  %v5608_v61 = vpop.eup %4410  ;;  %v2374_v30 = vsel %vm1935_vm1, %v5606_v39, 0.0 }
 0x156   :  { %v5614_v41 = vpop.eup %4412  ;;  %4414 = vpow2.f32 %v2234_v11  ;;  %v2371_v32 = vsel %vm1935_vm1, %v5608_v61, 0.0 }
 0x157   :  { %v5586_v35 = vpop.xlane.xlu0 %2036  ;;  %v5588_v44 = vpop.xlane.xlu2 %2048  ;;  %4416 = vpow2.f32 %v2230_v40  ;;  %v2156_v40 = vsub.f32 %v5264_v52, %v5538_v38 }
 0x158   :  { %4418 = vpow2.f32 %v2242_v63  ;;  %v2154_v63 = vsub.f32 %v5262_v51, %v5514_v18  ;;  %v2256_v18 = vmul.f32 1.442695, %v2160_v55 }
 0x15a   :  { %2369 = vadd.xlane.f32.xlu1 %v2368_v21  ;;  %v2386_v21 = vsel %vm1935_vm1, %v5614_v41, 0.0  ;;  %v2244_v52 = vmul.f32 1.442695, %v2154_v63  ;;  %v2162_v63 = vsub.f32 %v5290_v4, %v5564_v36 }
 0x15c   :  { %2381 = vadd.xlane.f32.xlu0 %v2380_v16  ;;  %2363 = vadd.xlane.f32.xlu2 %v2362_v0  ;;  %v2238_v16 = vmul.f32 1.442695, %v2151_v34  ;;  %v5630_v45 = vpop.eup %4414 }
 0x15d   :  { %v5604_v43 = vpop.xlane.xlu1 %2051  ;;  %v5632_v0 = vpop.eup %4416  ;;  %v2383_v34 = vsel %vm1935_vm1, %v5630_v45, 0.0 }
 0x15e   :  { %v5638_v26 = vpop.eup %4418  ;;  %4420 = vpow2.f32 %v2238_v16  ;;  %v2377_v17 = vsel %vm1935_vm1, %v5632_v0, 0.0 }
 0x15f   :  { %v5610_v24 = vpop.xlane.xlu0 %2042  ;;  %v5612_v50 = vpop.xlane.xlu2 %2054  ;;  %4422 = vpow2.f32 %v2240_v46  ;;  %v2158_v46 = vsub.f32 %v5276_v59, %v5562_v62 }
 0x160   :  { %4424 = vpow2.f32 %v2246_v20  ;;  %v2157_v20 = vsub.f32 %v5274_v57, %v5532_v25  ;;  %v2260_v25 = vmul.f32 1.442695, %v2162_v63 }
 0x162   :  { %2375 = vadd.xlane.f32.xlu1 %v2374_v30  ;;  %v2395_v30 = vsel %vm1935_vm1, %v5638_v26, 0.0  ;;  %v2250_v59 = vmul.f32 1.442695, %v2157_v20  ;;  %v2164_v20 = vsub.f32 %v5298_v12, %v5580_v37 }
 0x164   :  { %2387 = vadd.xlane.f32.xlu0 %v2386_v21  ;;  %2372 = vadd.xlane.f32.xlu2 %v2371_v32  ;;  %v2248_v21 = vmul.f32 1.442695, %v2156_v40  ;;  %v5654_v51 = vpop.eup %4420 }
 0x165   :  { %v5628_v54 = vpop.xlane.xlu1 %2060  ;;  %v5656_v32 = vpop.eup %4422  ;;  %v2389_v40 = vsel %vm1935_vm1, %v5654_v51, 0.0 }
 0x166   :  { %v5662_v28 = vpop.eup %4424  ;;  %4426 = vpow2.f32 %v2248_v21  ;;  %v2392_v55 = vsel %vm1935_vm1, %v5656_v32, 0.0 }
 0x167   :  { %v5634_v11 = vpop.xlane.xlu0 %2057  ;;  %v5636_v53 = vpop.xlane.xlu2 %2069  ;;  %4428 = vpow2.f32 %v2244_v52  ;;  %v2161_v52 = vsub.f32 %v5288_v2, %v5586_v35 }
 0x168   :  { %4430 = vpow2.f32 %v2256_v18  ;;  %v2159_v18 = vsub.f32 %v5286_v1, %v5556_v3  ;;  %v2264_v3 = vmul.f32 1.442695, %v2164_v20  ;;  %v6572_v20 = vld [vmem:[#allocation6_spill] sm:$0xff] }
 0x16a   :  { %2384 = vadd.xlane.f32.xlu1 %v2383_v34  ;;  %v2401_v34 = vsel %vm1935_vm1, %v5662_v28, 0.0  ;;  %v2254_v2 = vmul.f32 1.442695, %v2159_v18 }
 0x16c   :  { %2396 = vadd.xlane.f32.xlu0 %v2395_v30  ;;  %2378 = vadd.xlane.f32.xlu2 %v2377_v17  ;;  %v2252_v30 = vmul.f32 1.442695, %v2158_v46  ;;  %v5678_v57 = vpop.eup %4426 }
 0x16d   :  { %v5652_v38 = vpop.xlane.xlu1 %2066  ;;  %v5680_v17 = vpop.eup %4428  ;;  %v2404_v46 = vsel %vm1935_vm1, %v5678_v57, 0.0 }
 0x16e   :  { %v5686_v36 = vpop.eup %4430  ;;  %4432 = vpow2.f32 %v2252_v30  ;;  %v2398_v63 = vsel %vm1935_vm1, %v5680_v17, 0.0 }
 0x16f   :  { %v5658_v16 = vpop.xlane.xlu0 %2063  ;;  %v5660_v60 = vpop.xlane.xlu2 %2075  ;;  %6566 = vst [vmem:[#allocation26_spill] sm:$0xff] %v5686_v36  ;;  %4434 = vpow2.f32 %v2250_v59  ;;  %v6570_v59 = vld [vmem:[#allocation2_spill] sm:$0xff] }
 0x170   :  { %4436 = vpow2.f32 %v2260_v25  ;;  %v2163_v25 = vsub.f32 %v6570_v59, %v5610_v24 }
 0x172   :  { %2390 = vadd.xlane.f32.xlu1 %v2389_v40  ;;  %v2416_v40 = vsel %vm1935_vm1, %v5686_v36, 0.0  ;;  %v2262_v36 = vmul.f32 1.442695, %v2163_v25  ;;  %v6577_v25 = vld [vmem:[#allocation7_spill] sm:$0xff] }
 0x174   :  { %2402 = vadd.xlane.f32.xlu0 %v2401_v34  ;;  %2393 = vadd.xlane.f32.xlu2 %v2392_v55  ;;  %v2258_v34 = vmul.f32 1.442695, %v2161_v52  ;;  %v5702_v1 = vpop.eup %4432  ;;  %v6571_v52 = vld [vmem:[#allocation4_spill] sm:$0xff] }
 0x175   :  { %v5676_v62 = vpop.xlane.xlu1 %2081  ;;  %6567 = vst [vmem:[#allocation27_spill] sm:$0xff] %v5702_v1  ;;  %v5704_v55 = vpop.eup %4434  ;;  %v2166_v18 = vsub.f32 %v6571_v52, %v5604_v43 }
 0x176   :  { %6568 = vst [vmem:[#allocation28_spill] sm:$0xff] %v5704_v55  ;;  %v5710_v37 = vpop.eup %4436  ;;  %4438 = vpow2.f32 %v2258_v34  ;;  %v2407_v34 = vsel %vm1935_vm1, %v5704_v55, 0.0 }
 0x177   :  { %v5682_v21 = vpop.xlane.xlu0 %2072  ;;  %v5684_v4 = vpop.xlane.xlu2 %2084  ;;  %6569 = vst [vmem:[#allocation29_spill] sm:$0xff] %v5710_v37  ;;  %4440 = vpow2.f32 %v2254_v2  ;;  %v2268_v24 = vmul.f32 1.442695, %v2166_v18  ;;  %v2169_v18 = vsub.f32 %v6577_v25, %v5628_v54 }
 0x178   :  { %4442 = vpow2.f32 %v2264_v3 }
 0x179   :  { %4444 = vpow2.f32 %v2262_v36  ;;  %v2274_v36 = vmul.f32 1.442695, %v2169_v18  ;;  %v206_v18 = vld [vmem:[%s6500_s2] sm:$0xff] }
 0x17a   :  { %2405 = vadd.xlane.f32.xlu1 %v2404_v46  ;;  %v2410_v46 = vsel %vm1935_vm1, %v5702_v1, 0.0  ;;  %4446 = vpow2.f32 %v2268_v24  ;;  %2658 = vmatpush.msra.mxu0 %v206_v18 }
 0x17c   :  { %2417 = vadd.xlane.f32.xlu0 %v2416_v40  ;;  %2399 = vadd.xlane.f32.xlu2 %v2398_v63  ;;  %v2167_v40 = vsub.f32 %v6572_v20, %v5612_v50  ;;  %v2422_v63 = vsel %vm1935_vm1, %v5710_v37, 0.0  ;;  %v5726_v43 = vpop.eup %4438  ;;  %v6576_v20 = vld [vmem:[#allocation3_spill] sm:$0xff] }
 0x17d   :  { %v5700_v35 = vpop.xlane.xlu1 %2087  ;;  %6573 = vst [vmem:[#allocation2_spill] sm:$0xff] %v5726_v43  ;;  %v5728_v3 = vpop.eup %4440  ;;  %v2165_v37 = vsub.f32 %v6576_v20, %v5588_v44 }
 0x17e   :  { %v2270_v59 = vmul.f32 1.442695, %v2167_v40  ;;  %6574 = vst [vmem:[#allocation4_spill] sm:$0xff] %v5728_v3  ;;  %v6578_v40 = vld [vmem:[#allocation10_spill] sm:$0xff]  ;;  %v2413_v1 = vsel %vm1935_vm1, %v5728_v3, 0.0 }
 0x17f   :  { %v5706_v30 = vpop.xlane.xlu0 %2078  ;;  %v5708_v12 = vpop.xlane.xlu2 %2090  ;;  %v2266_v44 = vmul.f32 1.442695, %v2165_v37 }
 0x180   :  { %4448 = vpow2.f32 %v2270_v59 }
 0x181   :  { %4450 = vpow2.f32 %v2266_v44 }
 0x182   :  { %2411 = vadd.xlane.f32.xlu1 %v2410_v46  ;;  %v5734_v46 = vpop.eup %4442  ;;  %4452 = vpow2.f32 %v2274_v36 }
 0x183   :  { %6575 = vst [vmem:[#allocation6_spill] sm:$0xff] %v5734_v46  ;;  %v2428_v55 = vsel %vm1935_vm1, %v5734_v46, 0.0  ;;  %v5750_v54 = vpop.eup %4444 }
 0x184   :  { %2423 = vadd.xlane.f32.xlu0 %v2422_v63  ;;  %2408 = vadd.xlane.f32.xlu2 %v2407_v34  ;;  %v2419_v63 = vsel %vm1935_vm1, %v5726_v43, 0.0  ;;  %v2171_v34 = vsub.f32 %v6578_v40, %v5652_v38  ;;  %6579 = vst [vmem:[#allocation3_spill] sm:$0xff] %v5750_v54  ;;  %v208_v38 = vld [vmem:[%s6500_s2 + $0x10] sm:$0xff]  ;;  %v5755_v59 = vpop.eup %4446  ;;  %v207_v40 = vld [vmem:[%s6500_s2 + $0x8] sm:$0xff] }
 0x185   :  { %v5724_v2 = vpop.xlane.xlu1 %2096  ;;  %6580 = vst [vmem:[#allocation7_spill] sm:$0xff] %v5755_v59  ;;  %2704 = vmatpush.msra.mxu2 %v208_v38  ;;  %v2425_v38 = vsel %vm1935_vm1, %v5750_v54, 0.0  ;;  %2681 = vmatpush.msra.mxu1 %v207_v40  ;;  %v2434_v43 = vsel %vm1935_vm1, %v5755_v59, 0.0 }
 0x186   :  { %v2278_v20 = vmul.f32 1.442695, %v2171_v34  ;;  %v5761_v37 = vpop.eup %4448  ;;  %v6583_v34 = vld [vmem:[#allocation8_spill] sm:$0xff] }
 0x187   :  { %v5730_v52 = vpop.xlane.xlu0 %2093  ;;  %v5732_v50 = vpop.xlane.xlu2 %2105  ;;  %6581 = vst [vmem:[#allocation10_spill] sm:$0xff] %v5761_v37  ;;  %v2170_v3 = vsub.f32 %v6583_v34, %v5658_v16 }
 0x188   :  { %4454 = vpow2.f32 %v2278_v20  ;;  %v5783_v54 = vpop.eup %4450 }
 0x189   :  { %v2276_v16 = vmul.f32 1.442695, %v2170_v3  ;;  %v5785_v20 = vpop.eup %4452  ;;  %v210_v3 = vld [vmem:[%s6500_s2 + $0x20] sm:$0xff] }
 0x18a   :  { %2420 = vadd.xlane.f32.xlu1 %v2419_v63  ;;  %2750 = vmatpush.msrb.mxu0 %v210_v3  ;;  %v2443_v59 = vsel %vm1935_vm1, %v5785_v20, 0.0 }
 0x18c   :  { %2429 = vadd.xlane.f32.xlu0 %v2428_v55  ;;  %2414 = vadd.xlane.f32.xlu2 %v2413_v1  ;;  %v6582_v1 = vld [vmem:[#allocation5_spill] sm:$0xff] }
 0x18d   :  { %v5748_v24 = vpop.xlane.xlu1 %2102  ;;  %v2168_v55 = vsub.f32 %v6582_v1, %v5634_v11  ;;  %v6584_v11 = vld [vmem:[#allocation11_spill] sm:$0xff]  ;;  %v2437_v1 = vsel %vm1935_vm1, %v5761_v37, 0.0  ;;  %v2431_v37 = vsel %vm1935_vm1, %v5783_v54, 0.0 }
 0x18e   :  { %v2173_v44 = vsub.f32 %v6584_v11, %v5682_v21  ;;  %v6586_v11 = vld [vmem:[#allocation14_spill] sm:$0xff] }
 0x18f   :  { %v5757_v25 = vpop.xlane.xlu0 %2099  ;;  %v5759_v63 = vpop.xlane.xlu2 %2111  ;;  %v2272_v36 = vmul.f32 1.442695, %v2168_v55  ;;  %v2175_v55 = vsub.f32 %v6586_v11, %v5706_v30 }
 0x190   :  { %v2282_v18 = vmul.f32 1.442695, %v2173_v44  ;;  %v6587_v44 = vld [vmem:[#allocation9_spill] sm:$0xff] }
 0x191   :  { %4456 = vpow2.f32 %v2272_v36  ;;  %v6588_v36 = vld [vmem:[#allocation12_spill] sm:$0xff]  ;;  %v2286_v46 = vmul.f32 1.442695, %v2175_v55 }
 0x192   :  { %2426 = vadd.xlane.f32.xlu1 %v2425_v38  ;;  %v5791_v38 = vpop.eup %4454  ;;  %4458 = vpow2.f32 %v2276_v16  ;;  %v2174_v30 = vsub.f32 %v6588_v36, %v5660_v60  ;;  %v6589_v16 = vld [vmem:[#allocation13_spill] sm:$0xff]  ;;  %v6591_v36 = vld [vmem:[#allocation15_spill] sm:$0xff] }
 0x193   :  { %6585 = vst [vmem:[#allocation5_spill] sm:$0xff] %v5791_v38  ;;  %4460 = vpow2.f32 %v2282_v18  ;;  %v2449_v11 = vsel %vm1935_vm1, %v5791_v38, 0.0  ;;  %v2177_v55 = vsub.f32 %v6591_v36, %v5684_v4  ;;  %v6593_v4 = vld [vmem:[#allocation18_spill] sm:$0xff] }
 0x194   :  { %2438 = vadd.xlane.f32.xlu0 %v2437_v1  ;;  %2435 = vadd.xlane.f32.xlu2 %v2434_v43  ;;  %v209_v43 = vld [vmem:[%s6500_s2 + $0x18] sm:$0xff]  ;;  %v2172_v1 = vsub.f32 %v6587_v44, %v5636_v53  ;;  %v2176_v44 = vsub.f32 %v6589_v16, %v5676_v62  ;;  %v2284_v60 = vmul.f32 1.442695, %v2174_v30  ;;  %4462 = vpow2.f32 %v2286_v46 }
 0x195   :  { %v5781_v34 = vpop.xlane.xlu1 %2117  ;;  %2727 = vmatpush.msra.mxu3 %v209_v43  ;;  %v2179_v36 = vsub.f32 %v6593_v4, %v5708_v12  ;;  %v2290_v38 = vmul.f32 1.442695, %v2177_v55 }
 0x196   :  { %v2280_v53 = vmul.f32 1.442695, %v2172_v1  ;;  %v211_v1 = vld [vmem:[%s6500_s2 + $0x28] sm:$0xff]  ;;  %v2288_v30 = vmul.f32 1.442695, %v2176_v44 }
 0x197   :  { %v5787_v40 = vpop.xlane.xlu0 %2108  ;;  %v5789_v21 = vpop.xlane.xlu2 %2120  ;;  %2773 = vmatpush.msrb.mxu1 %v211_v1  ;;  %v6595_v1 = vld [vmem:[#allocation16_spill] sm:$0xff] }
 0x198   :  { %v5815_v3 = vpop.eup %4456  ;;  %4464 = vpow2.f32 %v2280_v53 }
 0x199   :  { %6590 = vst [vmem:[#allocation8_spill] sm:$0xff] %v5815_v3  ;;  %v5820_v18 = vpop.eup %4458  ;;  %v2440_v16 = vsel %vm1935_vm1, %v5815_v3, 0.0  ;;  %4466 = vpow2.f32 %v2284_v60  ;;  %v2178_v60 = vsub.f32 %v6595_v1, %v5700_v35  ;;  %v2294_v3 = vmul.f32 1.442695, %v2179_v36 }
 0x19a   :  { %2432 = vadd.xlane.f32.xlu1 %v2431_v37  ;;  %v212_v37 = vld [vmem:[%s6500_s2 + $0x30] sm:$0xff]  ;;  %v5828_v62 = vpop.eup %4460  ;;  %v2446_v46 = vsel %vm1935_vm1, %v5820_v18, 0.0  ;;  %4468 = vpow2.f32 %v2288_v30  ;;  %v213_v30 = vld [vmem:[%s6500_s2 + $0x38] sm:$0xff] }
 0x19b   :  { %2796 = vmatpush.msrb.mxu2 %v212_v37  ;;  %6592 = vst [vmem:[#allocation11_spill] sm:$0xff] %v5828_v62  ;;  %v2455_v37 = vsel %vm1935_vm1, %v5828_v62, 0.0  ;;  %v5841_v44 = vpop.eup %4462  ;;  %v6598_v62 = vld [vmem:[#allocation19_spill] sm:$0xff]  ;;  %2819 = vmatpush.msrb.mxu3 %v213_v30  ;;  %v2292_v36 = vmul.f32 1.442695, %v2178_v60 }
 0x19c   :  { %2450 = vadd.xlane.f32.xlu0 %v2449_v11  ;;  %2444 = vadd.xlane.f32.xlu2 %v2443_v59  ;;  %6594 = vst [vmem:[#allocation14_spill] sm:$0xff] %v5841_v44  ;;  %v2461_v35 = vsel %vm1935_vm1, %v5841_v44, 0.0 }
 0x19d   :  { %v5813_v43 = vpop.xlane.xlu1 %2123 }
 0x19e   :  { %v5845_v12 = vpop.eup %4464 }
 0x19f   :  { %v5824_v11 = vpop.xlane.xlu0 %2114  ;;  %v5826_v59 = vpop.xlane.xlu2 %2126  ;;  %6596 = vst [vmem:[#allocation9_spill] sm:$0xff] %v5845_v12 }
 0x1a0   :  { %v5847_v4 = vpop.eup %4466 }
 0x1a1   :  { %6597 = vst [vmem:[#allocation12_spill] sm:$0xff] %v5847_v4 }
 0x1a2   :  { %2441 = vadd.xlane.f32.xlu1 %v2440_v16 }
 0x1a4   :  { %2456 = vadd.xlane.f32.xlu0 %v2455_v37  ;;  %2447 = vadd.xlane.f32.xlu2 %v2446_v46  ;;  %v2181_v37 = vsub.f32 %v6598_v62, %v5724_v2  ;;  %v2458_v2 = vsel %vm1935_vm1, %v5847_v4, 0.0  ;;  %v2452_v62 = vsel %vm1935_vm1, %v5845_v12, 0.0 }
 0x1a5   :  { %v2328_v53 = vpop.xlane.xlu1 %2327 }
 0x1a6   :  { %4470 = vrcp.f32 %v2328_v53  ;;  %v5858_v53 = vpop.eup %4468 }
 0x1a7   :  { %4472 = vpow2.f32 %v2290_v38  ;;  %v2325_v55 = vpop.xlane.xlu0 %2324  ;;  %v2322_v16 = vpop.xlane.xlu2 %2321  ;;  %v6599_v38 = vld [vmem:[#allocation22_spill] sm:$0xff] }
 0x1a8   :  { %4474 = vrcp.f32 %v2325_v55  ;;  %v2183_v46 = vsub.f32 %v6599_v38, %v5748_v24  ;;  %v2298_v55 = vmul.f32 1.442695, %v2181_v37 }
 0x1a9   :  { %4476 = vrcp.f32 %v2322_v16 }
 0x1aa   :  { %4478 = vpow2.f32 %v2294_v3  ;;  %2462 = vadd.xlane.f32.xlu1 %v2461_v35  ;;  %v6600_v3 = vld [vmem:[#allocation17_spill] sm:$0xff]  ;;  %v216_v35 = vld [vmem:[%s6500_s2 + $0x50] sm:$0xff]  ;;  %v2302_v44 = vmul.f32 1.442695, %v2183_v46 }
 0x1ab   :  { %v2180_v60 = vsub.f32 %v6600_v3, %v5730_v52  ;;  %4480 = vpow2.f32 %v2292_v36  ;;  %v214_v36 = vld [vmem:[%s6500_s2 + $0x40] sm:$0xff] }
 0x1ac   :  { %v4471_v1 = vpop.eup %4470  ;;  %2459 = vadd.xlane.f32.xlu0 %v2458_v2  ;;  %2453 = vadd.xlane.f32.xlu2 %v2452_v62 }
 0x1ad   :  { %v5864_v16 = vpop.eup %4472  ;;  %v2578_v24 = vmul.f32 %v4471_v1, %v5462_v6  ;;  %v2334_v30 = vpop.xlane.xlu1 %2333  ;;  %v6601_v6 = vld [vmem:[#allocation20_spill] sm:$0xff]  ;;  %v2296_v46 = vmul.f32 1.442695, %v2180_v60 }
 0x1ae   :  { %v4475_v38 = vpop.eup %4474  ;;  %4482 = vrcp.f32 %v2334_v30  ;;  %v2182_v52 = vsub.f32 %v6601_v6, %v5757_v25  ;;  %v6602_v25 = vld [vmem:[#allocation23_spill] sm:$0xff] }
 0x1af   :  { %v4477_v12 = vpop.eup %4476  ;;  %v2577_v37 = vmul.f32 %v4475_v38, %v5470_v15  ;;  %v2346_v2 = vpop.xlane.xlu0 %2345  ;;  %4310 = vmatmul.msk.f32.vlgmr.msra.gmra.mxu2 %vm1935_vm1, %v2578_v24  ;;  %4484 = vpow2.f32 %v2298_v55  ;;  %v215_v15 = vld [vmem:[%s6500_s2 + $0x48] sm:$0xff]  ;;  %v2467_v55 = vsel %vm1935_vm1, %v5864_v16, 0.0 }
 0x1b0   :  { %v2331_v62 = vpop.xlane.xlu2 %2330  ;;  %v5874_v4 = vpop.eup %4478  ;;  %v2576_v1 = vmul.f32 %v4477_v12, %v5464_v7  ;;  %2888 = vmatpush.msra.mxu2 %v216_v35  ;;  %v2186_v7 = vsub.f32 %v6602_v25, %v5759_v63  ;;  %v2464_v12 = vsel %vm1935_vm1, %v5858_v53, 0.0  ;;  %v2300_v24 = vmul.f32 1.442695, %v2182_v52  ;;  %v6603_v35 = vld [vmem:[#allocation21_spill] sm:$0xff] }
 0x1b1   :  { %4486 = vrcp.f32 %v2331_v62  ;;  %4309 = vmatmul.msk.f32.vlgmr.msra.gmra.mxu1 %vm1935_vm1, %v2577_v37  ;;  %v2473_v3 = vsel %vm1935_vm1, %v5874_v4, 0.0  ;;  %v5895_v60 = vpop.eup %4480  ;;  %v2184_v38 = vsub.f32 %v6603_v35, %v5732_v50  ;;  %v2187_v52 = vsub.f32 %v5418_v42, %v5824_v11  ;;  %v217_v50 = vld [vmem:[%s6500_s2 + $0x58] sm:$0xff] }
 0x1b2   :  { %4488 = vpow2.f32 %v2302_v44  ;;  %4308 = vmatmul.msk.f32.vlgmr.msra.gmra.mxu0 %vm1935_vm1, %v2576_v1  ;;  %2468 = vadd.xlane.f32.xlu1 %v2467_v55  ;;  %v2308_v37 = vmul.f32 1.442695, %v2186_v7  ;;  %v2470_v42 = vsel %vm1935_vm1, %v5895_v60, 0.0 }
 0x1b3   :  { %2842 = vmatpush.msra.mxu0 %v214_v36  ;;  %2865 = vmatpush.msra.mxu1 %v215_v15  ;;  %4490 = vpow2.f32 %v2296_v46  ;;  %v2304_v55 = vmul.f32 1.442695, %v2184_v38  ;;  %v2310_v25 = vmul.f32 1.442695, %v2187_v52 }
 0x1b4   :  { %2465 = vadd.xlane.f32.xlu0 %v2464_v12  ;;  %2474 = vadd.xlane.f32.xlu2 %v2473_v3  ;;  %v4483_v44 = vpop.eup %4482  ;;  %v6604_v12 = vld [vmem:[#allocation24_spill] sm:$0xff] }
 0x1b5   :  { %v2340_v30 = vpop.xlane.xlu1 %2339  ;;  %v5897_v63 = vpop.eup %4484  ;;  %v2580_v15 = vmul.f32 %v4483_v44, %v5486_v9  ;;  %v218_v9 = vld [vmem:[%s6500_s2 + $0x60] sm:$0xff]  ;;  %v2188_v3 = vsub.f32 %v6604_v12, %v5781_v34 }
 0x1b6   :  { %4492 = vrcp.f32 %v2340_v30  ;;  %v220_v30 = vld [vmem:[%s6500_s2 + $0x70] sm:$0xff] }
 0x1b7   :  { %v4487_v62 = vpop.eup %4486  ;;  %4494 = vrcp.f32 %v2346_v2  ;;  %v2352_v6 = vpop.xlane.xlu0 %2351  ;;  %v2185_v2 = vsub.f32 %v5400_v5, %v5787_v40  ;;  %v2479_v5 = vsel %vm1935_vm1, %v5897_v63, 0.0 }
 0x1b8   :  { %v2337_v1 = vpop.xlane.xlu2 %2336  ;;  %v5901_v36 = vpop.eup %4488  ;;  %4496 = vpow2.f32 %v2300_v24  ;;  %v2579_v46 = vmul.f32 %v4487_v62, %v5488_v47 }
 0x1b9   :  { %4498 = vrcp.f32 %v2337_v1  ;;  %v5919_v47 = vpop.eup %4490  ;;  %v2485_v11 = vsel %vm1935_vm1, %v5901_v36, 0.0  ;;  %v2306_v38 = vmul.f32 1.442695, %v2185_v2 }
 0x1ba   :  { %4500 = vpow2.f32 %v2308_v37  ;;  %4311 = vmatmul.msk.f32.vlgmr.msra.gmra.mxu3 %vm1935_vm1, %v2579_v46  ;;  %4312 = vmatmul.msk.f32.vlgmr.msrb.gmra.mxu0 %vm1935_vm1, %v2580_v15  ;;  %v2190_v37 = vsub.f32 %v5439_v13, %v5813_v43  ;;  %v219_v15 = vld [vmem:[%s6500_s2 + $0x68] sm:$0xff]  ;;  %v2312_v46 = vmul.f32 1.442695, %v2188_v3 }
 0x1bb   :  { %2471 = vadd.xlane.f32.xlu1 %v2470_v42  ;;  %2911 = vmatpush.msra.mxu3 %v217_v50  ;;  %4502 = vrcp.f32 %v2352_v6  ;;  %v2191_v50 = vsub.f32 %v5443_v58, %v5826_v59 }
 0x1bc   :  { %v4493_v40 = vpop.eup %4492  ;;  %2486 = vadd.xlane.f32.xlu0 %v2485_v11  ;;  %2480 = vadd.xlane.f32.xlu2 %v2479_v5  ;;  %4504 = vpow2.f32 %v2304_v55  ;;  %v2316_v43 = vmul.f32 1.442695, %v2190_v37  ;;  %v224_v11 = vld [vmem:[%s6500_s2 + $0x90] sm:$0xff] }
 0x1bd   :  { %v4495_v7 = vpop.eup %4494  ;;  %v2582_v24 = vmul.f32 %v4493_v40, %v5510_v14  ;;  %v2349_v44 = vpop.xlane.xlu1 %2348  ;;  %2934 = vmatpush.msrb.mxu0 %v218_v9  ;;  %v6605_v40 = vld [vmem:[#allocation25_spill] sm:$0xff] }
 0x1be   :  { %v5931_v35 = vpop.eup %4496  ;;  %4506 = vrcp.f32 %v2349_v44  ;;  %v2584_v34 = vmul.f32 %v4495_v7, %v5494_v49  ;;  %v2476_v49 = vsel %vm1935_vm1, %v5919_v47, 0.0  ;;  %v2318_v7 = vmul.f32 1.442695, %v2191_v50 }
 0x1bf   :  { %v4499_v62 = vpop.eup %4498  ;;  %v2361_v6 = vpop.xlane.xlu0 %2360  ;;  %4314 = vmatmul.msk.f32.vlgmr.msrb.gmra.mxu2 %vm1935_vm1, %v2582_v24  ;;  %4508 = vpow2.f32 %v2310_v25  ;;  %v2482_v55 = vsel %vm1935_vm1, %v5931_v35, 0.0  ;;  %v2189_v25 = vsub.f32 %v6605_v40, %v5789_v21 }
 0x1c0   :  { %v2343_v1 = vpop.xlane.xlu2 %2342  ;;  %v5936_v14 = vpop.eup %4500  ;;  %v2581_v52 = vmul.f32 %v4499_v62, %v5512_v10  ;;  %2980 = vmatpush.msrb.mxu2 %v220_v30  ;;  %v222_v10 = vld [vmem:[%s6500_s2 + $0x80] sm:$0xff] }
 0x1c1   :  { %4510 = vrcp.f32 %v2343_v1  ;;  %v4503_v13 = vpop.eup %4502  ;;  %v2494_v2 = vsel %vm1935_vm1, %v5936_v14, 0.0  ;;  %v2314_v21 = vmul.f32 1.442695, %v2189_v25 }
 0x1c2   :  { %4512 = vpow2.f32 %v2306_v38  ;;  %4313 = vmatmul.msk.f32.vlgmr.msrb.gmra.mxu1 %vm1935_vm1, %v2581_v52  ;;  %4316 = vmatmul.msk.f32.vlgmr.msra.gmra.mxu0 %vm1935_vm1, %v2584_v34  ;;  %v5956_v58 = vpop.eup %4504  ;;  %v2586_v42 = vmul.f32 %v4503_v13, %v5518_v48  ;;  %v221_v38 = vld [vmem:[%s6500_s2 + $0x78] sm:$0xff] }
 0x1c3   :  { %2477 = vadd.xlane.f32.xlu1 %v2476_v49  ;;  %2957 = vmatpush.msrb.mxu1 %v219_v15  ;;  %4514 = vpow2.f32 %v2312_v46  ;;  %v2488_v62 = vsel %vm1935_vm1, %v5956_v58, 0.0 }
 0x1c4   :  { %2483 = vadd.xlane.f32.xlu2 %v2482_v55  ;;  %2495 = vadd.xlane.f32.xlu0 %v2494_v2  ;;  %v4507_v59 = vpop.eup %4506  ;;  %4516 = vpow2.f32 %v2316_v43 }
 0x1c5   :  { %v2355_v9 = vpop.xlane.xlu1 %2354  ;;  %3026 = vmatpush.msra.mxu0 %v222_v10  ;;  %v5962_v5 = vpop.eup %4508  ;;  %v2585_v44 = vmul.f32 %v4507_v59, %v5534_v22  ;;  %v223_v22 = vld [vmem:[%s6500_s2 + $0x88] sm:$0xff]  ;;  %v226_v59 = vld [vmem:[%s6500_s2 + $0xa0] sm:$0xff] }
 0x1c6   :  { %4518 = vrcp.f32 %v2355_v9  ;;  %v2497_v37 = vsel %vm1935_vm1, %v5962_v5, 0.0 }
 0x1c7   :  { %v4511_v12 = vpop.eup %4510  ;;  %v2367_v3 = vpop.xlane.xlu0 %2366  ;;  %4318 = vmatmul.msk.f32.vlgmr.msra.gmra.mxu2 %vm1935_vm1, %v2586_v42  ;;  %4520 = vrcp.f32 %v2361_v6  ;;  %v227_v42 = vld [vmem:[%s6500_s2 + $0xa8] sm:$0xff] }
 0x1c8   :  { %v2358_v24 = vpop.xlane.xlu2 %2357  ;;  %v5967_v48 = vpop.eup %4512  ;;  %v2583_v30 = vmul.f32 %v4511_v12, %v5536_v29  ;;  %3072 = vmatpush.msra.mxu2 %v224_v11 }
 0x1c9   :  { %4522 = vrcp.f32 %v2358_v24  ;;  %v5981_v29 = vpop.eup %4514  ;;  %v2491_v6 = vsel %vm1935_vm1, %v5967_v48, 0.0 }
 0x1ca   :  { %4524 = vpow2.f32 %v2318_v7  ;;  %4315 = vmatmul.msk.f32.vlgmr.msrb.gmra.mxu3 %vm1935_vm1, %v2583_v30  ;;  %4317 = vmatmul.msk.f32.vlgmr.msra.gmra.mxu1 %vm1935_vm1, %v2585_v44  ;;  %v5987_v1 = vpop.eup %4516 }
 0x1cb   :  { %2498 = vadd.xlane.f32.xlu1 %v2497_v37  ;;  %3003 = vmatpush.msrb.mxu3 %v221_v38  ;;  %4526 = vpow2.f32 %v2314_v21  ;;  %v2506_v2 = vsel %vm1935_vm1, %v5987_v1, 0.0  ;;  %v228_v38 = vld [vmem:[%s6500_s2 + $0xb0] sm:$0xff]  ;;  %v229_v21 = vld [vmem:[%s6500_s2 + $0xb8] sm:$0xff] }
 0x1cc   :  { %2489 = vadd.xlane.f32.xlu2 %v2488_v62  ;;  %2492 = vadd.xlane.f32.xlu0 %v2491_v6  ;;  %v4519_v34 = vpop.eup %4518  ;;  %4528 = vrcp.f32 %v2367_v3 }
 0x1cd   :  { %v2370_v52 = vpop.xlane.xlu1 %2369  ;;  %3049 = vmatpush.msra.mxu1 %v223_v22  ;;  %v4521_v15 = vpop.eup %4520  ;;  %v2587_v49 = vmul.f32 %v4519_v34, %v5558_v27  ;;  %v225_v27 = vld [vmem:[%s6500_s2 + $0x98] sm:$0xff] }
 0x1ce   :  { %4530 = vrcp.f32 %v2370_v52  ;;  %v2589_v55 = vmul.f32 %v4521_v15, %v5542_v31 }
 0x1cf   :  { %v4523_v46 = vpop.eup %4522  ;;  %v2382_v13 = vpop.xlane.xlu0 %2381 }
 0x1d0   :  { %v2364_v43 = vpop.xlane.xlu2 %2363  ;;  %v5989_v50 = vpop.eup %4524  ;;  %v2588_v10 = vmul.f32 %v4523_v46, %v5560_v8  ;;  %v2500_v8 = vsel %vm1935_vm1, %v5981_v29, 0.0  ;;  %v231_v46 = vld [vmem:[%s6500_s2 + $0xc8] sm:$0xff] }
 0x1d1   :  { %4532 = vrcp.f32 %v2364_v43  ;;  %v2509_v31 = vsel %vm1935_vm1, %v5989_v50, 0.0  ;;  %v6012_v9 = vpop.eup %4526  ;;  %v232_v43 = vld [vmem:[%s6500_s2 + $0xd0] sm:$0xff] }
 0x1d2   :  { %4319 = vmatmul.msk.f32.vlgmr.msra.gmra.mxu3 %vm1935_vm1, %v2587_v49  ;;  %4320 = vmatmul.msk.f32.vlgmr.msrb.gmra.mxu0 %vm1935_vm1, %v2588_v10  ;;  %v4529_v11 = vpop.eup %4528  ;;  %v234_v49 = vld [vmem:[%s6500_s2 + $0xe0] sm:$0xff] }
 0x1d3   :  { %4321 = vmatmul.msk.f32.vlgmr.msrb.gmra.mxu1 %vm1935_vm1, %v2589_v55  ;;  %2507 = vadd.xlane.f32.xlu1 %v2506_v2  ;;  %v2591_v24 = vmul.f32 %v4529_v11, %v5566_v23  ;;  %v2503_v23 = vsel %vm1935_vm1, %v6012_v9, 0.0  ;;  %v236_v11 = vld [vmem:[%s6500_s2 + $0xf0] sm:$0xff] }
 0x1d4   :  { %2510 = vadd.xlane.f32.xlu2 %v2509_v31  ;;  %2501 = vadd.xlane.f32.xlu0 %v2500_v8  ;;  %v4531_v25 = vpop.eup %4530  ;;  %v233_v31 = vld [vmem:[%s6500_s2 + $0xd8] sm:$0xff] }
 0x1d5   :  { %v2376_v40 = vpop.xlane.xlu1 %2375  ;;  %3118 = vmatpush.msrb.mxu0 %v226_v59  ;;  %3095 = vmatpush.msra.mxu3 %v225_v27  ;;  %v2592_v30 = vmul.f32 %v4531_v25, %v5582_v33  ;;  %v230_v33 = vld [vmem:[%s6500_s2 + $0xc0] sm:$0xff] }
 0x1d6   :  { %3141 = vmatpush.msrb.mxu1 %v227_v42  ;;  %4534 = vrcp.f32 %v2376_v40  ;;  %v235_v42 = vld [vmem:[%s6500_s2 + $0xe8] sm:$0xff] }
 0x1d7   :  { %v4533_v7 = vpop.eup %4532  ;;  %v2388_v12 = vpop.xlane.xlu0 %2387  ;;  %4536 = vrcp.f32 %v2382_v13 }
 0x1d8   :  { %v2373_v3 = vpop.xlane.xlu2 %2372  ;;  %v2590_v44 = vmul.f32 %v4533_v7, %v5584_v19 }
 0x1d9   :  { %4538 = vrcp.f32 %v2373_v3 }
 0x1da   :  { %4322 = vmatmul.msk.f32.vlgmr.msrb.gmra.mxu2 %vm1935_vm1, %v2590_v44  ;;  %4323 = vmatmul.msk.f32.vlgmr.msrb.gmra.mxu3 %vm1935_vm1, %v2591_v24  ;;  %v238_v24 = vld [vmem:[%s6500_s2 + $0x100] sm:$0xff] }
 0x1db   :  { %4324 = vmatmul.msk.f32.vlgmr.msra.gmra.mxu0 %vm1935_vm1, %v2592_v30  ;;  %2504 = vadd.xlane.f32.xlu1 %v2503_v23  ;;  %v237_v30 = vld [vmem:[%s6500_s2 + $0xf8] sm:$0xff] }
 0x1dc   :  { %3164 = vmatpush.msrb.mxu2 %v228_v38  ;;  %3187 = vmatpush.msrb.mxu3 %v229_v21  ;;  %v4535_v19 = vpop.eup %4534  ;;  %v239_v38 = vld [vmem:[%s6500_s2 + $0x108] sm:$0xff] }
 0x1dd   :  { %v2385_v37 = vpop.xlane.xlu1 %2384  ;;  %3210 = vmatpush.msra.mxu0 %v230_v33  ;;  %v4537_v22 = vpop.eup %4536  ;;  %v2594_v52 = vmul.f32 %v4535_v19, %v5606_v39 }
 0x1de   :  { %4540 = vrcp.f32 %v2385_v37  ;;  %v2596_v13 = vmul.f32 %v4537_v22, %v5590_v56  ;;  %v240_v22 = vld [vmem:[%s6500_s2 + $0x110] sm:$0xff] }
 0x1df   :  { %v4539_v62 = vpop.eup %4538  ;;  %v2397_v6 = vpop.xlane.xlu0 %2396  ;;  %4542 = vrcp.f32 %v2388_v12 }
 0x1e0   :  { %v2379_v34 = vpop.xlane.xlu2 %2378  ;;  %v2593_v15 = vmul.f32 %v4539_v62, %v5608_v61 }
 0x1e1   :  { %4544 = vrcp.f32 %v2379_v34  ;;  %v241_v34 = vld [vmem:[%s6500_s2 + $0x118] sm:$0xff] }
 0x1e2   :  { %4325 = vmatmul.msk.f32.vlgmr.msra.gmra.mxu1 %vm1935_vm1, %v2593_v15  ;;  %4326 = vmatmul.msk.f32.vlgmr.msra.gmra.mxu2 %vm1935_vm1, %v2594_v52 }
 0x1e3   :  { %4328 = vmatmul.msk.f32.vlgmr.msrb.gmra.mxu0 %vm1935_vm1, %v2596_v13  ;;  %3233 = vmatpush.msra.mxu1 %v231_v46  ;;  %v6606_v13 = vld [vmem:[#allocation27_spill] sm:$0xff] }
 0x1e4   :  { %3256 = vmatpush.msra.mxu2 %v232_v43  ;;  %3302 = vmatpush.msrb.mxu0 %v234_v49  ;;  %v4541_v39 = vpop.eup %4540  ;;  %v6607_v49 = vld [vmem:[#allocation28_spill] sm:$0xff] }
 0x1e5   :  { %v2391_v56 = vpop.xlane.xlu1 %2390  ;;  %v4543_v61 = vpop.eup %4542  ;;  %v2597_v59 = vmul.f32 %v4541_v39, %v5630_v45 }
 0x1e6   :  { %4546 = vrcp.f32 %v2391_v56  ;;  %v2598_v8 = vmul.f32 %v4543_v61, %v5614_v41  ;;  %v244_v56 = vld [vmem:[%s6500_s2 + $0x130] sm:$0xff]  ;;  %v6608_v61 = vld [vmem:[#allocation26_spill] sm:$0xff] }
 0x1e7   :  { %v4545_v10 = vpop.eup %4544  ;;  %v2403_v55 = vpop.xlane.xlu0 %2402  ;;  %4548 = vrcp.f32 %v2397_v6  ;;  %v242_v6 = vld [vmem:[%s6500_s2 + $0x120] sm:$0xff] }
 0x1e8   :  { %v2394_v2 = vpop.xlane.xlu2 %2393  ;;  %v2595_v27 = vmul.f32 %v4545_v10, %v5632_v0 }
 0x1e9   :  { %4550 = vrcp.f32 %v2394_v2  ;;  %v246_v2 = vld [vmem:[%s6500_s2 + $0x140] sm:$0xff] }
 0x1ea   :  { %4327 = vmatmul.msk.f32.vlgmr.msra.gmra.mxu3 %vm1935_vm1, %v2595_v27  ;;  %4329 = vmatmul.msk.f32.vlgmr.msrb.gmra.mxu1 %vm1935_vm1, %v2597_v59  ;;  %4552 = vrcp.f32 %v2403_v55  ;;  %v243_v55 = vld [vmem:[%s6500_s2 + $0x128] sm:$0xff] }
 0x1eb   :  { %4330 = vmatmul.msk.f32.vlgmr.msrb.gmra.mxu2 %vm1935_vm1, %v2598_v8  ;;  %3279 = vmatpush.msra.mxu3 %v233_v31 }
 0x1ec   :  { %3325 = vmatpush.msrb.mxu1 %v235_v42  ;;  %3348 = vmatpush.msrb.mxu2 %v236_v11  ;;  %v4547_v45 = vpop.eup %4546  ;;  %v6609_v11 = vld [vmem:[#allocation6_spill] sm:$0xff] }
 0x1ed   :  { %v2406_v41 = vpop.xlane.xlu1 %2405  ;;  %v4549_v0 = vpop.eup %4548  ;;  %v2599_v12 = vmul.f32 %v4547_v45, %v5654_v51 }
 0x1ee   :  { %4554 = vrcp.f32 %v2406_v41  ;;  %v2601_v44 = vmul.f32 %v4549_v0, %v5638_v26 }
 0x1ef   :  { %v4551_v40 = vpop.eup %4550  ;;  %v2418_v25 = vpop.xlane.xlu0 %2417 }
 0x1f0   :  { %v2400_v7 = vpop.xlane.xlu2 %2399  ;;  %v2600_v3 = vmul.f32 %v4551_v40, %v5656_v32  ;;  %v4553_v51 = vpop.eup %4552  ;;  %v6610_v40 = vld [vmem:[#allocation2_spill] sm:$0xff] }
 0x1f1   :  { %4556 = vrcp.f32 %v2400_v7  ;;  %v2603_v19 = vmul.f32 %v4553_v51, %v5662_v28  ;;  %v6611_v7 = vld [vmem:[#allocation4_spill] sm:$0xff]  ;;  %v250_v51 = vld [vmem:[%s6500_s2 + $0x160] sm:$0xff] }
 0x1f2   :  { %4331 = vmatmul.msk.f32.vlgmr.msrb.gmra.mxu3 %vm1935_vm1, %v2599_v12  ;;  %4332 = vmatmul.msk.f32.vlgmr.msra.gmra.mxu0 %vm1935_vm1, %v2600_v3  ;;  %v6612_v3 = vld [vmem:[#allocation29_spill] sm:$0xff] }
 0x1f3   :  { %4333 = vmatmul.msk.f32.vlgmr.msra.gmra.mxu1 %vm1935_vm1, %v2601_v44  ;;  %3394 = vmatpush.msra.mxu0 %v238_v24  ;;  %v245_v44 = vld [vmem:[%s6500_s2 + $0x138] sm:$0xff] }
 0x1f4   :  { %3371 = vmatpush.msrb.mxu3 %v237_v30  ;;  %3417 = vmatpush.msra.mxu1 %v239_v38  ;;  %v4555_v32 = vpop.eup %4554  ;;  %v247_v30 = vld [vmem:[%s6500_s2 + $0x148] sm:$0xff]  ;;  %v248_v38 = vld [vmem:[%s6500_s2 + $0x150] sm:$0xff] }
 0x1f5   :  { %v2412_v26 = vpop.xlane.xlu1 %2411  ;;  %v2604_v62 = vmul.f32 %v4555_v32, %v5678_v57 }
 0x1f6   :  { %4558 = vrcp.f32 %v2412_v26 }
 0x1f7   :  { %v4557_v21 = vpop.eup %4556  ;;  %v2424_v23 = vpop.xlane.xlu0 %2423  ;;  %4560 = vrcp.f32 %v2418_v25 }
 0x1f8   :  { %v2409_v33 = vpop.xlane.xlu2 %2408  ;;  %v2602_v37 = vmul.f32 %v4557_v21, %v5680_v17 }
 0x1f9   :  { %4562 = vrcp.f32 %v2409_v33 }
 0x1fa   :  { %4334 = vmatmul.msk.f32.vlgmr.msra.gmra.mxu2 %vm1935_vm1, %v2602_v37  ;;  %4335 = vmatmul.msk.f32.vlgmr.msra.gmra.mxu3 %vm1935_vm1, %v2603_v19  ;;  %4564 = vrcp.f32 %v2424_v23  ;;  %v6613_v19 = vld [vmem:[#allocation3_spill] sm:$0xff] }
 0x1fb   :  { %4336 = vmatmul.msk.f32.vlgmr.msrb.gmra.mxu0 %vm1935_vm1, %v2604_v62  ;;  %3440 = vmatpush.msra.mxu2 %v240_v22  ;;  %v6614_v22 = vld [vmem:[#allocation7_spill] sm:$0xff] }
 0x1fc   :  { %3486 = vmatpush.msrb.mxu0 %v242_v6  ;;  %3463 = vmatpush.msra.mxu3 %v241_v34  ;;  %v4559_v28 = vpop.eup %4558  ;;  %v249_v6 = vld [vmem:[%s6500_s2 + $0x158] sm:$0xff]  ;;  %v252_v34 = vld [vmem:[%s6500_s2 + $0x170] sm:$0xff] }
 0x1fd   :  { %v2421_v57 = vpop.xlane.xlu1 %2420  ;;  %v4561_v17 = vpop.eup %4560  ;;  %v2606_v43 = vmul.f32 %v4559_v28, %v6606_v13 }
 0x1fe   :  { %4566 = vrcp.f32 %v2421_v57  ;;  %v2608_v10 = vmul.f32 %v4561_v17, %v6608_v61 }
 0x1ff   :  { %v4563_v52 = vpop.eup %4562  ;;  %v2430_v15 = vpop.xlane.xlu0 %2429 }
 0x200   :  { %v2415_v46 = vpop.xlane.xlu2 %2414  ;;  %v2605_v39 = vmul.f32 %v4563_v52, %v6607_v49  ;;  %4568 = vrcp.f32 %v2430_v15  ;;  %v4565_v59 = vpop.eup %4564  ;;  %v251_v15 = vld [vmem:[%s6500_s2 + $0x168] sm:$0xff] }
 0x201   :  { %4570 = vrcp.f32 %v2415_v46  ;;  %v2610_v24 = vmul.f32 %v4565_v59, %v6612_v3 }
 0x202   :  { %4337 = vmatmul.msk.f32.vlgmr.msrb.gmra.mxu1 %vm1935_vm1, %v2605_v39  ;;  %4338 = vmatmul.msk.f32.vlgmr.msrb.gmra.mxu2 %vm1935_vm1, %v2606_v43  ;;  %v6615_v43 = vld [vmem:[#allocation10_spill] sm:$0xff]  ;;  %v253_v39 = vld [vmem:[%s6500_s2 + $0x178] sm:$0xff] }
 0x203   :  { %4340 = vmatmul.msk.f32.vlgmr.msra.gmra.mxu0 %vm1935_vm1, %v2608_v10  ;;  %3532 = vmatpush.msrb.mxu2 %v244_v56 }
 0x204   :  { %3509 = vmatpush.msrb.mxu1 %v243_v55  ;;  %3578 = vmatpush.msra.mxu0 %v246_v2  ;;  %v4567_v27 = vpop.eup %4566  ;;  %v6616_v55 = vld [vmem:[#allocation8_spill] sm:$0xff] }
 0x205   :  { %v2427_v31 = vpop.xlane.xlu1 %2426  ;;  %v2609_v25 = vmul.f32 %v4567_v27, %v6610_v40  ;;  %v255_v27 = vld [vmem:[%s6500_s2 + $0x188] sm:$0xff]  ;;  %v256_v40 = vld [vmem:[%s6500_s2 + $0x190] sm:$0xff] }
 0x206   :  { %v4569_v8 = vpop.eup %4568  ;;  %4572 = vrcp.f32 %v2427_v31  ;;  %v254_v31 = vld [vmem:[%s6500_s2 + $0x180] sm:$0xff] }
 0x207   :  { %v4571_v42 = vpop.eup %4570  ;;  %v2612_v45 = vmul.f32 %v4569_v8, %v6609_v11  ;;  %v2439_v41 = vpop.xlane.xlu0 %2438 }
 0x208   :  { %v2436_v0 = vpop.xlane.xlu2 %2435  ;;  %v2607_v12 = vmul.f32 %v4571_v42, %v6611_v7  ;;  %v6618_v7 = vld [vmem:[#allocation11_spill] sm:$0xff] }
 0x209   :  { %4574 = vrcp.f32 %v2436_v0  ;;  %v257_v0 = vld [vmem:[%s6500_s2 + $0x198] sm:$0xff] }
 0x20a   :  { %4339 = vmatmul.msk.f32.vlgmr.msrb.gmra.mxu3 %vm1935_vm1, %v2607_v12  ;;  %4341 = vmatmul.msk.f32.vlgmr.msra.gmra.mxu1 %vm1935_vm1, %v2609_v25 }
 0x20b   :  { %4342 = vmatmul.msk.f32.vlgmr.msra.gmra.mxu2 %vm1935_vm1, %v2610_v24  ;;  %4344 = vmatmul.msk.f32.vlgmr.msrb.gmra.mxu0 %vm1935_vm1, %v2612_v45  ;;  %v259_v24 = vld [vmem:[%s6500_s2 + $0x1a8] sm:$0xff] }
 0x20c   :  { %3555 = vmatpush.msrb.mxu3 %v245_v44  ;;  %3601 = vmatpush.msra.mxu1 %v247_v30  ;;  %v4573_v26 = vpop.eup %4572 }
 0x20d   :  { %v2433_v32 = vpop.xlane.xlu1 %2432  ;;  %3624 = vmatpush.msra.mxu2 %v248_v38  ;;  %3670 = vmatpush.msrb.mxu0 %v250_v51  ;;  %v2611_v37 = vmul.f32 %v4573_v26, %v6613_v19  ;;  %v6619_v38 = vld [vmem:[#allocation12_spill] sm:$0xff]  ;;  %v6621_v19 = vld [vmem:[#allocation14_spill] sm:$0xff] }
 0x20e   :  { %4576 = vrcp.f32 %v2433_v32 }
 0x20f   :  { %v4575_v21 = vpop.eup %4574  ;;  %4578 = vrcp.f32 %v2439_v41  ;;  %v2451_v23 = vpop.xlane.xlu0 %2450 }
 0x210   :  { %v2445_v33 = vpop.xlane.xlu2 %2444  ;;  %v2614_v62 = vmul.f32 %v4575_v21, %v6614_v22  ;;  %v6620_v21 = vld [vmem:[#allocation9_spill] sm:$0xff] }
 0x211   :  { %4580 = vrcp.f32 %v2445_v33  ;;  %v260_v33 = vld [vmem:[%s6500_s2 + $0x1b0] sm:$0xff]  ;;  %v261_v22 = vld [vmem:[%s6500_s2 + $0x1b8] sm:$0xff] }
 0x212   :  { %4343 = vmatmul.msk.f32.vlgmr.msra.gmra.mxu3 %vm1935_vm1, %v2611_v37 }
 0x213   :  { %4346 = vmatmul.msk.f32.vlgmr.msrb.gmra.mxu2 %vm1935_vm1, %v2614_v62  ;;  %3647 = vmatpush.msra.mxu3 %v249_v6  ;;  %v258_v62 = vld [vmem:[%s6500_s2 + $0x1a0] sm:$0xff] }
 0x214   :  { %v4577_v28 = vpop.eup %4576  ;;  %3716 = vmatpush.msrb.mxu2 %v252_v34 }
 0x215   :  { %v4579_v57 = vpop.eup %4578  ;;  %v2613_v17 = vmul.f32 %v4577_v28, %v5783_v54  ;;  %v2442_v52 = vpop.xlane.xlu1 %2441  ;;  %v263_v28 = vld [vmem:[%s6500_s2 + $0x1c8] sm:$0xff] }
 0x216   :  { %4582 = vrcp.f32 %v2442_v52  ;;  %v2615_v49 = vmul.f32 %v4579_v57, %v6615_v43 }
 0x217   :  { %4584 = vrcp.f32 %v2451_v23  ;;  %v2457_v46 = vpop.xlane.xlu0 %2456  ;;  %4345 = vmatmul.msk.f32.vlgmr.msrb.gmra.mxu1 %vm1935_vm1, %v2613_v17  ;;  %v4581_v54 = vpop.eup %4580 }
 0x218   :  { %v2448_v13 = vpop.xlane.xlu2 %2447  ;;  %3693 = vmatpush.msrb.mxu1 %v251_v15  ;;  %v2617_v10 = vmul.f32 %v4581_v54, %v5785_v20  ;;  %v6617_v20 = vld [vmem:[#allocation5_spill] sm:$0xff] }
 0x219   :  { %4586 = vrcp.f32 %v2448_v13 }
 0x21a   :  { %4347 = vmatmul.msk.f32.vlgmr.msrb.gmra.mxu3 %vm1935_vm1, %v2615_v49  ;;  %4588 = vrcp.f32 %v2457_v46 }
 0x21b   :  { %3739 = vmatpush.msrb.mxu3 %v253_v39  ;;  %v265_v39 = vld [vmem:[%s6500_s2 + $0x1d8] sm:$0xff] }
 0x21c   :  { %v4583_v56 = vpop.eup %4582 }
 0x21d   :  { %v4585_v61 = vpop.eup %4584  ;;  %v2616_v2 = vmul.f32 %v4583_v56, %v6616_v55  ;;  %v2463_v59 = vpop.xlane.xlu1 %2462  ;;  %v264_v55 = vld [vmem:[%s6500_s2 + $0x1d0] sm:$0xff] }
 0x21e   :  { %4590 = vrcp.f32 %v2463_v59  ;;  %v2619_v45 = vmul.f32 %v4585_v61, %v6617_v20 }
 0x21f   :  { %v4587_v8 = vpop.eup %4586  ;;  %v2460_v42 = vpop.xlane.xlu0 %2459  ;;  %4348 = vmatmul.msk.f32.vlgmr.msra.gmra.mxu0 %vm1935_vm1, %v2616_v2  ;;  %4349 = vmatmul.msk.f32.vlgmr.msra.gmra.mxu1 %vm1935_vm1, %v2617_v10 }
 0x220   :  { %v2454_v11 = vpop.xlane.xlu2 %2453  ;;  %v2618_v41 = vmul.f32 %v4587_v8, %v5820_v18  ;;  %4592 = vrcp.f32 %v2460_v42  ;;  %3785 = vmatpush.msra.mxu1 %v255_v27  ;;  %3762 = vmatpush.msra.mxu0 %v254_v31  ;;  %v4589_v25 = vpop.eup %4588 }
 0x221   :  { %4594 = vrcp.f32 %v2454_v11  ;;  %v2621_v12 = vmul.f32 %v4589_v25, %v6618_v7 }
 0x222   :  { %4350 = vmatmul.msk.f32.vlgmr.msra.gmra.mxu2 %vm1935_vm1, %v2618_v41  ;;  %4351 = vmatmul.msk.f32.vlgmr.msra.gmra.mxu3 %vm1935_vm1, %v2619_v45  ;;  %v266_v41 = vld [vmem:[%s6500_s2 + $0x1e0] sm:$0xff] }
 0x223   :  { %3831 = vmatpush.msra.mxu3 %v257_v0  ;;  %3808 = vmatpush.msra.mxu2 %v256_v40 }
 0x224   :  { %v4591_v18 = vpop.eup %4590 }
 0x225   :  { %v2469_v3 = vpop.xlane.xlu1 %2468  ;;  %v2623_v37 = vmul.f32 %v4591_v18, %v6621_v19 }
 0x226   :  { %v4593_v44 = vpop.eup %4592  ;;  %4596 = vrcp.f32 %v2469_v3 }
 0x227   :  { %v4595_v30 = vpop.eup %4594  ;;  %v2622_v51 = vmul.f32 %v4593_v44, %v6619_v38  ;;  %v2466_v26 = vpop.xlane.xlu0 %2465  ;;  %4353 = vmatmul.msk.f32.vlgmr.msrb.gmra.mxu1 %vm1935_vm1, %v2621_v12  ;;  %v268_v12 = vld [vmem:[%s6500_s2 + $0x1f0] sm:$0xff] }
 0x228   :  { %v2475_v32 = vpop.xlane.xlu2 %2474  ;;  %v2620_v23 = vmul.f32 %v4595_v30, %v6620_v21  ;;  %4598 = vrcp.f32 %v2466_v26  ;;  %3877 = vmatpush.msrb.mxu1 %v259_v24 }
 0x229   :  { %4600 = vrcp.f32 %v2475_v32 }
 0x22a   :  { %4352 = vmatmul.msk.f32.vlgmr.msrb.gmra.mxu0 %vm1935_vm1, %v2620_v23  ;;  %4354 = vmatmul.msk.f32.vlgmr.msrb.gmra.mxu2 %vm1935_vm1, %v2622_v51 }
 0x22b   :  { %4355 = vmatmul.msk.f32.vlgmr.msrb.gmra.mxu3 %vm1935_vm1, %v2623_v37  ;;  %3900 = vmatpush.msrb.mxu2 %v260_v33 }
 0x22c   :  { %v4597_v6 = vpop.eup %4596  ;;  %3923 = vmatpush.msrb.mxu3 %v261_v22  ;;  %3854 = vmatpush.msrb.mxu0 %v258_v62 }
 0x22d   :  { %v2625_v34 = vmul.f32 %v4597_v6, %v5864_v16 }
 0x22e   :  { %v4599_v57 = vpop.eup %4598  ;;  %v2472_v17 = vpop.xlane.xlu1 %2471 }
 0x22f   :  { %v2683_v52 = vpop.f32.mrf.mxu1  ;;  %v4601_v15 = vpop.eup %4600  ;;  %v2624_v46 = vmul.f32 %v4599_v57, %v5858_v53  ;;  %4602 = vrcp.f32 %v2472_v17  ;;  %4357 = vmatmul.msk.f32.vlgmr.msra.gmra.mxu1 %vm1935_vm1, %v2625_v34  ;;  %v262_v53 = vld [vmem:[%s6500_s2 + $0x1c0] sm:$0xff] }
 0x230   :  { %v2660_v13 = vpop.f32.mrf.mxu0  ;;  %4113 = vst.msk [vmem:[%s6501_s3 + $0x8] sm:$0xff] %vm270_vm0, %v2683_v52  ;;  %v2487_v43 = vpop.xlane.xlu0 %2486  ;;  %v2627_v16 = vmul.f32 %v4601_v15, %v5874_v4  ;;  %3969 = vmatpush.msra.mxu1 %v263_v28 }
 0x231   :  { %4112 = vst.msk [vmem:[%s6501_s3] sm:$0xff] %vm270_vm0, %v2660_v13  ;;  %4604 = vrcp.f32 %v2487_v43  ;;  %v2481_v49 = vpop.xlane.xlu2 %2480 }
 0x232   :  { %4606 = vrcp.f32 %v2481_v49  ;;  %4356 = vmatmul.msk.f32.vlgmr.msra.gmra.mxu0 %vm1935_vm1, %v2624_v46  ;;  %v2706_v4 = vpop.f32.mrf.mxu2 }
 0x233   :  { %4359 = vmatmul.msk.f32.vlgmr.msra.gmra.mxu3 %vm1935_vm1, %v2627_v16  ;;  %4114 = vst.msk [vmem:[%s6501_s3 + $0x10] sm:$0xff] %vm270_vm0, %v2706_v4  ;;  %3946 = vmatpush.msra.mxu0 %v262_v53 }
 0x234   :  { %4015 = vmatpush.msra.mxu3 %v265_v39 }
 0x235   :  { %v4603_v54 = vpop.eup %4602 }
 0x236   :  { %v2626_v61 = vmul.f32 %v4603_v54, %v5895_v60  ;;  %v2478_v10 = vpop.xlane.xlu1 %2477  ;;  %v267_v60 = vld [vmem:[%s6500_s2 + $0x1e8] sm:$0xff] }
 0x237   :  { %v4605_v56 = vpop.eup %4604  ;;  %4608 = vrcp.f32 %v2478_v10 }
 0x238   :  { %v4607_v2 = vpop.eup %4606  ;;  %v2631_v59 = vmul.f32 %v4605_v56, %v5901_v36  ;;  %v2752_v27 = vpop.f32.mrf.mxu0  ;;  %4358 = vmatmul.msk.f32.vlgmr.msra.gmra.mxu2 %vm1935_vm1, %v2626_v61  ;;  %v269_v36 = vld [vmem:[%s6500_s2 + $0x1f8] sm:$0xff] }
 0x239   :  { %v2496_v31 = vpop.xlane.xlu0 %2495  ;;  %v2629_v8 = vmul.f32 %v4607_v2, %v5897_v63  ;;  %4116 = vst.msk [vmem:[%s6501_s3 + $0x20] sm:$0xff] %vm270_vm0, %v2752_v27  ;;  %v2484_v42 = vpop.xlane.xlu2 %2483  ;;  %3992 = vmatpush.msra.mxu2 %v264_v55 }
 0x23a   :  { %4610 = vrcp.f32 %v2484_v42 }
 0x23b   :  { %4361 = vmatmul.msk.f32.vlgmr.msrb.gmra.mxu1 %vm1935_vm1, %v2629_v8  ;;  %4363 = vmatmul.msk.f32.vlgmr.msrb.gmra.mxu3 %vm1935_vm1, %v2631_v59  ;;  %4612 = vrcp.f32 %v2496_v31 }
 0x23c   :  { %4061 = vmatpush.msrb.mxu1 %v267_v60  ;;  %4107 = vmatpush.msrb.mxu3 %v269_v36 }
 0x23d   :  { %v4609_v63 = vpop.eup %4608  ;;  %v2729_v11 = vpop.f32.mrf.mxu3 }
 0x23e   :  { %v2628_v20 = vmul.f32 %v4609_v63, %v5919_v47  ;;  %4115 = vst.msk [vmem:[%s6501_s3 + $0x18] sm:$0xff] %vm270_vm0, %v2729_v11  ;;  %v2499_v45 = vpop.xlane.xlu1 %2498 }
 0x23f   :  { %4614 = vrcp.f32 %v2499_v45  ;;  %v2775_v40 = vpop.f32.mrf.mxu1 }
 0x240   :  { %v4611_v0 = vpop.eup %4610  ;;  %v2844_v25 = vpop.f32.mrf.mxu0  ;;  %4117 = vst.msk [vmem:[%s6501_s3 + $0x28] sm:$0xff] %vm270_vm0, %v2775_v40  ;;  %4360 = vmatmul.msk.f32.vlgmr.msrb.gmra.mxu0 %vm1935_vm1, %v2628_v20 }
 0x241   :  { %v2630_v18 = vmul.f32 %v4611_v0, %v5931_v35  ;;  %v2493_v47 = vpop.xlane.xlu0 %2492  ;;  %v2490_v7 = vpop.xlane.xlu2 %2489  ;;  %4120 = vst.msk [vmem:[%s6501_s3 + $0x40] sm:$0xff] %vm270_vm0, %v2844_v25  ;;  %4038 = vmatpush.msrb.mxu0 %v266_v41 }
 0x242   :  { %4616 = vrcp.f32 %v2493_v47  ;;  %v2798_v35 = vpop.f32.mrf.mxu2  ;;  %v4613_v3 = vpop.eup %4612 }
 0x243   :  { %4618 = vrcp.f32 %v2490_v7  ;;  %4362 = vmatmul.msk.f32.vlgmr.msrb.gmra.mxu2 %vm1935_vm1, %v2630_v18  ;;  %4118 = vst.msk [vmem:[%s6501_s3 + $0x30] sm:$0xff] %vm270_vm0, %v2798_v35  ;;  %v2634_v32 = vmul.f32 %v4613_v3, %v5936_v14 }
 0x244   :  { %4084 = vmatpush.msrb.mxu2 %v268_v12 }
 0x245   :  { %v4615_v24 = vpop.eup %4614 }
 0x246   :  { %v2635_v44 = vmul.f32 %v4615_v24, %v5962_v5  ;;  %v2508_v30 = vpop.xlane.xlu1 %2507 }
 0x247   :  { %4620 = vrcp.f32 %v2508_v30  ;;  %v2867_v51 = vpop.f32.mrf.mxu1 }
 0x248   :  { %v4617_v38 = vpop.eup %4616  ;;  %4121 = vst.msk [vmem:[%s6501_s3 + $0x48] sm:$0xff] %vm270_vm0, %v2867_v51  ;;  %4367 = vmatmul.msk.f32.vlgmr.msra.gmra.mxu3 %vm1935_vm1, %v2635_v44 }
 0x249   :  { %v4619_v26 = vpop.eup %4618  ;;  %v2633_v21 = vmul.f32 %v4617_v38, %v5967_v48  ;;  %v2511_v23 = vpop.xlane.xlu2 %2510 }
 0x24a   :  { %v2502_v33 = vpop.xlane.xlu0 %2501  ;;  %v2632_v5 = vmul.f32 %v4619_v26, %v5956_v58  ;;  %4622 = vrcp.f32 %v2511_v23  ;;  %v2890_v14 = vpop.f32.mrf.mxu2 }
 0x24b   :  { %4624 = vrcp.f32 %v2502_v33  ;;  %4365 = vmatmul.msk.f32.vlgmr.msra.gmra.mxu1 %vm1935_vm1, %v2633_v21  ;;  %4366 = vmatmul.msk.f32.vlgmr.msra.gmra.mxu2 %vm1935_vm1, %v2634_v32  ;;  %4122 = vst.msk [vmem:[%s6501_s3 + $0x50] sm:$0xff] %vm270_vm0, %v2890_v14 }
 0x24c   :  { %4364 = vmatmul.msk.f32.vlgmr.msra.gmra.mxu0 %vm1935_vm1, %v2632_v5 }
 0x24d   :  { %v4621_v48 = vpop.eup %4620  ;;  %v2821_v19 = vpop.f32.mrf.mxu3 }
 0x24e   :  { %4119 = vst.msk [vmem:[%s6501_s3 + $0x38] sm:$0xff] %vm270_vm0, %v2821_v19  ;;  %v2505_v58 = vpop.xlane.xlu1 %2504  ;;  %v2638_v6 = vmul.f32 %v4621_v48, %v5987_v1 }
 0x24f   :  { %4626 = vrcp.f32 %v2505_v58  ;;  %v2936_v22 = vpop.f32.mrf.mxu0 }
 0x250   :  { %v4623_v37 = vpop.eup %4622  ;;  %4124 = vst.msk [vmem:[%s6501_s3 + $0x60] sm:$0xff] %vm270_vm0, %v2936_v22  ;;  %v2959_v28 = vpop.f32.mrf.mxu1 }
 0x251   :  { %v4625_v62 = vpop.eup %4624  ;;  %v2639_v34 = vmul.f32 %v4623_v37, %v5989_v50  ;;  %4125 = vst.msk [vmem:[%s6501_s3 + $0x68] sm:$0xff] %vm270_vm0, %v2959_v28 }
 0x252   :  { %v2636_v57 = vmul.f32 %v4625_v62, %v5981_v29 }
 0x253   :  { %4370 = vmatmul.msk.f32.vlgmr.msrb.gmra.mxu2 %vm1935_vm1, %v2638_v6  ;;  %4371 = vmatmul.msk.f32.vlgmr.msrb.gmra.mxu3 %vm1935_vm1, %v2639_v34 }
 0x254   :  { %4368 = vmatmul.msk.f32.vlgmr.msrb.gmra.mxu0 %vm1935_vm1, %v2636_v57 }
 0x255   :  { %v4627_v1 = vpop.eup %4626  ;;  %v2913_v50 = vpop.f32.mrf.mxu3 }
 0x256   :  { %v2637_v17 = vmul.f32 %v4627_v1, %v6012_v9  ;;  %4123 = vst.msk [vmem:[%s6501_s3 + $0x58] sm:$0xff] %vm270_vm0, %v2913_v50 }
 0x258   :  { %v3028_v29 = vpop.f32.mrf.mxu0  ;;  %4369 = vmatmul.msk.f32.vlgmr.msrb.gmra.mxu1 %vm1935_vm1, %v2637_v17 }
 0x259   :  { %4128 = vst.msk [vmem:[%s6501_s3 + $0x80] sm:$0xff] %vm270_vm0, %v3028_v29 }
 0x25d   :  { %v2982_v52 = vpop.f32.mrf.mxu2  ;;  %v3005_v15 = vpop.f32.mrf.mxu3 }
 0x25e   :  { %4126 = vst.msk [vmem:[%s6501_s3 + $0x70] sm:$0xff] %vm270_vm0, %v2982_v52 }
 0x25f   :  { %4127 = vst.msk [vmem:[%s6501_s3 + $0x78] sm:$0xff] %vm270_vm0, %v3005_v15  ;;  %v3051_v9 = vpop.f32.mrf.mxu1 }
 0x260   :  { %4129 = vst.msk [vmem:[%s6501_s3 + $0x88] sm:$0xff] %vm270_vm0, %v3051_v9  ;;  %v3120_v46 = vpop.f32.mrf.mxu0 }
 0x261   :  { %4132 = vst.msk [vmem:[%s6501_s3 + $0xa0] sm:$0xff] %vm270_vm0, %v3120_v46 }
 0x265   :  { %v3074_v13 = vpop.f32.mrf.mxu2 }
 0x266   :  { %4130 = vst.msk [vmem:[%s6501_s3 + $0x90] sm:$0xff] %vm270_vm0, %v3074_v13 }
 0x267   :  { %v3143_v43 = vpop.f32.mrf.mxu1 }
 0x268   :  { %4133 = vst.msk [vmem:[%s6501_s3 + $0xa8] sm:$0xff] %vm270_vm0, %v3143_v43 }
 0x26d   :  { %v3097_v16 = vpop.f32.mrf.mxu3 }
 0x26e   :  { %4131 = vst.msk [vmem:[%s6501_s3 + $0x98] sm:$0xff] %vm270_vm0, %v3097_v16  ;;  %v3166_v49 = vpop.f32.mrf.mxu2 }
 0x26f   :  { %4134 = vst.msk [vmem:[%s6501_s3 + $0xb0] sm:$0xff] %vm270_vm0, %v3166_v49  ;;  %v3212_v53 = vpop.f32.mrf.mxu0 }
 0x270   :  { %4136 = vst.msk [vmem:[%s6501_s3 + $0xc0] sm:$0xff] %vm270_vm0, %v3212_v53  ;;  %v3235_v39 = vpop.f32.mrf.mxu1 }
 0x271   :  { %4137 = vst.msk [vmem:[%s6501_s3 + $0xc8] sm:$0xff] %vm270_vm0, %v3235_v39 }
 0x275   :  { %v3189_v4 = vpop.f32.mrf.mxu3 }
 0x276   :  { %4135 = vst.msk [vmem:[%s6501_s3 + $0xb8] sm:$0xff] %vm270_vm0, %v3189_v4 }
 0x278   :  { %v3304_v54 = vpop.f32.mrf.mxu0 }
 0x279   :  { %4140 = vst.msk [vmem:[%s6501_s3 + $0xe0] sm:$0xff] %vm270_vm0, %v3304_v54 }
 0x27d   :  { %v3258_v56 = vpop.f32.mrf.mxu2  ;;  %v3281_v61 = vpop.f32.mrf.mxu3 }
 0x27e   :  { %4138 = vst.msk [vmem:[%s6501_s3 + $0xd0] sm:$0xff] %vm270_vm0, %v3258_v56 }
 0x27f   :  { %4139 = vst.msk [vmem:[%s6501_s3 + $0xd8] sm:$0xff] %vm270_vm0, %v3281_v61  ;;  %v3327_v10 = vpop.f32.mrf.mxu1 }
 0x280   :  { %4141 = vst.msk [vmem:[%s6501_s3 + $0xe8] sm:$0xff] %vm270_vm0, %v3327_v10  ;;  %v3396_v55 = vpop.f32.mrf.mxu0 }
 0x281   :  { %4144 = vst.msk [vmem:[%s6501_s3 + $0x100] sm:$0xff] %vm270_vm0, %v3396_v55 }
 0x285   :  { %v3350_v2 = vpop.f32.mrf.mxu2 }
 0x286   :  { %4142 = vst.msk [vmem:[%s6501_s3 + $0xf0] sm:$0xff] %vm270_vm0, %v3350_v2 }
 0x287   :  { %v3419_v59 = vpop.f32.mrf.mxu1 }
 0x288   :  { %4145 = vst.msk [vmem:[%s6501_s3 + $0x108] sm:$0xff] %vm270_vm0, %v3419_v59  ;;  %v3488_v27 = vpop.f32.mrf.mxu0 }
 0x289   :  { %4148 = vst.msk [vmem:[%s6501_s3 + $0x120] sm:$0xff] %vm270_vm0, %v3488_v27 }
 0x28d   :  { %v3373_v31 = vpop.f32.mrf.mxu3 }
 0x28e   :  { %4143 = vst.msk [vmem:[%s6501_s3 + $0xf8] sm:$0xff] %vm270_vm0, %v3373_v31  ;;  %v3442_v8 = vpop.f32.mrf.mxu2 }
 0x28f   :  { %4146 = vst.msk [vmem:[%s6501_s3 + $0x110] sm:$0xff] %vm270_vm0, %v3442_v8 }
 0x294   :  { %v3511_v42 = vpop.f32.mrf.mxu1 }
 0x295   :  { %v3465_v60 = vpop.f32.mrf.mxu3  ;;  %4149 = vst.msk [vmem:[%s6501_s3 + $0x128] sm:$0xff] %vm270_vm0, %v3511_v42 }
 0x296   :  { %4147 = vst.msk [vmem:[%s6501_s3 + $0x118] sm:$0xff] %vm270_vm0, %v3465_v60  ;;  %v3534_v36 = vpop.f32.mrf.mxu2 }
 0x297   :  { %4150 = vst.msk [vmem:[%s6501_s3 + $0x130] sm:$0xff] %vm270_vm0, %v3534_v36 }
 0x29c   :  { %v3580_v63 = vpop.f32.mrf.mxu0  ;;  %v3603_v11 = vpop.f32.mrf.mxu1 }
 0x29d   :  { %v3557_v20 = vpop.f32.mrf.mxu3  ;;  %4152 = vst.msk [vmem:[%s6501_s3 + $0x140] sm:$0xff] %vm270_vm0, %v3580_v63 }
 0x29e   :  { %4151 = vst.msk [vmem:[%s6501_s3 + $0x138] sm:$0xff] %vm270_vm0, %v3557_v20 }
 0x29f   :  { %4153 = vst.msk [vmem:[%s6501_s3 + $0x148] sm:$0xff] %vm270_vm0, %v3603_v11 }
 0x2a4   :  { %v3695_v45 = vpop.f32.mrf.mxu1 }
 0x2a5   :  { %v3626_v41 = vpop.f32.mrf.mxu2  ;;  %v3649_v0 = vpop.f32.mrf.mxu3  ;;  %4157 = vst.msk [vmem:[%s6501_s3 + $0x168] sm:$0xff] %vm270_vm0, %v3695_v45 }
 0x2a6   :  { %4154 = vst.msk [vmem:[%s6501_s3 + $0x150] sm:$0xff] %vm270_vm0, %v3626_v41 }
 0x2a7   :  { %4155 = vst.msk [vmem:[%s6501_s3 + $0x158] sm:$0xff] %vm270_vm0, %v3649_v0  ;;  %v3672_v40 = vpop.f32.mrf.mxu0 }
 0x2a8   :  { %4156 = vst.msk [vmem:[%s6501_s3 + $0x160] sm:$0xff] %vm270_vm0, %v3672_v40 }
 0x2ac   :  { %v3787_v25 = vpop.f32.mrf.mxu1 }
 0x2ad   :  { %v3718_v18 = vpop.f32.mrf.mxu2  ;;  %4161 = vst.msk [vmem:[%s6501_s3 + $0x188] sm:$0xff] %vm270_vm0, %v3787_v25 }
 0x2ae   :  { %4158 = vst.msk [vmem:[%s6501_s3 + $0x170] sm:$0xff] %vm270_vm0, %v3718_v18  ;;  %v3741_v47 = vpop.f32.mrf.mxu3 }
 0x2af   :  { %4159 = vst.msk [vmem:[%s6501_s3 + $0x178] sm:$0xff] %vm270_vm0, %v3741_v47  ;;  %v3764_v7 = vpop.f32.mrf.mxu0 }
 0x2b0   :  { %4160 = vst.msk [vmem:[%s6501_s3 + $0x180] sm:$0xff] %vm270_vm0, %v3764_v7 }
 0x2b6   :  { %v3833_v12 = vpop.f32.mrf.mxu3 }
 0x2b7   :  { %4163 = vst.msk [vmem:[%s6501_s3 + $0x198] sm:$0xff] %vm270_vm0, %v3833_v12 }
 0x2b8   :  { %v3879_v35 = vpop.f32.mrf.mxu1 }
 0x2b9   :  { %4165 = vst.msk [vmem:[%s6501_s3 + $0x1a8] sm:$0xff] %vm270_vm0, %v3879_v35 }
 0x2bb   :  { %v3810_v3 = vpop.f32.mrf.mxu2 }
 0x2bc   :  { %4162 = vst.msk [vmem:[%s6501_s3 + $0x190] sm:$0xff] %vm270_vm0, %v3810_v3 }
 0x2bd   :  { %v3856_v24 = vpop.f32.mrf.mxu0 }
 0x2be   :  { %4164 = vst.msk [vmem:[%s6501_s3 + $0x1a0] sm:$0xff] %vm270_vm0, %v3856_v24  ;;  %v3925_v44 = vpop.f32.mrf.mxu3 }
 0x2bf   :  { %4167 = vst.msk [vmem:[%s6501_s3 + $0x1b8] sm:$0xff] %vm270_vm0, %v3925_v44 }
 0x2c6   :  { %v3902_v30 = vpop.f32.mrf.mxu2 }
 0x2c7   :  { %4166 = vst.msk [vmem:[%s6501_s3 + $0x1b0] sm:$0xff] %vm270_vm0, %v3902_v30 }
 0x2c8   :  { %v3971_v38 = vpop.f32.mrf.mxu1 }
 0x2c9   :  { %v3948_v51 = vpop.f32.mrf.mxu0  ;;  %4169 = vst.msk [vmem:[%s6501_s3 + $0x1c8] sm:$0xff] %vm270_vm0, %v3971_v38 }
 0x2ca   :  { %4168 = vst.msk [vmem:[%s6501_s3 + $0x1c0] sm:$0xff] %vm270_vm0, %v3948_v51 }
 0x2cb   :  { %v4017_v26 = vpop.f32.mrf.mxu3 }
 0x2cc   :  { %4171 = vst.msk [vmem:[%s6501_s3 + $0x1d8] sm:$0xff] %vm270_vm0, %v4017_v26 }
 0x2ce   :  { %v3994_v32 = vpop.f32.mrf.mxu2 }
 0x2cf   :  { %4170 = vst.msk [vmem:[%s6501_s3 + $0x1d0] sm:$0xff] %vm270_vm0, %v3994_v32 }
 0x2d1   :  { %v4040_v21 = vpop.f32.mrf.mxu0 }
 0x2d2   :  { %4172 = vst.msk [vmem:[%s6501_s3 + $0x1e0] sm:$0xff] %vm270_vm0, %v4040_v21 }
 0x2d5   :  { %v4063_v23 = vpop.f32.mrf.mxu1 }
 0x2d6   :  { %v4086_v33 = vpop.f32.mrf.mxu2  ;;  %4173 = vst.msk [vmem:[%s6501_s3 + $0x1e8] sm:$0xff] %vm270_vm0, %v4063_v23  ;;  %v4109_v5 = vpop.f32.mrf.mxu3 }
 0x2d7   :  { %4174 = vst.msk [vmem:[%s6501_s3 + $0x1f0] sm:$0xff] %vm270_vm0, %v4086_v33 }
 0x2d8   :  { %4175 = vst.msk [vmem:[%s6501_s3 + $0x1f8] sm:$0xff] %vm270_vm0, %v4109_v5 }

// kernel: _lambda_.26
= control target key start
LH: loop header
LB: loop body
LE: loop exit
PB: predicated region body
PF: predicated region fallthrough
CT: control target
= control target key end

     0   :  { %s1079_s12 = smov 0   ;;  %s1081_s13 = smov 0   ;;  %s1243_s0 = inlined_call_operand.vmem [shape: f32[8,16,96], index: 0, kind: input, shape index: {}]   ;;  %s1244_s1 = inlined_call_operand.vmem [shape: f32[32,96], index: 1, kind: input, shape index: {}]   ;;  %s1245_s2 = inlined_call_operand.vmem [shape: f32[1,96], index: 2, kind: input, shape index: {}]   ;;  %s1246_s3 = inlined_call_operand.vmem [shape: f32[8,16,32], index: 3, kind: output, shape index: {}]  }
   0x1   :  { %s1083_s14 = smov 0  }
   0x2 LB: > { %s914_s15 = sadd.s32 4294967295, %s1054_s14   ;;  %s1096_s16 = sadd.s32 1, %s1054_s14   ;;  %s1054_s14 = sphi %s1083_s14, %s1250_s14   ;;  %s1050_s13 = sphi %s1081_s13, %s1249_s13   ;;  %s1046_s12 = sphi %s1079_s12, %s1248_s12  }
   0x3   : > { %s17_s17 = ssub.s32 %s1054_s14, %s1096_s16  ;;  %s20_s18 = sadd.s32 1, %s1050_s13 }
   0x4   : > { %p18_p0 = scmp.eq.s32.totalorder %s17_s17, 0  ;;  %p27_p1 = scmp.ne.s32.totalorder %s1050_s13, %s1046_s12 }
   0x5   : > { %p28_p2 = scmp.eq.s32.totalorder %s1054_s14, 0  ;;  %p99_p3 = scmp.eq.s32.totalorder %s914_s15, 1 }
   0x6   : > { %s1107_s19 = scalar_select %p18_p0, %s1050_s13, %s20_s18  }
   0x7   : > { %p29_p4 = por %p28_p2, %p27_p1  ;;  %p1109_p5 = por %p99_p3, %p27_p1 }
   0x8   : > { %p917_p6 = scmp.ge.s32.totalorder %s1054_s14, 2 }
   0xa   : > { %127 = sbr.rel (%p917_p6) target bundleno = 27 (0x1b), region = 24 }
   0xf   : > { %130 = sbr.rel (!%p29_p4) target bundleno = 27 (0x1b), region = 28  ;;  %s132_s21 = sand.u32 (%p29_p4), 1, %s1050_s13  }
  0x10   : > { %s919_s22 = sshll.u32 (%p29_p4), %s1054_s14, 3  ;;  %s918_s23 = sshll.u32 (%p29_p4), %s132_s21, 6 }
  0x11   : > { %s136_s26 = scalar_lea.vmem (%p29_p4), %s1243_s0, %s919_s22  ;;  %s134_s27 = scalar_lea.vmem (%p29_p4), [#allocation2], %s918_s23 }
  0x12   : > { %v179_v0 = vld [vmem:[%s136_s26] sm:$0xff] (%p29_p4)  ;;  %v181_v1 = vld [vmem:[%s136_s26 + $0x10] sm:$0xff] (%p29_p4) }
  0x13   : > { %v183_v2 = vld [vmem:[%s136_s26 + $0x20] sm:$0xff] (%p29_p4)  ;;  %180 = vst [vmem:[%s134_s27] sm:$0xff] (%p29_p4), %v179_v0  ;;  %v185_v3 = vld [vmem:[%s136_s26 + $0x30] sm:$0xff] (%p29_p4) }
  0x14   : > { %182 = vst [vmem:[%s134_s27 + $0x8] sm:$0xff] %v181_v1  ;;  %v187_v4 = vld [vmem:[%s136_s26 + $0x40] sm:$0xff]  ;;  %v189_v5 = vld [vmem:[%s136_s26 + $0x50] sm:$0xff] }
  0x15   : > { %184 = vst [vmem:[%s134_s27 + $0x10] sm:$0xff] %v183_v2  ;;  %v191_v6 = vld [vmem:[%s136_s26 + $0x60] sm:$0xff]  ;;  %v193_v7 = vld [vmem:[%s136_s26 + $0x70] sm:$0xff] }
  0x16   : > { %186 = vst [vmem:[%s134_s27 + $0x18] sm:$0xff] %v185_v3 }
  0x17   : > { %188 = vst [vmem:[%s134_s27 + $0x20] sm:$0xff] %v187_v4 }
  0x18   : > { %190 = vst [vmem:[%s134_s27 + $0x28] sm:$0xff] %v189_v5 }
  0x19   : > { %192 = vst [vmem:[%s134_s27 + $0x30] sm:$0xff] %v191_v6 }
  0x1a   : > { %194 = vst [vmem:[%s134_s27 + $0x38] sm:$0xff] %v193_v7 }
  0x1b PF: > { %p920_p7 = scmp.ge.s32.totalorder %s1054_s14, 1  ;;  %p199_p8 = scmp.lt.s32.totalorder %s1054_s14, 3 }
  0x1d   : > { %p200_p9 = pnand %p920_p7, %p199_p8 }
  0x1e   : > { %s1057_s11 = smov (!%p200_p9), 64   ;;  %s206_s17 = sand.u32 (!%p200_p9), 1, %s1046_s12  }
  0x1f   : > { %203 = sbr.rel (%p200_p9) target bundleno = 4661 (0x1235), region = 66  ;;  %s1141_s18 = sshll.u32 (!%p200_p9), %s206_s17, 6 }
  0x20   : > { %s1144_s21 = scalar_lea.vmem (!%p200_p9), [#allocation2], %s1141_s18  ;;  %s1058_s12 = smov (!%p200_p9), 96  }
  0x21   : > { %s1151_s22 = scalar_lea.vmem (!%p200_p9), [#allocation3], %s1141_s18 }
  0x24   : > { %v231_v8 = vld [vmem:[%s1244_s1 + $0x18] sm:$0xff]  ;;  %v230_v9 = vld [vmem:[%s1244_s1 + $0x10] sm:$0xff]  ;;  %v229_v10 = vld [vmem:[%s1244_s1 + $0x8] sm:$0xff]  ;;  %v1056_v12 = vmov 0.0   ;;  %vm237_vm4 = vcmask 261120   ;;  %s953_s23 = sshll.u32 (%p1109_p5), %s914_s15, 3 }
  0x25   : > { %253 = vmatpush.msra.mxu0 %v231_v8  ;;  %321 = vmatpush.msra.mxu1 %v231_v8  ;;  %v228_v11 = vld [vmem:[%s1244_s1] sm:$0xff]  ;;  %v924_v44 = vld [vmem:[%s1144_s21 + $0x8] sm:$0xff]  ;;  %s796_s26 = scalar_lea.vmem (%p1109_p5), %s1246_s3, %s953_s23 }
  0x26   : > { %390 = vmatpush.msra.mxu2 %v231_v8  ;;  %459 = vmatpush.msra.mxu3 %v231_v8  ;;  %v1136_v13 = vld [vmem:[%s1245_s2] ss:$0 sm:$0xff] }
  0x27   : > { %254 = vmatpush.msra.mxu0 %v230_v9  ;;  %322 = vmatpush.msra.mxu1 %v230_v9  ;;  %v233_v16 = vld [vmem:[%s1144_s21] sm:$0xff] }
  0x28   : > { %391 = vmatpush.msra.mxu2 %v230_v9  ;;  %460 = vmatpush.msra.mxu3 %v230_v9 }
  0x29   : > { %255 = vmatpush.msra.mxu0 %v229_v10  ;;  %323 = vmatpush.msra.mxu1 %v229_v10 }
  0x2a   : > { %392 = vmatpush.msra.mxu2 %v229_v10  ;;  %461 = vmatpush.msra.mxu3 %v229_v10 }
  0x2b   : > { %256 = vmatpush.msra.mxu0 %v228_v11  ;;  %324 = vmatpush.msra.mxu1 %v228_v11 }
  0x2c   : > { %257 = vmatmul.f32.vlgmr.msra.gmra.mxu0 %v1056_v12  ;;  %393 = vmatpush.msra.mxu2 %v228_v11 }
  0x2d   : > { %462 = vmatpush.msra.mxu3 %v228_v11  ;;  %528 = vmatpush.msrb.mxu0 %v231_v8 }
  0x2e   : > { %597 = vmatpush.msrb.mxu1 %v231_v8  ;;  %666 = vmatpush.msrb.mxu2 %v231_v8 }
  0x2f   : > { %529 = vmatpush.msrb.mxu0 %v230_v9  ;;  %735 = vmatpush.msrb.mxu3 %v231_v8  ;;  %v928_v8 = vld [vmem:[%s1144_s21 + $0x10] sm:$0xff] }
  0x30   : > { %598 = vmatpush.msrb.mxu1 %v230_v9  ;;  %667 = vmatpush.msrb.mxu2 %v230_v9 }
  0x31   : > { %530 = vmatpush.msrb.mxu0 %v229_v10  ;;  %736 = vmatpush.msrb.mxu3 %v230_v9 }
  0x32   : > { %599 = vmatpush.msrb.mxu1 %v229_v10  ;;  %668 = vmatpush.msrb.mxu2 %v229_v10 }
  0x33   : > { %531 = vmatpush.msrb.mxu0 %v228_v11  ;;  %737 = vmatpush.msrb.mxu3 %v229_v10 }
  0x34   : > { %600 = vmatpush.msrb.mxu1 %v228_v11  ;;  %669 = vmatpush.msrb.mxu2 %v228_v11 }
  0x35   : > { %738 = vmatpush.msrb.mxu3 %v228_v11 }
  0xa9   : > { %v258_v14 = vpop.f32.mrf.mxu0 }
  0xaa   : > { %v259_v15 = vadd.f32 %v1136_v13, %v258_v14 }
  0xac   : > { %282 = vrot.lane.b32.xlu0 %v259_v15, %s1057_s11  ;;  %v261_v17 = vadd.f32 %v259_v15, %v233_v16 }
  0xae   : > { %v923_v18 = vmul.f32 -1.442695, %v261_v17 }
  0xb0   : > { %984 = vpow2.f32 %v923_v18 }
  0xb6   : > { %v985_v19 = vpop.eup %984 }
  0xb7   : > { %v265_v20 = vadd.f32 1.0, %v985_v19 }
  0xb9   : > { %986 = vrcp.f32 %v265_v20  ;;  %v277_v26 = vand.u32 2147483648, %v265_v20  ;;  %vm271_vm1 = vweird.f32 %v265_v20  ;;  %v275_v27 = vand.u32 2147483647, %v265_v20 }
  0xbb   : > { %v278_v29 = vor.u32 1.1754944e-38, %v277_v26  ;;  %vm276_vm3 = vcmp.eq.f32.partialorder %v275_v27, 8.507059e+37 }
  0xbf   : > { %v987_v21 = vpop.eup %986 }
  0xc0   : > { %v267_v22 = vmul.f32 %v987_v21, %v265_v20  ;;  %vm272_vm0 = vweird.f32 %v987_v21 }
  0xc1   : > { %vm273_vm2 = vmor %vm271_vm1, %vm272_vm0 }
  0xc2   : > { %v268_v23 = vsub.f32 1.0, %v267_v22 }
  0xc4   : > { %v269_v24 = vmul.f32 %v987_v21, %v268_v23 }
  0xc6   : > { %v270_v25 = vadd.f32 %v987_v21, %v269_v24 }
  0xc8   : > { %v274_v28 = vsel %vm273_vm2, %v987_v21, %v270_v25 }
  0xc9   : > { %v279_v31 = vsel %vm276_vm3, %v278_v29, %v274_v28 }
  0xca   : > { %v292_v36 = vsub.f32 1.0, %v279_v31  ;;  %v298_v38 = vmul.f32 0.0, %v279_v31 }
 0x11e   : > { %v283_v30 = vpop.permute.xlu0 %282 }
 0x11f   : > { %v285_v32 = vmul.f32 %v283_v30, %v279_v31 }
 0x121   : > { %287 = vrot.lane.b32.xlu0 %v285_v32, %s1057_s11 }
 0x193   : > { %v288_v33 = vpop.permute.xlu0 %287 }
 0x194   : > { %v290_v34 = vadd.f32 %v288_v33, %v233_v16 }
 0x196   : > { %988 = vtanh.f32 %v290_v34 }
 0x19c   : > { %v989_v35 = vpop.eup %988 }
 0x19d   : > { %294 = vrot.lane.b32.xlu1 %v989_v35, %s1058_s12 }
 0x20f   : > { %v295_v37 = vpop.permute.xlu1 %294 }
 0x210   : > { %v297_v39 = vmul.f32 %v295_v37, %v292_v36  ;;  %v932_v37 = vld [vmem:[%s1144_s21 + $0x18] sm:$0xff] }
 0x212   : > { %v299_v40 = vadd.f32 %v298_v38, %v297_v39 }
 0x214   : > { %301 = vrot.lane.b32.xlu1 %v299_v40, %s1058_s12 }
 0x286   : > { %v302_v41 = vpop.permute.xlu1 %301 }
 0x287   : > { %304 = vst.msk [vmem:[%s1151_s22] sm:$0xff] %vm237_vm4, %v302_v41  ;;  %925 = vmatmul.msk.f32.vlgmr.msra.gmra.mxu1 %vm237_vm4, %v302_v41 }
 0x304   : > { %v326_v42 = vpop.f32.mrf.mxu1 }
 0x305   : > { %v327_v43 = vadd.f32 %v1136_v13, %v326_v42 }
 0x307   : > { %350 = vrot.lane.b32.xlu2 %v327_v43, %s1057_s11  ;;  %v329_v45 = vadd.f32 %v924_v44, %v327_v43 }
 0x309   : > { %v926_v46 = vmul.f32 -1.442695, %v329_v45 }
 0x30b   : > { %990 = vpow2.f32 %v926_v46 }
 0x311   : > { %v991_v47 = vpop.eup %990 }
 0x312   : > { %v333_v48 = vadd.f32 1.0, %v991_v47 }
 0x314   : > { %992 = vrcp.f32 %v333_v48  ;;  %v345_v54 = vand.u32 2147483648, %v333_v48  ;;  %vm339_vm6 = vweird.f32 %v333_v48  ;;  %v343_v55 = vand.u32 2147483647, %v333_v48 }
 0x316   : > { %v346_v57 = vor.u32 1.1754944e-38, %v345_v54  ;;  %vm344_vm8 = vcmp.eq.f32.partialorder %v343_v55, 8.507059e+37 }
 0x31a   : > { %v993_v49 = vpop.eup %992 }
 0x31b   : > { %v335_v50 = vmul.f32 %v993_v49, %v333_v48  ;;  %vm340_vm5 = vweird.f32 %v993_v49 }
 0x31c   : > { %vm341_vm7 = vmor %vm339_vm6, %vm340_vm5 }
 0x31d   : > { %v336_v51 = vsub.f32 1.0, %v335_v50 }
 0x31f   : > { %v337_v52 = vmul.f32 %v993_v49, %v336_v51 }
 0x321   : > { %v338_v53 = vadd.f32 %v993_v49, %v337_v52 }
 0x323   : > { %v342_v56 = vsel %vm341_vm7, %v993_v49, %v338_v53 }
 0x324   : > { %v347_v59 = vsel %vm344_vm8, %v346_v57, %v342_v56 }
 0x325   : > { %v360_v0 = vsub.f32 1.0, %v347_v59  ;;  %v366_v2 = vmul.f32 %v347_v59, %v299_v40 }
 0x361   : > { %v351_v58 = vpop.permute.xlu2 %350 }
 0x362   : > { %v353_v60 = vmul.f32 %v351_v58, %v347_v59 }
 0x364   : > { %355 = vrot.lane.b32.xlu2 %v353_v60, %s1057_s11 }
 0x3be   : > { %v356_v61 = vpop.permute.xlu2 %355 }
 0x3bf   : > { %v358_v62 = vadd.f32 %v924_v44, %v356_v61 }
 0x3c1   : > { %994 = vtanh.f32 %v358_v62 }
 0x3c7   : > { %v995_v63 = vpop.eup %994 }
 0x3c8   : > { %362 = vrot.lane.b32.xlu0 %v995_v63, %s1058_s12 }
 0x43a   : > { %v363_v1 = vpop.permute.xlu0 %362 }
 0x43b   : > { %v365_v3 = vmul.f32 %v363_v1, %v360_v0  ;;  %v936_v1 = vld [vmem:[%s1144_s21 + $0x20] sm:$0xff] }
 0x43d   : > { %v367_v4 = vadd.f32 %v366_v2, %v365_v3 }
 0x43f   : > { %369 = vrot.lane.b32.xlu1 %v367_v4, %s1058_s12 }
 0x4b1   : > { %v370_v5 = vpop.permute.xlu1 %369 }
 0x4b2   : > { %927 = vst.msk [vmem:[%s1151_s22 + $0x8] sm:$0xff] %vm237_vm4, %v370_v5  ;;  %929 = vmatmul.msk.f32.vlgmr.msra.gmra.mxu2 %vm237_vm4, %v370_v5 }
 0x535   : > { %v395_v6 = vpop.f32.mrf.mxu2 }
 0x536   : > { %v396_v7 = vadd.f32 %v1136_v13, %v395_v6 }
 0x538   : > { %419 = vrot.lane.b32.xlu2 %v396_v7, %s1057_s11  ;;  %v398_v9 = vadd.f32 %v928_v8, %v396_v7 }
 0x53a   : > { %v930_v10 = vmul.f32 -1.442695, %v398_v9 }
 0x53c   : > { %996 = vpow2.f32 %v930_v10 }
 0x542   : > { %v997_v11 = vpop.eup %996 }
 0x543   : > { %v402_v12 = vadd.f32 1.0, %v997_v11 }
 0x545   : > { %998 = vrcp.f32 %v402_v12  ;;  %v414_v19 = vand.u32 2147483648, %v402_v12  ;;  %vm408_vm10 = vweird.f32 %v402_v12  ;;  %v412_v20 = vand.u32 2147483647, %v402_v12 }
 0x547   : > { %v415_v22 = vor.u32 1.1754944e-38, %v414_v19  ;;  %vm413_vm12 = vcmp.eq.f32.partialorder %v412_v20, 8.507059e+37 }
 0x54b   : > { %v999_v14 = vpop.eup %998 }
 0x54c   : > { %v404_v15 = vmul.f32 %v999_v14, %v402_v12  ;;  %vm409_vm9 = vweird.f32 %v999_v14 }
 0x54d   : > { %vm410_vm11 = vmor %vm408_vm10, %vm409_vm9 }
 0x54e   : > { %v405_v16 = vsub.f32 1.0, %v404_v15 }
 0x550   : > { %v406_v17 = vmul.f32 %v999_v14, %v405_v16 }
 0x552   : > { %v407_v18 = vadd.f32 %v999_v14, %v406_v17 }
 0x554   : > { %v411_v21 = vsel %vm410_vm11, %v999_v14, %v407_v18 }
 0x555   : > { %v416_v24 = vsel %vm413_vm12, %v415_v22, %v411_v21 }
 0x556   : > { %v429_v29 = vsub.f32 1.0, %v416_v24  ;;  %v435_v31 = vmul.f32 %v416_v24, %v367_v4 }
 0x592   : > { %v420_v23 = vpop.permute.xlu2 %419 }
 0x593   : > { %v422_v25 = vmul.f32 %v420_v23, %v416_v24 }
 0x595   : > { %424 = vrot.lane.b32.xlu0 %v422_v25, %s1057_s11 }
 0x607   : > { %v425_v26 = vpop.permute.xlu0 %424 }
 0x608   : > { %v427_v27 = vadd.f32 %v928_v8, %v425_v26 }
 0x60a   : > { %1000 = vtanh.f32 %v427_v27 }
 0x610   : > { %v1001_v28 = vpop.eup %1000 }
 0x611   : > { %431 = vrot.lane.b32.xlu1 %v1001_v28, %s1058_s12 }
 0x683   : > { %v432_v30 = vpop.permute.xlu1 %431 }
 0x684   : > { %v434_v32 = vmul.f32 %v432_v30, %v429_v29  ;;  %v940_v30 = vld [vmem:[%s1144_s21 + $0x28] sm:$0xff] }
 0x686   : > { %v436_v33 = vadd.f32 %v435_v31, %v434_v32 }
 0x688   : > { %438 = vrot.lane.b32.xlu2 %v436_v33, %s1058_s12 }
 0x6e2   : > { %v439_v34 = vpop.permute.xlu2 %438 }
 0x6e3   : > { %931 = vst.msk [vmem:[%s1151_s22 + $0x10] sm:$0xff] %vm237_vm4, %v439_v34  ;;  %933 = vmatmul.msk.f32.vlgmr.msra.gmra.mxu3 %vm237_vm4, %v439_v34 }
 0x766   : > { %v464_v35 = vpop.f32.mrf.mxu3 }
 0x767   : > { %v465_v36 = vadd.f32 %v1136_v13, %v464_v35 }
 0x769   : > { %488 = vrot.lane.b32.xlu0 %v465_v36, %s1057_s11  ;;  %v467_v38 = vadd.f32 %v932_v37, %v465_v36 }
 0x76b   : > { %v934_v39 = vmul.f32 -1.442695, %v467_v38 }
 0x76d   : > { %1002 = vpow2.f32 %v934_v39 }
 0x773   : > { %v1003_v40 = vpop.eup %1002 }
 0x774   : > { %v471_v41 = vadd.f32 1.0, %v1003_v40 }
 0x776   : > { %1004 = vrcp.f32 %v471_v41  ;;  %v483_v47 = vand.u32 2147483648, %v471_v41  ;;  %vm477_vm14 = vweird.f32 %v471_v41  ;;  %v481_v48 = vand.u32 2147483647, %v471_v41 }
 0x778   : > { %v484_v50 = vor.u32 1.1754944e-38, %v483_v47  ;;  %vm482_vm0 = vcmp.eq.f32.partialorder %v481_v48, 8.507059e+37 }
 0x77c   : > { %v1005_v42 = vpop.eup %1004 }
 0x77d   : > { %v473_v43 = vmul.f32 %v1005_v42, %v471_v41  ;;  %vm478_vm13 = vweird.f32 %v1005_v42 }
 0x77e   : > { %vm479_vm15 = vmor %vm477_vm14, %vm478_vm13 }
 0x77f   : > { %v474_v44 = vsub.f32 1.0, %v473_v43 }
 0x781   : > { %v475_v45 = vmul.f32 %v1005_v42, %v474_v44 }
 0x783   : > { %v476_v46 = vadd.f32 %v1005_v42, %v475_v45 }
 0x785   : > { %v480_v49 = vsel %vm479_vm15, %v1005_v42, %v476_v46 }
 0x786   : > { %v485_v52 = vsel %vm482_vm0, %v484_v50, %v480_v49 }
 0x787   : > { %v498_v57 = vsub.f32 1.0, %v485_v52  ;;  %v504_v59 = vmul.f32 %v485_v52, %v436_v33 }
 0x7db   : > { %v489_v51 = vpop.permute.xlu0 %488 }
 0x7dc   : > { %v491_v53 = vmul.f32 %v489_v51, %v485_v52 }
 0x7de   : > { %493 = vrot.lane.b32.xlu1 %v491_v53, %s1057_s11 }
 0x850   : > { %v494_v54 = vpop.permute.xlu1 %493 }
 0x851   : > { %v496_v55 = vadd.f32 %v932_v37, %v494_v54 }
 0x853   : > { %1006 = vtanh.f32 %v496_v55 }
 0x859   : > { %v1007_v56 = vpop.eup %1006 }
 0x85a   : > { %500 = vrot.lane.b32.xlu2 %v1007_v56, %s1058_s12 }
 0x8b4   : > { %v501_v58 = vpop.permute.xlu2 %500 }
 0x8b5   : > { %v503_v60 = vmul.f32 %v501_v58, %v498_v57  ;;  %v944_v58 = vld [vmem:[%s1144_s21 + $0x30] sm:$0xff] }
 0x8b7   : > { %v505_v61 = vadd.f32 %v504_v59, %v503_v60 }
 0x8b9   : > { %507 = vrot.lane.b32.xlu0 %v505_v61, %s1058_s12 }
 0x92b   : > { %v508_v62 = vpop.permute.xlu0 %507 }
 0x92c   : > { %935 = vst.msk [vmem:[%s1151_s22 + $0x18] sm:$0xff] %vm237_vm4, %v508_v62  ;;  %937 = vmatmul.msk.f32.vlgmr.msrb.gmra.mxu0 %vm237_vm4, %v508_v62 }
 0x9a9   : > { %v533_v63 = vpop.f32.mrf.mxu0 }
 0x9aa   : > { %v534_v0 = vadd.f32 %v1136_v13, %v533_v63 }
 0x9ac   : > { %557 = vrot.lane.b32.xlu1 %v534_v0, %s1057_s11  ;;  %v536_v2 = vadd.f32 %v936_v1, %v534_v0 }
 0x9ae   : > { %v938_v3 = vmul.f32 -1.442695, %v536_v2 }
 0x9b0   : > { %1008 = vpow2.f32 %v938_v3 }
 0x9b6   : > { %v1009_v4 = vpop.eup %1008 }
 0x9b7   : > { %v540_v5 = vadd.f32 1.0, %v1009_v4 }
 0x9b9   : > { %1010 = vrcp.f32 %v540_v5  ;;  %v552_v11 = vand.u32 2147483648, %v540_v5  ;;  %vm546_vm2 = vweird.f32 %v540_v5  ;;  %v550_v12 = vand.u32 2147483647, %v540_v5 }
 0x9bb   : > { %v553_v15 = vor.u32 1.1754944e-38, %v552_v11  ;;  %vm551_vm5 = vcmp.eq.f32.partialorder %v550_v12, 8.507059e+37 }
 0x9bf   : > { %v1011_v6 = vpop.eup %1010 }
 0x9c0   : > { %v542_v7 = vmul.f32 %v1011_v6, %v540_v5  ;;  %vm547_vm1 = vweird.f32 %v1011_v6 }
 0x9c1   : > { %vm548_vm3 = vmor %vm546_vm2, %vm547_vm1 }
 0x9c2   : > { %v543_v8 = vsub.f32 1.0, %v542_v7 }
 0x9c4   : > { %v544_v9 = vmul.f32 %v1011_v6, %v543_v8 }
 0x9c6   : > { %v545_v10 = vadd.f32 %v1011_v6, %v544_v9 }
 0x9c8   : > { %v549_v14 = vsel %vm548_vm3, %v1011_v6, %v545_v10 }
 0x9c9   : > { %v554_v17 = vsel %vm551_vm5, %v553_v15, %v549_v14 }
 0x9ca   : > { %v567_v22 = vsub.f32 1.0, %v554_v17  ;;  %v573_v24 = vmul.f32 %v554_v17, %v505_v61 }
 0xa1e   : > { %v558_v16 = vpop.permute.xlu1 %557 }
 0xa1f   : > { %v560_v18 = vmul.f32 %v558_v16, %v554_v17 }
 0xa21   : > { %562 = vrot.lane.b32.xlu2 %v560_v18, %s1057_s11 }
 0xa7b   : > { %v563_v19 = vpop.permute.xlu2 %562 }
 0xa7c   : > { %v565_v20 = vadd.f32 %v936_v1, %v563_v19 }
 0xa7e   : > { %1012 = vtanh.f32 %v565_v20 }
 0xa84   : > { %v1013_v21 = vpop.eup %1012 }
 0xa85   : > { %569 = vrot.lane.b32.xlu0 %v1013_v21, %s1058_s12 }
 0xaf7   : > { %v570_v23 = vpop.permute.xlu0 %569 }
 0xaf8   : > { %v572_v25 = vmul.f32 %v570_v23, %v567_v22  ;;  %v948_v23 = vld [vmem:[%s1144_s21 + $0x38] sm:$0xff] }
 0xafa   : > { %v574_v26 = vadd.f32 %v573_v24, %v572_v25 }
 0xafc   : > { %576 = vrot.lane.b32.xlu1 %v574_v26, %s1058_s12 }
 0xb6e   : > { %v577_v27 = vpop.permute.xlu1 %576 }
 0xb6f   : > { %939 = vst.msk [vmem:[%s1151_s22 + $0x20] sm:$0xff] %vm237_vm4, %v577_v27  ;;  %941 = vmatmul.msk.f32.vlgmr.msrb.gmra.mxu1 %vm237_vm4, %v577_v27 }
 0xbec   : > { %v602_v28 = vpop.f32.mrf.mxu1 }
 0xbed   : > { %v603_v29 = vadd.f32 %v1136_v13, %v602_v28 }
 0xbef   : > { %626 = vrot.lane.b32.xlu2 %v603_v29, %s1057_s11  ;;  %v605_v31 = vadd.f32 %v940_v30, %v603_v29 }
 0xbf1   : > { %v942_v32 = vmul.f32 -1.442695, %v605_v31 }
 0xbf3   : > { %1014 = vpow2.f32 %v942_v32 }
 0xbf9   : > { %v1015_v33 = vpop.eup %1014 }
 0xbfa   : > { %v609_v34 = vadd.f32 1.0, %v1015_v33 }
 0xbfc   : > { %1016 = vrcp.f32 %v609_v34  ;;  %v621_v40 = vand.u32 2147483648, %v609_v34  ;;  %vm615_vm7 = vweird.f32 %v609_v34  ;;  %v619_v41 = vand.u32 2147483647, %v609_v34 }
 0xbfe   : > { %v622_v43 = vor.u32 1.1754944e-38, %v621_v40  ;;  %vm620_vm9 = vcmp.eq.f32.partialorder %v619_v41, 8.507059e+37 }
 0xc02   : > { %v1017_v35 = vpop.eup %1016 }
 0xc03   : > { %v611_v36 = vmul.f32 %v1017_v35, %v609_v34  ;;  %vm616_vm6 = vweird.f32 %v1017_v35 }
 0xc04   : > { %vm617_vm8 = vmor %vm615_vm7, %vm616_vm6 }
 0xc05   : > { %v612_v37 = vsub.f32 1.0, %v611_v36 }
 0xc07   : > { %v613_v38 = vmul.f32 %v1017_v35, %v612_v37 }
 0xc09   : > { %v614_v39 = vadd.f32 %v1017_v35, %v613_v38 }
 0xc0b   : > { %v618_v42 = vsel %vm617_vm8, %v1017_v35, %v614_v39 }
 0xc0c   : > { %v623_v45 = vsel %vm620_vm9, %v622_v43, %v618_v42 }
 0xc0d   : > { %v636_v50 = vsub.f32 1.0, %v623_v45  ;;  %v642_v52 = vmul.f32 %v623_v45, %v574_v26 }
 0xc49   : > { %v627_v44 = vpop.permute.xlu2 %626 }
 0xc4a   : > { %v629_v46 = vmul.f32 %v627_v44, %v623_v45 }
 0xc4c   : > { %631 = vrot.lane.b32.xlu0 %v629_v46, %s1057_s11 }
 0xcbe   : > { %v632_v47 = vpop.permute.xlu0 %631 }
 0xcbf   : > { %v634_v48 = vadd.f32 %v940_v30, %v632_v47 }
 0xcc1   : > { %1018 = vtanh.f32 %v634_v48  ;;  %v839_v48 = vld [vmem:[%s1151_s22] sm:$0xff] (%p1109_p5) }
 0xcc2   : > { %840 = vst [vmem:[%s796_s26] sm:$0xff] (%p1109_p5), %v839_v48 }
 0xcc7   : > { %v1019_v49 = vpop.eup %1018 }
 0xcc8   : > { %638 = vrot.lane.b32.xlu1 %v1019_v49, %s1058_s12  ;;  %v841_v49 = vld [vmem:[%s1151_s22 + $0x8] sm:$0xff] (%p1109_p5) }
 0xcc9   : > { %842 = vst [vmem:[%s796_s26 + $0x10] sm:$0xff] (%p1109_p5), %v841_v49 }
 0xd3a   : > { %v639_v51 = vpop.permute.xlu1 %638 }
 0xd3b   : > { %v641_v53 = vmul.f32 %v639_v51, %v636_v50  ;;  %v843_v50 = vld [vmem:[%s1151_s22 + $0x10] sm:$0xff] (%p1109_p5)  ;;  %v845_v51 = vld [vmem:[%s1151_s22 + $0x18] sm:$0xff] (%p1109_p5) }
 0xd3c   : > { %844 = vst [vmem:[%s796_s26 + $0x20] sm:$0xff] (%p1109_p5), %v843_v50 }
 0xd3d   : > { %v643_v54 = vadd.f32 %v642_v52, %v641_v53  ;;  %v847_v52 = vld [vmem:[%s1151_s22 + $0x20] sm:$0xff] (%p1109_p5)  ;;  %846 = vst [vmem:[%s796_s26 + $0x30] sm:$0xff] (%p1109_p5), %v845_v51 }
 0xd3e   : > { %848 = vst [vmem:[%s796_s26 + $0x40] sm:$0xff] (%p1109_p5), %v847_v52 }
 0xd3f   : > { %645 = vrot.lane.b32.xlu2 %v643_v54, %s1058_s12 }
 0xd99   : > { %v646_v55 = vpop.permute.xlu2 %645 }
 0xd9a   : > { %943 = vst.msk [vmem:[%s1151_s22 + $0x28] sm:$0xff] %vm237_vm4, %v646_v55  ;;  %945 = vmatmul.msk.f32.vlgmr.msrb.gmra.mxu2 %vm237_vm4, %v646_v55 }
 0xda1   : > { %v849_v53 = vld [vmem:[%s1151_s22 + $0x28] sm:$0xff] (%p1109_p5) }
 0xda2   : > { %850 = vst [vmem:[%s796_s26 + $0x50] sm:$0xff] (%p1109_p5), %v849_v53 }
 0xe1d   : > { %v671_v56 = vpop.f32.mrf.mxu2 }
 0xe1e   : > { %v672_v57 = vadd.f32 %v1136_v13, %v671_v56 }
 0xe20   : > { %695 = vrot.lane.b32.xlu0 %v672_v57, %s1057_s11  ;;  %v674_v59 = vadd.f32 %v944_v58, %v672_v57 }
 0xe22   : > { %v946_v60 = vmul.f32 -1.442695, %v674_v59 }
 0xe24   : > { %1020 = vpow2.f32 %v946_v60 }
 0xe2a   : > { %v1021_v61 = vpop.eup %1020 }
 0xe2b   : > { %v678_v62 = vadd.f32 1.0, %v1021_v61 }
 0xe2d   : > { %1022 = vrcp.f32 %v678_v62  ;;  %v690_v4 = vand.u32 2147483648, %v678_v62  ;;  %vm684_vm11 = vweird.f32 %v678_v62  ;;  %v688_v5 = vand.u32 2147483647, %v678_v62 }
 0xe2f   : > { %v691_v7 = vor.u32 1.1754944e-38, %v690_v4  ;;  %vm689_vm13 = vcmp.eq.f32.partialorder %v688_v5, 8.507059e+37 }
 0xe33   : > { %v1023_v63 = vpop.eup %1022 }
 0xe34   : > { %v680_v0 = vmul.f32 %v1023_v63, %v678_v62  ;;  %vm685_vm10 = vweird.f32 %v1023_v63 }
 0xe35   : > { %vm686_vm12 = vmor %vm684_vm11, %vm685_vm10 }
 0xe36   : > { %v681_v1 = vsub.f32 1.0, %v680_v0 }
 0xe38   : > { %v682_v2 = vmul.f32 %v1023_v63, %v681_v1 }
 0xe3a   : > { %v683_v3 = vadd.f32 %v1023_v63, %v682_v2 }
 0xe3c   : > { %v687_v6 = vsel %vm686_vm12, %v1023_v63, %v683_v3 }
 0xe3d   : > { %v692_v9 = vsel %vm689_vm13, %v691_v7, %v687_v6 }
 0xe3e   : > { %v705_v15 = vsub.f32 1.0, %v692_v9  ;;  %v711_v17 = vmul.f32 %v692_v9, %v643_v54 }
 0xe92   : > { %v696_v8 = vpop.permute.xlu0 %695 }
 0xe93   : > { %v698_v10 = vmul.f32 %v696_v8, %v692_v9 }
 0xe95   : > { %700 = vrot.lane.b32.xlu1 %v698_v10, %s1057_s11 }
 0xf07   : > { %v701_v11 = vpop.permute.xlu1 %700 }
 0xf08   : > { %v703_v12 = vadd.f32 %v944_v58, %v701_v11 }
 0xf0a   : > { %1024 = vtanh.f32 %v703_v12 }
 0xf10   : > { %v1025_v14 = vpop.eup %1024 }
 0xf11   : > { %707 = vrot.lane.b32.xlu2 %v1025_v14, %s1058_s12 }
 0xf6b   : > { %v708_v16 = vpop.permute.xlu2 %707 }
 0xf6c   : > { %v710_v18 = vmul.f32 %v708_v16, %v705_v15 }
 0xf6e   : > { %v712_v19 = vadd.f32 %v711_v17, %v710_v18 }
 0xf70   : > { %714 = vrot.lane.b32.xlu0 %v712_v19, %s1058_s12 }
 0xfe2   : > { %v715_v20 = vpop.permute.xlu0 %714 }
 0xfe3   : > { %947 = vst.msk [vmem:[%s1151_s22 + $0x30] sm:$0xff] %vm237_vm4, %v715_v20  ;;  %949 = vmatmul.msk.f32.vlgmr.msrb.gmra.mxu3 %vm237_vm4, %v715_v20 }
 0xfea   : > { %v851_v54 = vld [vmem:[%s1151_s22 + $0x30] sm:$0xff] (%p1109_p5) }
 0xfeb   : > { %852 = vst [vmem:[%s796_s26 + $0x60] sm:$0xff] (%p1109_p5), %v851_v54 }
0x1066   : > { %v740_v21 = vpop.f32.mrf.mxu3 }
0x1067   : > { %v741_v22 = vadd.f32 %v1136_v13, %v740_v21 }
0x1069   : > { %764 = vrot.lane.b32.xlu1 %v741_v22, %s1057_s11  ;;  %v743_v24 = vadd.f32 %v948_v23, %v741_v22 }
0x106b   : > { %v950_v25 = vmul.f32 -1.442695, %v743_v24 }
0x106d   : > { %1026 = vpow2.f32 %v950_v25 }
0x1073   : > { %v1027_v26 = vpop.eup %1026 }
0x1074   : > { %v747_v27 = vadd.f32 1.0, %v1027_v26 }
0x1076   : > { %1028 = vrcp.f32 %v747_v27  ;;  %v759_v33 = vand.u32 2147483648, %v747_v27  ;;  %vm753_vm15 = vweird.f32 %v747_v27  ;;  %v757_v34 = vand.u32 2147483647, %v747_v27 }
0x1078   : > { %v760_v35 = vor.u32 1.1754944e-38, %v759_v33  ;;  %vm758_vm1 = vcmp.eq.f32.partialorder %v757_v34, 8.507059e+37 }
0x107c   : > { %v1029_v28 = vpop.eup %1028 }
0x107d   : > { %v749_v29 = vmul.f32 %v1029_v28, %v747_v27  ;;  %vm754_vm14 = vweird.f32 %v1029_v28 }
0x107e   : > { %vm755_vm0 = vmor %vm753_vm15, %vm754_vm14 }
0x107f   : > { %v750_v30 = vsub.f32 1.0, %v749_v29 }
0x1081   : > { %v751_v31 = vmul.f32 %v1029_v28, %v750_v30 }
0x1083   : > { %v752_v32 = vadd.f32 %v1029_v28, %v751_v31 }
0x1085   : > { %v756_v13 = vsel %vm755_vm0, %v1029_v28, %v752_v32 }
0x1086   : > { %v761_v37 = vsel %vm758_vm1, %v760_v35, %v756_v13 }
0x1087   : > { %v774_v42 = vsub.f32 1.0, %v761_v37  ;;  %v780_v44 = vmul.f32 %v761_v37, %v712_v19 }
0x10db   : > { %v765_v36 = vpop.permute.xlu1 %764 }
0x10dc   : > { %v767_v38 = vmul.f32 %v765_v36, %v761_v37 }
0x10de   : > { %769 = vrot.lane.b32.xlu2 %v767_v38, %s1057_s11 }
0x1138   : > { %v770_v39 = vpop.permute.xlu2 %769 }
0x1139   : > { %v772_v40 = vadd.f32 %v948_v23, %v770_v39 }
0x113b   : > { %1030 = vtanh.f32 %v772_v40 }
0x1141   : > { %v1031_v41 = vpop.eup %1030 }
0x1142   : > { %776 = vrot.lane.b32.xlu0 %v1031_v41, %s1058_s12 }
0x11b4   : > { %v777_v43 = vpop.permute.xlu0 %776 }
0x11b5   : > { %v779_v45 = vmul.f32 %v777_v43, %v774_v42 }
0x11b7   : > { %v781_v46 = vadd.f32 %v780_v44, %v779_v45 }
0x11b9   : > { %783 = vrot.lane.b32.xlu1 %v781_v46, %s1058_s12 }
0x1228   : > { %794 = sbr.rel (!%p1109_p5) target bundleno = 4661 (0x1235), region = 74 }
0x122b   : > { %v784_v47 = vpop.permute.xlu1 %783 }
0x122c   : > { %951 = vst.msk [vmem:[%s1151_s22 + $0x38] sm:$0xff] %vm237_vm4, %v784_v47 }
0x1233   : > { %v853_v55 = vld [vmem:[%s1151_s22 + $0x38] sm:$0xff] }
0x1234   : > { %854 = vst [vmem:[%s796_s26 + $0x70] sm:$0xff] %v853_v55 }
0x1235 PF: > { %p10_p10 = scmp.ge.s32.totalorder %s1096_s16, 4   ;;  %s1248_s12 = smov %s1050_s13 }
0x1236   : > { %s1249_s13 = smov %s1107_s19  ;;  %s1250_s14 = smov %s1096_s16 }
0x1237   :  { %12 = sbr.rel (!%p10_p10) target bundleno = 2 (0x2), region = 157 }

// kernel: _lambda_.28
= control target key start
LH: loop header
LB: loop body
LE: loop exit
PB: predicated region body
PF: predicated region fallthrough
CT: control target
= control target key end

     0   :  { %vm122_vm0 = vcmask 261120   ;;  %vm321_vm1 = vcmask 130048   ;;  %s1433_s3 = inlined_call_operand.vmem [shape: f32[32,16], index: 3, kind: input, shape index: {}]   ;;  %s1434_s2 = inlined_call_operand.vmem [shape: f32[32,16], index: 2, kind: input, shape index: {}]   ;;  %s1435_s1 = inlined_call_operand.vmem [shape: f32[128,32], index: 1, kind: input, shape index: {}]   ;;  %s1436_s0 = inlined_call_operand.vmem [shape: f32[128,32], index: 0, kind: input, shape index: {}]   ;;  %s1437_s4 = inlined_call_operand.vmem [shape: f32[1,16], index: 4, kind: input, shape index: {}]   ;;  %s1438_s5 = inlined_call_operand.vmem [shape: f32[128,16], index: 5, kind: input, shape index: {}]   ;;  %s1439_s6 = inlined_call_operand.vmem [shape: f32[1,16], index: 6, kind: input, shape index: {}]   ;;  %s1440_s7 = inlined_call_operand.vmem [shape: f32[1,16], index: 7, kind: input, shape index: {}]   ;;  %s1441_s8 = inlined_call_operand.vmem [shape: f32[128,16], index: 8, kind: output, shape index: {}]  }
   0x1   :  { %v118_v0 = vld [vmem:[%s1433_s3 + $0x10] sm:$0xff]  ;;  %v119_v1 = vld [vmem:[%s1433_s3 + $0x18] sm:$0xff]  ;;  %v116_v5 = vld [vmem:[%s1433_s3] sm:$0xff] }
   0x2   :  { %v112_v2 = vld [vmem:[%s1434_s2 + $0x10] sm:$0xff]  ;;  %v121_v3 = vpack.c.bf16 %v119_v1, %v118_v0  ;;  %v113_v4 = vld [vmem:[%s1434_s2 + $0x18] sm:$0xff]  ;;  %v117_v6 = vld [vmem:[%s1433_s3 + $0x8] sm:$0xff] }
   0x3   :  { %v115_v7 = vpack.c.bf16 %v113_v4, %v112_v2  ;;  %v110_v8 = vld [vmem:[%s1434_s2] sm:$0xff]  ;;  %v111_v9 = vld [vmem:[%s1434_s2 + $0x8] sm:$0xff]  ;;  %v120_v11 = vpack.c.bf16 %v117_v6, %v116_v5  ;;  %v72_v32 = vld [vmem:[%s1435_s1 + $0x10] sm:$0xff] }
   0x4   :  { %v70_v10 = vld [vmem:[%s1435_s1] sm:$0xff]  ;;  %153 = vmatpush.bf16.msra.mxu0 %v121_v3  ;;  %757 = vmatpush.bf16.msra.mxu2 %v121_v3  ;;  %v71_v12 = vld [vmem:[%s1435_s1 + $0x8] sm:$0xff]  ;;  %v114_v16 = vpack.c.bf16 %v111_v9, %v110_v8  ;;  %v73_v33 = vld [vmem:[%s1435_s1 + $0x18] sm:$0xff]  ;;  %v88_v40 = vmax.f32 %v72_v32, 0.0 }
   0x5   :  { %v86_v13 = vmax.f32 %v70_v10, 0.0  ;;  %v78_v14 = vld [vmem:[%s1435_s1 + $0x40] sm:$0xff]  ;;  %v79_v15 = vld [vmem:[%s1435_s1 + $0x48] sm:$0xff]  ;;  %226 = vmatpush.bf16.msra.mxu1 %v115_v7  ;;  %759 = vmatpush.bf16.msra.mxu3 %v115_v7  ;;  %v87_v17 = vmax.f32 %v71_v12, 0.0  ;;  %v80_v34 = vld [vmem:[%s1435_s1 + $0x50] sm:$0xff]  ;;  %v89_v41 = vmax.f32 %v73_v33, 0.0 }
   0x6   :  { %v94_v18 = vmax.f32 %v78_v14, 0.0  ;;  %v95_v19 = vmax.f32 %v79_v15, 0.0  ;;  %v30_v20 = vld [vmem:[%s1436_s0] sm:$0xff]  ;;  %v31_v21 = vld [vmem:[%s1436_s0 + $0x8] sm:$0xff]  ;;  %v81_v35 = vld [vmem:[%s1435_s1 + $0x58] sm:$0xff]  ;;  %v96_v42 = vmax.f32 %v80_v34, 0.0 }
   0x7   :  { %v38_v22 = vld [vmem:[%s1436_s0 + $0x40] sm:$0xff]  ;;  %v46_v23 = vmax.f32 %v30_v20, 0.0  ;;  %v47_v24 = vmax.f32 %v31_v21, 0.0  ;;  %v39_v25 = vld [vmem:[%s1436_s0 + $0x48] sm:$0xff]  ;;  %v102_v27 = vpack.c.bf16 %v87_v17, %v86_v13  ;;  %v32_v36 = vld [vmem:[%s1436_s0 + $0x10] sm:$0xff]  ;;  %v97_v43 = vmax.f32 %v81_v35, 0.0 }
   0x8   :  { %v54_v26 = vmax.f32 %v38_v22, 0.0  ;;  %v106_v28 = vpack.c.bf16 %v95_v19, %v94_v18  ;;  %v55_v29 = vmax.f32 %v39_v25, 0.0  ;;  %154 = vmatpush.bf16.msra.mxu0 %v120_v11  ;;  %758 = vmatpush.bf16.msra.mxu2 %v120_v11  ;;  %v33_v37 = vld [vmem:[%s1436_s0 + $0x18] sm:$0xff]  ;;  %v40_v38 = vld [vmem:[%s1436_s0 + $0x50] sm:$0xff]  ;;  %v48_v44 = vmax.f32 %v32_v36, 0.0  ;;  %v74_v52 = vld [vmem:[%s1435_s1 + $0x20] sm:$0xff] }
   0x9   :  { %v62_v30 = vpack.c.bf16 %v47_v24, %v46_v23  ;;  %227 = vmatpush.bf16.msra.mxu1 %v114_v16  ;;  %760 = vmatpush.bf16.msra.mxu3 %v114_v16  ;;  %v41_v39 = vld [vmem:[%s1436_s0 + $0x58] sm:$0xff]  ;;  %v49_v45 = vmax.f32 %v33_v37, 0.0  ;;  %v56_v46 = vmax.f32 %v40_v38, 0.0  ;;  %v103_v48 = vpack.c.bf16 %v89_v41, %v88_v40  ;;  %v75_v53 = vld [vmem:[%s1435_s1 + $0x28] sm:$0xff]  ;;  %v82_v54 = vld [vmem:[%s1435_s1 + $0x60] sm:$0xff] }
   0xa   :  { %v66_v31 = vpack.c.bf16 %v55_v29, %v54_v26  ;;  %v57_v47 = vmax.f32 %v41_v39, 0.0  ;;  %v107_v49 = vpack.c.bf16 %v97_v43, %v96_v42  ;;  %v83_v55 = vld [vmem:[%s1435_s1 + $0x68] sm:$0xff]  ;;  %v34_v56 = vld [vmem:[%s1436_s0 + $0x20] sm:$0xff]  ;;  %v90_v60 = vmax.f32 %v74_v52, 0.0  ;;  %v76_v8 = vld [vmem:[%s1435_s1 + $0x30] sm:$0xff] }
   0xb   :  { %741 = vmatmul.msk.bf16.vlgmr.msra.gmra.mxu0 %vm122_vm0, %v102_v27  ;;  %745 = vmatmul.msk.bf16.vlgmr.msra.gmra.mxu2 %vm122_vm0, %v106_v28  ;;  %v63_v50 = vpack.c.bf16 %v49_v45, %v48_v44  ;;  %v35_v57 = vld [vmem:[%s1436_s0 + $0x28] sm:$0xff]  ;;  %v42_v58 = vld [vmem:[%s1436_s0 + $0x60] sm:$0xff]  ;;  %v91_v61 = vmax.f32 %v75_v53, 0.0  ;;  %v98_v62 = vmax.f32 %v82_v54, 0.0  ;;  %v99_v63 = vmax.f32 %v83_v55, 0.0  ;;  %v77_v9 = vld [vmem:[%s1435_s1 + $0x38] sm:$0xff] }
   0xc   :  { %749 = vmatmul.msk.bf16.vlgmr.msra.gmra.mxu1 %vm122_vm0, %v62_v30  ;;  %753 = vmatmul.msk.bf16.vlgmr.msra.gmra.mxu3 %vm122_vm0, %v66_v31  ;;  %v67_v51 = vpack.c.bf16 %v57_v47, %v56_v46  ;;  %v43_v59 = vld [vmem:[%s1436_s0 + $0x68] sm:$0xff]  ;;  %v50_v0 = vmax.f32 %v34_v56, 0.0  ;;  %v51_v1 = vmax.f32 %v35_v57, 0.0  ;;  %v58_v2 = vmax.f32 %v42_v58, 0.0  ;;  %v84_v10 = vld [vmem:[%s1435_s1 + $0x70] sm:$0xff]  ;;  %v85_v11 = vld [vmem:[%s1435_s1 + $0x78] sm:$0xff] }
   0xd   :  { %v59_v3 = vmax.f32 %v43_v59, 0.0  ;;  %v104_v4 = vpack.c.bf16 %v91_v61, %v90_v60  ;;  %v108_v5 = vpack.c.bf16 %v99_v63, %v98_v62  ;;  %v36_v12 = vld [vmem:[%s1436_s0 + $0x30] sm:$0xff]  ;;  %v37_v13 = vld [vmem:[%s1436_s0 + $0x38] sm:$0xff]  ;;  %v92_v16 = vmax.f32 %v76_v8, 0.0  ;;  %v984_v29 = vld [vmem:[%s1437_s4] ss:$0 sm:$0xff] }
   0xe   :  { %v64_v6 = vpack.c.bf16 %v51_v1, %v50_v0  ;;  %v44_v14 = vld [vmem:[%s1436_s0 + $0x70] sm:$0xff]  ;;  %v45_v15 = vld [vmem:[%s1436_s0 + $0x78] sm:$0xff]  ;;  %v93_v17 = vmax.f32 %v77_v9, 0.0  ;;  %v100_v18 = vmax.f32 %v84_v10, 0.0  ;;  %v101_v19 = vmax.f32 %v85_v11, 0.0  ;;  %v289_v32 = vld [vmem:[%s1438_s5] sm:$0xff] }
   0xf   :  { %v68_v7 = vpack.c.bf16 %v59_v3, %v58_v2  ;;  %v52_v20 = vmax.f32 %v36_v12, 0.0  ;;  %v53_v21 = vmax.f32 %v37_v13, 0.0  ;;  %v60_v22 = vmax.f32 %v44_v14, 0.0  ;;  %v297_v41 = vld [vmem:[%s1438_s5 + $0x40] sm:$0xff]  ;;  %v290_v44 = vld [vmem:[%s1438_s5 + $0x8] sm:$0xff]  ;;  %v291_v58 = vld [vmem:[%s1438_s5 + $0x10] sm:$0xff] }
  0x10   :  { %v61_v23 = vmax.f32 %v45_v15, 0.0  ;;  %v105_v24 = vpack.c.bf16 %v93_v17, %v92_v16  ;;  %v109_v25 = vpack.c.bf16 %v101_v19, %v100_v18  ;;  %v298_v55 = vld [vmem:[%s1438_s5 + $0x48] sm:$0xff]  ;;  %v300_v16 = vld [vmem:[%s1438_s5 + $0x58] sm:$0xff] }
  0x11   :  { %v65_v26 = vpack.c.bf16 %v53_v21, %v52_v20  ;;  %v292_v17 = vld [vmem:[%s1438_s5 + $0x18] sm:$0xff] }
  0x12   :  { %v69_v27 = vpack.c.bf16 %v61_v23, %v60_v22 }
  0x1b   :  { %742 = vmatmul.msk.bf16.gmra.mxu0 %vm122_vm0, %v103_v48  ;;  %746 = vmatmul.msk.bf16.gmra.mxu2 %vm122_vm0, %v107_v49 }
  0x1c   :  { %750 = vmatmul.msk.bf16.gmra.mxu1 %vm122_vm0, %v63_v50  ;;  %754 = vmatmul.msk.bf16.gmra.mxu3 %vm122_vm0, %v67_v51 }
  0x2b   :  { %743 = vmatmul.msk.bf16.gmra.mxu0 %vm122_vm0, %v104_v4  ;;  %747 = vmatmul.msk.bf16.gmra.mxu2 %vm122_vm0, %v108_v5  ;;  %v299_v5 = vld [vmem:[%s1438_s5 + $0x50] sm:$0xff] }
  0x2c   :  { %751 = vmatmul.msk.bf16.gmra.mxu1 %vm122_vm0, %v64_v6  ;;  %755 = vmatmul.msk.bf16.gmra.mxu3 %vm122_vm0, %v68_v7 }
  0x3b   :  { %744 = vmatmul.msk.bf16.gmra.mxu0 %vm122_vm0, %v105_v24  ;;  %748 = vmatmul.msk.bf16.gmra.mxu2 %vm122_vm0, %v109_v25 }
  0x3c   :  { %752 = vmatmul.msk.bf16.gmra.mxu1 %vm122_vm0, %v65_v26  ;;  %756 = vmatmul.msk.bf16.gmra.mxu3 %vm122_vm0, %v69_v27  ;;  %v293_v26 = vld [vmem:[%s1438_s5 + $0x20] sm:$0xff] }
  0x88   :  { %v156_v28 = vpop.f32.mrf.mxu0 }
  0x89   :  { %v229_v30 = vpop.f32.mrf.mxu1 }
  0x8a   :  { %v230_v31 = vadd.f32 %v229_v30, %v156_v28 }
  0x8c   :  { %v273_v33 = vadd.f32 %v984_v29, %v230_v31 }
  0x8e   :  { %v176_v34 = vpop.f32.mrf.mxu2  ;;  %v990_v35 = vadd.f32 %v289_v32, %v273_v33  ;;  %v301_v32 = vld [vmem:[%s1438_s5 + $0x60] sm:$0xff] }
  0x8f   :  { %v249_v36 = vpop.f32.mrf.mxu3 }
  0x90   :  { %v250_v37 = vadd.f32 %v249_v36, %v176_v34  ;;  %v158_v38 = vpop.f32.mrf.mxu0  ;;  %v322_v39 = vsel %vm321_vm1, %v990_v35, 0.0 }
  0x91   :  { %v231_v40 = vpop.f32.mrf.mxu1  ;;  %323 = vadd.xlane.f32.xlu0 %v322_v39 }
  0x92   :  { %v281_v42 = vadd.f32 %v984_v29, %v250_v37  ;;  %v232_v43 = vadd.f32 %v231_v40, %v158_v38 }
  0x94   :  { %v274_v45 = vadd.f32 %v984_v29, %v232_v43  ;;  %v1002_v46 = vadd.f32 %v297_v41, %v281_v42  ;;  %v294_v43 = vld [vmem:[%s1438_s5 + $0x28] sm:$0xff] }
  0x96   :  { %v178_v47 = vpop.f32.mrf.mxu2  ;;  %v346_v48 = vsel %vm321_vm1, %v1002_v46, 0.0  ;;  %v1006_v49 = vadd.f32 %v290_v44, %v274_v45 }
  0x97   :  { %v251_v50 = vpop.f32.mrf.mxu3  ;;  %347 = vadd.xlane.f32.xlu2 %v346_v48  ;;  %v302_v48 = vld [vmem:[%s1438_s5 + $0x68] sm:$0xff] }
  0x98   :  { %v252_v51 = vadd.f32 %v251_v50, %v178_v47  ;;  %v161_v52 = vpop.f32.mrf.mxu0  ;;  %v325_v53 = vsel %vm321_vm1, %v1006_v49, 0.0 }
  0x99   :  { %v234_v54 = vpop.f32.mrf.mxu1  ;;  %326 = vadd.xlane.f32.xlu0 %v325_v53  ;;  %v295_v53 = vld [vmem:[%s1438_s5 + $0x30] sm:$0xff] }
  0x9a   :  { %v282_v56 = vadd.f32 %v984_v29, %v252_v51  ;;  %v235_v57 = vadd.f32 %v234_v54, %v161_v52 }
  0x9c   :  { %v275_v59 = vadd.f32 %v984_v29, %v235_v57  ;;  %v1018_v60 = vadd.f32 %v298_v55, %v282_v56 }
  0x9e   :  { %v181_v61 = vpop.f32.mrf.mxu2  ;;  %v1020_v62 = vadd.f32 %v291_v58, %v275_v59  ;;  %v349_v3 = vsel %vm321_vm1, %v1018_v60, 0.0 }
  0x9f   :  { %v254_v63 = vpop.f32.mrf.mxu3 }
  0xa0   :  { %v255_v0 = vadd.f32 %v254_v63, %v181_v61  ;;  %v163_v1 = vpop.f32.mrf.mxu0  ;;  %v328_v2 = vsel %vm321_vm1, %v1020_v62, 0.0 }
  0xa1   :  { %v236_v4 = vpop.f32.mrf.mxu1  ;;  %329 = vadd.xlane.f32.xlu1 %v328_v2  ;;  %350 = vadd.xlane.f32.xlu0 %v349_v3  ;;  %v303_v3 = vld [vmem:[%s1438_s5 + $0x70] sm:$0xff] }
  0xa2   :  { %v283_v6 = vadd.f32 %v984_v29, %v255_v0  ;;  %v237_v7 = vadd.f32 %v236_v4, %v163_v1 }
  0xa4   :  { %v1030_v8 = vadd.f32 %v299_v5, %v283_v6  ;;  %v276_v12 = vadd.f32 %v984_v29, %v237_v7  ;;  %v296_v6 = vld [vmem:[%s1438_s5 + $0x38] sm:$0xff] }
  0xa6   :  { %v183_v9 = vpop.f32.mrf.mxu2  ;;  %v352_v10 = vsel %vm321_vm1, %v1030_v8, 0.0  ;;  %v1044_v21 = vadd.f32 %v292_v17, %v276_v12 }
  0xa7   :  { %v256_v11 = vpop.f32.mrf.mxu3 }
  0xa8   :  { %v257_v13 = vadd.f32 %v256_v11, %v183_v9  ;;  %v166_v14 = vpop.f32.mrf.mxu0  ;;  %v331_v30 = vsel %vm321_vm1, %v1044_v21, 0.0 }
  0xa9   :  { %v239_v15 = vpop.f32.mrf.mxu1  ;;  %353 = vadd.xlane.f32.xlu1 %v352_v10 }
  0xaa   :  { %v284_v18 = vadd.f32 %v984_v29, %v257_v13  ;;  %v240_v19 = vadd.f32 %v239_v15, %v166_v14 }
  0xac   :  { %v1042_v20 = vadd.f32 %v300_v16, %v284_v18  ;;  %v277_v22 = vadd.f32 %v984_v29, %v240_v19  ;;  %v304_v16 = vld [vmem:[%s1438_s5 + $0x78] sm:$0xff] }
  0xae   :  { %v186_v23 = vpop.f32.mrf.mxu2  ;;  %v355_v24 = vsel %vm321_vm1, %v1042_v20, 0.0  ;;  %v1058_v36 = vadd.f32 %v293_v26, %v277_v22  ;;  %v799_v22 = vmov 16.0  }
  0xaf   :  { %v259_v25 = vpop.f32.mrf.mxu3  ;;  %356 = vadd.xlane.f32.xlu2 %v355_v24  ;;  %765 = vrcp.f32 %v799_v22 }
  0xb0   :  { %v260_v27 = vadd.f32 %v259_v25, %v186_v23  ;;  %v168_v28 = vpop.f32.mrf.mxu0  ;;  %v334_v40 = vsel %vm321_vm1, %v1058_v36, 0.0 }
  0xb1   :  { %v241_v31 = vpop.f32.mrf.mxu1  ;;  %332 = vadd.xlane.f32.xlu1 %v331_v30 }
  0xb2   :  { %v285_v33 = vadd.f32 %v984_v29, %v260_v27  ;;  %v242_v34 = vadd.f32 %v241_v31, %v168_v28 }
  0xb4   :  { %v1060_v37 = vadd.f32 %v301_v32, %v285_v33  ;;  %v278_v38 = vadd.f32 %v984_v29, %v242_v34 }
  0xb5   :  { %v766_v23 = vpop.eup %765 }
  0xb6   :  { %v188_v39 = vpop.f32.mrf.mxu2  ;;  %v358_v41 = vsel %vm321_vm1, %v1060_v37, 0.0  ;;  %v1074_v52 = vadd.f32 %v294_v43, %v278_v38  ;;  %v371_v24 = vmul.f32 16.0, %v766_v23  ;;  %vm375_vm2 = vweird.f32 %v766_v23 }
  0xb7   :  { %v261_v42 = vpop.f32.mrf.mxu3  ;;  %335 = vadd.xlane.f32.xlu2 %v334_v40  ;;  %359 = vadd.xlane.f32.xlu0 %v358_v41 }
  0xb8   :  { %v262_v44 = vadd.f32 %v261_v42, %v188_v39  ;;  %v171_v45 = vpop.f32.mrf.mxu0  ;;  %v337_v57 = vsel %vm321_vm1, %v1074_v52, 0.0  ;;  %v372_v25 = vsub.f32 1.0, %v371_v24 }
  0xb9   :  { %v244_v47 = vpop.f32.mrf.mxu1 }
  0xba   :  { %v286_v50 = vadd.f32 %v984_v29, %v262_v44  ;;  %v245_v51 = vadd.f32 %v244_v47, %v171_v45  ;;  %v373_v26 = vmul.f32 %v766_v23, %v372_v25 }
  0xbc   :  { %v279_v54 = vadd.f32 %v984_v29, %v245_v51  ;;  %v1080_v55 = vadd.f32 %v302_v48, %v286_v50  ;;  %v374_v27 = vadd.f32 %v766_v23, %v373_v26 }
  0xbe   :  { %v191_v56 = vpop.f32.mrf.mxu2  ;;  %v361_v58 = vsel %vm321_vm1, %v1080_v55, 0.0  ;;  %v1086_v59 = vadd.f32 %v295_v53, %v279_v54  ;;  %v1114_v28 = vsel %vm375_vm2, %v766_v23, %v374_v27 }
  0xbf   :  { %v264_v61 = vpop.f32.mrf.mxu3  ;;  %338 = vadd.xlane.f32.xlu2 %v337_v57  ;;  %362 = vadd.xlane.f32.xlu1 %v361_v58 }
  0xc0   :  { %v265_v63 = vadd.f32 %v264_v61, %v191_v56  ;;  %v173_v0 = vpop.f32.mrf.mxu0  ;;  %v340_v1 = vsel %vm321_vm1, %v1086_v59, 0.0 }
  0xc1   :  { %v246_v2 = vpop.f32.mrf.mxu1  ;;  %341 = vadd.xlane.f32.xlu0 %v340_v1 }
  0xc2   :  { %v287_v4 = vadd.f32 %v984_v29, %v265_v63  ;;  %v247_v5 = vadd.f32 %v246_v2, %v173_v0 }
  0xc4   :  { %v280_v7 = vadd.f32 %v984_v29, %v247_v5  ;;  %v1098_v9 = vadd.f32 %v303_v3, %v287_v4 }
  0xc6   :  { %v193_v10 = vpop.f32.mrf.mxu2  ;;  %v364_v11 = vsel %vm321_vm1, %v1098_v9, 0.0  ;;  %v1102_v12 = vadd.f32 %v296_v6, %v280_v7 }
  0xc7   :  { %v266_v13 = vpop.f32.mrf.mxu3  ;;  %365 = vadd.xlane.f32.xlu2 %v364_v11 }
  0xc8   :  { %v267_v14 = vadd.f32 %v266_v13, %v193_v10  ;;  %v343_v15 = vsel %vm321_vm1, %v1102_v12, 0.0 }
  0xc9   :  { %344 = vadd.xlane.f32.xlu1 %v343_v15 }
  0xca   :  { %v288_v17 = vadd.f32 %v984_v29, %v267_v14 }
  0xcc   :  { %v1110_v18 = vadd.f32 %v304_v16, %v288_v17 }
  0xce   :  { %v367_v19 = vsel %vm321_vm1, %v1110_v18, 0.0 }
  0xcf   :  { %368 = vadd.xlane.f32.xlu0 %v367_v19 }
 0x104   :  { %v324_v30 = vpop.xlane.xlu0 %323 }
 0x105   :  { %v377_v31 = vmul.f32 %v1114_v28, %v324_v30 }
 0x107   :  { %v1118_v29 = vsub.f32 %v990_v35, %v377_v31 }
 0x109   :  { %v409_v32 = vmul.f32 %v1118_v29, %v1118_v29 }
 0x10a   :  { %v348_v33 = vpop.xlane.xlu2 %347 }
 0x10b   :  { %v385_v34 = vmul.f32 %v1114_v28, %v348_v33  ;;  %v425_v38 = vsel %vm321_vm1, %v409_v32, 0.0 }
 0x10c   :  { %426 = vadd.xlane.f32.xlu1 %v425_v38  ;;  %v327_v39 = vpop.xlane.xlu0 %326 }
 0x10d   :  { %v1125_v40 = vsub.f32 %v1002_v46, %v385_v34  ;;  %v378_v41 = vmul.f32 %v1114_v28, %v327_v39 }
 0x10f   :  { %v1129_v42 = vsub.f32 %v1006_v49, %v378_v41  ;;  %v417_v35 = vmul.f32 %v1125_v40, %v1125_v40 }
 0x111   :  { %v449_v43 = vsel %vm321_vm1, %v417_v35, 0.0  ;;  %v410_v44 = vmul.f32 %v1129_v42, %v1129_v42 }
 0x112   :  { %450 = vadd.xlane.f32.xlu0 %v449_v43 }
 0x113   :  { %v428_v45 = vsel %vm321_vm1, %v410_v44, 0.0 }
 0x114   :  { %v330_v47 = vpop.xlane.xlu1 %329  ;;  %429 = vadd.xlane.f32.xlu2 %v428_v45  ;;  %v351_v46 = vpop.xlane.xlu0 %350 }
 0x115   :  { %v379_v48 = vmul.f32 %v1114_v28, %v330_v47  ;;  %v386_v50 = vmul.f32 %v1114_v28, %v351_v46 }
 0x117   :  { %v1140_v49 = vsub.f32 %v1020_v62, %v379_v48  ;;  %v1143_v51 = vsub.f32 %v1018_v60, %v386_v50 }
 0x119   :  { %v411_v53 = vmul.f32 %v1140_v49, %v1140_v49  ;;  %v418_v54 = vmul.f32 %v1143_v51, %v1143_v51 }
 0x11b   :  { %v431_v56 = vsel %vm321_vm1, %v411_v53, 0.0  ;;  %v452_v57 = vsel %vm321_vm1, %v418_v54, 0.0 }
 0x11c   :  { %v354_v58 = vpop.xlane.xlu1 %353  ;;  %432 = vadd.xlane.f32.xlu0 %v431_v56  ;;  %453 = vadd.xlane.f32.xlu1 %v452_v57 }
 0x11d   :  { %v387_v61 = vmul.f32 %v1114_v28, %v354_v58 }
 0x11f   :  { %v1153_v62 = vsub.f32 %v1030_v8, %v387_v61 }
 0x121   :  { %v419_v60 = vmul.f32 %v1153_v62, %v1153_v62 }
 0x122   :  { %v357_v63 = vpop.xlane.xlu2 %356 }
 0x123   :  { %v388_v0 = vmul.f32 %v1114_v28, %v357_v63  ;;  %v455_v1 = vsel %vm321_vm1, %v419_v60, 0.0 }
 0x124   :  { %v333_v2 = vpop.xlane.xlu1 %332  ;;  %456 = vadd.xlane.f32.xlu2 %v455_v1 }
 0x125   :  { %v1160_v3 = vsub.f32 %v1042_v20, %v388_v0  ;;  %v380_v4 = vmul.f32 %v1114_v28, %v333_v2 }
 0x127   :  { %v1164_v5 = vsub.f32 %v1044_v21, %v380_v4  ;;  %v420_v8 = vmul.f32 %v1160_v3, %v1160_v3 }
 0x129   :  { %v458_v6 = vsel %vm321_vm1, %v420_v8, 0.0  ;;  %v412_v7 = vmul.f32 %v1164_v5, %v1164_v5 }
 0x12a   :  { %v336_v10 = vpop.xlane.xlu2 %335  ;;  %459 = vadd.xlane.f32.xlu0 %v458_v6  ;;  %v360_v11 = vpop.xlane.xlu0 %359 }
 0x12b   :  { %v381_v13 = vmul.f32 %v1114_v28, %v336_v10  ;;  %v389_v20 = vmul.f32 %v1114_v28, %v360_v11  ;;  %v434_v14 = vsel %vm321_vm1, %v412_v7, 0.0 }
 0x12c   :  { %435 = vadd.xlane.f32.xlu1 %v434_v14 }
 0x12d   :  { %v1175_v21 = vsub.f32 %v1058_v36, %v381_v13  ;;  %v1178_v15 = vsub.f32 %v1060_v37, %v389_v20 }
 0x12f   :  { %v413_v16 = vmul.f32 %v1175_v21, %v1175_v21  ;;  %v421_v17 = vmul.f32 %v1178_v15, %v1178_v15 }
 0x131   :  { %v437_v19 = vsel %vm321_vm1, %v413_v16, 0.0  ;;  %v461_v24 = vsel %vm321_vm1, %v421_v17, 0.0 }
 0x132   :  { %v339_v22 = vpop.xlane.xlu2 %338  ;;  %438 = vadd.xlane.f32.xlu2 %v437_v19  ;;  %v363_v25 = vpop.xlane.xlu1 %362 }
 0x133   :  { %v382_v23 = vmul.f32 %v1114_v28, %v339_v22  ;;  %v390_v41 = vmul.f32 %v1114_v28, %v363_v25 }
 0x134   :  { %462 = vadd.xlane.f32.xlu1 %v461_v24  ;;  %v342_v36 = vpop.xlane.xlu0 %341 }
 0x135   :  { %v1188_v37 = vsub.f32 %v1074_v52, %v382_v23  ;;  %v383_v26 = vmul.f32 %v1114_v28, %v342_v36  ;;  %v1240_v36 = vld [vmem:[%s1439_s6] ss:$0 sm:$0xff] }
 0x137   :  { %v1192_v27 = vsub.f32 %v1086_v59, %v383_v26  ;;  %v414_v30 = vmul.f32 %v1188_v37, %v1188_v37 }
 0x139   :  { %v440_v31 = vsel %vm321_vm1, %v414_v30, 0.0  ;;  %v415_v32 = vmul.f32 %v1192_v27, %v1192_v27 }
 0x13a   :  { %v366_v33 = vpop.xlane.xlu2 %365  ;;  %441 = vadd.xlane.f32.xlu0 %v440_v31 }
 0x13b   :  { %v391_v34 = vmul.f32 %v1114_v28, %v366_v33  ;;  %v443_v52 = vsel %vm321_vm1, %v415_v32, 0.0  ;;  %v1247_v32 = vld [vmem:[%s1440_s7] ss:$0 sm:$0xff] }
 0x13c   :  { %v345_v38 = vpop.xlane.xlu1 %344  ;;  %444 = vadd.xlane.f32.xlu1 %v443_v52 }
 0x13d   :  { %v1202_v39 = vsub.f32 %v1098_v9, %v391_v34  ;;  %v384_v59 = vmul.f32 %v1114_v28, %v345_v38  ;;  %v1215_v9 = vsub.f32 %v1080_v55, %v390_v41 }
 0x13f   :  { %v1207_v35 = vsub.f32 %v1102_v12, %v384_v59  ;;  %v423_v43 = vmul.f32 %v1202_v39, %v1202_v39  ;;  %v422_v53 = vmul.f32 %v1215_v9, %v1215_v9 }
 0x141   :  { %v467_v44 = vsel %vm321_vm1, %v423_v43, 0.0  ;;  %v416_v45 = vmul.f32 %v1207_v35, %v1207_v35  ;;  %v464_v55 = vsel %vm321_vm1, %v422_v53, 0.0 }
 0x142   :  { %468 = vadd.xlane.f32.xlu0 %v467_v44  ;;  %v369_v47 = vpop.xlane.xlu0 %368 }
 0x143   :  { %v392_v46 = vmul.f32 %v1114_v28, %v369_v47  ;;  %v446_v48 = vsel %vm321_vm1, %v416_v45, 0.0 }
 0x144   :  { %447 = vadd.xlane.f32.xlu2 %v446_v48 }
 0x145   :  { %v1220_v12 = vsub.f32 %v1110_v18, %v392_v46 }
 0x147   :  { %v424_v50 = vmul.f32 %v1220_v12, %v1220_v12 }
 0x149   :  { %v470_v54 = vsel %vm321_vm1, %v424_v50, 0.0 }
 0x14a   :  { %471 = vadd.xlane.f32.xlu1 %v470_v54 }
 0x14c   :  { %465 = vadd.xlane.f32.xlu2 %v464_v55 }
 0x17f   :  { %v427_v56 = vpop.xlane.xlu1 %426 }
 0x180   :  { %v473_v57 = vmul.f32 %v427_v56, %v1114_v28 }
 0x182   :  { %v489_v58 = vadd.f32 1e-05, %v473_v57 }
 0x184   :  { %767 = vrsqrt.f32 %v489_v58  ;;  %vm511_vm4 = vweird.f32 %v489_v58 }
 0x185   :  { %v451_v61 = vpop.xlane.xlu0 %450 }
 0x186   :  { %v481_v18 = vmul.f32 %v451_v61, %v1114_v28 }
 0x187   :  { %v430_v60 = vpop.xlane.xlu2 %429 }
 0x188   :  { %v497_v63 = vadd.f32 1e-05, %v481_v18  ;;  %v474_v0 = vmul.f32 %v430_v60, %v1114_v28 }
 0x18a   :  { %v768_v1 = vpop.eup %767  ;;  %769 = vrsqrt.f32 %v497_v63  ;;  %v490_v2 = vadd.f32 1e-05, %v474_v0  ;;  %vm591_vm7 = vweird.f32 %v497_v63 }
 0x18b   :  { %v506_v4 = vmul.f32 %v768_v1, %v489_v58  ;;  %vm512_vm3 = vweird.f32 %v768_v1 }
 0x18c   :  { %771 = vrsqrt.f32 %v490_v2  ;;  %vm513_vm5 = vmor %vm511_vm4, %vm512_vm3  ;;  %vm521_vm10 = vweird.f32 %v490_v2 }
 0x18d   :  { %v507_v8 = vmul.f32 %v768_v1, %v506_v4 }
 0x18f   :  { %v508_v6 = vmul.f32 0.5, %v507_v8  ;;  %v454_v7 = vpop.xlane.xlu1 %453  ;;  %v433_v10 = vpop.xlane.xlu0 %432 }
 0x190   :  { %v770_v11 = vpop.eup %769  ;;  %v482_v13 = vmul.f32 %v454_v7, %v1114_v28  ;;  %v475_v20 = vmul.f32 %v433_v10, %v1114_v28 }
 0x191   :  { %v509_v14 = vsub.f32 1.5, %v508_v6  ;;  %v586_v16 = vmul.f32 %v770_v11, %v497_v63  ;;  %vm592_vm6 = vweird.f32 %v770_v11 }
 0x192   :  { %v772_v17 = vpop.eup %771  ;;  %v1233_v19 = vadd.f32 1e-05, %v482_v13  ;;  %v1235_v22 = vadd.f32 1e-05, %v475_v20  ;;  %vm593_vm9 = vmor %vm591_vm7, %vm592_vm6 }
 0x193   :  { %v510_v23 = vmul.f32 %v768_v1, %v509_v14  ;;  %v587_v24 = vmul.f32 %v770_v11, %v586_v16  ;;  %v516_v25 = vmul.f32 %v772_v17, %v490_v2  ;;  %vm522_vm8 = vweird.f32 %v772_v17 }
 0x194   :  { %773 = vrsqrt.f32 %v1233_v19  ;;  %vm523_vm11 = vmor %vm521_vm10, %vm522_vm8  ;;  %vm601_vm14 = vweird.f32 %v1233_v19  ;;  %vm531_vm0 = vweird.f32 %v1235_v22 }
 0x195   :  { %v514_v26 = vsel %vm513_vm5, %v768_v1, %v510_v23  ;;  %v588_v30 = vmul.f32 0.5, %v587_v24  ;;  %v517_v31 = vmul.f32 %v772_v17, %v516_v25  ;;  %775 = vrsqrt.f32 %v1235_v22 }
 0x196   :  { %v665_v33 = vmul.f32 %v514_v26, %v1118_v29 }
 0x197   :  { %v589_v34 = vsub.f32 1.5, %v588_v30  ;;  %v518_v52 = vmul.f32 0.5, %v517_v31  ;;  %v457_v38 = vpop.xlane.xlu2 %456 }
 0x198   :  { %v685_v59 = vmul.f32 %v1240_v36, %v665_v33  ;;  %v483_v41 = vmul.f32 %v457_v38, %v1114_v28 }
 0x199   :  { %v590_v43 = vmul.f32 %v770_v11, %v589_v34  ;;  %v519_v44 = vsub.f32 1.5, %v518_v52 }
 0x19a   :  { %v774_v45 = vpop.eup %773  ;;  %v705_v47 = vadd.f32 %v1247_v32, %v685_v59  ;;  %v1253_v46 = vadd.f32 1e-05, %v483_v41 }
 0x19b   :  { %v776_v48 = vpop.eup %775  ;;  %v594_v29 = vsel %vm593_vm9, %v770_v11, %v590_v43  ;;  %v520_v50 = vmul.f32 %v772_v17, %v519_v44  ;;  %v596_v53 = vmul.f32 %v774_v45, %v1233_v19  ;;  %vm602_vm12 = vweird.f32 %v774_v45 }
 0x19c   :  { %721 = vst.msk [vmem:[%s1441_s8] sm:$0xff] %vm321_vm1, %v705_v47  ;;  %v673_v54 = vmul.f32 %v594_v29, %v1125_v40  ;;  %v526_v55 = vmul.f32 %v776_v48, %v1235_v22  ;;  %777 = vrsqrt.f32 %v1253_v46  ;;  %vm532_vm13 = vweird.f32 %v776_v48  ;;  %vm603_vm15 = vmor %vm601_vm14, %vm602_vm12 }
 0x19d   :  { %v524_v56 = vsel %vm523_vm11, %v772_v17, %v520_v50  ;;  %v597_v57 = vmul.f32 %v774_v45, %v596_v53  ;;  %v460_v58 = vpop.xlane.xlu0 %459  ;;  %vm533_vm2 = vmor %vm531_vm0, %vm532_vm13  ;;  %vm611_vm4 = vweird.f32 %v1253_v46 }
 0x19e   :  { %v693_v61 = vmul.f32 %v1240_v36, %v673_v54  ;;  %v666_v18 = vmul.f32 %v524_v56, %v1129_v42  ;;  %v527_v60 = vmul.f32 %v776_v48, %v526_v55  ;;  %v484_v63 = vmul.f32 %v460_v58, %v1114_v28 }
 0x19f   :  { %v598_v0 = vmul.f32 0.5, %v597_v57  ;;  %v436_v1 = vpop.xlane.xlu1 %435 }
 0x1a0   :  { %v713_v2 = vadd.f32 %v1247_v32, %v693_v61  ;;  %v686_v40 = vmul.f32 %v1240_v36, %v666_v18  ;;  %v528_v4 = vmul.f32 0.5, %v527_v60  ;;  %v1268_v8 = vadd.f32 1e-05, %v484_v63 }
 0x1a1   :  { %v599_v6 = vsub.f32 1.5, %v598_v0  ;;  %v476_v7 = vmul.f32 %v436_v1, %v1114_v28 }
 0x1a2   :  { %v778_v10 = vpop.eup %777  ;;  %729 = vst.msk [vmem:[%s1441_s8 + $0x40] sm:$0xff] %vm321_vm1, %v713_v2  ;;  %v706_v42 = vadd.f32 %v1247_v32, %v686_v40  ;;  %v529_v11 = vsub.f32 1.5, %v528_v4  ;;  %779 = vrsqrt.f32 %v1268_v8  ;;  %vm621_vm7 = vweird.f32 %v1268_v8 }
 0x1a3   :  { %v600_v13 = vmul.f32 %v774_v45, %v599_v6  ;;  %v606_v20 = vmul.f32 %v778_v10, %v1253_v46  ;;  %v1279_v14 = vadd.f32 1e-05, %v476_v7  ;;  %vm612_vm3 = vweird.f32 %v778_v10 }
 0x1a4   :  { %722 = vst.msk [vmem:[%s1441_s8 + $0x8] sm:$0xff] %vm321_vm1, %v706_v42  ;;  %v530_v16 = vmul.f32 %v776_v48, %v529_v11  ;;  %vm613_vm5 = vmor %vm611_vm4, %vm612_vm3 }
 0x1a5   :  { %v604_v17 = vsel %vm603_vm15, %v774_v45, %v600_v13  ;;  %v607_v23 = vmul.f32 %v778_v10, %v606_v20  ;;  %781 = vrsqrt.f32 %v1279_v14  ;;  %v439_v24 = vpop.xlane.xlu2 %438  ;;  %vm541_vm10 = vweird.f32 %v1279_v14 }
 0x1a6   :  { %v674_v19 = vmul.f32 %v604_v17, %v1143_v51  ;;  %v534_v25 = vsel %vm533_vm2, %v776_v48, %v530_v16  ;;  %v477_v26 = vmul.f32 %v439_v24, %v1114_v28 }
 0x1a7   :  { %v667_v30 = vmul.f32 %v534_v25, %v1140_v49  ;;  %v608_v31 = vmul.f32 0.5, %v607_v23  ;;  %v463_v33 = vpop.xlane.xlu1 %462 }
 0x1a8   :  { %v780_v34 = vpop.eup %779  ;;  %v694_v52 = vmul.f32 %v1240_v36, %v674_v19  ;;  %v1291_v38 = vadd.f32 1e-05, %v477_v26  ;;  %v485_v22 = vmul.f32 %v463_v33, %v1114_v28 }
 0x1a9   :  { %v687_v59 = vmul.f32 %v1240_v36, %v667_v30  ;;  %v609_v41 = vsub.f32 1.5, %v608_v31  ;;  %v616_v51 = vmul.f32 %v780_v34, %v1268_v8  ;;  %vm622_vm6 = vweird.f32 %v780_v34 }
 0x1aa   :  { %v714_v43 = vadd.f32 %v1247_v32, %v694_v52  ;;  %783 = vrsqrt.f32 %v1291_v38  ;;  %v1298_v49 = vadd.f32 1e-05, %v485_v22  ;;  %vm623_vm8 = vmor %vm621_vm7, %vm622_vm6  ;;  %vm551_vm13 = vweird.f32 %v1291_v38 }
 0x1ab   :  { %v782_v44 = vpop.eup %781  ;;  %v707_v45 = vadd.f32 %v1247_v32, %v687_v59  ;;  %v610_v47 = vmul.f32 %v778_v10, %v609_v41  ;;  %v617_v48 = vmul.f32 %v780_v34, %v616_v51 }
 0x1ac   :  { %730 = vst.msk [vmem:[%s1441_s8 + $0x48] sm:$0xff] %vm321_vm1, %v714_v43  ;;  %v536_v29 = vmul.f32 %v782_v44, %v1279_v14  ;;  %785 = vrsqrt.f32 %v1298_v49  ;;  %vm542_vm9 = vweird.f32 %v782_v44  ;;  %vm631_vm0 = vweird.f32 %v1298_v49 }
 0x1ad   :  { %723 = vst.msk [vmem:[%s1441_s8 + $0x10] sm:$0xff] %vm321_vm1, %v707_v45  ;;  %v614_v50 = vsel %vm613_vm5, %v778_v10, %v610_v47  ;;  %v618_v53 = vmul.f32 0.5, %v617_v48  ;;  %v442_v54 = vpop.xlane.xlu0 %441  ;;  %vm543_vm11 = vmor %vm541_vm10, %vm542_vm9 }
 0x1ae   :  { %v675_v46 = vmul.f32 %v614_v50, %v1153_v62  ;;  %v537_v55 = vmul.f32 %v782_v44, %v536_v29  ;;  %v478_v56 = vmul.f32 %v442_v54, %v1114_v28 }
 0x1af   :  { %v619_v57 = vsub.f32 1.5, %v618_v53  ;;  %v445_v58 = vpop.xlane.xlu1 %444 }
 0x1b0   :  { %v784_v61 = vpop.eup %783  ;;  %v695_v18 = vmul.f32 %v1240_v36, %v675_v46  ;;  %v538_v60 = vmul.f32 0.5, %v537_v55  ;;  %v1315_v63 = vadd.f32 1e-05, %v478_v56  ;;  %v479_v0 = vmul.f32 %v445_v58, %v1114_v28 }
 0x1b1   :  { %v620_v1 = vmul.f32 %v780_v34, %v619_v57  ;;  %v546_v2 = vmul.f32 %v784_v61, %v1291_v38  ;;  %vm552_vm12 = vweird.f32 %v784_v61 }
 0x1b2   :  { %v786_v62 = vpop.eup %785  ;;  %v715_v40 = vadd.f32 %v1247_v32, %v695_v18  ;;  %v539_v4 = vsub.f32 1.5, %v538_v60  ;;  %787 = vrsqrt.f32 %v1315_v63  ;;  %v1329_v11 = vadd.f32 1e-05, %v479_v0  ;;  %vm553_vm15 = vmor %vm551_vm13, %vm552_vm12 }
 0x1b3   :  { %v624_v6 = vsel %vm623_vm8, %v780_v34, %v620_v1  ;;  %v547_v7 = vmul.f32 %v784_v61, %v546_v2  ;;  %v626_v10 = vmul.f32 %v786_v62, %v1298_v49  ;;  %vm632_vm14 = vweird.f32 %v786_v62 }
 0x1b4   :  { %731 = vst.msk [vmem:[%s1441_s8 + $0x50] sm:$0xff] %vm321_vm1, %v715_v40  ;;  %v676_v8 = vmul.f32 %v624_v6, %v1160_v3  ;;  %v540_v42 = vmul.f32 %v782_v44, %v539_v4  ;;  %789 = vrsqrt.f32 %v1329_v11  ;;  %vm633_vm2 = vmor %vm631_vm0, %vm632_vm14  ;;  %vm561_vm4 = vweird.f32 %v1315_v63 }
 0x1b5   :  { %v548_v13 = vmul.f32 0.5, %v547_v7  ;;  %v627_v20 = vmul.f32 %v786_v62, %v626_v10  ;;  %v469_v16 = vpop.xlane.xlu0 %468  ;;  %vm571_vm7 = vweird.f32 %v1329_v11 }
 0x1b6   :  { %v696_v17 = vmul.f32 %v1240_v36, %v676_v8  ;;  %v544_v23 = vsel %vm543_vm11, %v782_v44, %v540_v42  ;;  %v487_v3 = vmul.f32 %v469_v16, %v1114_v28 }
 0x1b7   :  { %v668_v24 = vmul.f32 %v544_v23, %v1164_v5  ;;  %v549_v19 = vsub.f32 1.5, %v548_v13  ;;  %v628_v25 = vmul.f32 0.5, %v627_v20  ;;  %v448_v26 = vpop.xlane.xlu2 %447 }
 0x1b8   :  { %v788_v14 = vpop.eup %787  ;;  %v716_v30 = vadd.f32 %v1247_v32, %v696_v17  ;;  %v480_v31 = vmul.f32 %v448_v26, %v1114_v28  ;;  %v1346_v5 = vadd.f32 1e-05, %v487_v3 }
 0x1b9   :  { %v688_v33 = vmul.f32 %v1240_v36, %v668_v24  ;;  %v550_v34 = vmul.f32 %v784_v61, %v549_v19  ;;  %v629_v52 = vsub.f32 1.5, %v628_v25  ;;  %v556_v22 = vmul.f32 %v788_v14, %v1315_v63 }
 0x1ba   :  { %732 = vst.msk [vmem:[%s1441_s8 + $0x58] sm:$0xff] %vm321_vm1, %v716_v30  ;;  %v1348_v38 = vadd.f32 1e-05, %v480_v31  ;;  %v790_v44 = vpop.eup %789  ;;  %791 = vrsqrt.f32 %v1346_v5  ;;  %vm562_vm3 = vweird.f32 %v788_v14  ;;  %vm651_vm10 = vweird.f32 %v1346_v5 }
 0x1bb   :  { %v708_v59 = vadd.f32 %v1247_v32, %v688_v33  ;;  %v554_v41 = vsel %vm553_vm15, %v784_v61, %v550_v34  ;;  %v630_v51 = vmul.f32 %v786_v62, %v629_v52  ;;  %v557_v43 = vmul.f32 %v788_v14, %v556_v22  ;;  %vm563_vm5 = vmor %vm561_vm4, %vm562_vm3 }
 0x1bc   :  { %v669_v45 = vmul.f32 %v554_v41, %v1175_v21  ;;  %v566_v48 = vmul.f32 %v790_v44, %v1329_v11  ;;  %793 = vrsqrt.f32 %v1348_v38  ;;  %vm572_vm6 = vweird.f32 %v790_v44 }
 0x1bd   :  { %724 = vst.msk [vmem:[%s1441_s8 + $0x18] sm:$0xff] %vm321_vm1, %v708_v59  ;;  %v634_v49 = vsel %vm633_vm2, %v786_v62, %v630_v51  ;;  %v558_v47 = vmul.f32 0.5, %v557_v43  ;;  %v472_v29 = vpop.xlane.xlu1 %471  ;;  %vm573_vm8 = vmor %vm571_vm7, %vm572_vm6  ;;  %vm581_vm13 = vweird.f32 %v1348_v38 }
 0x1be   :  { %v689_v50 = vmul.f32 %v1240_v36, %v669_v45  ;;  %v677_v53 = vmul.f32 %v634_v49, %v1178_v15  ;;  %v488_v21 = vmul.f32 %v472_v29, %v1114_v28  ;;  %v567_v46 = vmul.f32 %v790_v44, %v566_v48 }
 0x1bf   :  { %v559_v54 = vsub.f32 1.5, %v558_v47  ;;  %v466_v55 = vpop.xlane.xlu2 %465 }
 0x1c0   :  { %v709_v56 = vadd.f32 %v1247_v32, %v689_v50  ;;  %v697_v57 = vmul.f32 %v1240_v36, %v677_v53  ;;  %v1365_v58 = vadd.f32 1e-05, %v488_v21  ;;  %v486_v61 = vmul.f32 %v466_v55, %v1114_v28  ;;  %v792_v60 = vpop.eup %791 }
 0x1c1   :  { %v560_v18 = vmul.f32 %v788_v14, %v559_v54  ;;  %v568_v15 = vmul.f32 0.5, %v567_v46  ;;  %v646_v28 = vmul.f32 %v792_v60, %v1346_v5  ;;  %vm652_vm9 = vweird.f32 %v792_v60 }
 0x1c2   :  { %725 = vst.msk [vmem:[%s1441_s8 + $0x20] sm:$0xff] %vm321_vm1, %v709_v56  ;;  %v717_v0 = vadd.f32 %v1247_v32, %v697_v57  ;;  %795 = vrsqrt.f32 %v1365_v58  ;;  %v1375_v1 = vadd.f32 1e-05, %v486_v61  ;;  %v794_v63 = vpop.eup %793  ;;  %vm653_vm12 = vmor %vm651_vm10, %vm652_vm9  ;;  %vm661_vm0 = vweird.f32 %v1365_v58 }
 0x1c3   :  { %v564_v2 = vsel %vm563_vm5, %v788_v14, %v560_v18  ;;  %v569_v62 = vsub.f32 1.5, %v568_v15  ;;  %v647_v6 = vmul.f32 %v792_v60, %v646_v28  ;;  %v576_v7 = vmul.f32 %v794_v63, %v1348_v38 }
 0x1c4   :  { %733 = vst.msk [vmem:[%s1441_s8 + $0x60] sm:$0xff] %vm321_vm1, %v717_v0  ;;  %v670_v40 = vmul.f32 %v564_v2, %v1188_v37  ;;  %797 = vrsqrt.f32 %v1375_v1  ;;  %vm582_vm11 = vweird.f32 %v794_v63  ;;  %vm641_vm4 = vweird.f32 %v1375_v1 }
 0x1c5   :  { %v570_v4 = vmul.f32 %v790_v44, %v569_v62  ;;  %v648_v42 = vmul.f32 0.5, %v647_v6  ;;  %v577_v13 = vmul.f32 %v794_v63, %v576_v7  ;;  %vm583_vm14 = vmor %vm581_vm13, %vm582_vm11 }
 0x1c6   :  { %v690_v10 = vmul.f32 %v1240_v36, %v670_v40 }
 0x1c7   :  { %v574_v8 = vsel %vm573_vm8, %v790_v44, %v570_v4  ;;  %v649_v37 = vsub.f32 1.5, %v648_v42  ;;  %v578_v23 = vmul.f32 0.5, %v577_v13 }
 0x1c8   :  { %v796_v20 = vpop.eup %795  ;;  %v710_v16 = vadd.f32 %v1247_v32, %v690_v10  ;;  %v671_v17 = vmul.f32 %v574_v8, %v1192_v27 }
 0x1c9   :  { %v656_v24 = vmul.f32 %v796_v20, %v1365_v58  ;;  %v650_v25 = vmul.f32 %v792_v60, %v649_v37  ;;  %v579_v3 = vsub.f32 1.5, %v578_v23  ;;  %vm662_vm15 = vweird.f32 %v796_v20 }
 0x1ca   :  { %v798_v11 = vpop.eup %797  ;;  %726 = vst.msk [vmem:[%s1441_s8 + $0x28] sm:$0xff] %vm321_vm1, %v710_v16  ;;  %v691_v19 = vmul.f32 %v1240_v36, %v671_v17  ;;  %vm663_vm3 = vmor %vm661_vm0, %vm662_vm15 }
 0x1cb   :  { %v657_v26 = vmul.f32 %v796_v20, %v656_v24  ;;  %v636_v27 = vmul.f32 %v798_v11, %v1375_v1  ;;  %v654_v30 = vsel %vm653_vm12, %v792_v60, %v650_v25  ;;  %v580_v31 = vmul.f32 %v794_v63, %v579_v3 }
 0x1cc   :  { %v711_v14 = vadd.f32 %v1247_v32, %v691_v19  ;;  %v679_v52 = vmul.f32 %v654_v30, %v1202_v39  ;;  %vm642_vm2 = vweird.f32 %v798_v11 }
 0x1cd   :  { %v658_v33 = vmul.f32 0.5, %v657_v26  ;;  %v637_v34 = vmul.f32 %v798_v11, %v636_v27  ;;  %v584_v22 = vsel %vm583_vm14, %v794_v63, %v580_v31  ;;  %vm643_vm5 = vmor %vm641_vm4, %vm642_vm2 }
 0x1ce   :  { %727 = vst.msk [vmem:[%s1441_s8 + $0x30] sm:$0xff] %vm321_vm1, %v711_v14  ;;  %v699_v41 = vmul.f32 %v1240_v36, %v679_v52  ;;  %v672_v38 = vmul.f32 %v584_v22, %v1207_v35 }
 0x1cf   :  { %v659_v5 = vsub.f32 1.5, %v658_v33  ;;  %v638_v59 = vmul.f32 0.5, %v637_v34 }
 0x1d0   :  { %v719_v44 = vadd.f32 %v1247_v32, %v699_v41  ;;  %v692_v45 = vmul.f32 %v1240_v36, %v672_v38 }
 0x1d1   :  { %v660_v51 = vmul.f32 %v796_v20, %v659_v5  ;;  %v639_v43 = vsub.f32 1.5, %v638_v59 }
 0x1d2   :  { %735 = vst.msk [vmem:[%s1441_s8 + $0x70] sm:$0xff] %vm321_vm1, %v719_v44  ;;  %v712_v35 = vadd.f32 %v1247_v32, %v692_v45 }
 0x1d3   :  { %v664_v39 = vsel %vm663_vm3, %v796_v20, %v660_v51  ;;  %v640_v49 = vmul.f32 %v798_v11, %v639_v43 }
 0x1d4   :  { %v680_v47 = vmul.f32 %v664_v39, %v1220_v12  ;;  %728 = vst.msk [vmem:[%s1441_s8 + $0x38] sm:$0xff] %vm321_vm1, %v712_v35 }
 0x1d5   :  { %v644_v48 = vsel %vm643_vm5, %v798_v11, %v640_v49 }
 0x1d6   :  { %v700_v29 = vmul.f32 %v1240_v36, %v680_v47  ;;  %v678_v50 = vmul.f32 %v644_v48, %v1215_v9 }
 0x1d8   :  { %v720_v53 = vadd.f32 %v1247_v32, %v700_v29  ;;  %v698_v21 = vmul.f32 %v1240_v36, %v678_v50 }
 0x1da   :  { %736 = vst.msk [vmem:[%s1441_s8 + $0x78] sm:$0xff] %vm321_vm1, %v720_v53  ;;  %v718_v12 = vadd.f32 %v1247_v32, %v698_v21 }
 0x1dc   :  { %734 = vst.msk [vmem:[%s1441_s8 + $0x68] sm:$0xff] %vm321_vm1, %v718_v12 }

// kernel: _lambda_.29
= control target key start
LH: loop header
LB: loop body
LE: loop exit
PB: predicated region body
PF: predicated region fallthrough
CT: control target
= control target key end

     0   :  { %s461_s15 = smov 0   ;;  %s508_s0 = inlined_call_operand.vmem [shape: f32[2,16,64], index: 0, kind: input, shape index: {}, may-alias: {0,4}]   ;;  %s509_s1 = inlined_call_operand.vmem [shape: f32[2,16,64], index: 1, kind: input, shape index: {}]   ;;  %s510_s2 = inlined_call_operand.vmem [shape: f32[16,1], index: 2, kind: input, shape index: {}]   ;;  %s511_s3 = inlined_call_operand.vmem [shape: f32[16,1], index: 3, kind: input, shape index: {}]   ;;  %s512_s4 = inlined_call_operand.vmem [shape: f32[2,16,64], index: 4, kind: output, shape index: {}, may-alias: {0,4}]  }
   0x1 LB: > { %s385_s16 = sadd.s32 4294967295, %s432_s15   ;;  %p389_p0 = scmp.ge.s32.totalorder %s432_s15, 1  ;;  %s432_s15 = sphi %s461_s15, %s14_s15  }
   0x2   : > { %p172_p1 = scmp.lt.s32.totalorder %s432_s15, 3 }
   0x4   : > { %p173_p2 = pnand %p389_p0, %p172_p1 }
   0x5   : > { %p203_p3 = scmp.lt.s32.totalorder (!%p173_p2), %s385_s16, 1 }
   0x6   : > { %176 = sbr.rel (%p173_p2) target bundleno = 469 (0x1d5), region = 36 }
   0xb   : > { %s514_s16 = smov (!%p203_p3, %s385_s16), 1  ;;  %vm220_vm0 = vcmask 523264   ;;  %v434_v5 = vmov 1024.0   ;;  %v435_v27 = vmov 0   ;;  %v286_v28 = vld [vmem:[%s510_s2] sm:$0xff]  ;;  %v287_v29 = vld [vmem:[%s510_s2 + $0x8] sm:$0xff] }
   0xc   : > { %s469_s17 = sshll.u32 %s514_s16, 4  ;;  %422 = vrcp.f32 %v434_v5  ;;  %419 = vset.pattern.permute.xlu1 %v435_v27  ;;  %420 = vset.pattern.permute.xlu2 %v435_v27  ;;  %v302_v30 = vld [vmem:[%s511_s3] sm:$0xff]  ;;  %v303_v31 = vld [vmem:[%s511_s3 + $0x8] sm:$0xff] }
   0xd   : > { %s212_s20 = scalar_lea.vmem %s509_s1, %s469_s17  ;;  %290 = vperm.xlu1 %419, %v286_v28   ;;  %421 = vset.pattern.permute.xlu0 %v435_v27  ;;  %s207_s11 = scalar_lea.vmem %s508_s0, %s469_s17 }
   0xe   : > { %v218_v0 = vld [vmem:[%s212_s20] sm:$0xff]  ;;  %v219_v1 = vld [vmem:[%s212_s20 + $0x8] sm:$0xff]  ;;  %306 = vperm.xlu2 %420, %v302_v30   ;;  %s217_s16 = scalar_lea.vmem %s512_s4, %s469_s17 }
   0xf   : > { %v221_v2 = vsel %vm220_vm0, %v218_v0, 0.0  ;;  %v222_v3 = vsel %vm220_vm0, %v219_v1, 0.0  ;;  %v284_v53 = vld [vmem:[%s207_s11] sm:$0xff]  ;;  %v285_v54 = vld [vmem:[%s207_s11 + $0x8] sm:$0xff] }
  0x10   : > { %v223_v4 = vadd.f32 %v222_v3, %v221_v2 }
  0x12   : > { %224 = vadd.xlane.f32.xlu0 %v223_v4  ;;  %v423_v6 = vpop.eup %422 }
  0x13   : > { %v234_v7 = vmul.f32 1024.0, %v423_v6  ;;  %vm238_vm1 = vweird.f32 %v423_v6 }
  0x15   : > { %v235_v8 = vsub.f32 1.0, %v234_v7  ;;  %295 = vperm.xlu1 %419, %v287_v29  }
  0x16   : > { %311 = vperm.xlu2 %420, %v303_v31  }
  0x17   : > { %v236_v12 = vmul.f32 %v423_v6, %v235_v8 }
  0x19   : > { %v237_v15 = vadd.f32 %v423_v6, %v236_v12 }
  0x1b   : > { %v239_v18 = vsel %vm238_vm1, %v423_v6, %v237_v15 }
  0x68   : > { %v307_v48 = vpop.permute.xlu2 %306 }
  0x70   : > { %v312_v59 = vpop.permute.xlu2 %311 }
  0x7f   : > { %v291_v47 = vpop.permute.xlu1 %290 }
  0x85   : > { %v225_v9 = vpop.xlane.xlu0 %224 }
  0x86   : > { %v226_v10 = vrot.slane %v225_v9, 4 }
  0x87   : > { %v296_v52 = vpop.permute.xlu1 %295 }
  0x88   : > { %v227_v11 = vadd.f32 %v226_v10, %v225_v9 }
  0x8a   : > { %v228_v13 = vrot.slane %v227_v11, 2 }
  0x8c   : > { %v229_v14 = vadd.f32 %v228_v13, %v227_v11 }
  0x8e   : > { %v230_v16 = vrot.slane %v229_v14, 1 }
  0x90   : > { %v231_v17 = vadd.f32 %v230_v16, %v229_v14 }
  0x92   : > { %401 = vpush %v231_v17 }
  0x93   : > { %403 = vpush %v239_v18 }
  0xc3   : > { %s402_s21 = spop %401 }
  0xc4   : > { %s477_s22 = spop %403 }
  0xc5   : > { %s241_s23 = smul.f32 %s477_s22, %s402_s21 }
  0xc7   : > { %v242_v19 = vstv %s241_s23 }
  0xc8   : > { %v243_v20 = vsub.f32 %v218_v0, %v242_v19  ;;  %v244_v21 = vsub.f32 %v219_v1, %v242_v19 }
  0xca   : > { %v245_v22 = vmul.f32 %v243_v20, %v243_v20  ;;  %v246_v23 = vmul.f32 %v244_v21, %v244_v21 }
  0xcc   : > { %v247_v24 = vsel %vm220_vm0, %v245_v22, 0.0  ;;  %v248_v25 = vsel %vm220_vm0, %v246_v23, 0.0 }
  0xcd   : > { %v249_v26 = vadd.f32 %v248_v25, %v247_v24 }
  0xcf   : > { %250 = vadd.xlane.f32.xlu0 %v249_v26 }
 0x142   : > { %v251_v32 = vpop.xlane.xlu0 %250 }
 0x143   : > { %v252_v33 = vrot.slane %v251_v32, 4 }
 0x145   : > { %v253_v34 = vadd.f32 %v252_v33, %v251_v32 }
 0x147   : > { %v254_v35 = vrot.slane %v253_v34, 2 }
 0x149   : > { %v255_v36 = vadd.f32 %v254_v35, %v253_v34 }
 0x14b   : > { %v256_v37 = vrot.slane %v255_v36, 1 }
 0x14d   : > { %v257_v38 = vadd.f32 %v256_v37, %v255_v36 }
 0x14f   : > { %405 = vpush %v257_v38 }
 0x180   : > { %s406_s6 = spop %405 }
 0x181   : > { %s267_s7 = smul.f32 %s406_s6, %s477_s22 }
 0x183   : > { %s268_s8 = sadd.f32 1e-08, %s267_s7 }
 0x185   : > { %v269_v39 = vstv %s268_s8 }
 0x186   : > { %424 = vrsqrt.f32 %v269_v39  ;;  %vm276_vm3 = vweird.f32 %v269_v39 }
 0x18c   : > { %v425_v40 = vpop.eup %424 }
 0x18d   : > { %v271_v41 = vmul.f32 %v425_v40, %v269_v39  ;;  %vm277_vm2 = vweird.f32 %v425_v40 }
 0x18e   : > { %vm278_vm4 = vmor %vm276_vm3, %vm277_vm2 }
 0x18f   : > { %v272_v42 = vmul.f32 %v425_v40, %v271_v41 }
 0x191   : > { %v273_v43 = vmul.f32 0.5, %v272_v42 }
 0x193   : > { %v274_v44 = vsub.f32 1.5, %v273_v43 }
 0x195   : > { %v275_v45 = vmul.f32 %v425_v40, %v274_v44 }
 0x197   : > { %v279_v46 = vsel %vm278_vm4, %v425_v40, %v275_v45 }
 0x198   : > { %407 = vpush %v279_v46 }
 0x1c9   : > { %s408_s12 = spop %407 }
 0x1ca   : > { %v281_v49 = vstv %s408_s12 }
 0x1cb   : > { %v282_v50 = vmul.f32 %v281_v49, %v243_v20  ;;  %v283_v51 = vmul.f32 %v281_v49, %v244_v21 }
 0x1cd   : > { %v298_v55 = vmul.f32 %v291_v47, %v282_v50  ;;  %v299_v56 = vmul.f32 %v296_v52, %v283_v51 }
 0x1cf   : > { %v300_v57 = vadd.f32 %v298_v55, %v284_v53  ;;  %v301_v58 = vadd.f32 %v299_v56, %v285_v54 }
 0x1d1   : > { %v314_v60 = vadd.f32 %v307_v48, %v300_v57  ;;  %v315_v61 = vadd.f32 %v312_v59, %v301_v58 }
 0x1d3   : > { %316 = vst.msk [vmem:[%s217_s16] sm:$0xff] %vm220_vm0, %v314_v60 }
 0x1d4   : > { %317 = vst.msk [vmem:[%s217_s16 + $0x8] sm:$0xff] %vm220_vm0, %v315_v61 }
 0x1d5 PF: > { %s14_s15 = sadd.s32 1, %s432_s15  }
 0x1d6   : > { %p11_p4 = scmp.ge.s32.totalorder %s14_s15, 4  }
 0x1d8   :  { %13 = sbr.rel (!%p11_p4) target bundleno = 1 (0x1), region = 69 }

// kernel: _lambda_.39
= control target key start
LH: loop header
LB: loop body
LE: loop exit
PB: predicated region body
PF: predicated region fallthrough
CT: control target
= control target key end

     0   :  { %s482_s17 = smov 0   ;;  %s484_s18 = smov 0   ;;  %s543_s0 = inlined_call_operand.vmem [shape: f32[2,16,64], index: 0, kind: input, shape index: {}]   ;;  %s544_s1 = inlined_call_operand.vmem [shape: f32[32,16], index: 1, kind: input, shape index: {}]   ;;  %s545_s2 = inlined_call_operand.vmem [shape: f32[32,1], index: 2, kind: input, shape index: {}]   ;;  %s546_s3 = inlined_call_operand.<no memory space> [shape: f32[1,1], index: 3, kind: input, shape index: {}]   ;;  %s547_s4 = inlined_call_operand.vmem [shape: f32[2,32,64], index: 4, kind: output, shape index: {}]  }
   0x1   :  { %9 = sst [smem:[#allocation2]] %s546_s3  ;;  %s486_s19 = smov 0  }
   0x2 LB: > { %s27_s3 = sadd.s32 1, %s447_s18  ;;  %p390_p0 = scmp.ge.s32.totalorder %s451_s19, 1  ;;  %s451_s19 = sphi %s486_s19, %s15_s19   ;;  %s447_s18 = sphi %s484_s18, %s549_s18   ;;  %s443_s17 = sphi %s482_s17, %s548_s17  }
   0x3   : > { %p29_p1 = scmp.ge.s32.totalorder %s27_s3, 2  ;;  %p182_p2 = scmp.lt.s32.totalorder %s451_s19, 3 }
   0x5   : > { %s551_s3 = smov (%p29_p1, %s27_s3), 0  ;;  %p183_p3 = pnand %p390_p0, %p182_p2 }
   0x6   : > { %p214_p4 = scmp.lt.s32.totalorder (!%p183_p3), %s443_s17, 1  ;;  %s233_s20 = sld [smem:[#allocation2]] (!%p183_p3) }
   0x7   : > { %186 = sbr.rel (%p183_p3) target bundleno = 162 (0xa2), region = 36 }
   0xc   : > { %v250_v0 = vld [vmem:[%s545_s2 + $0x10] sm:$0xff]  ;;  %s553_s17 = smov (!%p214_p4, %s443_s17), 1  ;;  %v453_v1 = vmov 0   ;;  %v248_v2 = vld [vmem:[%s545_s2] sm:$0xff]  ;;  %v236_v5 = vstv %s233_s20  ;;  %v242_v9 = vld [vmem:[%s544_s1 + $0x8] sm:$0xff]  ;;  %vm272_vm2 = vcmask 130048  }
   0xd   : > { %428 = vset.pattern.permute.xlu1 %v453_v1  ;;  %427 = vset.pattern.permute.xlu0 %v453_v1  ;;  %s399_s25 = sshll.u32 %s553_s17, 4  ;;  %v241_v8 = vld [vmem:[%s544_s1] sm:$0xff]  ;;  %v243_v10 = vld [vmem:[%s544_s1 + $0x10] sm:$0xff]  ;;  %v244_v11 = vld [vmem:[%s544_s1 + $0x18] sm:$0xff]  ;;  %s400_s15 = sshll.u32 %s553_s17, 5  ;;  %vm298_vm3 = vcmask 523264  }
   0xe   : > { %264 = vperm.xlu1 %428, %v250_v0   ;;  %254 = vperm.xlu0 %427, %v248_v2   ;;  %s221_s28 = scalar_lea.vmem %s543_s0, %s399_s25  ;;  %v251_v12 = vld [vmem:[%s545_s2 + $0x18] sm:$0xff]  ;;  %v249_v13 = vld [vmem:[%s545_s2 + $0x8] sm:$0xff]  ;;  %v245_v17 = vpack.c.bf16 %v242_v9, %v241_v8  ;;  %v246_v18 = vpack.c.bf16 %v244_v11, %v243_v10  ;;  %s229_s21 = scalar_lea.vmem %s547_s4, %s400_s15 }
   0xf   : > { %v231_v3 = vld [vmem:[%s221_s28] sm:$0xff]  ;;  %v232_v4 = vld [vmem:[%s221_s28 + $0x8] sm:$0xff] }
  0x10   : > { %vm234_vm0 = vcmp.gt.f32.partialorder %v231_v3, 0.0  ;;  %vm235_vm1 = vcmp.gt.f32.partialorder %v232_v4, 0.0  ;;  %v237_v6 = vmul.f32 %v236_v5, %v231_v3  ;;  %v238_v7 = vmul.f32 %v236_v5, %v232_v4 }
  0x12   : > { %v239_v14 = vsel %vm234_vm0, %v231_v3, %v237_v6  ;;  %v240_v15 = vsel %vm235_vm1, %v232_v4, %v238_v7 }
  0x13   : > { %v247_v16 = vpack.c.bf16 %v240_v15, %v239_v14 }
  0x15   : > { %286 = vmatpush.bf16.msra.mxu0 %v247_v16  ;;  %401 = vmatpush.bf16.msra.mxu1 %v247_v16 }
  0x16   : > { %269 = vperm.xlu1 %428, %v251_v12   ;;  %259 = vperm.xlu0 %427, %v249_v13  }
  0x18   : > { %395 = vmatmul.msk.bf16.vlgmr.msra.gmra.mxu0 %vm272_vm2, %v245_v17  ;;  %396 = vmatmul.msk.bf16.vlgmr.msra.gmra.mxu1 %vm272_vm2, %v246_v18 }
  0x80   : > { %v265_v19 = vpop.permute.xlu1 %264  ;;  %v255_v20 = vpop.permute.xlu0 %254 }
  0x88   : > { %v270_v25 = vpop.permute.xlu1 %269  ;;  %v260_v26 = vpop.permute.xlu0 %259 }
  0x95   : > { %v288_v21 = vpop.f32.mrf.mxu0  ;;  %v293_v22 = vpop.f32.mrf.mxu1 }
  0x96   : > { %v289_v23 = vadd.f32 %v288_v21, %v255_v20  ;;  %v294_v24 = vadd.f32 %v293_v22, %v265_v19 }
  0x98   : > { %299 = vst.msk [vmem:[%s229_s21] sm:$0xff] %vm298_vm3, %v289_v23 }
  0x99   : > { %301 = vst.msk [vmem:[%s229_s21 + $0x10] sm:$0xff] %vm298_vm3, %v294_v24 }
  0x9d   : > { %v290_v27 = vpop.f32.mrf.mxu0  ;;  %v295_v28 = vpop.f32.mrf.mxu1 }
  0x9e   : > { %v291_v29 = vadd.f32 %v290_v27, %v260_v26  ;;  %v296_v30 = vadd.f32 %v295_v28, %v270_v25 }
  0xa0   : > { %300 = vst.msk [vmem:[%s229_s21 + $0x8] sm:$0xff] %vm298_vm3, %v291_v29 }
  0xa1   : > { %302 = vst.msk [vmem:[%s229_s21 + $0x18] sm:$0xff] %vm298_vm3, %v296_v30 }
  0xa2 PF: > { %s15_s19 = sadd.s32 1, %s451_s19   ;;  %s548_s17 = smov %s447_s18 }
  0xa3   : > { %p12_p5 = scmp.ge.s32.totalorder %s15_s19, 4   ;;  %s549_s18 = smov %s551_s3 }
  0xa5   :  { %14 = sbr.rel (!%p12_p5) target bundleno = 2 (0x2), region = 66 }

</bundles_post_ra>
